<compile_context>
chip_gen: v5e
topology: v5e:2x2
jax: 0.10.0
libtpu: 0.0.40
codegen_flags: <defaults>
</compile_context>

<pallas_src>
import functools

import jax
import jax.numpy as jnp
from jax.experimental import pallas as pl
from jax.experimental.pallas import tpu as pltpu

LANE = 128        # Cin / Cout GEMM dims padded to lane width
SUBLANE = 8
M_TILE = 128      # flattened output rows per grid step

# MXU operand dtype (accumulation is always f32).  Set to jnp.float32 for a
# strict 1e-4 comparison against the f32 XLA reference.
COMPUTE_DTYPE = jnp.bfloat16

# Max-pool padding identity: exactly representable in bf16 and f32, stays
# finite through the zero-weight GEMM on discarded padded rows (unlike -inf).
_POOL_PAD = float(jnp.finfo(jnp.bfloat16).min)


def _round_up(v, m):
    return (v + m - 1) // m * m


# -----------------------------------------------------------------------------
# Pallas kernels
# -----------------------------------------------------------------------------
def _finish_tile(partial_f32, b_ref, o_ref, scratch):
    """Bias + ReLU + store; Cin-tile accumulation only when actually needed."""
    if not scratch:                        # single Cin tile: no acc round-trip
        o_ref[0] = jnp.maximum(partial_f32 + b_ref[...], 0.0).astype(o_ref.dtype)
        return

    acc_ref, = scratch
    ci = pl.program_id(3)

    @pl.when(ci == 0)
    def _():                               # fold zero-init into first partial
        acc_ref[...] = partial_f32

    @pl.when(ci > 0)
    def _():
        acc_ref[...] += partial_f32

    @pl.when(ci == pl.num_programs(3) - 1)
    def _():
        o_ref[0] = jnp.maximum(acc_ref[...] + b_ref[...], 0.0).astype(o_ref.dtype)


def _conv_taps_kernel(x_ref, w_ref, b_ref, o_ref, *scratch, k, wp, m_tile, band_rows):
    """One (image, M-tile, Cout-tile, Cin-tile) step of a KxK 'same' conv.

    x_ref  : (1, R, tCin)        flattened, spatially padded image rows
    w_ref  : (K*K, tCin, tCout)
    b_ref  : (1, tCout)
    o_ref  : (1, m_tile, tCout)
    scratch: () or (acc_ref,)    f32 accumulator only when n_cin > 1
    """
    base = pl.multiple_of(pl.program_id(1) * m_tile, m_tile)
    partial = None
    for kh in range(k):
        # Sublane-aligned dynamic band load (base % 128 == 0, wp % 8 == 0);
        # the kw shift is a static, in-register slice of the band.
        start = pl.multiple_of(base + kh * wp, SUBLANE)
        band = x_ref[0, pl.ds(start, band_rows), :]
        for kw in range(k):
            lhs = band[kw:kw + m_tile, :]
            contrib = jnp.dot(lhs, w_ref[kh * k + kw],
                              preferred_element_type=jnp.float32)
            partial = contrib if partial is None else partial + contrib
    _finish_tile(partial, b_ref, o_ref, scratch)


def _pool_conv_kernel(x_ref, w_ref, b_ref, o_ref, *scratch, k, wp, m_tile, band_rows):
    """Fused 3x3/s1/p1 max-pool -> 1x1 conv -> bias -> ReLU (pool never leaves VMEM)."""
    base = pl.multiple_of(pl.program_id(1) * m_tile, m_tile)
    pooled = None
    for kh in range(k):
        start = pl.multiple_of(base + kh * wp, SUBLANE)
        band = x_ref[0, pl.ds(start, band_rows), :]
        for kw in range(k):
            win = band[kw:kw + m_tile, :]
            pooled = win if pooled is None else jnp.maximum(pooled, win)
    partial = jnp.dot(pooled, w_ref[0], preferred_element_type=jnp.float32)
    _finish_tile(partial, b_ref, o_ref, scratch)


# -----------------------------------------------------------------------------
# Launch + host-side layout prep (pad / reshape / slice only)
# -----------------------------------------------------------------------------
def _launch(kernel_fn, xf, wt, bp, *, N, M_pad, R, kk, coutp, cinp,
            flops, bytes_accessed):
    # 256-wide Cout tile when it divides evenly (v6e/v7x 256-wide MXU), else 128.
    cout_t = 256 if coutp % 256 == 0 else LANE
    n_cin = cinp // LANE
    grid = (N, M_pad // M_TILE, coutp // cout_t, n_cin)
    scratch = [] if n_cin == 1 else [pltpu.VMEM((M_TILE, cout_t), jnp.float32)]
    return pl.pallas_call(
        kernel_fn,
        out_shape=jax.ShapeDtypeStruct((N, M_pad, coutp), jnp.float32),
        grid_spec=pltpu.PrefetchScalarGridSpec(
            num_scalar_prefetch=0,
            grid=grid,
            in_specs=[
                pl.BlockSpec((1, R, LANE), lambda n, m, j, c: (n, 0, c)),
                pl.BlockSpec((kk, LANE, cout_t), lambda n, m, j, c: (0, c, j)),
                pl.BlockSpec((1, cout_t), lambda n, m, j, c: (0, j)),
            ],
            out_specs=pl.BlockSpec((1, M_TILE, cout_t), lambda n, m, j, c: (n, m, j)),
            scratch_shapes=scratch,
        ),
        compiler_params=pltpu.CompilerParams(
            dimension_semantics=("parallel", "parallel", "parallel", "arbitrary")),
        cost_estimate=pl.CostEstimate(flops=int(flops), transcendentals=0,
                                      bytes_accessed=int(bytes_accessed)),
    )(xf, wt, bp)


def _prep_weight(w_oihw, k, cinp, coutp):
    cout, cin = w_oihw.shape[0], w_oihw.shape[1]
    wt = jnp.transpose(w_oihw, (2, 3, 1, 0)).reshape(k * k, cin, cout)
    wt = jnp.pad(wt, ((0, 0), (0, cinp - cin), (0, coutp - cout)))
    return wt.astype(COMPUTE_DTYPE)


def _prep_activation(x_nhwc, k, pad_value):
    """Spatial pad (Wp rounded to sublane) -> flatten rows -> lane-pad channels."""
    N, H, W, cin = x_nhwc.shape
    pad = (k - 1) // 2
    Hp = H + 2 * pad
    Wp = W if k == 1 else _round_up(W + 2 * pad, SUBLANE)
    cinp = _round_up(cin, LANE)
    M = H * Wp
    M_pad = _round_up(M, M_TILE)
    band_rows = _round_up(M_TILE + k - 1, SUBLANE)
    R = _round_up(max(M_pad - M_TILE + (k - 1) * Wp + band_rows, Hp * Wp), SUBLANE)

    xp = jnp.pad(x_nhwc, ((0, 0), (pad, pad), (pad, Wp - W - pad), (0, 0)),
                 constant_values=pad_value)
    xf = xp.reshape(N, Hp * Wp, cin)
    # Tail rows / padded channels are zero (padded channels hit zero weights).
    xf = jnp.pad(xf, ((0, 0), (0, R - Hp * Wp), (0, cinp - cin)))
    return xf.astype(COMPUTE_DTYPE), Wp, M, M_pad, R, band_rows, cinp


def conv_relu(x_nhwc, w_oihw, bias, k):
    """'Same'-padding (stride 1) KxK conv + bias + ReLU, taps fused in-kernel."""
    N, H, W, cin = x_nhwc.shape
    cout = w_oihw.shape[0]
    coutp = _round_up(cout, LANE)
    xf, Wp, M, M_pad, R, band_rows, cinp = _prep_activation(x_nhwc, k, 0.0)
    wt = _prep_weight(w_oihw, k, cinp, coutp)
    bp = jnp.pad(bias, (0, coutp - cout)).reshape(1, coutp)

    kernel = functools.partial(_conv_taps_kernel, k=k, wp=Wp,
                               m_tile=M_TILE, band_rows=band_rows)
    out = _launch(kernel, xf, wt, bp, N=N, M_pad=M_pad, R=R, kk=k * k,
                  coutp=coutp, cinp=cinp,
                  flops=2 * N * H * W * cin * cout * k * k,
                  bytes_accessed=4 * (N * H * W * (cin + cout) + k * k * cin * cout))

    # (N, M_pad, coutp) -> (N, H, W, cout): drop pad rows / columns / channels.
    return out[:, :M, :].reshape(N, H, Wp, coutp)[:, :, :W, :cout]


def maxpool3x3_conv1x1_relu(x_nhwc, w_oihw, bias):
    """Fused p4 branch: 3x3/s1/p1 max-pool -> 1x1 conv -> bias -> ReLU."""
    N, H, W, cin = x_nhwc.shape
    cout = w_oihw.shape[0]
    coutp = _round_up(cout, LANE)
    xf, Wp, M, M_pad, R, band_rows, cinp = _prep_activation(x_nhwc, 3, _POOL_PAD)
    wt = _prep_weight(w_oihw, 1, cinp, coutp)           # (1, cinp, coutp)
    bp = jnp.pad(bias, (0, coutp - cout)).reshape(1, coutp)

    kernel = functools.partial(_pool_conv_kernel, k=3, wp=Wp,
                               m_tile=M_TILE, band_rows=band_rows)
    out = _launch(kernel, xf, wt, bp, N=N, M_pad=M_pad, R=R, kk=1,
                  coutp=coutp, cinp=cinp,
                  flops=2 * N * H * W * cin * cout + 9 * N * H * W * cin,
                  bytes_accessed=4 * (N * H * W * (cin + cout) + cin * cout))

    return out[:, :M, :].reshape(N, H, Wp, coutp)[:, :, :W, :cout]


# -----------------------------------------------------------------------------
# Inception forward (matches the PyTorch module)
# -----------------------------------------------------------------------------
@jax.jit
def inception_forward(x_nchw, params):
    x = jnp.transpose(x_nchw, (0, 2, 3, 1))            # NCHW -> NHWC

    c1 = params["p1_1_w"].shape[0]
    c2_0 = params["p2_1_w"].shape[0]
    c3_0 = params["p3_1_w"].shape[0]

    # Fuse the three branch-entry 1x1 convs into one lane-dense GEMM (x read once).
    w_entry = jnp.concatenate(
        [params["p1_1_w"], params["p2_1_w"], params["p3_1_w"]], axis=0)
    b_entry = jnp.concatenate(
        [params["p1_1_b"], params["p2_1_b"], params["p3_1_b"]], axis=0)
    entry = conv_relu(x, w_entry, b_entry, 1)          # (N, H, W, c1+c2_0+c3_0)

    p1 = entry[..., :c1]
    p2 = conv_relu(entry[..., c1:c1 + c2_0], params["p2_2_w"], params["p2_2_b"], 3)
    p3 = conv_relu(entry[..., c1 + c2_0:c1 + c2_0 + c3_0],
                   params["p3_2_w"], params["p3_2_b"], 5)
    p4 = maxpool3x3_conv1x1_relu(x, params["p4_2_w"], params["p4_2_b"])

    out = jnp.concatenate([p1, p2, p3, p4], axis=-1)   # channel concat
    return jnp.transpose(out, (0, 3, 1, 2))            # NHWC -> NCHW


# -----------------------------------------------------------------------------
# Pure-JAX f32 reference (correctness check)
# -----------------------------------------------------------------------------
def inception_ref(x, params):
    def conv(inp, w, b, pad):
        y = jax.lax.conv_general_dilated(
            inp, w, window_strides=(1, 1),
            padding=[(pad, pad), (pad, pad)],
            dimension_numbers=("NCHW", "OIHW", "NCHW"))
        return jax.nn.relu(y + b[None, :, None, None])

    p1 = conv(x, params["p1_1_w"], params["p1_1_b"], 0)
    p2 = conv(conv(x, params["p2_1_w"], params["p2_1_b"], 0),
              params["p2_2_w"], params["p2_2_b"], 1)
    p3 = conv(conv(x, params["p3_1_w"], params["p3_1_b"], 0),
              params["p3_2_w"], params["p3_2_b"], 2)
    pool = jax.lax.reduce_window(
        x, -jnp.inf, jax.lax.max,
        window_dimensions=(1, 1, 3, 3), window_strides=(1, 1, 1, 1),
        padding=[(0, 0), (0, 0), (1, 1), (1, 1)])
    p4 = conv(pool, params["p4_2_w"], params["p4_2_b"], 0)
    return jnp.concatenate([p1, p2, p3, p4], axis=1)


# -----------------------------------------------------------------------------
# Deterministic parameter init + driver
# -----------------------------------------------------------------------------
def init_params(key, in_channels, c1, c2, c3, c4):
    shapes = {
        "p1_1_w": (c1, in_channels, 1, 1),      "p1_1_b": (c1,),
        "p2_1_w": (c2[0], in_channels, 1, 1),   "p2_1_b": (c2[0],),
        "p2_2_w": (c2[1], c2[0], 3, 3),         "p2_2_b": (c2[1],),
        "p3_1_w": (c3[0], in_channels, 1, 1),   "p3_1_b": (c3[0],),
        "p3_2_w": (c3[1], c3[0], 5, 5),         "p3_2_b": (c3[1],),
        "p4_2_w": (c4, in_channels, 1, 1),      "p4_2_b": (c4,),
    }
    params = {}
    keys = jax.random.split(key, len(shapes))
    for k_rng, (name, shape) in zip(keys, sorted(shapes.items())):
        params[name] = 0.1 * jax.random.normal(k_rng, shape, dtype=jnp.float32)
    return params


if __name__ == "__main__":
    key = jax.random.PRNGKey(0)
    k_x, k_p = jax.random.split(key)

    # Small shapes consistent with the module: batch=2, in_channels=4, 16x16.
    in_channels, c1, c2, c3, c4 = 4, 4, (4, 8), (2, 4), 4
    x = jax.random.normal(k_x, (2, in_channels, 16, 16), dtype=jnp.float32)
    params = init_params(k_p, in_channels, c1, c2, c3, c4)

    out = jax.block_until_ready(inception_forward(x, params))
    assert out.shape == (2, c1 + c2[1] + c3[1] + c4, 16, 16), out.shape

    ref = jax.block_until_ready(inception_ref(x, params))
    # bf16 MXU operands (f32 accumulation) -> loosened tolerance vs f32 reference.
    strict_f32 = jnp.dtype(COMPUTE_DTYPE) == jnp.dtype(jnp.float32)
    tol = 1e-4 if strict_f32 else 2e-2
    if not jnp.allclose(out, ref, rtol=tol, atol=tol):
        err = float(jnp.max(jnp.abs(out - ref)))
        raise AssertionError(
            f"Pallas Inception output mismatch vs JAX reference (max abs err {err})")

    print("KERNEL_OK")
</pallas_src>

<mosaic_0001>
module attributes {stable_mosaic.version = 11 : i64} {
  func.func @_conv_taps_kernel(%arg0: i32, %arg1: i32, %arg2: i32, %arg3: i32, %arg4: memref<1x256x128xbf16, #tpu.memory_space<vmem>>, %arg5: memref<1x128x128xbf16, #tpu.memory_space<vmem>>, %arg6: memref<1x128xf32, #tpu.memory_space<vmem>>, %arg7: memref<1x128x128xf32, #tpu.memory_space<vmem>>) attributes {dimension_semantics = [#tpu.dimension_semantics<parallel>, #tpu.dimension_semantics<parallel>, #tpu.dimension_semantics<parallel>, #tpu.dimension_semantics<arbitrary>], iteration_bounds = array<i64: 2, 2, 1, 1>, scalar_prefetch = 0 : i64, scratch_operands = 0 : i64, tpu.core_type = #tpu.core_type<tc>, window_params = [{transform_indices = @transform_0, window_bounds = array<i64: 1, 256, 128>}, {transform_indices = @transform_1, window_bounds = array<i64: 1, 128, 128>}, {transform_indices = @transform_2, window_bounds = array<i64: 1, 128>}, {transform_indices = @transform_3, window_bounds = array<i64: 1, 128, 128>}]} {
    %c128_i32 = arith.constant 128 : i32
    %0 = arith.muli %arg1, %c128_i32 : i32
    %1 = tpu.assume_multiple %0, 128 : i32
    %c0_i32 = arith.constant 0 : i32
    %2 = arith.addi %1, %c0_i32 : i32
    %3 = tpu.assume_multiple %2, 8 : i32
    %c0 = arith.constant 0 : index
    %4 = arith.index_cast %3 : i32 to index
    %c0_0 = arith.constant 0 : index
    %5 = vector.load %arg4[%c0, %4, %c0_0] : memref<1x256x128xbf16, #tpu.memory_space<vmem>>, vector<1x128x128xbf16>
    %6 = vector.shape_cast %5 : vector<1x128x128xbf16> to vector<128x128xbf16>
    %c0_1 = arith.constant 0 : index
    %c0_2 = arith.constant 0 : index
    %c0_3 = arith.constant 0 : index
    %7 = vector.load %arg5[%c0_1, %c0_2, %c0_3] : memref<1x128x128xbf16, #tpu.memory_space<vmem>>, vector<1x128x128xbf16>
    %8 = vector.shape_cast %7 : vector<1x128x128xbf16> to vector<128x128xbf16>
    %cst = arith.constant dense<0.000000e+00> : vector<128x128xf32>
    %9 = tpu.matmul %6, %8, %cst {dimension_numbers = #tpu.dot_dimension_numbers<[1], [0], [0], [1], [0, 0, 1, 1], [], []>} : vector<128x128xbf16>, vector<128x128xbf16>, vector<128x128xf32> -> vector<128x128xf32>
    %c0_4 = arith.constant 0 : index
    %c0_5 = arith.constant 0 : index
    %10 = vector.load %arg6[%c0_4, %c0_5] : memref<1x128xf32, #tpu.memory_space<vmem>>, vector<1x128xf32>
    %11 = vector.broadcast %10 : vector<1x128xf32> to vector<128x128xf32>
    %12 = arith.addf %9, %11 : vector<128x128xf32>
    %cst_6 = arith.constant 0.000000e+00 : f32
    %13 = vector.broadcast %cst_6 : f32 to vector<128x128xf32>
    %14 = arith.maximumf %12, %13 : vector<128x128xf32>
    %c0_7 = arith.constant 0 : index
    %c0_8 = arith.constant 0 : index
    %c0_9 = arith.constant 0 : index
    %15 = vector.load %arg7[%c0_7, %c0_8, %c0_9] : memref<1x128x128xf32, #tpu.memory_space<vmem>>, vector<1x128x128xf32>
    %16 = vector.shape_cast %15 : vector<1x128x128xf32> to vector<128x128xf32>
    %17 = vector.shape_cast %14 : vector<128x128xf32> to vector<1x128x128xf32>
    tpu.vector_store %arg7[%c0_7, %c0_8, %c0_9], %17 {strides = array<i32>} : memref<1x128x128xf32, #tpu.memory_space<vmem>>, vector<1x128x128xf32>,
    return
  }
  func.func @transform_0(%arg0: i32, %arg1: i32, %arg2: i32, %arg3: i32) -> (i32, i32, i32) {
    %c0_i32 = arith.constant 0 : i32
    %c0_i32_0 = arith.constant 0 : i32
    return %arg0, %c0_i32, %arg3 : i32, i32, i32
  }
  func.func @transform_1(%arg0: i32, %arg1: i32, %arg2: i32, %arg3: i32) -> (i32, i32, i32) {
    %c0_i32 = arith.constant 0 : i32
    %c0_i32_0 = arith.constant 0 : i32
    return %c0_i32, %arg3, %arg2 : i32, i32, i32
  }
  func.func @transform_2(%arg0: i32, %arg1: i32, %arg2: i32, %arg3: i32) -> (i32, i32) {
    %c0_i32 = arith.constant 0 : i32
    %c0_i32_0 = arith.constant 0 : i32
    return %c0_i32, %arg2 : i32, i32
  }
  func.func @transform_3(%arg0: i32, %arg1: i32, %arg2: i32, %arg3: i32) -> (i32, i32, i32) {
    %c0_i32 = arith.constant 0 : i32
    return %arg0, %arg1, %arg2 : i32, i32, i32
  }
}

module attributes {stable_mosaic.version = 11 : i64} {
  func.func @_conv_taps_kernel(%arg0: i32, %arg1: i32, %arg2: i32, %arg3: i32, %arg4: memref<1x488x128xbf16, #tpu.memory_space<vmem>>, %arg5: memref<25x128x128xbf16, #tpu.memory_space<vmem>>, %arg6: memref<1x128xf32, #tpu.memory_space<vmem>>, %arg7: memref<1x128x128xf32, #tpu.memory_space<vmem>>) attributes {dimension_semantics = [#tpu.dimension_semantics<parallel>, #tpu.dimension_semantics<parallel>, #tpu.dimension_semantics<parallel>, #tpu.dimension_semantics<arbitrary>], iteration_bounds = array<i64: 2, 3, 1, 1>, scalar_prefetch = 0 : i64, scratch_operands = 0 : i64, tpu.core_type = #tpu.core_type<tc>, window_params = [{transform_indices = @transform_0, window_bounds = array<i64: 1, 488, 128>}, {transform_indices = @transform_1, window_bounds = array<i64: 25, 128, 128>}, {transform_indices = @transform_2, window_bounds = array<i64: 1, 128>}, {transform_indices = @transform_3, window_bounds = array<i64: 1, 128, 128>}]} {
    %c128_i32 = arith.constant 128 : i32
    %0 = arith.muli %arg1, %c128_i32 : i32
    %1 = tpu.assume_multiple %0, 128 : i32
    %c0_i32 = arith.constant 0 : i32
    %2 = arith.addi %1, %c0_i32 : i32
    %3 = tpu.assume_multiple %2, 8 : i32
    %c0 = arith.constant 0 : index
    %4 = arith.index_cast %3 : i32 to index
    %c0_0 = arith.constant 0 : index
    %5 = vector.load %arg4[%c0, %4, %c0_0] : memref<1x488x128xbf16, #tpu.memory_space<vmem>>, vector<1x136x128xbf16>
    %6 = vector.shape_cast %5 : vector<1x136x128xbf16> to vector<136x128xbf16>
    %7 = vector.extract_strided_slice %6 {offsets = [0, 0], sizes = [128, 128], strides = [1, 1]} : vector<136x128xbf16> to vector<128x128xbf16>
    %c0_1 = arith.constant 0 : index
    %c0_2 = arith.constant 0 : index
    %c0_3 = arith.constant 0 : index
    %8 = vector.load %arg5[%c0_1, %c0_2, %c0_3] : memref<25x128x128xbf16, #tpu.memory_space<vmem>>, vector<1x128x128xbf16>
    %9 = vector.shape_cast %8 : vector<1x128x128xbf16> to vector<128x128xbf16>
    %cst = arith.constant dense<0.000000e+00> : vector<128x128xf32>
    %10 = tpu.matmul %7, %9, %cst {dimension_numbers = #tpu.dot_dimension_numbers<[1], [0], [0], [1], [0, 0, 1, 1], [], []>} : vector<128x128xbf16>, vector<128x128xbf16>, vector<128x128xf32> -> vector<128x128xf32>
    %11 = vector.extract_strided_slice %6 {offsets = [1, 0], sizes = [128, 128], strides = [1, 1]} : vector<136x128xbf16> to vector<128x128xbf16>
    %c1 = arith.constant 1 : index
    %c0_4 = arith.constant 0 : index
    %c0_5 = arith.constant 0 : index
    %12 = vector.load %arg5[%c1, %c0_4, %c0_5] : memref<25x128x128xbf16, #tpu.memory_space<vmem>>, vector<1x128x128xbf16>
    %13 = vector.shape_cast %12 : vector<1x128x128xbf16> to vector<128x128xbf16>
    %cst_6 = arith.constant dense<0.000000e+00> : vector<128x128xf32>
    %14 = tpu.matmul %11, %13, %cst_6 {dimension_numbers = #tpu.dot_dimension_numbers<[1], [0], [0], [1], [0, 0, 1, 1], [], []>} : vector<128x128xbf16>, vector<128x128xbf16>, vector<128x128xf32> -> vector<128x128xf32>
    %15 = arith.addf %10, %14 : vector<128x128xf32>
    %16 = vector.extract_strided_slice %6 {offsets = [2, 0], sizes = [128, 128], strides = [1, 1]} : vector<136x128xbf16> to vector<128x128xbf16>
    %c2 = arith.constant 2 : index
    %c0_7 = arith.constant 0 : index
    %c0_8 = arith.constant 0 : index
    %17 = vector.load %arg5[%c2, %c0_7, %c0_8] : memref<25x128x128xbf16, #tpu.memory_space<vmem>>, vector<1x128x128xbf16>
    %18 = vector.shape_cast %17 : vector<1x128x128xbf16> to vector<128x128xbf16>
    %cst_9 = arith.constant dense<0.000000e+00> : vector<128x128xf32>
    %19 = tpu.matmul %16, %18, %cst_9 {dimension_numbers = #tpu.dot_dimension_numbers<[1], [0], [0], [1], [0, 0, 1, 1], [], []>} : vector<128x128xbf16>, vector<128x128xbf16>, vector<128x128xf32> -> vector<128x128xf32>
    %20 = arith.addf %15, %19 : vector<128x128xf32>
    %21 = vector.extract_strided_slice %6 {offsets = [3, 0], sizes = [128, 128], strides = [1, 1]} : vector<136x128xbf16> to vector<128x128xbf16>
    %c3 = arith.constant 3 : index
    %c0_10 = arith.constant 0 : index
    %c0_11 = arith.constant 0 : index
    %22 = vector.load %arg5[%c3, %c0_10, %c0_11] : memref<25x128x128xbf16, #tpu.memory_space<vmem>>, vector<1x128x128xbf16>
    %23 = vector.shape_cast %22 : vector<1x128x128xbf16> to vector<128x128xbf16>
    %cst_12 = arith.constant dense<0.000000e+00> : vector<128x128xf32>
    %24 = tpu.matmul %21, %23, %cst_12 {dimension_numbers = #tpu.dot_dimension_numbers<[1], [0], [0], [1], [0, 0, 1, 1], [], []>} : vector<128x128xbf16>, vector<128x128xbf16>, vector<128x128xf32> -> vector<128x128xf32>
    %25 = arith.addf %20, %24 : vector<128x128xf32>
    %26 = vector.extract_strided_slice %6 {offsets = [4, 0], sizes = [128, 128], strides = [1, 1]} : vector<136x128xbf16> to vector<128x128xbf16>
    %c4 = arith.constant 4 : index
    %c0_13 = arith.constant 0 : index
    %c0_14 = arith.constant 0 : index
    %27 = vector.load %arg5[%c4, %c0_13, %c0_14] : memref<25x128x128xbf16, #tpu.memory_space<vmem>>, vector<1x128x128xbf16>
    %28 = vector.shape_cast %27 : vector<1x128x128xbf16> to vector<128x128xbf16>
    %cst_15 = arith.constant dense<0.000000e+00> : vector<128x128xf32>
    %29 = tpu.matmul %26, %28, %cst_15 {dimension_numbers = #tpu.dot_dimension_numbers<[1], [0], [0], [1], [0, 0, 1, 1], [], []>} : vector<128x128xbf16>, vector<128x128xbf16>, vector<128x128xf32> -> vector<128x128xf32>
    %30 = arith.addf %25, %29 : vector<128x128xf32>
    %c24_i32 = arith.constant 24 : i32
    %31 = arith.addi %1, %c24_i32 : i32
    %32 = tpu.assume_multiple %31, 8 : i32
    %c0_16 = arith.constant 0 : index
    %33 = arith.index_cast %32 : i32 to index
    %c0_17 = arith.constant 0 : index
    %34 = vector.load %arg4[%c0_16, %33, %c0_17] : memref<1x488x128xbf16, #tpu.memory_space<vmem>>, vector<1x136x128xbf16>
    %35 = vector.shape_cast %34 : vector<1x136x128xbf16> to vector<136x128xbf16>
    %36 = vector.extract_strided_slice %35 {offsets = [0, 0], sizes = [128, 128], strides = [1, 1]} : vector<136x128xbf16> to vector<128x128xbf16>
    %c5 = arith.constant 5 : index
    %c0_18 = arith.constant 0 : index
    %c0_19 = arith.constant 0 : index
    %37 = vector.load %arg5[%c5, %c0_18, %c0_19] : memref<25x128x128xbf16, #tpu.memory_space<vmem>>, vector<1x128x128xbf16>
    %38 = vector.shape_cast %37 : vector<1x128x128xbf16> to vector<128x128xbf16>
    %cst_20 = arith.constant dense<0.000000e+00> : vector<128x128xf32>
    %39 = tpu.matmul %36, %38, %cst_20 {dimension_numbers = #tpu.dot_dimension_numbers<[1], [0], [0], [1], [0, 0, 1, 1], [], []>} : vector<128x128xbf16>, vector<128x128xbf16>, vector<128x128xf32> -> vector<128x128xf32>
    %40 = arith.addf %30, %39 : vector<128x128xf32>
    %41 = vector.extract_strided_slice %35 {offsets = [1, 0], sizes = [128, 128], strides = [1, 1]} : vector<136x128xbf16> to vector<128x128xbf16>
    %c6 = arith.constant 6 : index
    %c0_21 = arith.constant 0 : index
    %c0_22 = arith.constant 0 : index
    %42 = vector.load %arg5[%c6, %c0_21, %c0_22] : memref<25x128x128xbf16, #tpu.memory_space<vmem>>, vector<1x128x128xbf16>
    %43 = vector.shape_cast %42 : vector<1x128x128xbf16> to vector<128x128xbf16>
    %cst_23 = arith.constant dense<0.000000e+00> : vector<128x128xf32>
    %44 = tpu.matmul %41, %43, %cst_23 {dimension_numbers = #tpu.dot_dimension_numbers<[1], [0], [0], [1], [0, 0, 1, 1], [], []>} : vector<128x128xbf16>, vector<128x128xbf16>, vector<128x128xf32> -> vector<128x128xf32>
    %45 = arith.addf %40, %44 : vector<128x128xf32>
    %46 = vector.extract_strided_slice %35 {offsets = [2, 0], sizes = [128, 128], strides = [1, 1]} : vector<136x128xbf16> to vector<128x128xbf16>
    %c7 = arith.constant 7 : index
    %c0_24 = arith.constant 0 : index
    %c0_25 = arith.constant 0 : index
    %47 = vector.load %arg5[%c7, %c0_24, %c0_25] : memref<25x128x128xbf16, #tpu.memory_space<vmem>>, vector<1x128x128xbf16>
    %48 = vector.shape_cast %47 : vector<1x128x128xbf16> to vector<128x128xbf16>
    %cst_26 = arith.constant dense<0.000000e+00> : vector<128x128xf32>
    %49 = tpu.matmul %46, %48, %cst_26 {dimension_numbers = #tpu.dot_dimension_numbers<[1], [0], [0], [1], [0, 0, 1, 1], [], []>} : vector<128x128xbf16>, vector<128x128xbf16>, vector<128x128xf32> -> vector<128x128xf32>
    %50 = arith.addf %45, %49 : vector<128x128xf32>
    %51 = vector.extract_strided_slice %35 {offsets = [3, 0], sizes = [128, 128], strides = [1, 1]} : vector<136x128xbf16> to vector<128x128xbf16>
    %c8 = arith.constant 8 : index
    %c0_27 = arith.constant 0 : index
    %c0_28 = arith.constant 0 : index
    %52 = vector.load %arg5[%c8, %c0_27, %c0_28] : memref<25x128x128xbf16, #tpu.memory_space<vmem>>, vector<1x128x128xbf16>
    %53 = vector.shape_cast %52 : vector<1x128x128xbf16> to vector<128x128xbf16>
    %cst_29 = arith.constant dense<0.000000e+00> : vector<128x128xf32>
    %54 = tpu.matmul %51, %53, %cst_29 {dimension_numbers = #tpu.dot_dimension_numbers<[1], [0], [0], [1], [0, 0, 1, 1], [], []>} : vector<128x128xbf16>, vector<128x128xbf16>, vector<128x128xf32> -> vector<128x128xf32>
    %55 = arith.addf %50, %54 : vector<128x128xf32>
    %56 = vector.extract_strided_slice %35 {offsets = [4, 0], sizes = [128, 128], strides = [1, 1]} : vector<136x128xbf16> to vector<128x128xbf16>
    %c9 = arith.constant 9 : index
    %c0_30 = arith.constant 0 : index
    %c0_31 = arith.constant 0 : index
    %57 = vector.load %arg5[%c9, %c0_30, %c0_31] : memref<25x128x128xbf16, #tpu.memory_space<vmem>>, vector<1x128x128xbf16>
    %58 = vector.shape_cast %57 : vector<1x128x128xbf16> to vector<128x128xbf16>
    %cst_32 = arith.constant dense<0.000000e+00> : vector<128x128xf32>
    %59 = tpu.matmul %56, %58, %cst_32 {dimension_numbers = #tpu.dot_dimension_numbers<[1], [0], [0], [1], [0, 0, 1, 1], [], []>} : vector<128x128xbf16>, vector<128x128xbf16>, vector<128x128xf32> -> vector<128x128xf32>
    %60 = arith.addf %55, %59 : vector<128x128xf32>
    %c48_i32 = arith.constant 48 : i32
    %61 = arith.addi %1, %c48_i32 : i32
    %62 = tpu.assume_multiple %61, 8 : i32
    %c0_33 = arith.constant 0 : index
    %63 = arith.index_cast %62 : i32 to index
    %c0_34 = arith.constant 0 : index
    %64 = vector.load %arg4[%c0_33, %63, %c0_34] : memref<1x488x128xbf16, #tpu.memory_space<vmem>>, vector<1x136x128xbf16>
    %65 = vector.shape_cast %64 : vector<1x136x128xbf16> to vector<136x128xbf16>
    %66 = vector.extract_strided_slice %65 {offsets = [0, 0], sizes = [128, 128], strides = [1, 1]} : vector<136x128xbf16> to vector<128x128xbf16>
    %c10 = arith.constant 10 : index
    %c0_35 = arith.constant 0 : index
    %c0_36 = arith.constant 0 : index
    %67 = vector.load %arg5[%c10, %c0_35, %c0_36] : memref<25x128x128xbf16, #tpu.memory_space<vmem>>, vector<1x128x128xbf16>
    %68 = vector.shape_cast %67 : vector<1x128x128xbf16> to vector<128x128xbf16>
    %cst_37 = arith.constant dense<0.000000e+00> : vector<128x128xf32>
    %69 = tpu.matmul %66, %68, %cst_37 {dimension_numbers = #tpu.dot_dimension_numbers<[1], [0], [0], [1], [0, 0, 1, 1], [], []>} : vector<128x128xbf16>, vector<128x128xbf16>, vector<128x128xf32> -> vector<128x128xf32>
    %70 = arith.addf %60, %69 : vector<128x128xf32>
    %71 = vector.extract_strided_slice %65 {offsets = [1, 0], sizes = [128, 128], strides = [1, 1]} : vector<136x128xbf16> to vector<128x128xbf16>
    %c11 = arith.constant 11 : index
    %c0_38 = arith.constant 0 : index
    %c0_39 = arith.constant 0 : index
    %72 = vector.load %arg5[%c11, %c0_38, %c0_39] : memref<25x128x128xbf16, #tpu.memory_space<vmem>>, vector<1x128x128xbf16>
    %73 = vector.shape_cast %72 : vector<1x128x128xbf16> to vector<128x128xbf16>
    %cst_40 = arith.constant dense<0.000000e+00> : vector<128x128xf32>
    %74 = tpu.matmul %71, %73, %cst_40 {dimension_numbers = #tpu.dot_dimension_numbers<[1], [0], [0], [1], [0, 0, 1, 1], [], []>} : vector<128x128xbf16>, vector<128x128xbf16>, vector<128x128xf32> -> vector<128x128xf32>
    %75 = arith.addf %70, %74 : vector<128x128xf32>
    %76 = vector.extract_strided_slice %65 {offsets = [2, 0], sizes = [128, 128], strides = [1, 1]} : vector<136x128xbf16> to vector<128x128xbf16>
    %c12 = arith.constant 12 : index
    %c0_41 = arith.constant 0 : index
    %c0_42 = arith.constant 0 : index
    %77 = vector.load %arg5[%c12, %c0_41, %c0_42] : memref<25x128x128xbf16, #tpu.memory_space<vmem>>, vector<1x128x128xbf16>
    %78 = vector.shape_cast %77 : vector<1x128x128xbf16> to vector<128x128xbf16>
    %cst_43 = arith.constant dense<0.000000e+00> : vector<128x128xf32>
    %79 = tpu.matmul %76, %78, %cst_43 {dimension_numbers = #tpu.dot_dimension_numbers<[1], [0], [0], [1], [0, 0, 1, 1], [], []>} : vector<128x128xbf16>, vector<128x128xbf16>, vector<128x128xf32> -> vector<128x128xf32>
    %80 = arith.addf %75, %79 : vector<128x128xf32>
    %81 = vector.extract_strided_slice %65 {offsets = [3, 0], sizes = [128, 128], strides = [1, 1]} : vector<136x128xbf16> to vector<128x128xbf16>
    %c13 = arith.constant 13 : index
    %c0_44 = arith.constant 0 : index
    %c0_45 = arith.constant 0 : index
    %82 = vector.load %arg5[%c13, %c0_44, %c0_45] : memref<25x128x128xbf16, #tpu.memory_space<vmem>>, vector<1x128x128xbf16>
    %83 = vector.shape_cast %82 : vector<1x128x128xbf16> to vector<128x128xbf16>
    %cst_46 = arith.constant dense<0.000000e+00> : vector<128x128xf32>
    %84 = tpu.matmul %81, %83, %cst_46 {dimension_numbers = #tpu.dot_dimension_numbers<[1], [0], [0], [1], [0, 0, 1, 1], [], []>} : vector<128x128xbf16>, vector<128x128xbf16>, vector<128x128xf32> -> vector<128x128xf32>
    %85 = arith.addf %80, %84 : vector<128x128xf32>
    %86 = vector.extract_strided_slice %65 {offsets = [4, 0], sizes = [128, 128], strides = [1, 1]} : vector<136x128xbf16> to vector<128x128xbf16>
    %c14 = arith.constant 14 : index
    %c0_47 = arith.constant 0 : index
    %c0_48 = arith.constant 0 : index
    %87 = vector.load %arg5[%c14, %c0_47, %c0_48] : memref<25x128x128xbf16, #tpu.memory_space<vmem>>, vector<1x128x128xbf16>
    %88 = vector.shape_cast %87 : vector<1x128x128xbf16> to vector<128x128xbf16>
    %cst_49 = arith.constant dense<0.000000e+00> : vector<128x128xf32>
    %89 = tpu.matmul %86, %88, %cst_49 {dimension_numbers = #tpu.dot_dimension_numbers<[1], [0], [0], [1], [0, 0, 1, 1], [], []>} : vector<128x128xbf16>, vector<128x128xbf16>, vector<128x128xf32> -> vector<128x128xf32>
    %90 = arith.addf %85, %89 : vector<128x128xf32>
    %c72_i32 = arith.constant 72 : i32
    %91 = arith.addi %1, %c72_i32 : i32
    %92 = tpu.assume_multiple %91, 8 : i32
    %c0_50 = arith.constant 0 : index
    %93 = arith.index_cast %92 : i32 to index
    %c0_51 = arith.constant 0 : index
    %94 = vector.load %arg4[%c0_50, %93, %c0_51] : memref<1x488x128xbf16, #tpu.memory_space<vmem>>, vector<1x136x128xbf16>
    %95 = vector.shape_cast %94 : vector<1x136x128xbf16> to vector<136x128xbf16>
    %96 = vector.extract_strided_slice %95 {offsets = [0, 0], sizes = [128, 128], strides = [1, 1]} : vector<136x128xbf16> to vector<128x128xbf16>
    %c15 = arith.constant 15 : index
    %c0_52 = arith.constant 0 : index
    %c0_53 = arith.constant 0 : index
    %97 = vector.load %arg5[%c15, %c0_52, %c0_53] : memref<25x128x128xbf16, #tpu.memory_space<vmem>>, vector<1x128x128xbf16>
    %98 = vector.shape_cast %97 : vector<1x128x128xbf16> to vector<128x128xbf16>
    %cst_54 = arith.constant dense<0.000000e+00> : vector<128x128xf32>
    %99 = tpu.matmul %96, %98, %cst_54 {dimension_numbers = #tpu.dot_dimension_numbers<[1], [0], [0], [1], [0, 0, 1, 1], [], []>} : vector<128x128xbf16>, vector<128x128xbf16>, vector<128x128xf32> -> vector<128x128xf32>
    %100 = arith.addf %90, %99 : vector<128x128xf32>
    %101 = vector.extract_strided_slice %95 {offsets = [1, 0], sizes = [128, 128], strides = [1, 1]} : vector<136x128xbf16> to vector<128x128xbf16>
    %c16 = arith.constant 16 : index
    %c0_55 = arith.constant 0 : index
    %c0_56 = arith.constant 0 : index
    %102 = vector.load %arg5[%c16, %c0_55, %c0_56] : memref<25x128x128xbf16, #tpu.memory_space<vmem>>, vector<1x128x128xbf16>
    %103 = vector.shape_cast %102 : vector<1x128x128xbf16> to vector<128x128xbf16>
    %cst_57 = arith.constant dense<0.000000e+00> : vector<128x128xf32>
    %104 = tpu.matmul %101, %103, %cst_57 {dimension_numbers = #tpu.dot_dimension_numbers<[1], [0], [0], [1], [0, 0, 1, 1], [], []>} : vector<128x128xbf16>, vector<128x128xbf16>, vector<128x128xf32> -> vector<128x128xf32>
    %105 = arith.addf %100, %104 : vector<128x128xf32>
    %106 = vector.extract_strided_slice %95 {offsets = [2, 0], sizes = [128, 128], strides = [1, 1]} : vector<136x128xbf16> to vector<128x128xbf16>
    %c17 = arith.constant 17 : index
    %c0_58 = arith.constant 0 : index
    %c0_59 = arith.constant 0 : index
    %107 = vector.load %arg5[%c17, %c0_58, %c0_59] : memref<25x128x128xbf16, #tpu.memory_space<vmem>>, vector<1x128x128xbf16>
    %108 = vector.shape_cast %107 : vector<1x128x128xbf16> to vector<128x128xbf16>
    %cst_60 = arith.constant dense<0.000000e+00> : vector<128x128xf32>
    %109 = tpu.matmul %106, %108, %cst_60 {dimension_numbers = #tpu.dot_dimension_numbers<[1], [0], [0], [1], [0, 0, 1, 1], [], []>} : vector<128x128xbf16>, vector<128x128xbf16>, vector<128x128xf32> -> vector<128x128xf32>
    %110 = arith.addf %105, %109 : vector<128x128xf32>
    %111 = vector.extract_strided_slice %95 {offsets = [3, 0], sizes = [128, 128], strides = [1, 1]} : vector<136x128xbf16> to vector<128x128xbf16>
    %c18 = arith.constant 18 : index
    %c0_61 = arith.constant 0 : index
    %c0_62 = arith.constant 0 : index
    %112 = vector.load %arg5[%c18, %c0_61, %c0_62] : memref<25x128x128xbf16, #tpu.memory_space<vmem>>, vector<1x128x128xbf16>
    %113 = vector.shape_cast %112 : vector<1x128x128xbf16> to vector<128x128xbf16>
    %cst_63 = arith.constant dense<0.000000e+00> : vector<128x128xf32>
    %114 = tpu.matmul %111, %113, %cst_63 {dimension_numbers = #tpu.dot_dimension_numbers<[1], [0], [0], [1], [0, 0, 1, 1], [], []>} : vector<128x128xbf16>, vector<128x128xbf16>, vector<128x128xf32> -> vector<128x128xf32>
    %115 = arith.addf %110, %114 : vector<128x128xf32>
    %116 = vector.extract_strided_slice %95 {offsets = [4, 0], sizes = [128, 128], strides = [1, 1]} : vector<136x128xbf16> to vector<128x128xbf16>
    %c19 = arith.constant 19 : index
    %c0_64 = arith.constant 0 : index
    %c0_65 = arith.constant 0 : index
    %117 = vector.load %arg5[%c19, %c0_64, %c0_65] : memref<25x128x128xbf16, #tpu.memory_space<vmem>>, vector<1x128x128xbf16>
    %118 = vector.shape_cast %117 : vector<1x128x128xbf16> to vector<128x128xbf16>
    %cst_66 = arith.constant dense<0.000000e+00> : vector<128x128xf32>
    %119 = tpu.matmul %116, %118, %cst_66 {dimension_numbers = #tpu.dot_dimension_numbers<[1], [0], [0], [1], [0, 0, 1, 1], [], []>} : vector<128x128xbf16>, vector<128x128xbf16>, vector<128x128xf32> -> vector<128x128xf32>
    %120 = arith.addf %115, %119 : vector<128x128xf32>
    %c96_i32 = arith.constant 96 : i32
    %121 = arith.addi %1, %c96_i32 : i32
    %122 = tpu.assume_multiple %121, 8 : i32
    %c0_67 = arith.constant 0 : index
    %123 = arith.index_cast %122 : i32 to index
    %c0_68 = arith.constant 0 : index
    %124 = vector.load %arg4[%c0_67, %123, %c0_68] : memref<1x488x128xbf16, #tpu.memory_space<vmem>>, vector<1x136x128xbf16>
    %125 = vector.shape_cast %124 : vector<1x136x128xbf16> to vector<136x128xbf16>
    %126 = vector.extract_strided_slice %125 {offsets = [0, 0], sizes = [128, 128], strides = [1, 1]} : vector<136x128xbf16> to vector<128x128xbf16>
    %c20 = arith.constant 20 : index
    %c0_69 = arith.constant 0 : index
    %c0_70 = arith.constant 0 : index
    %127 = vector.load %arg5[%c20, %c0_69, %c0_70] : memref<25x128x128xbf16, #tpu.memory_space<vmem>>, vector<1x128x128xbf16>
    %128 = vector.shape_cast %127 : vector<1x128x128xbf16> to vector<128x128xbf16>
    %cst_71 = arith.constant dense<0.000000e+00> : vector<128x128xf32>
    %129 = tpu.matmul %126, %128, %cst_71 {dimension_numbers = #tpu.dot_dimension_numbers<[1], [0], [0], [1], [0, 0, 1, 1], [], []>} : vector<128x128xbf16>, vector<128x128xbf16>, vector<128x128xf32> -> vector<128x128xf32>
    %130 = arith.addf %120, %129 : vector<128x128xf32>
    %131 = vector.extract_strided_slice %125 {offsets = [1, 0], sizes = [128, 128], strides = [1, 1]} : vector<136x128xbf16> to vector<128x128xbf16>
    %c21 = arith.constant 21 : index
    %c0_72 = arith.constant 0 : index
    %c0_73 = arith.constant 0 : index
    %132 = vector.load %arg5[%c21, %c0_72, %c0_73] : memref<25x128x128xbf16, #tpu.memory_space<vmem>>, vector<1x128x128xbf16>
    %133 = vector.shape_cast %132 : vector<1x128x128xbf16> to vector<128x128xbf16>
    %cst_74 = arith.constant dense<0.000000e+00> : vector<128x128xf32>
    %134 = tpu.matmul %131, %133, %cst_74 {dimension_numbers = #tpu.dot_dimension_numbers<[1], [0], [0], [1], [0, 0, 1, 1], [], []>} : vector<128x128xbf16>, vector<128x128xbf16>, vector<128x128xf32> -> vector<128x128xf32>
    %135 = arith.addf %130, %134 : vector<128x128xf32>
    %136 = vector.extract_strided_slice %125 {offsets = [2, 0], sizes = [128, 128], strides = [1, 1]} : vector<136x128xbf16> to vector<128x128xbf16>
    %c22 = arith.constant 22 : index
    %c0_75 = arith.constant 0 : index
    %c0_76 = arith.constant 0 : index
    %137 = vector.load %arg5[%c22, %c0_75, %c0_76] : memref<25x128x128xbf16, #tpu.memory_space<vmem>>, vector<1x128x128xbf16>
    %138 = vector.shape_cast %137 : vector<1x128x128xbf16> to vector<128x128xbf16>
    %cst_77 = arith.constant dense<0.000000e+00> : vector<128x128xf32>
    %139 = tpu.matmul %136, %138, %cst_77 {dimension_numbers = #tpu.dot_dimension_numbers<[1], [0], [0], [1], [0, 0, 1, 1], [], []>} : vector<128x128xbf16>, vector<128x128xbf16>, vector<128x128xf32> -> vector<128x128xf32>
    %140 = arith.addf %135, %139 : vector<128x128xf32>
    %141 = vector.extract_strided_slice %125 {offsets = [3, 0], sizes = [128, 128], strides = [1, 1]} : vector<136x128xbf16> to vector<128x128xbf16>
    %c23 = arith.constant 23 : index
    %c0_78 = arith.constant 0 : index
    %c0_79 = arith.constant 0 : index
    %142 = vector.load %arg5[%c23, %c0_78, %c0_79] : memref<25x128x128xbf16, #tpu.memory_space<vmem>>, vector<1x128x128xbf16>
    %143 = vector.shape_cast %142 : vector<1x128x128xbf16> to vector<128x128xbf16>
    %cst_80 = arith.constant dense<0.000000e+00> : vector<128x128xf32>
    %144 = tpu.matmul %141, %143, %cst_80 {dimension_numbers = #tpu.dot_dimension_numbers<[1], [0], [0], [1], [0, 0, 1, 1], [], []>} : vector<128x128xbf16>, vector<128x128xbf16>, vector<128x128xf32> -> vector<128x128xf32>
    %145 = arith.addf %140, %144 : vector<128x128xf32>
    %146 = vector.extract_strided_slice %125 {offsets = [4, 0], sizes = [128, 128], strides = [1, 1]} : vector<136x128xbf16> to vector<128x128xbf16>
    %c24 = arith.constant 24 : index
    %c0_81 = arith.constant 0 : index
    %c0_82 = arith.constant 0 : index
    %147 = vector.load %arg5[%c24, %c0_81, %c0_82] : memref<25x128x128xbf16, #tpu.memory_space<vmem>>, vector<1x128x128xbf16>
    %148 = vector.shape_cast %147 : vector<1x128x128xbf16> to vector<128x128xbf16>
    %cst_83 = arith.constant dense<0.000000e+00> : vector<128x128xf32>
    %149 = tpu.matmul %146, %148, %cst_83 {dimension_numbers = #tpu.dot_dimension_numbers<[1], [0], [0], [1], [0, 0, 1, 1], [], []>} : vector<128x128xbf16>, vector<128x128xbf16>, vector<128x128xf32> -> vector<128x128xf32>
    %150 = arith.addf %145, %149 : vector<128x128xf32>
    %c0_84 = arith.constant 0 : index
    %c0_85 = arith.constant 0 : index
    %151 = vector.load %arg6[%c0_84, %c0_85] : memref<1x128xf32, #tpu.memory_space<vmem>>, vector<1x128xf32>
    %152 = vector.broadcast %151 : vector<1x128xf32> to vector<128x128xf32>
    %153 = arith.addf %150, %152 : vector<128x128xf32>
    %cst_86 = arith.constant 0.000000e+00 : f32
    %154 = vector.broadcast %cst_86 : f32 to vector<128x128xf32>
    %155 = arith.maximumf %153, %154 : vector<128x128xf32>
    %c0_87 = arith.constant 0 : index
    %c0_88 = arith.constant 0 : index
    %c0_89 = arith.constant 0 : index
    %156 = vector.load %arg7[%c0_87, %c0_88, %c0_89] : memref<1x128x128xf32, #tpu.memory_space<vmem>>, vector<1x128x128xf32>
    %157 = vector.shape_cast %156 : vector<1x128x128xf32> to vector<128x128xf32>
    %158 = vector.shape_cast %155 : vector<128x128xf32> to vector<1x128x128xf32>
    tpu.vector_store %arg7[%c0_87, %c0_88, %c0_89], %158 {strides = array<i32>} : memref<1x128x128xf32, #tpu.memory_space<vmem>>, vector<1x128x128xf32>,
    return
  }
  func.func @transform_0(%arg0: i32, %arg1: i32, %arg2: i32, %arg3: i32) -> (i32, i32, i32) {
    %c0_i32 = arith.constant 0 : i32
    %c0_i32_0 = arith.constant 0 : i32
    return %arg0, %c0_i32, %arg3 : i32, i32, i32
  }
  func.func @transform_1(%arg0: i32, %arg1: i32, %arg2: i32, %arg3: i32) -> (i32, i32, i32) {
    %c0_i32 = arith.constant 0 : i32
    %c0_i32_0 = arith.constant 0 : i32
    return %c0_i32, %arg3, %arg2 : i32, i32, i32
  }
  func.func @transform_2(%arg0: i32, %arg1: i32, %arg2: i32, %arg3: i32) -> (i32, i32) {
    %c0_i32 = arith.constant 0 : i32
    %c0_i32_0 = arith.constant 0 : i32
    return %c0_i32, %arg2 : i32, i32
  }
  func.func @transform_3(%arg0: i32, %arg1: i32, %arg2: i32, %arg3: i32) -> (i32, i32, i32) {
    %c0_i32 = arith.constant 0 : i32
    return %arg0, %arg1, %arg2 : i32, i32, i32
  }
}

module attributes {stable_mosaic.version = 11 : i64} {
  func.func @_conv_taps_kernel(%arg0: i32, %arg1: i32, %arg2: i32, %arg3: i32, %arg4: memref<1x440x128xbf16, #tpu.memory_space<vmem>>, %arg5: memref<9x128x128xbf16, #tpu.memory_space<vmem>>, %arg6: memref<1x128xf32, #tpu.memory_space<vmem>>, %arg7: memref<1x128x128xf32, #tpu.memory_space<vmem>>) attributes {dimension_semantics = [#tpu.dimension_semantics<parallel>, #tpu.dimension_semantics<parallel>, #tpu.dimension_semantics<parallel>, #tpu.dimension_semantics<arbitrary>], iteration_bounds = array<i64: 2, 3, 1, 1>, scalar_prefetch = 0 : i64, scratch_operands = 0 : i64, tpu.core_type = #tpu.core_type<tc>, window_params = [{transform_indices = @transform_0, window_bounds = array<i64: 1, 440, 128>}, {transform_indices = @transform_1, window_bounds = array<i64: 9, 128, 128>}, {transform_indices = @transform_2, window_bounds = array<i64: 1, 128>}, {transform_indices = @transform_3, window_bounds = array<i64: 1, 128, 128>}]} {
    %c128_i32 = arith.constant 128 : i32
    %0 = arith.muli %arg1, %c128_i32 : i32
    %1 = tpu.assume_multiple %0, 128 : i32
    %c0_i32 = arith.constant 0 : i32
    %2 = arith.addi %1, %c0_i32 : i32
    %3 = tpu.assume_multiple %2, 8 : i32
    %c0 = arith.constant 0 : index
    %4 = arith.index_cast %3 : i32 to index
    %c0_0 = arith.constant 0 : index
    %5 = vector.load %arg4[%c0, %4, %c0_0] : memref<1x440x128xbf16, #tpu.memory_space<vmem>>, vector<1x136x128xbf16>
    %6 = vector.shape_cast %5 : vector<1x136x128xbf16> to vector<136x128xbf16>
    %7 = vector.extract_strided_slice %6 {offsets = [0, 0], sizes = [128, 128], strides = [1, 1]} : vector<136x128xbf16> to vector<128x128xbf16>
    %c0_1 = arith.constant 0 : index
    %c0_2 = arith.constant 0 : index
    %c0_3 = arith.constant 0 : index
    %8 = vector.load %arg5[%c0_1, %c0_2, %c0_3] : memref<9x128x128xbf16, #tpu.memory_space<vmem>>, vector<1x128x128xbf16>
    %9 = vector.shape_cast %8 : vector<1x128x128xbf16> to vector<128x128xbf16>
    %cst = arith.constant dense<0.000000e+00> : vector<128x128xf32>
    %10 = tpu.matmul %7, %9, %cst {dimension_numbers = #tpu.dot_dimension_numbers<[1], [0], [0], [1], [0, 0, 1, 1], [], []>} : vector<128x128xbf16>, vector<128x128xbf16>, vector<128x128xf32> -> vector<128x128xf32>
    %11 = vector.extract_strided_slice %6 {offsets = [1, 0], sizes = [128, 128], strides = [1, 1]} : vector<136x128xbf16> to vector<128x128xbf16>
    %c1 = arith.constant 1 : index
    %c0_4 = arith.constant 0 : index
    %c0_5 = arith.constant 0 : index
    %12 = vector.load %arg5[%c1, %c0_4, %c0_5] : memref<9x128x128xbf16, #tpu.memory_space<vmem>>, vector<1x128x128xbf16>
    %13 = vector.shape_cast %12 : vector<1x128x128xbf16> to vector<128x128xbf16>
    %cst_6 = arith.constant dense<0.000000e+00> : vector<128x128xf32>
    %14 = tpu.matmul %11, %13, %cst_6 {dimension_numbers = #tpu.dot_dimension_numbers<[1], [0], [0], [1], [0, 0, 1, 1], [], []>} : vector<128x128xbf16>, vector<128x128xbf16>, vector<128x128xf32> -> vector<128x128xf32>
    %15 = arith.addf %10, %14 : vector<128x128xf32>
    %16 = vector.extract_strided_slice %6 {offsets = [2, 0], sizes = [128, 128], strides = [1, 1]} : vector<136x128xbf16> to vector<128x128xbf16>
    %c2 = arith.constant 2 : index
    %c0_7 = arith.constant 0 : index
    %c0_8 = arith.constant 0 : index
    %17 = vector.load %arg5[%c2, %c0_7, %c0_8] : memref<9x128x128xbf16, #tpu.memory_space<vmem>>, vector<1x128x128xbf16>
    %18 = vector.shape_cast %17 : vector<1x128x128xbf16> to vector<128x128xbf16>
    %cst_9 = arith.constant dense<0.000000e+00> : vector<128x128xf32>
    %19 = tpu.matmul %16, %18, %cst_9 {dimension_numbers = #tpu.dot_dimension_numbers<[1], [0], [0], [1], [0, 0, 1, 1], [], []>} : vector<128x128xbf16>, vector<128x128xbf16>, vector<128x128xf32> -> vector<128x128xf32>
    %20 = arith.addf %15, %19 : vector<128x128xf32>
    %c24_i32 = arith.constant 24 : i32
    %21 = arith.addi %1, %c24_i32 : i32
    %22 = tpu.assume_multiple %21, 8 : i32
    %c0_10 = arith.constant 0 : index
    %23 = arith.index_cast %22 : i32 to index
    %c0_11 = arith.constant 0 : index
    %24 = vector.load %arg4[%c0_10, %23, %c0_11] : memref<1x440x128xbf16, #tpu.memory_space<vmem>>, vector<1x136x128xbf16>
    %25 = vector.shape_cast %24 : vector<1x136x128xbf16> to vector<136x128xbf16>
    %26 = vector.extract_strided_slice %25 {offsets = [0, 0], sizes = [128, 128], strides = [1, 1]} : vector<136x128xbf16> to vector<128x128xbf16>
    %c3 = arith.constant 3 : index
    %c0_12 = arith.constant 0 : index
    %c0_13 = arith.constant 0 : index
    %27 = vector.load %arg5[%c3, %c0_12, %c0_13] : memref<9x128x128xbf16, #tpu.memory_space<vmem>>, vector<1x128x128xbf16>
    %28 = vector.shape_cast %27 : vector<1x128x128xbf16> to vector<128x128xbf16>
    %cst_14 = arith.constant dense<0.000000e+00> : vector<128x128xf32>
    %29 = tpu.matmul %26, %28, %cst_14 {dimension_numbers = #tpu.dot_dimension_numbers<[1], [0], [0], [1], [0, 0, 1, 1], [], []>} : vector<128x128xbf16>, vector<128x128xbf16>, vector<128x128xf32> -> vector<128x128xf32>
    %30 = arith.addf %20, %29 : vector<128x128xf32>
    %31 = vector.extract_strided_slice %25 {offsets = [1, 0], sizes = [128, 128], strides = [1, 1]} : vector<136x128xbf16> to vector<128x128xbf16>
    %c4 = arith.constant 4 : index
    %c0_15 = arith.constant 0 : index
    %c0_16 = arith.constant 0 : index
    %32 = vector.load %arg5[%c4, %c0_15, %c0_16] : memref<9x128x128xbf16, #tpu.memory_space<vmem>>, vector<1x128x128xbf16>
    %33 = vector.shape_cast %32 : vector<1x128x128xbf16> to vector<128x128xbf16>
    %cst_17 = arith.constant dense<0.000000e+00> : vector<128x128xf32>
    %34 = tpu.matmul %31, %33, %cst_17 {dimension_numbers = #tpu.dot_dimension_numbers<[1], [0], [0], [1], [0, 0, 1, 1], [], []>} : vector<128x128xbf16>, vector<128x128xbf16>, vector<128x128xf32> -> vector<128x128xf32>
    %35 = arith.addf %30, %34 : vector<128x128xf32>
    %36 = vector.extract_strided_slice %25 {offsets = [2, 0], sizes = [128, 128], strides = [1, 1]} : vector<136x128xbf16> to vector<128x128xbf16>
    %c5 = arith.constant 5 : index
    %c0_18 = arith.constant 0 : index
    %c0_19 = arith.constant 0 : index
    %37 = vector.load %arg5[%c5, %c0_18, %c0_19] : memref<9x128x128xbf16, #tpu.memory_space<vmem>>, vector<1x128x128xbf16>
    %38 = vector.shape_cast %37 : vector<1x128x128xbf16> to vector<128x128xbf16>
    %cst_20 = arith.constant dense<0.000000e+00> : vector<128x128xf32>
    %39 = tpu.matmul %36, %38, %cst_20 {dimension_numbers = #tpu.dot_dimension_numbers<[1], [0], [0], [1], [0, 0, 1, 1], [], []>} : vector<128x128xbf16>, vector<128x128xbf16>, vector<128x128xf32> -> vector<128x128xf32>
    %40 = arith.addf %35, %39 : vector<128x128xf32>
    %c48_i32 = arith.constant 48 : i32
    %41 = arith.addi %1, %c48_i32 : i32
    %42 = tpu.assume_multiple %41, 8 : i32
    %c0_21 = arith.constant 0 : index
    %43 = arith.index_cast %42 : i32 to index
    %c0_22 = arith.constant 0 : index
    %44 = vector.load %arg4[%c0_21, %43, %c0_22] : memref<1x440x128xbf16, #tpu.memory_space<vmem>>, vector<1x136x128xbf16>
    %45 = vector.shape_cast %44 : vector<1x136x128xbf16> to vector<136x128xbf16>
    %46 = vector.extract_strided_slice %45 {offsets = [0, 0], sizes = [128, 128], strides = [1, 1]} : vector<136x128xbf16> to vector<128x128xbf16>
    %c6 = arith.constant 6 : index
    %c0_23 = arith.constant 0 : index
    %c0_24 = arith.constant 0 : index
    %47 = vector.load %arg5[%c6, %c0_23, %c0_24] : memref<9x128x128xbf16, #tpu.memory_space<vmem>>, vector<1x128x128xbf16>
    %48 = vector.shape_cast %47 : vector<1x128x128xbf16> to vector<128x128xbf16>
    %cst_25 = arith.constant dense<0.000000e+00> : vector<128x128xf32>
    %49 = tpu.matmul %46, %48, %cst_25 {dimension_numbers = #tpu.dot_dimension_numbers<[1], [0], [0], [1], [0, 0, 1, 1], [], []>} : vector<128x128xbf16>, vector<128x128xbf16>, vector<128x128xf32> -> vector<128x128xf32>
    %50 = arith.addf %40, %49 : vector<128x128xf32>
    %51 = vector.extract_strided_slice %45 {offsets = [1, 0], sizes = [128, 128], strides = [1, 1]} : vector<136x128xbf16> to vector<128x128xbf16>
    %c7 = arith.constant 7 : index
    %c0_26 = arith.constant 0 : index
    %c0_27 = arith.constant 0 : index
    %52 = vector.load %arg5[%c7, %c0_26, %c0_27] : memref<9x128x128xbf16, #tpu.memory_space<vmem>>, vector<1x128x128xbf16>
    %53 = vector.shape_cast %52 : vector<1x128x128xbf16> to vector<128x128xbf16>
    %cst_28 = arith.constant dense<0.000000e+00> : vector<128x128xf32>
    %54 = tpu.matmul %51, %53, %cst_28 {dimension_numbers = #tpu.dot_dimension_numbers<[1], [0], [0], [1], [0, 0, 1, 1], [], []>} : vector<128x128xbf16>, vector<128x128xbf16>, vector<128x128xf32> -> vector<128x128xf32>
    %55 = arith.addf %50, %54 : vector<128x128xf32>
    %56 = vector.extract_strided_slice %45 {offsets = [2, 0], sizes = [128, 128], strides = [1, 1]} : vector<136x128xbf16> to vector<128x128xbf16>
    %c8 = arith.constant 8 : index
    %c0_29 = arith.constant 0 : index
    %c0_30 = arith.constant 0 : index
    %57 = vector.load %arg5[%c8, %c0_29, %c0_30] : memref<9x128x128xbf16, #tpu.memory_space<vmem>>, vector<1x128x128xbf16>
    %58 = vector.shape_cast %57 : vector<1x128x128xbf16> to vector<128x128xbf16>
    %cst_31 = arith.constant dense<0.000000e+00> : vector<128x128xf32>
    %59 = tpu.matmul %56, %58, %cst_31 {dimension_numbers = #tpu.dot_dimension_numbers<[1], [0], [0], [1], [0, 0, 1, 1], [], []>} : vector<128x128xbf16>, vector<128x128xbf16>, vector<128x128xf32> -> vector<128x128xf32>
    %60 = arith.addf %55, %59 : vector<128x128xf32>
    %c0_32 = arith.constant 0 : index
    %c0_33 = arith.constant 0 : index
    %61 = vector.load %arg6[%c0_32, %c0_33] : memref<1x128xf32, #tpu.memory_space<vmem>>, vector<1x128xf32>
    %62 = vector.broadcast %61 : vector<1x128xf32> to vector<128x128xf32>
    %63 = arith.addf %60, %62 : vector<128x128xf32>
    %cst_34 = arith.constant 0.000000e+00 : f32
    %64 = vector.broadcast %cst_34 : f32 to vector<128x128xf32>
    %65 = arith.maximumf %63, %64 : vector<128x128xf32>
    %c0_35 = arith.constant 0 : index
    %c0_36 = arith.constant 0 : index
    %c0_37 = arith.constant 0 : index
    %66 = vector.load %arg7[%c0_35, %c0_36, %c0_37] : memref<1x128x128xf32, #tpu.memory_space<vmem>>, vector<1x128x128xf32>
    %67 = vector.shape_cast %66 : vector<1x128x128xf32> to vector<128x128xf32>
    %68 = vector.shape_cast %65 : vector<128x128xf32> to vector<1x128x128xf32>
    tpu.vector_store %arg7[%c0_35, %c0_36, %c0_37], %68 {strides = array<i32>} : memref<1x128x128xf32, #tpu.memory_space<vmem>>, vector<1x128x128xf32>,
    return
  }
  func.func @transform_0(%arg0: i32, %arg1: i32, %arg2: i32, %arg3: i32) -> (i32, i32, i32) {
    %c0_i32 = arith.constant 0 : i32
    %c0_i32_0 = arith.constant 0 : i32
    return %arg0, %c0_i32, %arg3 : i32, i32, i32
  }
  func.func @transform_1(%arg0: i32, %arg1: i32, %arg2: i32, %arg3: i32) -> (i32, i32, i32) {
    %c0_i32 = arith.constant 0 : i32
    %c0_i32_0 = arith.constant 0 : i32
    return %c0_i32, %arg3, %arg2 : i32, i32, i32
  }
  func.func @transform_2(%arg0: i32, %arg1: i32, %arg2: i32, %arg3: i32) -> (i32, i32) {
    %c0_i32 = arith.constant 0 : i32
    %c0_i32_0 = arith.constant 0 : i32
    return %c0_i32, %arg2 : i32, i32
  }
  func.func @transform_3(%arg0: i32, %arg1: i32, %arg2: i32, %arg3: i32) -> (i32, i32, i32) {
    %c0_i32 = arith.constant 0 : i32
    return %arg0, %arg1, %arg2 : i32, i32, i32
  }
}

module attributes {stable_mosaic.version = 11 : i64} {
  func.func @_pool_conv_kernel(%arg0: i32, %arg1: i32, %arg2: i32, %arg3: i32, %arg4: memref<1x440x128xbf16, #tpu.memory_space<vmem>>, %arg5: memref<1x128x128xbf16, #tpu.memory_space<vmem>>, %arg6: memref<1x128xf32, #tpu.memory_space<vmem>>, %arg7: memref<1x128x128xf32, #tpu.memory_space<vmem>>) attributes {dimension_semantics = [#tpu.dimension_semantics<parallel>, #tpu.dimension_semantics<parallel>, #tpu.dimension_semantics<parallel>, #tpu.dimension_semantics<arbitrary>], iteration_bounds = array<i64: 2, 3, 1, 1>, scalar_prefetch = 0 : i64, scratch_operands = 0 : i64, tpu.core_type = #tpu.core_type<tc>, window_params = [{transform_indices = @transform_0, window_bounds = array<i64: 1, 440, 128>}, {transform_indices = @transform_1, window_bounds = array<i64: 1, 128, 128>}, {transform_indices = @transform_2, window_bounds = array<i64: 1, 128>}, {transform_indices = @transform_3, window_bounds = array<i64: 1, 128, 128>}]} {
    %c128_i32 = arith.constant 128 : i32
    %0 = arith.muli %arg1, %c128_i32 : i32
    %1 = tpu.assume_multiple %0, 128 : i32
    %c0_i32 = arith.constant 0 : i32
    %2 = arith.addi %1, %c0_i32 : i32
    %3 = tpu.assume_multiple %2, 8 : i32
    %c0 = arith.constant 0 : index
    %4 = arith.index_cast %3 : i32 to index
    %c0_0 = arith.constant 0 : index
    %5 = vector.load %arg4[%c0, %4, %c0_0] : memref<1x440x128xbf16, #tpu.memory_space<vmem>>, vector<1x136x128xbf16>
    %6 = vector.shape_cast %5 : vector<1x136x128xbf16> to vector<136x128xbf16>
    %7 = vector.extract_strided_slice %6 {offsets = [0, 0], sizes = [128, 128], strides = [1, 1]} : vector<136x128xbf16> to vector<128x128xbf16>
    %8 = vector.extract_strided_slice %6 {offsets = [1, 0], sizes = [128, 128], strides = [1, 1]} : vector<136x128xbf16> to vector<128x128xbf16>
    %9 = arith.maximumf %7, %8 : vector<128x128xbf16>
    %10 = vector.extract_strided_slice %6 {offsets = [2, 0], sizes = [128, 128], strides = [1, 1]} : vector<136x128xbf16> to vector<128x128xbf16>
    %11 = arith.maximumf %9, %10 : vector<128x128xbf16>
    %c24_i32 = arith.constant 24 : i32
    %12 = arith.addi %1, %c24_i32 : i32
    %13 = tpu.assume_multiple %12, 8 : i32
    %c0_1 = arith.constant 0 : index
    %14 = arith.index_cast %13 : i32 to index
    %c0_2 = arith.constant 0 : index
    %15 = vector.load %arg4[%c0_1, %14, %c0_2] : memref<1x440x128xbf16, #tpu.memory_space<vmem>>, vector<1x136x128xbf16>
    %16 = vector.shape_cast %15 : vector<1x136x128xbf16> to vector<136x128xbf16>
    %17 = vector.extract_strided_slice %16 {offsets = [0, 0], sizes = [128, 128], strides = [1, 1]} : vector<136x128xbf16> to vector<128x128xbf16>
    %18 = arith.maximumf %11, %17 : vector<128x128xbf16>
    %19 = vector.extract_strided_slice %16 {offsets = [1, 0], sizes = [128, 128], strides = [1, 1]} : vector<136x128xbf16> to vector<128x128xbf16>
    %20 = arith.maximumf %18, %19 : vector<128x128xbf16>
    %21 = vector.extract_strided_slice %16 {offsets = [2, 0], sizes = [128, 128], strides = [1, 1]} : vector<136x128xbf16> to vector<128x128xbf16>
    %22 = arith.maximumf %20, %21 : vector<128x128xbf16>
    %c48_i32 = arith.constant 48 : i32
    %23 = arith.addi %1, %c48_i32 : i32
    %24 = tpu.assume_multiple %23, 8 : i32
    %c0_3 = arith.constant 0 : index
    %25 = arith.index_cast %24 : i32 to index
    %c0_4 = arith.constant 0 : index
    %26 = vector.load %arg4[%c0_3, %25, %c0_4] : memref<1x440x128xbf16, #tpu.memory_space<vmem>>, vector<1x136x128xbf16>
    %27 = vector.shape_cast %26 : vector<1x136x128xbf16> to vector<136x128xbf16>
    %28 = vector.extract_strided_slice %27 {offsets = [0, 0], sizes = [128, 128], strides = [1, 1]} : vector<136x128xbf16> to vector<128x128xbf16>
    %29 = arith.maximumf %22, %28 : vector<128x128xbf16>
    %30 = vector.extract_strided_slice %27 {offsets = [1, 0], sizes = [128, 128], strides = [1, 1]} : vector<136x128xbf16> to vector<128x128xbf16>
    %31 = arith.maximumf %29, %30 : vector<128x128xbf16>
    %32 = vector.extract_strided_slice %27 {offsets = [2, 0], sizes = [128, 128], strides = [1, 1]} : vector<136x128xbf16> to vector<128x128xbf16>
    %33 = arith.maximumf %31, %32 : vector<128x128xbf16>
    %c0_5 = arith.constant 0 : index
    %c0_6 = arith.constant 0 : index
    %c0_7 = arith.constant 0 : index
    %34 = vector.load %arg5[%c0_5, %c0_6, %c0_7] : memref<1x128x128xbf16, #tpu.memory_space<vmem>>, vector<1x128x128xbf16>
    %35 = vector.shape_cast %34 : vector<1x128x128xbf16> to vector<128x128xbf16>
    %cst = arith.constant dense<0.000000e+00> : vector<128x128xf32>
    %36 = tpu.matmul %33, %35, %cst {dimension_numbers = #tpu.dot_dimension_numbers<[1], [0], [0], [1], [0, 0, 1, 1], [], []>} : vector<128x128xbf16>, vector<128x128xbf16>, vector<128x128xf32> -> vector<128x128xf32>
    %c0_8 = arith.constant 0 : index
    %c0_9 = arith.constant 0 : index
    %37 = vector.load %arg6[%c0_8, %c0_9] : memref<1x128xf32, #tpu.memory_space<vmem>>, vector<1x128xf32>
    %38 = vector.broadcast %37 : vector<1x128xf32> to vector<128x128xf32>
    %39 = arith.addf %36, %38 : vector<128x128xf32>
    %cst_10 = arith.constant 0.000000e+00 : f32
    %40 = vector.broadcast %cst_10 : f32 to vector<128x128xf32>
    %41 = arith.maximumf %39, %40 : vector<128x128xf32>
    %c0_11 = arith.constant 0 : index
    %c0_12 = arith.constant 0 : index
    %c0_13 = arith.constant 0 : index
    %42 = vector.load %arg7[%c0_11, %c0_12, %c0_13] : memref<1x128x128xf32, #tpu.memory_space<vmem>>, vector<1x128x128xf32>
    %43 = vector.shape_cast %42 : vector<1x128x128xf32> to vector<128x128xf32>
    %44 = vector.shape_cast %41 : vector<128x128xf32> to vector<1x128x128xf32>
    tpu.vector_store %arg7[%c0_11, %c0_12, %c0_13], %44 {strides = array<i32>} : memref<1x128x128xf32, #tpu.memory_space<vmem>>, vector<1x128x128xf32>,
    return
  }
  func.func @transform_0(%arg0: i32, %arg1: i32, %arg2: i32, %arg3: i32) -> (i32, i32, i32) {
    %c0_i32 = arith.constant 0 : i32
    %c0_i32_0 = arith.constant 0 : i32
    return %arg0, %c0_i32, %arg3 : i32, i32, i32
  }
  func.func @transform_1(%arg0: i32, %arg1: i32, %arg2: i32, %arg3: i32) -> (i32, i32, i32) {
    %c0_i32 = arith.constant 0 : i32
    %c0_i32_0 = arith.constant 0 : i32
    return %c0_i32, %arg3, %arg2 : i32, i32, i32
  }
  func.func @transform_2(%arg0: i32, %arg1: i32, %arg2: i32, %arg3: i32) -> (i32, i32) {
    %c0_i32 = arith.constant 0 : i32
    %c0_i32_0 = arith.constant 0 : i32
    return %c0_i32, %arg2 : i32, i32
  }
  func.func @transform_3(%arg0: i32, %arg1: i32, %arg2: i32, %arg3: i32) -> (i32, i32, i32) {
    %c0_i32 = arith.constant 0 : i32
    return %arg0, %arg1, %arg2 : i32, i32, i32
  }
}

</mosaic_0001>

<bundles_post_ra>
// kernel: inception_forward.4
= control target key start
LH: loop header
LB: loop body
LE: loop exit
PB: predicated region body
PF: predicated region fallthrough
CT: control target
= control target key end

     0   :  { %s852_s12 = smov 0   ;;  %s854_s13 = smov 0   ;;  %s960_s0 = inlined_call_operand.vmem [shape: bf16[2,256,128], index: 0, kind: input, shape index: {}]   ;;  %s961_s1 = inlined_call_operand.vmem [shape: bf16[1,128,128], index: 1, kind: input, shape index: {}]   ;;  %s962_s2 = inlined_call_operand.vmem [shape: f32[1,128], index: 2, kind: input, shape index: {}]   ;;  %s963_s3 = inlined_call_operand.vmem [shape: f32[2,256,128], index: 3, kind: output, shape index: {}]  }
   0x1   :  { %s856_s14 = smov 0   ;;  %s858_s15 = smov 0  }
   0x2   :  { %s860_s16 = smov 0  }
   0x3 LB: > { %s35_s17 = sadd.s32 1, %s822_s14  ;;  %s39_s18 = sadd.s32 1, %s826_s15  ;;  %s830_s16 = sphi %s860_s16, %s13_s16   ;;  %s826_s15 = sphi %s858_s15, %s967_s15   ;;  %s822_s14 = sphi %s856_s14, %s966_s14   ;;  %s818_s13 = sphi %s854_s13, %s965_s13   ;;  %s814_s12 = sphi %s852_s12, %s964_s12  }
   0x4   : > { %p37_p0 = scmp.ge.s32.totalorder %s35_s17, 2  ;;  %p636_p1 = scmp.ge.s32.totalorder %s830_s16, 1 }
   0x5   : > { %p196_p2 = scmp.lt.s32.totalorder %s830_s16, 5 }
   0x6   : > { %s969_s17 = smov (%p37_p0, %s35_s17), 0  ;;  %s971_s18 = smov (!%p37_p0, %s39_s18), %s826_s15 }
   0x7   : > { %p197_p3 = pnand %p636_p1, %p196_p2  ;;  %p41_p4 = scmp.ge.s32.totalorder %s971_s18, 2 }
   0x8   : > { %p241_p5 = scmp.lt.s32.totalorder (!%p197_p3), %s818_s13, 1  ;;  %s642_s29 = sshll.u32 (!%p197_p3), %s814_s12, 7 }
   0x9   : > { %s973_s18 = smov (%p41_p4, %s971_s18), 0  ;;  %200 = sbr.rel (%p197_p3) target bundleno = 209 (0xd1), region = 32 }
   0xa   : > { %s275_s6 = sshra.s32 (!%p197_p3), %s642_s29, 3  ;;  %s639_s23 = sshll.u32 (!%p197_p3), %s814_s12, 4 }
   0xb   : > { %s643_s19 = sshll.u32 (!%p197_p3), %s275_s6, 2  ;;  %p264_p6 = scmp.lt.s32.totalorder (!%p197_p3), %s639_s23, 31 }
   0xe   : > { %v726_v0 = vld [vmem:[%s961_s1 + $0x38] sm:$0xff]  ;;  %v725_v1 = vld [vmem:[%s961_s1 + $0x30] sm:$0xff]  ;;  %v724_v2 = vld [vmem:[%s961_s1 + $0x28] sm:$0xff]  ;;  %s975_s13 = smov (!%p241_p5, %s818_s13), 1  ;;  %s977_s23 = smov (!%p264_p6, %s639_s23), 31 }
   0xf   : > { %411 = vmatpush.bf16.msra.mxu0 %v726_v0  ;;  %727 = vmatpush.bf16.msra.mxu1 %v726_v0  ;;  %v723_v3 = vld [vmem:[%s961_s1 + $0x20] sm:$0xff]  ;;  %v722_v4 = vld [vmem:[%s961_s1 + $0x18] sm:$0xff]  ;;  %v721_v5 = vld [vmem:[%s961_s1 + $0x10] sm:$0xff]  ;;  %s710_s5 = sshll.u32 %s975_s13, 7  ;;  %s640_s24 = sshll.u32 %s975_s13, 5 }
  0x10   : > { %728 = vmatpush.bf16.msra.mxu2 %v726_v0  ;;  %729 = vmatpush.bf16.msra.mxu3 %v726_v0  ;;  %v720_v6 = vld [vmem:[%s961_s1 + $0x8] sm:$0xff]  ;;  %s248_s11 = scalar_lea.vmem %s960_s0, %s710_s5  ;;  %v719_v7 = vld [vmem:[%s961_s1] sm:$0xff]  ;;  %s270_s25 = sadd.s32 %s640_s24, %s977_s23 }
  0x11   : > { %s278_s22 = scalar_lea.vmem %s248_s11, %s643_s19  ;;  %v791_v16 = vld [vmem:[%s962_s2] ss:$0 sm:$0xff]  ;;  %s641_s28 = sshll.u32 %s270_s25, 3 }
  0x12   : > { %v711_v8 = vld [vmem:[%s278_s22] sm:$0xff]  ;;  %v713_v9 = vld [vmem:[%s278_s22 + $0x10] sm:$0xff]  ;;  %v712_v12 = vld [vmem:[%s278_s22 + $0x8] sm:$0xff]  ;;  %s927_s4 = scalar_lea.vmem %s963_s3, %s641_s28 }
  0x13   : > { %412 = vmatpush.bf16.msra.mxu0 %v725_v1  ;;  %730 = vmatpush.bf16.msra.mxu1 %v725_v1  ;;  %v715_v10 = vld [vmem:[%s278_s22 + $0x20] sm:$0xff]  ;;  %v717_v11 = vld [vmem:[%s278_s22 + $0x30] sm:$0xff]  ;;  %v714_v13 = vld [vmem:[%s278_s22 + $0x18] sm:$0xff] }
  0x14   : > { %731 = vmatpush.bf16.msra.mxu2 %v725_v1  ;;  %732 = vmatpush.bf16.msra.mxu3 %v725_v1  ;;  %v716_v14 = vld [vmem:[%s278_s22 + $0x28] sm:$0xff]  ;;  %v718_v15 = vld [vmem:[%s278_s22 + $0x38] sm:$0xff] }
  0x17   : > { %413 = vmatpush.bf16.msra.mxu0 %v724_v2  ;;  %733 = vmatpush.bf16.msra.mxu1 %v724_v2 }
  0x18   : > { %734 = vmatpush.bf16.msra.mxu2 %v724_v2  ;;  %735 = vmatpush.bf16.msra.mxu3 %v724_v2 }
  0x1b   : > { %414 = vmatpush.bf16.msra.mxu0 %v723_v3  ;;  %736 = vmatpush.bf16.msra.mxu1 %v723_v3 }
  0x1c   : > { %737 = vmatpush.bf16.msra.mxu2 %v723_v3  ;;  %738 = vmatpush.bf16.msra.mxu3 %v723_v3 }
  0x1f   : > { %415 = vmatpush.bf16.msra.mxu0 %v722_v4  ;;  %739 = vmatpush.bf16.msra.mxu1 %v722_v4 }
  0x20   : > { %740 = vmatpush.bf16.msra.mxu2 %v722_v4  ;;  %741 = vmatpush.bf16.msra.mxu3 %v722_v4 }
  0x23   : > { %416 = vmatpush.bf16.msra.mxu0 %v721_v5  ;;  %742 = vmatpush.bf16.msra.mxu1 %v721_v5 }
  0x24   : > { %743 = vmatpush.bf16.msra.mxu2 %v721_v5  ;;  %744 = vmatpush.bf16.msra.mxu3 %v721_v5 }
  0x27   : > { %417 = vmatpush.bf16.msra.mxu0 %v720_v6  ;;  %745 = vmatpush.bf16.msra.mxu1 %v720_v6 }
  0x28   : > { %746 = vmatpush.bf16.msra.mxu2 %v720_v6  ;;  %747 = vmatpush.bf16.msra.mxu3 %v720_v6 }
  0x2b   : > { %418 = vmatpush.bf16.msra.mxu0 %v719_v7  ;;  %748 = vmatpush.bf16.msra.mxu1 %v719_v7 }
  0x2c   : > { %749 = vmatpush.bf16.msra.mxu2 %v719_v7  ;;  %750 = vmatpush.bf16.msra.mxu3 %v719_v7 }
  0x2e   : > { %419 = vmatmul.bf16.vlgmr.msra.gmra.mxu0 %v711_v8  ;;  %429 = vmatmul.bf16.vlgmr.msra.gmra.mxu1 %v713_v9 }
  0x2f   : > { %439 = vmatmul.bf16.vlgmr.msra.gmra.mxu2 %v715_v10  ;;  %449 = vmatmul.bf16.vlgmr.msra.gmra.mxu3 %v717_v11 }
  0x3e   : > { %424 = vmatmul.bf16.gmra.mxu0 %v712_v12  ;;  %434 = vmatmul.bf16.gmra.mxu1 %v714_v13 }
  0x3f   : > { %444 = vmatmul.bf16.gmra.mxu2 %v716_v14  ;;  %454 = vmatmul.bf16.gmra.mxu3 %v718_v15 }
  0xab   : > { %v420_v17 = vpop.f32.mrf.mxu0  ;;  %v430_v18 = vpop.f32.mrf.mxu1 }
  0xac   : > { %v421_v19 = vadd.f32 %v791_v16, %v420_v17  ;;  %v431_v20 = vadd.f32 %v791_v16, %v430_v18 }
  0xae   : > { %v460_v21 = vmax.f32 %v421_v19, 0.0  ;;  %v464_v22 = vmax.f32 %v431_v20, 0.0 }
  0xb0   : > { %476 = vst [vmem:[%s927_s4] sm:$0xff] %v460_v21 }
  0xb1   : > { %480 = vst [vmem:[%s927_s4 + $0x20] sm:$0xff] %v464_v22 }
  0xb2   : > { %v440_v23 = vpop.f32.mrf.mxu2  ;;  %v450_v24 = vpop.f32.mrf.mxu3 }
  0xb3   : > { %v441_v25 = vadd.f32 %v791_v16, %v440_v23  ;;  %v451_v26 = vadd.f32 %v791_v16, %v450_v24  ;;  %v422_v27 = vpop.f32.mrf.mxu0  ;;  %v432_v28 = vpop.f32.mrf.mxu1 }
  0xb4   : > { %v423_v29 = vadd.f32 %v791_v16, %v422_v27  ;;  %v433_v30 = vadd.f32 %v791_v16, %v432_v28 }
  0xb5   : > { %v468_v31 = vmax.f32 %v441_v25, 0.0  ;;  %v472_v32 = vmax.f32 %v451_v26, 0.0 }
  0xb6   : > { %v461_v33 = vmax.f32 %v423_v29, 0.0  ;;  %v465_v34 = vmax.f32 %v433_v30, 0.0 }
  0xb7   : > { %484 = vst [vmem:[%s927_s4 + $0x40] sm:$0xff] %v468_v31 }
  0xb8   : > { %488 = vst [vmem:[%s927_s4 + $0x60] sm:$0xff] %v472_v32 }
  0xb9   : > { %477 = vst [vmem:[%s927_s4 + $0x8] sm:$0xff] %v461_v33 }
  0xba   : > { %481 = vst [vmem:[%s927_s4 + $0x28] sm:$0xff] %v465_v34  ;;  %v442_v35 = vpop.f32.mrf.mxu2  ;;  %v452_v36 = vpop.f32.mrf.mxu3 }
  0xbb   : > { %v443_v37 = vadd.f32 %v791_v16, %v442_v35  ;;  %v453_v38 = vadd.f32 %v791_v16, %v452_v36  ;;  %v425_v39 = vpop.f32.mrf.mxu0  ;;  %v435_v40 = vpop.f32.mrf.mxu1 }
  0xbc   : > { %v426_v41 = vadd.f32 %v791_v16, %v425_v39  ;;  %v436_v42 = vadd.f32 %v791_v16, %v435_v40 }
  0xbd   : > { %v469_v43 = vmax.f32 %v443_v37, 0.0  ;;  %v473_v44 = vmax.f32 %v453_v38, 0.0 }
  0xbe   : > { %v462_v45 = vmax.f32 %v426_v41, 0.0  ;;  %v466_v46 = vmax.f32 %v436_v42, 0.0 }
  0xbf   : > { %485 = vst [vmem:[%s927_s4 + $0x48] sm:$0xff] %v469_v43 }
  0xc0   : > { %489 = vst [vmem:[%s927_s4 + $0x68] sm:$0xff] %v473_v44 }
  0xc1   : > { %478 = vst [vmem:[%s927_s4 + $0x10] sm:$0xff] %v462_v45 }
  0xc2   : > { %482 = vst [vmem:[%s927_s4 + $0x30] sm:$0xff] %v466_v46  ;;  %v445_v47 = vpop.f32.mrf.mxu2  ;;  %v455_v48 = vpop.f32.mrf.mxu3 }
  0xc3   : > { %v446_v49 = vadd.f32 %v791_v16, %v445_v47  ;;  %v456_v50 = vadd.f32 %v791_v16, %v455_v48  ;;  %v427_v51 = vpop.f32.mrf.mxu0  ;;  %v437_v52 = vpop.f32.mrf.mxu1 }
  0xc4   : > { %v428_v53 = vadd.f32 %v791_v16, %v427_v51  ;;  %v438_v54 = vadd.f32 %v791_v16, %v437_v52 }
  0xc5   : > { %v470_v55 = vmax.f32 %v446_v49, 0.0  ;;  %v474_v56 = vmax.f32 %v456_v50, 0.0 }
  0xc6   : > { %v463_v57 = vmax.f32 %v428_v53, 0.0  ;;  %v467_v58 = vmax.f32 %v438_v54, 0.0 }
  0xc7   : > { %486 = vst [vmem:[%s927_s4 + $0x50] sm:$0xff] %v470_v55 }
  0xc8   : > { %490 = vst [vmem:[%s927_s4 + $0x70] sm:$0xff] %v474_v56 }
  0xc9   : > { %479 = vst [vmem:[%s927_s4 + $0x18] sm:$0xff] %v463_v57 }
  0xca   : > { %483 = vst [vmem:[%s927_s4 + $0x38] sm:$0xff] %v467_v58  ;;  %v447_v59 = vpop.f32.mrf.mxu2  ;;  %v457_v60 = vpop.f32.mrf.mxu3 }
  0xcb   : > { %v448_v61 = vadd.f32 %v791_v16, %v447_v59  ;;  %v458_v62 = vadd.f32 %v791_v16, %v457_v60 }
  0xcd   : > { %v471_v63 = vmax.f32 %v448_v61, 0.0  ;;  %v475_v0 = vmax.f32 %v458_v62, 0.0 }
  0xcf   : > { %487 = vst [vmem:[%s927_s4 + $0x58] sm:$0xff] %v471_v63 }
  0xd0   : > { %491 = vst [vmem:[%s927_s4 + $0x78] sm:$0xff] %v475_v0 }
  0xd1 PF: > { %s13_s16 = sadd.s32 1, %s830_s16   ;;  %s964_s12 = smov %s822_s14 }
  0xd2   : > { %p10_p7 = scmp.ge.s32.totalorder %s13_s16, 6   ;;  %s965_s13 = smov %s826_s15 }
  0xd3   : > { %s966_s14 = smov %s969_s17  ;;  %s967_s15 = smov %s973_s18 }
  0xd4   :  { %12 = sbr.rel (!%p10_p7) target bundleno = 3 (0x3), region = 69 }

// kernel: inception_forward.7
= control target key start
LH: loop header
LB: loop body
LE: loop exit
PB: predicated region body
PF: predicated region fallthrough
CT: control target
= control target key end

     0   :  { %s1689_s12 = smov 0   ;;  %s1691_s13 = smov 0   ;;  %s2286_s0 = inlined_call_operand.vmem [shape: bf16[2,440,128], index: 0, kind: input, shape index: {}]   ;;  %s2287_s1 = inlined_call_operand.vmem [shape: bf16[1,128,128], index: 1, kind: input, shape index: {}]   ;;  %s2288_s2 = inlined_call_operand.vmem [shape: f32[1,128], index: 2, kind: input, shape index: {}]   ;;  %s2289_s3 = inlined_call_operand.vmem [shape: f32[2,384,128], index: 3, kind: output, shape index: {}]  }
   0x1   :  { %s1693_s14 = smov 0   ;;  %s1695_s15 = smov 0  }
   0x2   :  { %s1697_s16 = smov 0  }
   0x3 LB: > { %s35_s17 = sadd.s32 1, %s1659_s14  ;;  %s39_s18 = sadd.s32 1, %s1663_s15  ;;  %s1667_s16 = sphi %s1697_s16, %s13_s16   ;;  %s1663_s15 = sphi %s1695_s15, %s2355_s15   ;;  %s1659_s14 = sphi %s1693_s14, %s2354_s14   ;;  %s1655_s13 = sphi %s1691_s13, %s2353_s13   ;;  %s1651_s12 = sphi %s1689_s12, %s2352_s12  }
   0x4   : > { %p37_p0 = scmp.ge.s32.totalorder %s35_s17, 3  ;;  %p1395_p1 = scmp.ge.s32.totalorder %s1667_s16, 1 }
   0x5   : > { %p196_p2 = scmp.lt.s32.totalorder %s1667_s16, 7 }
   0x6   : > { %s2357_s17 = smov (%p37_p0, %s35_s17), 0  ;;  %s2359_s18 = smov (!%p37_p0, %s39_s18), %s1663_s15 }
   0x7   : > { %p197_p3 = pnand %p1395_p1, %p196_p2  ;;  %p41_p4 = scmp.ge.s32.totalorder %s2359_s18, 2 }
   0x8   : > { %p241_p5 = scmp.lt.s32.totalorder (!%p197_p3), %s1655_s13, 1  ;;  %s1725_s21 = sshll.u32 (!%p197_p3), %s1651_s12, 7 }
   0x9   : > { %s2361_s18 = smov (%p41_p4, %s2359_s18), 0  ;;  %200 = sbr.rel (%p197_p3) target bundleno = 277 (0x115), region = 32 }
   0xa   : > { %s275_s25 = sshra.s32 (!%p197_p3), %s1725_s21, 3  ;;  %s510_s5 = sadd.s32 (!%p197_p3), 24, %s1725_s21 }
   0xb   : > { %s1400_s26 = sshll.u32 (!%p197_p3), %s275_s25, 2  ;;  %s511_s7 = sshra.s32 (!%p197_p3), %s510_s5, 3 }
   0xc   : > { %s1401_s8 = sshll.u32 (!%p197_p3), %s511_s7, 2  ;;  %s808_s19 = sadd.s32 (!%p197_p3), 48, %s1725_s21 }
   0xd   : > { %s809_s20 = sshra.s32 (!%p197_p3), %s808_s19, 3 }
   0xe   : > { %v1444_v0 = vld [vmem:[%s2287_s1 + $0x38] sm:$0xff]  ;;  %v1443_v1 = vld [vmem:[%s2287_s1 + $0x30] sm:$0xff]  ;;  %s2363_s13 = smov (!%p241_p5, %s1655_s13), 1  ;;  %v1442_v2 = vld [vmem:[%s2287_s1 + $0x28] sm:$0xff]  ;;  %vm330_vm0 = vcmask 1046528   ;;  %vm428_vm1 = vcmask 1045504  }
   0xf   : > { %1166 = vmatpush.bf16.msra.mxu0 %v1444_v0  ;;  %1562 = vmatpush.bf16.msra.mxu1 %v1444_v0  ;;  %s1586_s24 = smul.u32 220, %s2363_s13  ;;  %v1441_v12 = vld [vmem:[%s2287_s1 + $0x20] sm:$0xff]  ;;  %s1402_s21 = sshll.u32 %s809_s20, 2  ;;  %v1440_v31 = vld [vmem:[%s2287_s1 + $0x18] sm:$0xff]  ;;  %v1439_v50 = vld [vmem:[%s2287_s1 + $0x10] sm:$0xff] }
  0x10   : > { %1563 = vmatpush.bf16.msra.mxu2 %v1444_v0  ;;  %1564 = vmatpush.bf16.msra.mxu3 %v1444_v0  ;;  %s1587_s5 = smul.u32 48, %s2363_s13 }
  0x11   : > { %s1740_s4 = scalar_lea.vmem %s2286_s0, %s1586_s24 }
  0x12   : > { %s1744_s6 = scalar_lea.vmem %s1740_s4, %s1400_s26  ;;  %s1764_s11 = scalar_lea.vmem %s1740_s4, %s1401_s8 }
  0x13   : > { %1167 = vmatpush.bf16.msra.mxu0 %v1443_v1  ;;  %1565 = vmatpush.bf16.msra.mxu1 %v1443_v1  ;;  %v1446_v3 = vld [vmem:[%s1744_s6] sm:$0xff]   ;;  %v1748_v4 = vld [vmem:[%s1744_s6 + $0x8] sm:$0xff]   ;;  %v1542_v5 = vld [vmem:[%s1744_s6 + $0x10] sm:$0xff]   ;;  %s1795_s24 = scalar_lea.vmem %s1740_s4, %s1402_s21  ;;  %s1397_s4 = sshll.u32 %s1651_s12, 4 }
  0x14   : > { %1566 = vmatpush.bf16.msra.mxu2 %v1443_v1  ;;  %1567 = vmatpush.bf16.msra.mxu3 %v1443_v1  ;;  %v1447_v6 = vunpack.c.l.bf16 %v1446_v3  ;;  %v1448_v7 = vunpack.c.h.bf16 %v1446_v3  ;;  %v1752_v8 = vunpack.c.l.bf16 %v1748_v4  ;;  %v1754_v9 = vunpack.c.l.bf16 %v1542_v5  ;;  %v1757_v10 = vld [vmem:[%s1744_s6 + $0x18] sm:$0xff]   ;;  %v1544_v11 = vld [vmem:[%s1744_s6 + $0x20] sm:$0xff]   ;;  %v1779_v22 = vld [vmem:[%s1764_s11 + $0x8] sm:$0xff]   ;;  %p264_p6 = scmp.lt.s32.totalorder %s1397_s4, 47 }
  0x15   : > { %v1767_v13 = vunpack.c.h.bf16 %v1542_v5  ;;  %v1770_v14 = vunpack.c.l.bf16 %v1757_v10  ;;  %v1772_v15 = vunpack.c.l.bf16 %v1544_v11  ;;  %v1774_v16 = vunpack.c.h.bf16 %v1544_v11  ;;  %v1478_v21 = vld [vmem:[%s1764_s11] sm:$0xff]   ;;  %v1803_v41 = vld [vmem:[%s1795_s24 + $0x8] sm:$0xff]  }
  0x16   : > { %v331_v17 = vrot.slane %v1447_v6, 1  ;;  %v332_v18 = vrot.slane %v1448_v7, 1  ;;  %v334_v19 = vrot.slane %v1752_v8, 1  ;;  %v429_v20 = vrot.slane %v1447_v6, 2  ;;  %v1510_v40 = vld [vmem:[%s1795_s24] sm:$0xff]   ;;  %v1438_v3 = vld [vmem:[%s2287_s1 + $0x8] sm:$0xff] }
  0x17   : > { %1168 = vmatpush.bf16.msra.mxu0 %v1442_v2  ;;  %1568 = vmatpush.bf16.msra.mxu1 %v1442_v2  ;;  %v430_v23 = vrot.slane %v1448_v7, 2  ;;  %v432_v24 = vrot.slane %v1752_v8, 2  ;;  %v1479_v25 = vunpack.c.l.bf16 %v1478_v21  ;;  %v1480_v26 = vunpack.c.h.bf16 %v1478_v21  ;;  %s2365_s4 = smov (!%p264_p6, %s1397_s4), 47 }
  0x18   : > { %1569 = vmatpush.bf16.msra.mxu2 %v1442_v2  ;;  %1570 = vmatpush.bf16.msra.mxu3 %v1442_v2  ;;  %v333_v27 = vsel %vm330_vm0, %v331_v17, %v332_v18  ;;  %v335_v28 = vsel %vm330_vm0, %v332_v18, %v334_v19  ;;  %v1787_v29 = vunpack.c.l.bf16 %v1779_v22  ;;  %v338_v30 = vrot.slane %v1754_v9, 1 }
  0x19   : > { %v380_v32 = vmax.f32 %v1447_v6, %v333_v27  ;;  %v381_v33 = vmax.f32 %v1448_v7, %v335_v28  ;;  %v431_v34 = vsel %vm428_vm1, %v429_v20, %v430_v23  ;;  %v630_v35 = vrot.slane %v1479_v25, 1  ;;  %v1846_v28 = vld [vmem:[%s1764_s11 + $0x18] sm:$0xff]  }
  0x1a   : > { %v433_v36 = vsel %vm428_vm1, %v430_v23, %v432_v24  ;;  %v631_v37 = vrot.slane %v1480_v26, 1  ;;  %v633_v38 = vrot.slane %v1787_v29, 1  ;;  %v727_v39 = vrot.slane %v1479_v25, 2 }
  0x1b   : > { %1169 = vmatpush.bf16.msra.mxu0 %v1441_v12  ;;  %1571 = vmatpush.bf16.msra.mxu1 %v1441_v12  ;;  %v478_v42 = vmax.f32 %v380_v32, %v431_v34  ;;  %v479_v43 = vmax.f32 %v381_v33, %v433_v36  ;;  %v728_v44 = vrot.slane %v1480_v26, 2  ;;  %v730_v45 = vrot.slane %v1787_v29, 2 }
  0x1c   : > { %1572 = vmatpush.bf16.msra.mxu2 %v1441_v12  ;;  %1573 = vmatpush.bf16.msra.mxu3 %v1441_v12  ;;  %v632_v46 = vsel %vm330_vm0, %v630_v35, %v631_v37  ;;  %v634_v47 = vsel %vm330_vm0, %v631_v37, %v633_v38  ;;  %v1511_v48 = vunpack.c.l.bf16 %v1510_v40  ;;  %v1512_v49 = vunpack.c.h.bf16 %v1510_v40  ;;  %v1549_v12 = vld [vmem:[%s1764_s11 + $0x10] sm:$0xff]   ;;  %v1437_v35 = vld [vmem:[%s2287_s1] sm:$0xff] }
  0x1d   : > { %v564_v51 = vmax.f32 %v478_v42, %v1479_v25  ;;  %v565_v52 = vmax.f32 %v479_v43, %v1480_v26  ;;  %v729_v53 = vsel %vm428_vm1, %v727_v39, %v728_v44  ;;  %v1815_v54 = vunpack.c.l.bf16 %v1803_v41 }
  0x1e   : > { %v731_v55 = vsel %vm428_vm1, %v728_v44, %v730_v45  ;;  %v928_v56 = vrot.slane %v1511_v48, 1  ;;  %v929_v57 = vrot.slane %v1512_v49, 1  ;;  %v1025_v58 = vrot.slane %v1511_v48, 2 }
  0x1f   : > { %1170 = vmatpush.bf16.msra.mxu0 %v1440_v31  ;;  %1574 = vmatpush.bf16.msra.mxu1 %v1440_v31  ;;  %v679_v59 = vmax.f32 %v564_v51, %v632_v46  ;;  %v680_v60 = vmax.f32 %v565_v52, %v634_v47  ;;  %v931_v61 = vrot.slane %v1815_v54, 1  ;;  %v1026_v62 = vrot.slane %v1512_v49, 2  ;;  %v1556_v46 = vld [vmem:[%s1795_s24 + $0x10] sm:$0xff]   ;;  %v1869_v51 = vld [vmem:[%s1795_s24 + $0x18] sm:$0xff]  }
  0x20   : > { %1575 = vmatpush.bf16.msra.mxu2 %v1440_v31  ;;  %1576 = vmatpush.bf16.msra.mxu3 %v1440_v31  ;;  %v930_v63 = vsel %vm330_vm0, %v928_v56, %v929_v57  ;;  %v2318_v0 = vrot.slane %v1815_v54, 2  ;;  %v340_v1 = vrot.slane %v1767_v13, 1  ;;  %v2313_v2 = vrot.slane %v1770_v14, 1 }
  0x21   : > { %v776_v5 = vmax.f32 %v679_v59, %v729_v53  ;;  %v777_v6 = vmax.f32 %v680_v60, %v731_v55  ;;  %v932_v7 = vsel %vm330_vm0, %v929_v57, %v931_v61  ;;  %v436_v11 = vrot.slane %v1754_v9, 2 }
  0x22   : > { %v1027_v17 = vsel %vm428_vm1, %v1025_v58, %v1026_v62  ;;  %v1029_v18 = vsel %vm428_vm1, %v1026_v62, %v2318_v0  ;;  %v341_v20 = vsel %vm330_vm0, %v338_v30, %v340_v1  ;;  %v438_v21 = vrot.slane %v1767_v13, 2 }
  0x23   : > { %1171 = vmatpush.bf16.msra.mxu0 %v1439_v50  ;;  %1577 = vmatpush.bf16.msra.mxu1 %v1439_v50  ;;  %v862_v23 = vmax.f32 %v776_v5, %v1511_v48  ;;  %v863_v25 = vmax.f32 %v777_v6, %v1512_v49  ;;  %v343_v26 = vsel %vm330_vm0, %v340_v1, %v2313_v2  ;;  %v2306_v33 = vrot.slane %v1770_v14, 2  ;;  %v1888_v5 = vld [vmem:[%s1744_s6 + $0x28] sm:$0xff]  }
  0x24   : > { %1578 = vmatpush.bf16.msra.mxu2 %v1439_v50  ;;  %1579 = vmatpush.bf16.msra.mxu3 %v1439_v50  ;;  %v384_v27 = vmax.f32 %v1754_v9, %v341_v20  ;;  %v385_v31 = vmax.f32 %v1767_v13, %v343_v26  ;;  %v439_v32 = vsel %vm428_vm1, %v436_v11, %v438_v21  ;;  %v1853_v34 = vunpack.c.l.bf16 %v1549_v12 }
  0x25   : > { %v977_v36 = vmax.f32 %v862_v23, %v930_v63  ;;  %v978_v37 = vmax.f32 %v863_v25, %v932_v7  ;;  %v1488_v13 = vunpack.c.h.bf16 %v1549_v12  ;;  %v441_v40 = vsel %vm428_vm1, %v438_v21, %v2306_v33 }
  0x26   : > { %v482_v39 = vmax.f32 %v384_v27, %v439_v32  ;;  %v1862_v42 = vunpack.c.l.bf16 %v1846_v28  ;;  %v637_v43 = vrot.slane %v1853_v34, 1  ;;  %v734_v44 = vrot.slane %v1853_v34, 2 }
  0x27   : > { %1172 = vmatpush.bf16.msra.mxu0 %v1438_v3  ;;  %1580 = vmatpush.bf16.msra.mxu1 %v1438_v3  ;;  %v1074_v47 = vmax.f32 %v977_v36, %v1027_v17  ;;  %v1075_v48 = vmax.f32 %v978_v37, %v1029_v18  ;;  %v483_v49 = vmax.f32 %v385_v31, %v441_v40  ;;  %v639_v52 = vrot.slane %v1488_v13, 1 }
  0x28   : > { %1581 = vmatpush.bf16.msra.mxu2 %v1438_v3  ;;  %1582 = vmatpush.bf16.msra.mxu3 %v1438_v3  ;;  %v568_v50 = vmax.f32 %v482_v39, %v1853_v34  ;;  %v2303_v53 = vrot.slane %v1862_v42, 1  ;;  %v736_v55 = vrot.slane %v1488_v13, 2  ;;  %v2298_v56 = vrot.slane %v1862_v42, 2  ;;  %v1551_v39 = vld [vmem:[%s1764_s11 + $0x20] sm:$0xff]  }
  0x29   : > { %v1090_v57 = vpack.c.bf16 %v1075_v48, %v1074_v47  ;;  %v569_v58 = vmax.f32 %v483_v49, %v1488_v13  ;;  %v1873_v59 = vunpack.c.l.bf16 %v1556_v46  ;;  %v1520_v60 = vunpack.c.h.bf16 %v1556_v46 }
  0x2a   : > { %v640_v62 = vsel %vm330_vm0, %v637_v43, %v639_v52  ;;  %v642_v63 = vsel %vm330_vm0, %v639_v52, %v2303_v53  ;;  %v737_v1 = vsel %vm428_vm1, %v734_v44, %v736_v55  ;;  %v1885_v3 = vunpack.c.l.bf16 %v1869_v51 }
  0x2b   : > { %1173 = vmatpush.bf16.msra.mxu0 %v1437_v35  ;;  %1583 = vmatpush.bf16.msra.mxu1 %v1437_v35  ;;  %v683_v6 = vmax.f32 %v568_v50, %v640_v62  ;;  %v684_v7 = vmax.f32 %v569_v58, %v642_v63  ;;  %v739_v12 = vsel %vm428_vm1, %v736_v55, %v2298_v56  ;;  %v2320_v17 = vrot.slane %v1873_v59, 1  ;;  %v1926_v62 = vld [vmem:[%s1764_s11 + $0x28] sm:$0xff]  }
  0x2c   : > { %1584 = vmatpush.bf16.msra.mxu2 %v1437_v35  ;;  %1585 = vmatpush.bf16.msra.mxu3 %v1437_v35  ;;  %v937_v18 = vrot.slane %v1520_v60, 1  ;;  %v2295_v20 = vrot.slane %v1885_v3, 1  ;;  %v2315_v21 = vrot.slane %v1873_v59, 2  ;;  %v1034_v23 = vrot.slane %v1520_v60, 2 }
  0x2d   : > { %v780_v25 = vmax.f32 %v683_v6, %v737_v1  ;;  %v781_v26 = vmax.f32 %v684_v7, %v739_v12  ;;  %v2291_v27 = vrot.slane %v1885_v3, 2  ;;  %v1898_v31 = vunpack.c.l.bf16 %v1888_v5 }
  0x2e   : > { %1174 = vmatmul.bf16.vlgmr.msra.gmra.mxu0 %v1090_v57  ;;  %v938_v32 = vsel %vm330_vm0, %v2320_v17, %v937_v18  ;;  %v940_v35 = vsel %vm330_vm0, %v937_v18, %v2295_v20  ;;  %v1035_v36 = vsel %vm428_vm1, %v2315_v21, %v1034_v23  ;;  %v2307_v37 = vrot.slane %v1772_v15, 1 }
  0x2f   : > { %v866_v13 = vmax.f32 %v780_v25, %v1873_v59  ;;  %v867_v40 = vmax.f32 %v781_v26, %v1520_v60  ;;  %v1037_v46 = vsel %vm428_vm1, %v1034_v23, %v2291_v27  ;;  %v348_v47 = vrot.slane %v1774_v16, 1  ;;  %v1558_v26 = vld [vmem:[%s1795_s24 + $0x20] sm:$0xff]  }
  0x30   : > { %v2290_v48 = vrot.slane %v1898_v31, 1  ;;  %v2304_v49 = vrot.slane %v1772_v15, 2  ;;  %v446_v50 = vrot.slane %v1774_v16, 2  ;;  %v2292_v52 = vrot.slane %v1898_v31, 2 }
  0x31   : > { %v981_v55 = vmax.f32 %v866_v13, %v938_v32  ;;  %v982_v57 = vmax.f32 %v867_v40, %v940_v35  ;;  %v349_v58 = vsel %vm330_vm0, %v2307_v37, %v348_v47  ;;  %v1923_v60 = vunpack.c.l.bf16 %v1551_v39  ;;  %v1560_v37 = vld [vmem:[%s1795_s24 + $0x30] sm:$0xff]  }
  0x32   : > { %v351_v63 = vsel %vm330_vm0, %v348_v47, %v2290_v48  ;;  %v388_v1 = vmax.f32 %v1772_v15, %v349_v58  ;;  %v447_v6 = vsel %vm428_vm1, %v2304_v49, %v446_v50  ;;  %v449_v7 = vsel %vm428_vm1, %v446_v50, %v2292_v52  ;;  %v1946_v50 = vld [vmem:[%s1795_s24 + $0x28] sm:$0xff]  }
  0x33   : > { %v1078_v12 = vmax.f32 %v981_v55, %v1035_v36  ;;  %v1079_v18 = vmax.f32 %v982_v57, %v1037_v46  ;;  %v389_v23 = vmax.f32 %v1774_v16, %v351_v63  ;;  %v1496_v25 = vunpack.c.h.bf16 %v1551_v39 }
  0x34   : > { %v486_v32 = vmax.f32 %v388_v1, %v447_v6  ;;  %v1941_v35 = vunpack.c.l.bf16 %v1926_v62  ;;  %v2299_v13 = vrot.slane %v1923_v60, 1  ;;  %v2297_v40 = vrot.slane %v1923_v60, 2 }
  0x35   : > { %v1092_v47 = vpack.c.bf16 %v1079_v18, %v1078_v12  ;;  %v487_v58 = vmax.f32 %v389_v23, %v449_v7  ;;  %v647_v48 = vrot.slane %v1496_v25, 1  ;;  %v744_v27 = vrot.slane %v1496_v25, 2  ;;  %v1546_v23 = vld [vmem:[%s1744_s6 + $0x30] sm:$0xff]  }
  0x36   : > { %v572_v36 = vmax.f32 %v486_v32, %v1923_v60  ;;  %v2294_v16 = vrot.slane %v1941_v35, 1  ;;  %v2293_v39 = vrot.slane %v1941_v35, 2  ;;  %v1951_v46 = vunpack.c.l.bf16 %v1558_v26 }
  0x37   : > { %1184 = vmatmul.bf16.vlgmr.msra.gmra.mxu1 %v1092_v47  ;;  %v573_v55 = vmax.f32 %v487_v58, %v1496_v25  ;;  %v648_v57 = vsel %vm330_vm0, %v2299_v13, %v647_v48  ;;  %v745_v63 = vsel %vm428_vm1, %v2297_v40, %v744_v27  ;;  %v1528_v1 = vunpack.c.h.bf16 %v1558_v26 }
  0x38   : > { %v650_v6 = vsel %vm330_vm0, %v647_v48, %v2294_v16  ;;  %v687_v7 = vmax.f32 %v572_v36, %v648_v57  ;;  %v747_v12 = vsel %vm428_vm1, %v744_v27, %v2293_v39  ;;  %v1966_v18 = vunpack.c.l.bf16 %v1946_v50  ;;  %v1974_v57 = vld [vmem:[%s1744_s6 + $0x38] sm:$0xff]   ;;  %v1553_v16 = vld [vmem:[%s1764_s11 + $0x30] sm:$0xff]  }
  0x39   : > { %v688_v25 = vmax.f32 %v573_v55, %v650_v6  ;;  %v2296_v32 = vrot.slane %v1951_v46, 1  ;;  %v945_v47 = vrot.slane %v1528_v1, 1  ;;  %v2301_v26 = vrot.slane %v1951_v46, 2 }
  0x3a   : > { %v784_v58 = vmax.f32 %v687_v7, %v745_v63  ;;  %v2300_v52 = vrot.slane %v1966_v18, 1  ;;  %v1042_v48 = vrot.slane %v1528_v1, 2  ;;  %v2302_v36 = vrot.slane %v1966_v18, 2 }
  0x3b   : > { %v785_v27 = vmax.f32 %v688_v25, %v747_v12  ;;  %v946_v39 = vsel %vm330_vm0, %v2296_v32, %v945_v47  ;;  %v1979_v55 = vunpack.c.l.bf16 %v1546_v23  ;;  %v1472_v6 = vunpack.c.h.bf16 %v1546_v23 }
  0x3c   : > { %v870_v20 = vmax.f32 %v784_v58, %v1951_v46  ;;  %v948_v63 = vsel %vm330_vm0, %v945_v47, %v2300_v52  ;;  %v1043_v7 = vsel %vm428_vm1, %v2301_v26, %v1042_v48  ;;  %v1045_v12 = vsel %vm428_vm1, %v1042_v48, %v2302_v36  ;;  %v2000_v52 = vld [vmem:[%s1764_s11 + $0x38] sm:$0xff]  }
  0x3d   : > { %v871_v25 = vmax.f32 %v785_v27, %v1528_v1  ;;  %v1993_v32 = vunpack.c.l.bf16 %v1974_v57  ;;  %v2305_v23 = vrot.slane %v1979_v55, 1  ;;  %v356_v40 = vrot.slane %v1472_v6, 1 }
  0x3e   : > { %v985_v58 = vmax.f32 %v870_v20, %v946_v39  ;;  %v2308_v56 = vrot.slane %v1979_v55, 2  ;;  %v454_v13 = vrot.slane %v1472_v6, 2  ;;  %v1997_v47 = vunpack.c.l.bf16 %v1553_v16 }
  0x3f   : > { %v986_v26 = vmax.f32 %v871_v25, %v948_v63  ;;  %v357_v1 = vsel %vm330_vm0, %v2305_v23, %v356_v40  ;;  %v2309_v48 = vrot.slane %v1993_v32, 1  ;;  %v2310_v27 = vrot.slane %v1993_v32, 2 }
  0x40   : > { %v1082_v36 = vmax.f32 %v985_v58, %v1043_v7  ;;  %v392_v20 = vmax.f32 %v1979_v55, %v357_v1  ;;  %v455_v39 = vsel %vm428_vm1, %v2308_v56, %v454_v13  ;;  %v1504_v53 = vunpack.c.h.bf16 %v1553_v16 }
  0x41   : > { %v1083_v49 = vmax.f32 %v986_v26, %v1045_v12  ;;  %v359_v63 = vsel %vm330_vm0, %v356_v40, %v2309_v48  ;;  %v457_v25 = vsel %vm428_vm1, %v454_v13, %v2310_v27  ;;  %v2018_v23 = vunpack.c.l.bf16 %v2000_v52  ;;  %v2025_v40 = vld [vmem:[%s1795_s24 + $0x38] sm:$0xff]  }
  0x42   : > { %v393_v7 = vmax.f32 %v1472_v6, %v359_v63  ;;  %v490_v58 = vmax.f32 %v392_v20, %v455_v39  ;;  %v2311_v1 = vrot.slane %v1997_v47, 1  ;;  %v655_v33 = vrot.slane %v1504_v53, 1 }
  0x43   : > { %v1094_v56 = vpack.c.bf16 %v1083_v49, %v1082_v36  ;;  %v2312_v16 = vrot.slane %v2018_v23, 1  ;;  %v2314_v26 = vrot.slane %v1997_v47, 2  ;;  %v752_v12 = vrot.slane %v1504_v53, 2 }
  0x44   : > { %v491_v48 = vmax.f32 %v393_v7, %v457_v25  ;;  %v576_v13 = vmax.f32 %v490_v58, %v1997_v47  ;;  %v656_v6 = vsel %vm330_vm0, %v2311_v1, %v655_v33  ;;  %v2316_v20 = vrot.slane %v2018_v23, 2 }
  0x45   : > { %1194 = vmatmul.bf16.vlgmr.msra.gmra.mxu2 %v1094_v56  ;;  %v658_v49 = vsel %vm330_vm0, %v655_v33, %v2312_v16  ;;  %v753_v36 = vsel %vm428_vm1, %v2314_v26, %v752_v12  ;;  %v2038_v39 = vunpack.c.l.bf16 %v1560_v37  ;;  %v1536_v63 = vunpack.c.h.bf16 %v1560_v37 }
  0x46   : > { %v577_v25 = vmax.f32 %v491_v48, %v1504_v53  ;;  %v691_v7 = vmax.f32 %v576_v13, %v656_v6  ;;  %v755_v58 = vsel %vm428_vm1, %v752_v12, %v2316_v20  ;;  %v2044_v27 = vunpack.c.l.bf16 %v2025_v40 }
  0x47   : > { %v2317_v56 = vrot.slane %v2038_v39, 1  ;;  %v953_v1 = vrot.slane %v1536_v63, 1  ;;  %v2319_v33 = vrot.slane %v2038_v39, 2  ;;  %v1050_v16 = vrot.slane %v1536_v63, 2 }
  0x48   : > { %v692_v2 = vmax.f32 %v577_v25, %v658_v49  ;;  %v788_v26 = vmax.f32 %v691_v7, %v753_v36  ;;  %v955_v21 = vrot.slane %v2044_v27, 1  ;;  %v1052_v53 = vrot.slane %v2044_v27, 2 }
  0x49   : > { %v954_v37 = vsel %vm330_vm0, %v2317_v56, %v953_v1  ;;  %v1051_v48 = vsel %vm428_vm1, %v2319_v33, %v1050_v16  ;;  %v1452_v12 = vunpack.c.h.bf16 %v1748_v4  ;;  %v1484_v13 = vunpack.c.h.bf16 %v1779_v22 }
  0x4a   : > { %v789_v6 = vmax.f32 %v692_v2, %v755_v58  ;;  %v874_v49 = vmax.f32 %v788_v26, %v2038_v39  ;;  %v956_v36 = vsel %vm330_vm0, %v953_v1, %v955_v21  ;;  %v1053_v25 = vsel %vm428_vm1, %v1050_v16, %v1052_v53 }
  0x4b   : > { %v336_v7 = vrot.slane %v1452_v12, 1  ;;  %v434_v20 = vrot.slane %v1452_v12, 2  ;;  %v635_v56 = vrot.slane %v1484_v13, 1  ;;  %v732_v0 = vrot.slane %v1484_v13, 2 }
  0x4c   : > { %v875_v33 = vmax.f32 %v789_v6, %v1536_v63  ;;  %v989_v17 = vmax.f32 %v874_v49, %v954_v37  ;;  %v1516_v4 = vunpack.c.h.bf16 %v1803_v41  ;;  %v1460_v22 = vunpack.c.h.bf16 %v1757_v10 }
  0x4d   : > { %v337_v2 = vsel %vm330_vm0, %v334_v19, %v336_v7  ;;  %v339_v1 = vsel %vm330_vm0, %v336_v7, %v338_v30  ;;  %v435_v16 = vsel %vm428_vm1, %v432_v24, %v434_v20  ;;  %v437_v26 = vsel %vm428_vm1, %v434_v20, %v436_v11 }
  0x4e   : > { %v990_v63 = vmax.f32 %v875_v33, %v956_v36  ;;  %v1086_v41 = vmax.f32 %v989_v17, %v1051_v48  ;;  %v382_v10 = vmax.f32 %v1752_v8, %v337_v2  ;;  %v383_v58 = vmax.f32 %v1452_v12, %v339_v1 }
  0x4f   : > { %v636_v19 = vsel %vm330_vm0, %v633_v38, %v635_v56  ;;  %v638_v30 = vsel %vm330_vm0, %v635_v56, %v637_v43  ;;  %v733_v24 = vsel %vm428_vm1, %v730_v45, %v732_v0  ;;  %v735_v9 = vsel %vm428_vm1, %v732_v0, %v734_v44 }
  0x50   : > { %v1087_v11 = vmax.f32 %v990_v63, %v1053_v25  ;;  %v480_v17 = vmax.f32 %v382_v10, %v435_v16  ;;  %v481_v8 = vmax.f32 %v383_v58, %v437_v26  ;;  %v933_v20 = vrot.slane %v1516_v4, 1 }
  0x51   : > { %v1030_v33 = vrot.slane %v1516_v4, 2  ;;  %v344_v37 = vrot.slane %v1460_v22, 1  ;;  %v442_v48 = vrot.slane %v1460_v22, 2  ;;  %v1492_v38 = vunpack.c.h.bf16 %v1846_v28 }
  0x52   : > { %v1096_v12 = vpack.c.bf16 %v1087_v11, %v1086_v41  ;;  %v566_v43 = vmax.f32 %v480_v17, %v1787_v29  ;;  %v567_v56 = vmax.f32 %v481_v8, %v1484_v13  ;;  %v934_v45 = vsel %vm330_vm0, %v931_v61, %v933_v20 }
  0x53   : > { %v2321_v34 = vrot.slane %v1873_v59, 1  ;;  %v2322_v44 = vrot.slane %v1815_v54, 2  ;;  %v2323_v49 = vrot.slane %v1873_v59, 2  ;;  %v2324_v36 = vrot.slane %v1770_v14, 1 }
  0x54   : > { %1204 = vmatmul.bf16.vlgmr.msra.gmra.mxu3 %v1096_v12  ;;  %v681_v13 = vmax.f32 %v566_v43, %v636_v19  ;;  %v682_v25 = vmax.f32 %v567_v56, %v638_v30  ;;  %v2325_v61 = vrot.slane %v1772_v15, 1  ;;  %v2326_v16 = vrot.slane %v1770_v14, 2 }
  0x55   : > { %v936_v0 = vsel %vm330_vm0, %v933_v20, %v2321_v34  ;;  %v1031_v6 = vsel %vm428_vm1, %v2322_v44, %v1030_v33  ;;  %v1033_v28 = vsel %vm428_vm1, %v1030_v33, %v2323_v49  ;;  %v345_v29 = vsel %vm330_vm0, %v2324_v36, %v344_v37 }
  0x56   : > { %v347_v7 = vsel %vm330_vm0, %v344_v37, %v2325_v61  ;;  %v386_v2 = vmax.f32 %v1770_v14, %v345_v29  ;;  %v443_v59 = vsel %vm428_vm1, %v2326_v16, %v442_v48  ;;  %v2327_v26 = vrot.slane %v1772_v15, 2 }
  0x57   : > { %v387_v1 = vmax.f32 %v1460_v22, %v347_v7  ;;  %v643_v41 = vrot.slane %v1492_v38, 1  ;;  %v778_v10 = vmax.f32 %v681_v13, %v733_v24  ;;  %v779_v58 = vmax.f32 %v682_v25, %v735_v9 }
  0x58   : > { %v445_v63 = vsel %vm428_vm1, %v442_v48, %v2327_v26  ;;  %v484_v19 = vmax.f32 %v386_v2, %v443_v59  ;;  %v740_v30 = vrot.slane %v1492_v38, 2  ;;  %v2328_v17 = vrot.slane %v1862_v42, 1 }
  0x59   : > { %v485_v11 = vmax.f32 %v387_v1, %v445_v63  ;;  %v2329_v22 = vrot.slane %v1923_v60, 1  ;;  %v1524_v20 = vunpack.c.h.bf16 %v1869_v51  ;;  %v864_v15 = vmax.f32 %v778_v10, %v1815_v54 }
  0x5a   : > { %v644_v8 = vsel %vm330_vm0, %v2328_v17, %v643_v41  ;;  %v865_v33 = vmax.f32 %v779_v58, %v1516_v4  ;;  %v570_v37 = vmax.f32 %v484_v19, %v1862_v42  ;;  %v2330_v24 = vrot.slane %v1862_v42, 2 }
  0x5b   : > { %v646_v14 = vsel %vm330_vm0, %v643_v41, %v2329_v22  ;;  %v571_v48 = vmax.f32 %v485_v11, %v1492_v38  ;;  %v2331_v12 = vrot.slane %v1923_v60, 2  ;;  %v941_v56 = vrot.slane %v1524_v20, 1 }
  0x5c   : > { %v741_v9 = vsel %vm428_vm1, %v2330_v24, %v740_v30  ;;  %v1038_v34 = vrot.slane %v1524_v20, 2  ;;  %v979_v44 = vmax.f32 %v864_v15, %v934_v45  ;;  %v980_v49 = vmax.f32 %v865_v33, %v936_v0 }
  0x5d   : > { %v743_v43 = vsel %vm428_vm1, %v740_v30, %v2331_v12  ;;  %v685_v36 = vmax.f32 %v570_v37, %v644_v8  ;;  %v1468_v51 = vunpack.c.h.bf16 %v1888_v5  ;;  %v686_v54 = vmax.f32 %v571_v48, %v646_v14 }
  0x5e   : > { %v2332_v4 = vrot.slane %v1885_v3, 1  ;;  %v2333_v42 = vrot.slane %v1951_v46, 1  ;;  %v2334_v60 = vrot.slane %v1885_v3, 2  ;;  %v1076_v25 = vmax.f32 %v979_v44, %v1031_v6 }
  0x5f   : > { %v1077_v61 = vmax.f32 %v980_v49, %v1033_v28  ;;  %v782_v45 = vmax.f32 %v685_v36, %v741_v9  ;;  %v2335_v0 = vrot.slane %v1951_v46, 2  ;;  %v783_v7 = vmax.f32 %v686_v54, %v743_v43 }
  0x60   : > { %v942_v29 = vsel %vm330_vm0, %v2332_v4, %v941_v56  ;;  %v944_v38 = vsel %vm330_vm0, %v941_v56, %v2333_v42  ;;  %v1039_v13 = vsel %vm428_vm1, %v2334_v60, %v1038_v34  ;;  %v352_v2 = vrot.slane %v1468_v51, 1  ;;  %v295_v56 = vld [vmem:[%s1744_s6 + $0x40] sm:$0xf]  ;;  %s270_s6 = sadd.s32 %s1587_s5, %s2365_s4 }
  0x61   : > { %v1041_v5 = vsel %vm428_vm1, %v1038_v34, %v2335_v0  ;;  %v450_v1 = vrot.slane %v1468_v51, 2  ;;  %v1500_v16 = vunpack.c.h.bf16 %v1926_v62  ;;  %v1091_v59 = vpack.c.bf16 %v1077_v61, %v1076_v25  ;;  %v531_v4 = vld [vmem:[%s1764_s11 + $0x40] sm:$0xf]  ;;  %s1398_s9 = sshll.u32 %s270_s6, 3 }
  0x62   : > { %v868_v26 = vmax.f32 %v782_v45, %v1885_v3  ;;  %v1532_v63 = vunpack.c.h.bf16 %v1946_v50  ;;  %v2151_v41 = vunpack.c.h.bf16 %v1974_v57  ;;  %v869_v6 = vmax.f32 %v783_v7, %v1524_v20  ;;  %s2238_s19 = scalar_lea.vmem %s2289_s3, %s1398_s9 }
  0x63   : > { %v2336_v28 = vrot.slane %v1898_v31, 1  ;;  %v2337_v10 = vrot.slane %v1979_v55, 1  ;;  %v2338_v19 = vrot.slane %v1898_v31, 2  ;;  %1179 = vmatmul.bf16.gmra.mxu0 %v1091_v59  ;;  %v2339_v30 = vrot.slane %v1979_v55, 2 }
  0x64   : > { %v983_v3 = vmax.f32 %v868_v26, %v942_v29  ;;  %v984_v17 = vmax.f32 %v869_v6, %v944_v38  ;;  %v651_v8 = vrot.slane %v1500_v16, 1  ;;  %v748_v22 = vrot.slane %v1500_v16, 2 }
  0x65   : > { %v353_v46 = vsel %vm330_vm0, %v2336_v28, %v352_v2  ;;  %v355_v58 = vsel %vm330_vm0, %v352_v2, %v2337_v10  ;;  %v451_v62 = vsel %vm428_vm1, %v2338_v19, %v450_v1  ;;  %v453_v11 = vsel %vm428_vm1, %v450_v1, %v2339_v30 }
  0x66   : > { %v390_v50 = vmax.f32 %v1898_v31, %v353_v46  ;;  %v391_v57 = vmax.f32 %v1468_v51, %v355_v58  ;;  %v949_v14 = vrot.slane %v1532_v63, 1  ;;  %v1080_v20 = vmax.f32 %v983_v3, %v1039_v13 }
  0x67   : > { %v1046_v37 = vrot.slane %v1532_v63, 2  ;;  %v1081_v24 = vmax.f32 %v984_v17, %v1041_v5  ;;  %v2340_v9 = vrot.slane %v1941_v35, 1  ;;  %v2341_v31 = vrot.slane %v1997_v47, 1 }
  0x68   : > { %v488_v15 = vmax.f32 %v390_v50, %v451_v62  ;;  %v489_v33 = vmax.f32 %v391_v57, %v453_v11  ;;  %v2342_v12 = vrot.slane %v1941_v35, 2  ;;  %v2343_v49 = vrot.slane %v1997_v47, 2  ;;  %v829_v50 = vld [vmem:[%s1795_s24 + $0x40] sm:$0xf] }
  0x69   : > { %v652_v48 = vsel %vm330_vm0, %v2340_v9, %v651_v8  ;;  %v654_v55 = vsel %vm330_vm0, %v651_v8, %v2341_v31  ;;  %v2344_v51 = vrot.slane %v1966_v18, 1  ;;  %v1093_v29 = vpack.c.bf16 %v1081_v24, %v1080_v20 }
  0x6a   : > { %v749_v43 = vsel %vm428_vm1, %v2342_v12, %v748_v22  ;;  %v574_v34 = vmax.f32 %v488_v15, %v1941_v35  ;;  %v575_v44 = vmax.f32 %v489_v33, %v1500_v16  ;;  %v751_v36 = vsel %vm428_vm1, %v748_v22, %v2343_v49 }
  0x6b   : > { %v950_v54 = vsel %vm330_vm0, %v2344_v51, %v949_v14  ;;  %v2345_v42 = vrot.slane %v2038_v39, 1  ;;  %v2346_v60 = vrot.slane %v1966_v18, 2  ;;  %v2347_v35 = vrot.slane %v2038_v39, 2  ;;  %1189 = vmatmul.bf16.gmra.mxu1 %v1093_v29 }
  0x6c   : > { %v689_v25 = vmax.f32 %v574_v34, %v652_v48  ;;  %v690_v61 = vmax.f32 %v575_v44, %v654_v55  ;;  %v312_v45 = vunpack.c.l.bf16 %v295_v56  ;;  %v360_v0 = vrot.slane %v2151_v41, 1 }
  0x6d   : > { %v952_v38 = vsel %vm330_vm0, %v949_v14, %v2345_v42  ;;  %v1047_v13 = vsel %vm428_vm1, %v2346_v60, %v1046_v37  ;;  %v1049_v47 = vsel %vm428_vm1, %v1046_v37, %v2347_v35  ;;  %v458_v5 = vrot.slane %v2151_v41, 2 }
  0x6e   : > { %v1508_v7 = vunpack.c.h.bf16 %v2000_v52  ;;  %v612_v2 = vunpack.c.l.bf16 %v531_v4  ;;  %v1540_v1 = vunpack.c.h.bf16 %v2025_v40  ;;  %v786_v16 = vmax.f32 %v689_v25, %v749_v43 }
  0x6f   : > { %v787_v59 = vmax.f32 %v690_v61, %v751_v36  ;;  %v2348_v39 = vrot.slane %v1993_v32, 1  ;;  %v362_v6 = vrot.slane %v312_v45, 1  ;;  %v2349_v46 = vrot.slane %v1993_v32, 2 }
  0x70   : > { %v460_v58 = vrot.slane %v312_v45, 2  ;;  %v659_v19 = vrot.slane %v1508_v7, 1  ;;  %v872_v52 = vmax.f32 %v786_v16, %v1966_v18  ;;  %v661_v3 = vrot.slane %v612_v2, 1 }
  0x71   : > { %v361_v26 = vsel %vm330_vm0, %v2348_v39, %v360_v0  ;;  %v459_v10 = vsel %vm428_vm1, %v2349_v46, %v458_v5  ;;  %v873_v62 = vmax.f32 %v787_v59, %v1532_v63  ;;  %v363_v40 = vsel %vm330_vm0, %v360_v0, %v362_v6 }
  0x72   : > { %v394_v28 = vmax.f32 %v1993_v32, %v361_v26  ;;  %v395_v57 = vmax.f32 %v2151_v41, %v363_v40  ;;  %v461_v30 = vsel %vm428_vm1, %v458_v5, %v460_v58  ;;  %v2350_v17 = vrot.slane %v2018_v23, 1 }
  0x73   : > { %v987_v8 = vmax.f32 %v872_v52, %v950_v54  ;;  %v988_v22 = vmax.f32 %v873_v62, %v952_v38  ;;  %v662_v14 = vsel %vm330_vm0, %v659_v19, %v661_v3  ;;  %v756_v20 = vrot.slane %v1508_v7, 2 }
  0x74   : > { %v492_v11 = vmax.f32 %v394_v28, %v459_v10  ;;  %v660_v32 = vsel %vm330_vm0, %v2350_v17, %v659_v19  ;;  %v493_v18 = vmax.f32 %v395_v57, %v461_v30  ;;  %v758_v15 = vrot.slane %v612_v2, 2 }
  0x75   : > { %v910_v33 = vunpack.c.l.bf16 %v829_v50  ;;  %v1084_v37 = vmax.f32 %v987_v8, %v1047_v13  ;;  %v1085_v24 = vmax.f32 %v988_v22, %v1049_v47  ;;  %v2351_v41 = vrot.slane %v2018_v23, 2 }
  0x76   : > { %v578_v63 = vmax.f32 %v492_v11, %v2018_v23  ;;  %v957_v48 = vrot.slane %v1540_v1, 1  ;;  %v579_v31 = vmax.f32 %v493_v18, %v1508_v7  ;;  %v759_v43 = vsel %vm428_vm1, %v756_v20, %v758_v15 }
  0x77   : > { %v757_v9 = vsel %vm428_vm1, %v2351_v41, %v756_v20  ;;  %v1095_v12 = vpack.c.bf16 %v1085_v24, %v1084_v37  ;;  %v959_v56 = vrot.slane %v910_v33, 1  ;;  %v1054_v34 = vrot.slane %v1540_v1, 2 }
  0x78   : > { %v693_v55 = vmax.f32 %v578_v63, %v660_v32  ;;  %v694_v44 = vmax.f32 %v579_v31, %v662_v14  ;;  %v958_v36 = vsel %vm330_vm0, %v955_v21, %v957_v48  ;;  %v1056_v51 = vrot.slane %v910_v33, 2  ;;  %v2232_v21 = vld [vmem:[%s2288_s2] ss:$0 sm:$0xff] }
  0x79   : > { %1199 = vmatmul.bf16.gmra.mxu2 %v1095_v12  ;;  %v960_v4 = vsel %vm330_vm0, %v957_v48, %v959_v56  ;;  %v1055_v29 = vsel %vm428_vm1, %v1052_v53, %v1054_v34 }
  0x7a   : > { %v790_v49 = vmax.f32 %v693_v55, %v757_v9  ;;  %v791_v23 = vmax.f32 %v694_v44, %v759_v43  ;;  %v1057_v60 = vsel %vm428_vm1, %v1054_v34, %v1056_v51 }
  0x7c   : > { %v876_v54 = vmax.f32 %v790_v49, %v2044_v27  ;;  %v877_v42 = vmax.f32 %v791_v23, %v1540_v1 }
  0x7e   : > { %v991_v38 = vmax.f32 %v876_v54, %v958_v36  ;;  %v992_v13 = vmax.f32 %v877_v42, %v960_v4 }
  0x80   : > { %v1088_v35 = vmax.f32 %v991_v38, %v1055_v29  ;;  %v1089_v47 = vmax.f32 %v992_v13, %v1057_v60 }
  0x82   : > { %v1097_v25 = vpack.c.bf16 %v1089_v47, %v1088_v35 }
  0x84   : > { %1209 = vmatmul.bf16.gmra.mxu3 %v1097_v25 }
  0xab   : > { %v1175_v27 = vpop.f32.mrf.mxu0 }
  0xac   : > { %v1176_v53 = vadd.f32 %v2232_v21, %v1175_v27 }
  0xae   : > { %v1215_v61 = vmax.f32 %v1176_v53, 0.0 }
  0xb0   : > { %1231 = vst [vmem:[%s2238_s19] sm:$0xff] %v1215_v61 }
  0xb3   : > { %v1177_v7 = vpop.f32.mrf.mxu0 }
  0xb4   : > { %v1185_v45 = vpop.f32.mrf.mxu1  ;;  %v1178_v1 = vadd.f32 %v2232_v21, %v1177_v7 }
  0xb5   : > { %v1186_v0 = vadd.f32 %v2232_v21, %v1185_v45 }
  0xb6   : > { %v1216_v59 = vmax.f32 %v1178_v1, 0.0 }
  0xb7   : > { %v1219_v5 = vmax.f32 %v1186_v0, 0.0 }
  0xb8   : > { %1232 = vst [vmem:[%s2238_s19 + $0x8] sm:$0xff] %v1216_v59 }
  0xb9   : > { %1235 = vst [vmem:[%s2238_s19 + $0x20] sm:$0xff] %v1219_v5 }
  0xbc   : > { %v1187_v2 = vpop.f32.mrf.mxu1 }
  0xbd   : > { %v1188_v16 = vadd.f32 %v2232_v21, %v1187_v2 }
  0xbf   : > { %v1220_v39 = vmax.f32 %v1188_v16, 0.0 }
  0xc1   : > { %1236 = vst [vmem:[%s2238_s19 + $0x28] sm:$0xff] %v1220_v39 }
  0xc8   : > { %v1195_v26 = vpop.f32.mrf.mxu2 }
  0xc9   : > { %v1196_v6 = vadd.f32 %v2232_v21, %v1195_v26 }
  0xcb   : > { %v1223_v28 = vmax.f32 %v1196_v6, 0.0 }
  0xcd   : > { %1239 = vst [vmem:[%s2238_s19 + $0x40] sm:$0xff] %v1223_v28 }
  0xd0   : > { %v1197_v46 = vpop.f32.mrf.mxu2 }
  0xd1   : > { %v1198_v10 = vadd.f32 %v2232_v21, %v1197_v46 }
  0xd3   : > { %v1224_v58 = vmax.f32 %v1198_v10, 0.0 }
  0xd5   : > { %1240 = vst [vmem:[%s2238_s19 + $0x48] sm:$0xff] %v1224_v58 }
  0xd7   : > { %v1205_v19 = vpop.f32.mrf.mxu3 }
  0xd8   : > { %v1206_v52 = vadd.f32 %v2232_v21, %v1205_v19 }
  0xda   : > { %v1227_v62 = vmax.f32 %v1206_v52, 0.0 }
  0xdc   : > { %1243 = vst [vmem:[%s2238_s19 + $0x60] sm:$0xff] %v1227_v62 }
  0xdf   : > { %v1207_v50 = vpop.f32.mrf.mxu3 }
  0xe0   : > { %v1180_v40 = vpop.f32.mrf.mxu0  ;;  %v1208_v57 = vadd.f32 %v2232_v21, %v1207_v50 }
  0xe1   : > { %v1181_v3 = vadd.f32 %v2232_v21, %v1180_v40 }
  0xe2   : > { %v1228_v11 = vmax.f32 %v1208_v57, 0.0 }
  0xe3   : > { %v1217_v30 = vmax.f32 %v1181_v3, 0.0 }
  0xe4   : > { %1244 = vst [vmem:[%s2238_s19 + $0x68] sm:$0xff] %v1228_v11 }
  0xe5   : > { %1233 = vst [vmem:[%s2238_s19 + $0x10] sm:$0xff] %v1217_v30 }
  0xe8   : > { %v1190_v17 = vpop.f32.mrf.mxu1  ;;  %v1182_v8 = vpop.f32.mrf.mxu0 }
  0xe9   : > { %v1191_v32 = vadd.f32 %v2232_v21, %v1190_v17  ;;  %v1183_v22 = vadd.f32 %v2232_v21, %v1182_v8 }
  0xeb   : > { %v1221_v14 = vmax.f32 %v1191_v32, 0.0  ;;  %v1218_v20 = vmax.f32 %v1183_v22, 0.0 }
  0xed   : > { %1237 = vst [vmem:[%s2238_s19 + $0x30] sm:$0xff] %v1221_v14 }
  0xee   : > { %1234 = vst [vmem:[%s2238_s19 + $0x18] sm:$0xff] %v1218_v20 }
  0xf0   : > { %v1192_v18 = vpop.f32.mrf.mxu1 }
  0xf1   : > { %v1193_v63 = vadd.f32 %v2232_v21, %v1192_v18 }
  0xf3   : > { %v1222_v15 = vmax.f32 %v1193_v63, 0.0 }
  0xf5   : > { %1238 = vst [vmem:[%s2238_s19 + $0x38] sm:$0xff] %v1222_v15 }
  0xfc   : > { %v1200_v33 = vpop.f32.mrf.mxu2 }
  0xfd   : > { %v1201_v37 = vadd.f32 %v2232_v21, %v1200_v33 }
  0xff   : > { %v1225_v24 = vmax.f32 %v1201_v37, 0.0 }
 0x101   : > { %1241 = vst [vmem:[%s2238_s19 + $0x50] sm:$0xff] %v1225_v24 }
 0x104   : > { %v1202_v41 = vpop.f32.mrf.mxu2 }
 0x105   : > { %v1203_v9 = vadd.f32 %v2232_v21, %v1202_v41 }
 0x107   : > { %v1210_v48 = vpop.f32.mrf.mxu3  ;;  %v1226_v31 = vmax.f32 %v1203_v9, 0.0 }
 0x108   : > { %v1211_v55 = vadd.f32 %v2232_v21, %v1210_v48 }
 0x109   : > { %1242 = vst [vmem:[%s2238_s19 + $0x58] sm:$0xff] %v1226_v31 }
 0x10a   : > { %v1229_v12 = vmax.f32 %v1211_v55, 0.0 }
 0x10c   : > { %1245 = vst [vmem:[%s2238_s19 + $0x70] sm:$0xff] %v1229_v12 }
 0x10f   : > { %v1212_v43 = vpop.f32.mrf.mxu3 }
 0x110   : > { %v1213_v56 = vadd.f32 %v2232_v21, %v1212_v43 }
 0x112   : > { %v1230_v34 = vmax.f32 %v1213_v56, 0.0 }
 0x114   : > { %1246 = vst [vmem:[%s2238_s19 + $0x78] sm:$0xff] %v1230_v34 }
 0x115 PF: > { %s13_s16 = sadd.s32 1, %s1667_s16   ;;  %s2352_s12 = smov %s1659_s14 }
 0x116   : > { %p10_p7 = scmp.ge.s32.totalorder %s13_s16, 8   ;;  %s2353_s13 = smov %s1663_s15 }
 0x117   : > { %s2354_s14 = smov %s2357_s17  ;;  %s2355_s15 = smov %s2361_s18 }
 0x118   :  { %12 = sbr.rel (!%p10_p7) target bundleno = 3 (0x3), region = 71 }

// kernel: inception_forward.5
= control target key start
LH: loop header
LB: loop body
LE: loop exit
PB: predicated region body
PF: predicated region fallthrough
CT: control target
= control target key end

     0   :  { %s2880_s12 = smov 0   ;;  %s2882_s13 = smov 0   ;;  %s3485_s0 = inlined_call_operand.vmem [shape: bf16[2,440,128], index: 0, kind: input, shape index: {}]   ;;  %s3486_s1 = inlined_call_operand.vmem [shape: bf16[9,128,128], index: 1, kind: input, shape index: {}]   ;;  %s3487_s2 = inlined_call_operand.vmem [shape: f32[1,128], index: 2, kind: input, shape index: {}]   ;;  %s3488_s3 = inlined_call_operand.vmem [shape: f32[2,384,128], index: 3, kind: output, shape index: {}]  }
   0x1   :  { %s2884_s14 = smov 0   ;;  %s2886_s15 = smov 0  }
   0x2   :  { %s2888_s16 = smov 0  }
   0x3 LB: > { %s35_s17 = sadd.s32 1, %s2850_s14  ;;  %s39_s18 = sadd.s32 1, %s2854_s15  ;;  %s2858_s16 = sphi %s2888_s16, %s13_s16   ;;  %s2854_s15 = sphi %s2886_s15, %s3492_s15   ;;  %s2850_s14 = sphi %s2884_s14, %s3491_s14   ;;  %s2846_s13 = sphi %s2882_s13, %s3490_s13   ;;  %s2842_s12 = sphi %s2880_s12, %s3489_s12  }
   0x4   : > { %p37_p0 = scmp.ge.s32.totalorder %s35_s17, 3  ;;  %p2135_p1 = scmp.ge.s32.totalorder %s2858_s16, 1 }
   0x5   : > { %p196_p2 = scmp.lt.s32.totalorder %s2858_s16, 7 }
   0x6   : > { %s3494_s17 = smov (%p37_p0, %s35_s17), 0  ;;  %s3496_s18 = smov (!%p37_p0, %s39_s18), %s2854_s15 }
   0x7   : > { %p197_p3 = pnand %p2135_p1, %p196_p2  ;;  %p41_p4 = scmp.ge.s32.totalorder %s3496_s18, 2 }
   0x8   : > { %p241_p5 = scmp.lt.s32.totalorder (!%p197_p3), %s2846_s13, 1  ;;  %s2916_s21 = sshll.u32 (!%p197_p3), %s2842_s12, 7 }
   0x9   : > { %s3498_s18 = smov (%p41_p4, %s3496_s18), 0  ;;  %200 = sbr.rel (%p197_p3) target bundleno = 469 (0x1d5), region = 32 }
   0xa   : > { %s275_s25 = sshra.s32 (!%p197_p3), %s2916_s21, 3  ;;  %s807_s22 = sadd.s32 (!%p197_p3), 24, %s2916_s21 }
   0xb   : > { %s2140_s4 = sshll.u32 (!%p197_p3), %s275_s25, 2  ;;  %s808_s27 = sshra.s32 (!%p197_p3), %s807_s22, 3 }
   0xc   : > { %s2301_s10 = sshll.u32 (!%p197_p3), %s808_s27, 2  ;;  %s1371_s26 = sadd.s32 (!%p197_p3), 48, %s2916_s21 }
   0xd   : > { %s1372_s28 = sshra.s32 (!%p197_p3), %s1371_s26, 3 }
   0xe   : > { %v2680_v0 = vld [vmem:[%s3486_s1 + $0x78] sm:$0xff]  ;;  %v2679_v1 = vld [vmem:[%s3486_s1 + $0x70] sm:$0xff]  ;;  %s3500_s13 = smov (!%p241_p5, %s2846_s13), 1  ;;  %v2678_v2 = vld [vmem:[%s3486_s1 + $0x68] sm:$0xff]  ;;  %vm372_vm0 = vsmask.f32 7424 }
   0xf   : > { %2753 = vmatpush.bf16.msra.mxu1 %v2680_v0  ;;  %2754 = vmatpush.bf16.msra.mxu2 %v2680_v0  ;;  %s2777_s24 = smul.u32 220, %s3500_s13  ;;  %v2677_v3 = vld [vmem:[%s3486_s1 + $0x60] sm:$0xff]  ;;  %v2676_v4 = vld [vmem:[%s3486_s1 + $0x58] sm:$0xff]  ;;  %v2675_v11 = vld [vmem:[%s3486_s1 + $0x50] sm:$0xff]  ;;  %vm668_vm1 = vcmask 1046528  }
  0x10   : > { %2755 = vmatpush.bf16.msra.mxu3 %v2680_v0  ;;  %497 = vmatpush.bf16.msra.mxu0 %v2680_v0  ;;  %v2674_v22 = vld [vmem:[%s3486_s1 + $0x48] sm:$0xff]  ;;  %v2673_v31 = vld [vmem:[%s3486_s1 + $0x40] sm:$0xff]  ;;  %v2688_v40 = vld [vmem:[%s3486_s1 + $0xb8] sm:$0xff] }
  0x11   : > { %s2931_s30 = scalar_lea.vmem %s3485_s0, %s2777_s24  ;;  %v2672_v41 = vld [vmem:[%s3486_s1 + $0x38] sm:$0xff]  ;;  %v2687_v50 = vld [vmem:[%s3486_s1 + $0xb0] sm:$0xff]  ;;  %v2686_v55 = vld [vmem:[%s3486_s1 + $0xa8] sm:$0xff] }
  0x12   : > { %s2937_s7 = scalar_lea.vmem %s2931_s30, %s2140_s4  ;;  %v2704_v46 = vld [vmem:[%s3486_s1 + $0xf8] sm:$0xff]  ;;  %v2671_v51 = vld [vmem:[%s3486_s1 + $0x30] sm:$0xff]  ;;  %v2670_v56 = vld [vmem:[%s3486_s1 + $0x28] sm:$0xff]  ;;  %s3064_s27 = scalar_lea.vmem %s2931_s30, %s2301_s10 }
  0x13   : > { %2756 = vmatpush.bf16.msra.mxu1 %v2679_v1  ;;  %2757 = vmatpush.bf16.msra.mxu2 %v2679_v1  ;;  %v2943_v5 = vld [vmem:[%s2937_s7 + $0x10] sm:$0xff]  ;;  %v2946_v6 = vld [vmem:[%s2937_s7 + $0x20] sm:$0xff]  ;;  %v2955_v9 = vld [vmem:[%s2937_s7 + $0x18] sm:$0xff] }
  0x14   : > { %2758 = vmatpush.bf16.msra.mxu3 %v2679_v1  ;;  %498 = vmatpush.bf16.msra.mxu0 %v2679_v1  ;;  %v2949_v7 = vld [vmem:[%s2937_s7 + $0x30] sm:$0xff]  ;;  %v2952_v8 = vld [vmem:[%s2937_s7] sm:$0xff]  ;;  %v2958_v10 = vld [vmem:[%s2937_s7 + $0x28] sm:$0xff]  ;;  %v389_v12 = vshll.u32 %v2943_v5, 16  ;;  %v405_v13 = vshll.u32 %v2946_v6, 16  ;;  %v393_v18 = vshrl.u32 %v2943_v5, 16 }
  0x15   : > { %v2966_v14 = vld [vmem:[%s2937_s7 + $0x38] sm:$0xff]  ;;  %v421_v15 = vshll.u32 %v2949_v7, 16  ;;  %v2970_v16 = vld [vmem:[%s2937_s7 + $0x8] sm:$0xff]  ;;  %v376_v17 = vshll.u32 %v2952_v8, 16  ;;  %v397_v19 = vshll.u32 %v2955_v9, 16  ;;  %v409_v20 = vshrl.u32 %v2946_v6, 16 }
  0x16   : > { %v413_v21 = vshll.u32 %v2958_v10, 16  ;;  %v2980_v23 = vrot.slane %v389_v12, 1  ;;  %v2982_v24 = vrot.slane %v405_v13, 1  ;;  %v425_v25 = vshrl.u32 %v2949_v7, 16  ;;  %v295_v42 = vld [vmem:[%s2937_s7 + $0x40] sm:$0xf] }
  0x17   : > { %2759 = vmatpush.bf16.msra.mxu1 %v2678_v2  ;;  %2760 = vmatpush.bf16.msra.mxu2 %v2678_v2  ;;  %v429_v26 = vshll.u32 %v2966_v14, 16  ;;  %v2986_v27 = vrot.slane %v421_v15, 1  ;;  %v374_v28 = vshrl.u32 %v2952_v8, 16  ;;  %v378_v29 = vrot.slane %v376_v17, 1  ;;  %v2712_v48 = vld [vmem:[%s3486_s1 + $0x138] sm:$0xff]  ;;  %v2703_v52 = vld [vmem:[%s3486_s1 + $0xf0] sm:$0xff] }
  0x18   : > { %2761 = vmatpush.bf16.msra.mxu3 %v2678_v2  ;;  %499 = vmatpush.bf16.msra.mxu0 %v2678_v2  ;;  %v381_v30 = vshll.u32 %v2970_v16, 16  ;;  %v395_v32 = vor.u32 %v393_v18, %v2980_v23  ;;  %v399_v33 = vrot.slane %v397_v19, 1  ;;  %v411_v34 = vor.u32 %v409_v20, %v2982_v24  ;;  %v2711_v53 = vld [vmem:[%s3486_s1 + $0x130] sm:$0xff]  ;;  %v2702_v59 = vld [vmem:[%s3486_s1 + $0xe8] sm:$0xff]  ;;  %v2685_v0 = vld [vmem:[%s3486_s1 + $0xa0] sm:$0xff]  ;;  %s2478_s7 = sshll.u32 %s1372_s28, 2 }
  0x19   : > { %v415_v35 = vrot.slane %v413_v21, 1  ;;  %v427_v36 = vor.u32 %v425_v25, %v2986_v27  ;;  %v431_v37 = vrot.slane %v429_v26, 1  ;;  %v379_v38 = vor.u32 %v378_v29, %v374_v28  ;;  %v2710_v60 = vld [vmem:[%s3486_s1 + $0x128] sm:$0xff]  ;;  %v2669_v1 = vld [vmem:[%s3486_s1 + $0x20] sm:$0xff]  ;;  %v2684_v17 = vld [vmem:[%s3486_s1 + $0x98] sm:$0xff]  ;;  %s3120_s11 = scalar_lea.vmem %s2931_s30, %s2478_s7 }
  0x1a   : > { %v383_v39 = vrot.slane %v381_v30, 1  ;;  %v400_v43 = vsel %vm372_vm0, %v395_v32, %v399_v33  ;;  %v362_v49 = vunpack.c.l.b16 %v295_v42  ;;  %v401_v57 = vshrl.u32 %v2955_v9, 16  ;;  %v2668_v18 = vld [vmem:[%s3486_s1 + $0x18] sm:$0xff]  ;;  %v2667_v28 = vld [vmem:[%s3486_s1 + $0x10] sm:$0xff]  ;;  %v3095_v30 = vld [vmem:[%s3064_s27 + $0x8] sm:$0xff] }
  0x1b   : > { %2762 = vmatpush.bf16.msra.mxu1 %v2677_v3  ;;  %2763 = vmatpush.bf16.msra.mxu2 %v2677_v3  ;;  %v416_v44 = vsel %vm372_vm0, %v411_v34, %v415_v35  ;;  %v432_v45 = vsel %vm372_vm0, %v427_v36, %v431_v37  ;;  %v417_v58 = vshrl.u32 %v2958_v10, 16  ;;  %v433_v61 = vshrl.u32 %v2966_v14, 16  ;;  %v2708_v26 = vld [vmem:[%s3486_s1 + $0x118] sm:$0xff]  ;;  %v2707_v29 = vld [vmem:[%s3486_s1 + $0x110] sm:$0xff]  ;;  %v2682_v32 = vld [vmem:[%s3486_s1 + $0x88] sm:$0xff] }
  0x1c   : > { %2764 = vmatpush.bf16.msra.mxu3 %v2677_v3  ;;  %500 = vmatpush.bf16.msra.mxu0 %v2677_v3  ;;  %v384_v47 = vsel %vm372_vm0, %v379_v38, %v383_v39  ;;  %v3025_v54 = vpack.c.b16 %v362_v49, %v362_v49  ;;  %v385_v63 = vshrl.u32 %v2970_v16, 16  ;;  %v403_v2 = vor.u32 %v401_v57, %v399_v33  ;;  %v2666_v33 = vld [vmem:[%s3486_s1 + $0x8] sm:$0xff]  ;;  %v2720_v42 = vld [vmem:[%s3486_s1 + $0x178] sm:$0xff]  ;;  %v2751_v57 = vld [vmem:[%s3486_s1 + $0x230] sm:$0xff] }
  0x1d   : > { %v419_v3 = vor.u32 %v417_v58, %v415_v35  ;;  %v435_v12 = vor.u32 %v433_v61, %v431_v37  ;;  %v2698_v34 = vld [vmem:[%s3486_s1 + $0xc8] sm:$0xff]  ;;  %v1035_v38 = vshll.u32 %v3095_v30, 16  ;;  %v2744_v49 = vld [vmem:[%s3486_s1 + $0x1f8] sm:$0xff]  ;;  %v3159_v58 = vld [vmem:[%s3064_s27 + $0x10] sm:$0xff] }
  0x1e   : > { %v437_v62 = vshll.u32 %v3025_v54, 16  ;;  %v387_v15 = vor.u32 %v385_v63, %v383_v39  ;;  %v408_v19 = vsel %vm372_vm0, %v403_v2, %v2982_v24  ;;  %v3080_v24 = vld [vmem:[%s3064_s27] sm:$0xff]  ;;  %v2706_v35 = vld [vmem:[%s3486_s1 + $0x108] sm:$0xff]  ;;  %v1043_v63 = vshll.u32 %v3159_v58, 16 }
  0x1f   : > { %2765 = vmatpush.bf16.msra.mxu1 %v2676_v4  ;;  %2766 = vmatpush.bf16.msra.mxu2 %v2676_v4  ;;  %v424_v20 = vsel %vm372_vm0, %v419_v3, %v2986_v27  ;;  %v2683_v27 = vld [vmem:[%s3486_s1 + $0x90] sm:$0xff]  ;;  %v1028_v36 = vshrl.u32 %v3080_v24, 16  ;;  %v2681_v39 = vld [vmem:[%s3486_s1 + $0x80] sm:$0xff]  ;;  %v2750_v61 = vld [vmem:[%s3486_s1 + $0x228] sm:$0xff] }
  0x20   : > { %2767 = vmatpush.bf16.msra.mxu3 %v2676_v4  ;;  %501 = vmatpush.bf16.msra.mxu0 %v2676_v4  ;;  %v2701_v4 = vld [vmem:[%s3486_s1 + $0xe0] sm:$0xff]  ;;  %v439_v13 = vrot.slane %v437_v62, 1  ;;  %v392_v25 = vsel %vm372_vm0, %v387_v15, %v2980_v23  ;;  %v2699_v23 = vld [vmem:[%s3486_s1 + $0xd0] sm:$0xff]  ;;  %v1039_v62 = vshrl.u32 %v3095_v30, 16  ;;  %v1045_v2 = vrot.slane %v1043_v63, 1  ;;  %v3190_v15 = vld [vmem:[%s3064_s27 + $0x18] sm:$0xff] }
  0x22   : > { %v440_v21 = vsel %vm372_vm0, %v435_v12, %v439_v13  ;;  %v2741_v12 = vld [vmem:[%s3486_s1 + $0x1e0] sm:$0xff] }
  0x23   : > { %2768 = vmatpush.bf16.msra.mxu1 %v2675_v11  ;;  %2769 = vmatpush.bf16.msra.mxu2 %v2675_v11  ;;  %v2717_v13 = vld [vmem:[%s3486_s1 + $0x160] sm:$0xff] }
  0x24   : > { %2770 = vmatpush.bf16.msra.mxu3 %v2675_v11  ;;  %502 = vmatpush.bf16.msra.mxu0 %v2675_v11  ;;  %v2709_v11 = vld [vmem:[%s3486_s1 + $0x120] sm:$0xff] }
  0x27   : > { %2771 = vmatpush.bf16.msra.mxu1 %v2674_v22  ;;  %2772 = vmatpush.bf16.msra.mxu2 %v2674_v22 }
  0x28   : > { %2773 = vmatpush.bf16.msra.mxu3 %v2674_v22  ;;  %503 = vmatpush.bf16.msra.mxu0 %v2674_v22  ;;  %v2700_v22 = vld [vmem:[%s3486_s1 + $0xd8] sm:$0xff] }
  0x2b   : > { %2774 = vmatpush.bf16.msra.mxu1 %v2673_v31  ;;  %2775 = vmatpush.bf16.msra.mxu2 %v2673_v31 }
  0x2c   : > { %2776 = vmatpush.bf16.msra.mxu3 %v2673_v31  ;;  %504 = vmatpush.bf16.msra.mxu0 %v2673_v31  ;;  %v1030_v31 = vshll.u32 %v3080_v24, 16 }
  0x2e   : > { %515 = vmatmul.bf16.vlgmr.msra.gmra.mxu1 %v400_v43  ;;  %525 = vmatmul.bf16.vlgmr.msra.gmra.mxu2 %v416_v44  ;;  %v1032_v37 = vrot.slane %v1030_v31, 1  ;;  %v669_v43 = vrot.slane %v2952_v8, 1  ;;  %v670_v44 = vrot.slane %v2970_v16, 1 }
  0x2f   : > { %742 = vmatpush.bf16.msrb.mxu2 %v2688_v40  ;;  %602 = vmatpush.bf16.msrb.mxu1 %v2672_v41  ;;  %v2665_v40 = vld [vmem:[%s3486_s1] sm:$0xff]  ;;  %v2736_v41 = vld [vmem:[%s3486_s1 + $0x1b8] sm:$0xff] }
  0x30   : > { %535 = vmatmul.bf16.vlgmr.msra.gmra.mxu3 %v432_v45  ;;  %505 = vmatmul.bf16.vlgmr.msra.gmra.mxu0 %v384_v47  ;;  %v2697_v45 = vld [vmem:[%s3486_s1 + $0xc0] sm:$0xff]  ;;  %v1033_v47 = vor.u32 %v1032_v37, %v1028_v36  ;;  %v2731_v37 = vld [vmem:[%s3486_s1 + $0x190] sm:$0xff] }
  0x31   : > { %942 = vmatpush.bf16.msrb.mxu3 %v2704_v46  ;;  %1151 = vmatpush.bf16.msrb.mxu0 %v2712_v48  ;;  %v2705_v46 = vld [vmem:[%s3486_s1 + $0x100] sm:$0xff]  ;;  %v1037_v48 = vrot.slane %v1035_v38, 1  ;;  %v2739_v38 = vld [vmem:[%s3486_s1 + $0x1d0] sm:$0xff] }
  0x33   : > { %743 = vmatpush.bf16.msrb.mxu2 %v2687_v50  ;;  %603 = vmatpush.bf16.msrb.mxu1 %v2671_v51  ;;  %v2752_v50 = vld [vmem:[%s3486_s1 + $0x238] sm:$0xff]  ;;  %v671_v51 = vsel %vm668_vm1, %v669_v43, %v670_v44  ;;  %v678_v43 = vrot.slane %v2958_v10, 1 }
  0x35   : > { %943 = vmatpush.bf16.msrb.mxu3 %v2703_v52  ;;  %1152 = vmatpush.bf16.msrb.mxu0 %v2711_v53  ;;  %v1038_v52 = vsel %vm372_vm0, %v1033_v47, %v1037_v48  ;;  %v2735_v53 = vld [vmem:[%s3486_s1 + $0x1b0] sm:$0xff] }
  0x37   : > { %744 = vmatpush.bf16.msrb.mxu2 %v2686_v55  ;;  %604 = vmatpush.bf16.msrb.mxu1 %v2670_v56  ;;  %v2719_v55 = vld [vmem:[%s3486_s1 + $0x170] sm:$0xff] }
  0x38   : > { %v2743_v56 = vld [vmem:[%s3486_s1 + $0x1f0] sm:$0xff] }
  0x39   : > { %944 = vmatpush.bf16.msrb.mxu3 %v2702_v59  ;;  %1153 = vmatpush.bf16.msrb.mxu0 %v2710_v60  ;;  %v2734_v59 = vld [vmem:[%s3486_s1 + $0x1a8] sm:$0xff] }
  0x3a   : > { %v2718_v60 = vld [vmem:[%s3486_s1 + $0x168] sm:$0xff] }
  0x3b   : > { %745 = vmatpush.bf16.msrb.mxu2 %v2685_v0  ;;  %605 = vmatpush.bf16.msrb.mxu1 %v2669_v1  ;;  %v672_v0 = vrot.slane %v2943_v5, 1  ;;  %v1041_v1 = vor.u32 %v1039_v62, %v1037_v48  ;;  %v2730_v48 = vld [vmem:[%s3486_s1 + $0x188] sm:$0xff]  ;;  %v3275_v62 = vld [vmem:[%s3064_s27 + $0x38] sm:$0xff] }
  0x3d   : > { %945 = vmatpush.bf16.msrb.mxu3 %v2701_v4  ;;  %1154 = vmatpush.bf16.msrb.mxu0 %v2709_v11  ;;  %v673_v3 = vsel %vm668_vm1, %v670_v44, %v672_v0  ;;  %v1046_v4 = vsel %vm372_vm0, %v1041_v1, %v1045_v2  ;;  %v2733_v11 = vld [vmem:[%s3486_s1 + $0x1a0] sm:$0xff] }
  0x3e   : > { %520 = vmatmul.bf16.gmra.mxu1 %v408_v19  ;;  %530 = vmatmul.bf16.gmra.mxu2 %v424_v20  ;;  %v674_v19 = vrot.slane %v2955_v9, 1  ;;  %v2745_v1 = vld [vmem:[%s3486_s1 + $0x200] sm:$0xff] }
  0x3f   : > { %746 = vmatpush.bf16.msrb.mxu2 %v2684_v17  ;;  %606 = vmatpush.bf16.msrb.mxu1 %v2668_v18  ;;  %v1047_v17 = vshrl.u32 %v3159_v58, 16  ;;  %v1051_v18 = vshll.u32 %v3190_v15, 16 }
  0x40   : > { %540 = vmatmul.bf16.gmra.mxu3 %v440_v21  ;;  %510 = vmatmul.bf16.gmra.mxu0 %v392_v25 }
  0x41   : > { %946 = vmatpush.bf16.msrb.mxu3 %v2700_v22  ;;  %1155 = vmatpush.bf16.msrb.mxu0 %v2708_v26  ;;  %v1049_v20 = vor.u32 %v1047_v17, %v1045_v2  ;;  %v1053_v21 = vrot.slane %v1051_v18, 1  ;;  %v675_v22 = vsel %vm668_vm1, %v672_v0, %v674_v19  ;;  %v2732_v26 = vld [vmem:[%s3486_s1 + $0x198] sm:$0xff]  ;;  %v1083_v0 = vshll.u32 %v3275_v62, 16 }
  0x42   : > { %v682_v2 = vrot.slane %v2966_v14, 1 }
  0x43   : > { %747 = vmatpush.bf16.msrb.mxu2 %v2683_v27  ;;  %607 = vmatpush.bf16.msrb.mxu1 %v2667_v28  ;;  %v1054_v25 = vsel %vm372_vm0, %v1049_v20, %v1053_v21  ;;  %v2740_v27 = vld [vmem:[%s3486_s1 + $0x1d8] sm:$0xff] }
  0x44   : > { %v2716_v28 = vld [vmem:[%s3486_s1 + $0x158] sm:$0xff] }
  0x45   : > { %947 = vmatpush.bf16.msrb.mxu3 %v2699_v23  ;;  %1156 = vmatpush.bf16.msrb.mxu0 %v2707_v29  ;;  %v3212_v23 = vld [vmem:[%s3064_s27 + $0x20] sm:$0xff]  ;;  %v1055_v29 = vshrl.u32 %v3190_v15, 16 }
  0x46   : > { %v1059_v31 = vshll.u32 %v3212_v23, 16 }
  0x47   : > { %748 = vmatpush.bf16.msrb.mxu2 %v2682_v32  ;;  %608 = vmatpush.bf16.msrb.mxu1 %v2666_v33  ;;  %v676_v32 = vrot.slane %v2946_v6, 1  ;;  %v1057_v33 = vor.u32 %v1055_v29, %v1053_v21 }
  0x49   : > { %948 = vmatpush.bf16.msrb.mxu3 %v2698_v34  ;;  %1157 = vmatpush.bf16.msrb.mxu0 %v2706_v35  ;;  %v1061_v34 = vrot.slane %v1059_v31, 1  ;;  %v677_v35 = vsel %vm668_vm1, %v674_v19, %v676_v32 }
  0x4b   : > { %749 = vmatpush.bf16.msrb.mxu2 %v2681_v39  ;;  %609 = vmatpush.bf16.msrb.mxu1 %v2665_v40  ;;  %v1062_v36 = vsel %vm372_vm0, %v1057_v33, %v1061_v34  ;;  %v2715_v39 = vld [vmem:[%s3486_s1 + $0x150] sm:$0xff]  ;;  %v3234_v40 = vld [vmem:[%s3064_s27 + $0x28] sm:$0xff] }
  0x4d   : > { %949 = vmatpush.bf16.msrb.mxu3 %v2697_v45  ;;  %1158 = vmatpush.bf16.msrb.mxu0 %v2705_v46  ;;  %v679_v46 = vsel %vm668_vm1, %v676_v32, %v678_v43 }
  0x4e   : > { %610 = vmatmul.bf16.vlgmr.msrb.gmra.mxu1 %v2952_v8  ;;  %750 = vmatmul.bf16.vlgmr.msrb.gmra.mxu2 %v671_v51  ;;  %v2742_v8 = vld [vmem:[%s3486_s1 + $0x1e8] sm:$0xff]  ;;  %v1071_v51 = vshrl.u32 %v3234_v40, 16 }
  0x4f   : > { %1506 = vmatpush.bf16.msra.mxu2 %v2736_v41  ;;  %1306 = vmatpush.bf16.msra.mxu1 %v2720_v42  ;;  %v1063_v41 = vshrl.u32 %v3212_v23, 16  ;;  %v1067_v42 = vshll.u32 %v3234_v40, 16 }
  0x50   : > { %950 = vmatmul.bf16.vlgmr.msrb.gmra.mxu3 %v3080_v24  ;;  %1159 = vmatmul.bf16.vlgmr.msrb.gmra.mxu0 %v1038_v52 }
  0x51   : > { %1715 = vmatpush.bf16.msra.mxu3 %v2744_v49  ;;  %1870 = vmatpush.bf16.msra.mxu0 %v2752_v50  ;;  %v1065_v44 = vor.u32 %v1063_v41, %v1061_v34  ;;  %v1069_v45 = vrot.slane %v1067_v42, 1  ;;  %v2738_v49 = vld [vmem:[%s3486_s1 + $0x1c8] sm:$0xff]  ;;  %v3253_v50 = vld [vmem:[%s3064_s27 + $0x30] sm:$0xff] }
  0x52   : > { %v1075_v52 = vshll.u32 %v3253_v50, 16  ;;  %v1079_v63 = vshrl.u32 %v3253_v50, 16 }
  0x53   : > { %1507 = vmatpush.bf16.msra.mxu2 %v2735_v53  ;;  %1307 = vmatpush.bf16.msra.mxu1 %v2719_v55  ;;  %v1070_v47 = vsel %vm372_vm0, %v1065_v44, %v1069_v45  ;;  %v2746_v53 = vld [vmem:[%s3486_s1 + $0x208] sm:$0xff]  ;;  %v680_v55 = vrot.slane %v2949_v7, 1 }
  0x55   : > { %1716 = vmatpush.bf16.msra.mxu3 %v2743_v56  ;;  %1871 = vmatpush.bf16.msra.mxu0 %v2751_v57  ;;  %v1073_v56 = vor.u32 %v1071_v51, %v1069_v45  ;;  %v1077_v57 = vrot.slane %v1075_v52, 1  ;;  %v1233_v45 = vrot.slane %v3080_v24, 1 }
  0x57   : > { %1508 = vmatpush.bf16.msra.mxu2 %v2734_v59  ;;  %1308 = vmatpush.bf16.msra.mxu1 %v2718_v60  ;;  %v681_v59 = vsel %vm668_vm1, %v678_v43, %v680_v55  ;;  %v1078_v60 = vsel %vm372_vm0, %v1073_v56, %v1077_v57 }
  0x59   : > { %1717 = vmatpush.bf16.msra.mxu3 %v2742_v8  ;;  %1872 = vmatpush.bf16.msra.mxu0 %v2750_v61  ;;  %v2729_v8 = vld [vmem:[%s3486_s1 + $0x180] sm:$0xff] }
  0x5a   : > { %v2737_v61 = vld [vmem:[%s3486_s1 + $0x1c0] sm:$0xff] }
  0x5b   : > { %1509 = vmatpush.bf16.msra.mxu2 %v2733_v11  ;;  %1309 = vmatpush.bf16.msra.mxu1 %v2717_v13  ;;  %v828_v11 = vld [vmem:[%s3064_s27 + $0x40] sm:$0xf]  ;;  %v683_v13 = vsel %vm668_vm1, %v680_v55, %v682_v2  ;;  %s2137_s27 = sshll.u32 %s2842_s12, 4 }
  0x5c   : > { %v1025_v18 = vunpack.c.l.b16 %v828_v11  ;;  %p264_p6 = scmp.lt.s32.totalorder %s2137_s27, 47 }
  0x5d   : > { %1718 = vmatpush.bf16.msra.mxu3 %v2741_v12 }
  0x5e   : > { %615 = vmatmul.bf16.gmra.mxu1 %v2970_v16  ;;  %755 = vmatmul.bf16.gmra.mxu2 %v673_v3  ;;  %v2749_v16 = vld [vmem:[%s3486_s1 + $0x220] sm:$0xff]  ;;  %v1081_v3 = vor.u32 %v1079_v63, %v1077_v57  ;;  %v3293_v19 = vpack.c.b16 %v1025_v18, %v1025_v18  ;;  %s3502_s27 = smov (!%p264_p6, %s2137_s27), 47 }
  0x5f   : > { %1873 = vmatpush.bf16.msra.mxu0 %v2749_v16  ;;  %1510 = vmatpush.bf16.msra.mxu2 %v2732_v26  ;;  %v1087_v26 = vshrl.u32 %v3275_v62, 16 }
  0x60   : > { %955 = vmatmul.bf16.gmra.mxu3 %v3095_v30  ;;  %1164 = vmatmul.bf16.gmra.mxu0 %v1046_v4  ;;  %v1085_v4 = vrot.slane %v1083_v0, 1 }
  0x61   : > { %1719 = vmatpush.bf16.msra.mxu3 %v2740_v27  ;;  %1310 = vmatpush.bf16.msra.mxu1 %v2716_v28  ;;  %v1091_v27 = vshll.u32 %v3293_v19, 16 }
  0x62   : > { %v1086_v17 = vsel %vm372_vm0, %v1081_v3, %v1085_v4  ;;  %v1089_v28 = vor.u32 %v1087_v26, %v1085_v4  ;;  %v1236_v4 = vrot.slane %v3159_v58, 1 }
  0x63   : > { %1511 = vmatpush.bf16.msra.mxu2 %v2731_v37 }
  0x65   : > { %1720 = vmatpush.bf16.msra.mxu3 %v2739_v38  ;;  %1311 = vmatpush.bf16.msra.mxu1 %v2715_v39 }
  0x67   : > { %1512 = vmatpush.bf16.msra.mxu2 %v2730_v48 }
  0x69   : > { %1721 = vmatpush.bf16.msra.mxu3 %v2738_v49 }
  0x6b   : > { %1513 = vmatpush.bf16.msra.mxu2 %v2729_v8 }
  0x6d   : > { %1722 = vmatpush.bf16.msra.mxu3 %v2737_v61 }
  0x6e   : > { %620 = vmatmul.bf16.gmra.mxu1 %v2943_v5  ;;  %760 = vmatmul.bf16.gmra.mxu2 %v675_v22  ;;  %v2748_v5 = vld [vmem:[%s3486_s1 + $0x218] sm:$0xff] }
  0x6f   : > { %1874 = vmatpush.bf16.msra.mxu0 %v2748_v5  ;;  %v1093_v5 = vrot.slane %v1091_v27, 1 }
  0x70   : > { %960 = vmatmul.bf16.gmra.mxu3 %v3159_v58  ;;  %1169 = vmatmul.bf16.gmra.mxu0 %v1054_v25 }
  0x7e   : > { %625 = vmatmul.bf16.gmra.mxu1 %v2955_v9  ;;  %765 = vmatmul.bf16.gmra.mxu2 %v677_v35  ;;  %v2747_v9 = vld [vmem:[%s3486_s1 + $0x210] sm:$0xff]  ;;  %v1094_v35 = vsel %vm372_vm0, %v1089_v28, %v1093_v5 }
  0x7f   : > { %1875 = vmatpush.bf16.msra.mxu0 %v2747_v9 }
  0x80   : > { %965 = vmatmul.bf16.gmra.mxu3 %v3190_v15  ;;  %1174 = vmatmul.bf16.gmra.mxu0 %v1062_v36  ;;  %v2721_v36 = vld [vmem:[%s3120_s11] sm:$0xff] }
  0x81   : > { %v1594_v37 = vshll.u32 %v2721_v36, 16  ;;  %v1592_v42 = vshrl.u32 %v2721_v36, 16  ;;  %v1797_v48 = vrot.slane %v2721_v36, 1 }
  0x83   : > { %1876 = vmatpush.bf16.msra.mxu0 %v2746_v53  ;;  %v1596_v43 = vrot.slane %v1594_v37, 1 }
  0x87   : > { %1877 = vmatpush.bf16.msra.mxu0 %v2745_v1 }
  0x8e   : > { %630 = vmatmul.bf16.gmra.mxu1 %v2946_v6  ;;  %770 = vmatmul.bf16.gmra.mxu2 %v679_v46  ;;  %v2714_v6 = vld [vmem:[%s3486_s1 + $0x148] sm:$0xff]  ;;  %v1597_v46 = vor.u32 %v1596_v43, %v1592_v42 }
  0x8f   : > { %1312 = vmatpush.bf16.msra.mxu1 %v2714_v6 }
  0x90   : > { %970 = vmatmul.bf16.gmra.mxu3 %v3212_v23  ;;  %1179 = vmatmul.bf16.gmra.mxu0 %v1070_v47 }
  0x9e   : > { %635 = vmatmul.bf16.gmra.mxu1 %v2958_v10  ;;  %775 = vmatmul.bf16.gmra.mxu2 %v681_v59  ;;  %v2713_v10 = vld [vmem:[%s3486_s1 + $0x140] sm:$0xff] }
  0x9f   : > { %1313 = vmatpush.bf16.msra.mxu1 %v2713_v10 }
  0xa0   : > { %975 = vmatmul.bf16.gmra.mxu3 %v3234_v40  ;;  %1184 = vmatmul.bf16.gmra.mxu0 %v1078_v60 }
  0xab   : > { %v3287_v12 = vpop.f32.mrf.mxu1 }
  0xad   : > { %v506_v16 = vpop.f32.mrf.mxu0 }
  0xae   : > { %640 = vmatmul.bf16.gmra.mxu1 %v2949_v7  ;;  %780 = vmatmul.bf16.gmra.mxu2 %v683_v13  ;;  %v684_v7 = vrot.slane %v3025_v54, 1  ;;  %v2722_v54 = vld [vmem:[%s3120_s11 + $0x8] sm:$0xff] }
  0xaf   : > { %v1599_v44 = vshll.u32 %v2722_v54, 16  ;;  %v1798_v49 = vrot.slane %v2722_v54, 1  ;;  %v1603_v1 = vshrl.u32 %v2722_v54, 16 }
  0xb0   : > { %980 = vmatmul.bf16.gmra.mxu3 %v3253_v50  ;;  %1189 = vmatmul.bf16.gmra.mxu0 %v1086_v17  ;;  %v685_v33 = vsel %vm668_vm1, %v682_v2, %v684_v7 }
  0xb1   : > { %v3295_v20 = vpop.f32.mrf.mxu2  ;;  %v1601_v47 = vrot.slane %v1599_v44, 1  ;;  %v1799_v24 = vsel %vm668_vm1, %v1797_v48, %v1798_v49 }
  0xb3   : > { %v3297_v21 = vpop.f32.mrf.mxu3  ;;  %v3299_v22 = vpop.f32.mrf.mxu1  ;;  %v1602_v57 = vsel %vm372_vm0, %v1597_v46, %v1601_v47  ;;  %v1605_v11 = vor.u32 %v1603_v1, %v1601_v47 }
  0xb5   : > { %v508_v25 = vpop.f32.mrf.mxu0 }
  0xb9   : > { %v3304_v29 = vpop.f32.mrf.mxu2 }
  0xbb   : > { %v3306_v31 = vpop.f32.mrf.mxu3  ;;  %v3308_v32 = vpop.f32.mrf.mxu1 }
  0xbd   : > { %v511_v34 = vpop.f32.mrf.mxu0 }
  0xbe   : > { %645 = vmatmul.bf16.gmra.mxu1 %v2966_v14  ;;  %785 = vmatmul.bf16.gmra.mxu2 %v685_v33  ;;  %v1234_v14 = vrot.slane %v3095_v30, 1  ;;  %v2723_v30 = vld [vmem:[%s3120_s11 + $0x10] sm:$0xff] }
  0xbf   : > { %v1607_v2 = vshll.u32 %v2723_v30, 16 }
  0xc0   : > { %985 = vmatmul.bf16.gmra.mxu3 %v3275_v62  ;;  %1194 = vmatmul.bf16.gmra.mxu0 %v1094_v35  ;;  %v1235_v53 = vsel %vm668_vm1, %v1233_v45, %v1234_v14  ;;  %v1237_v7 = vsel %vm668_vm1, %v1234_v14, %v1236_v4 }
  0xc1   : > { %v3316_v38 = vpop.f32.mrf.mxu2  ;;  %v1609_v13 = vrot.slane %v1607_v2, 1 }
  0xc3   : > { %v3318_v39 = vpop.f32.mrf.mxu3  ;;  %v3320_v9 = vpop.f32.mrf.mxu1  ;;  %v1610_v33 = vsel %vm372_vm0, %v1605_v11, %v1609_v13 }
  0xc5   : > { %v513_v41 = vpop.f32.mrf.mxu0 }
  0xc9   : > { %v3324_v6 = vpop.f32.mrf.mxu2 }
  0xcb   : > { %v3326_v51 = vpop.f32.mrf.mxu3  ;;  %v611_v52 = vpop.f32.mrf.mxu1 }
  0xcc   : > { %v612_v55 = vadd.f32 %v611_v52, %v506_v16  ;;  %v1800_v16 = vrot.slane %v2723_v30, 1 }
  0xcd   : > { %v1160_v56 = vpop.f32.mrf.mxu0 }
  0xce   : > { %1314 = vmatmul.bf16.vlgmr.msra.gmra.mxu1 %v1235_v53  ;;  %1514 = vmatmul.bf16.vlgmr.msra.gmra.mxu2 %v2721_v36  ;;  %v1801_v35 = vsel %vm668_vm1, %v1798_v49, %v1800_v16  ;;  %v2724_v36 = vld [vmem:[%s3120_s11 + $0x18] sm:$0xff]  ;;  %v1238_v49 = vrot.slane %v3190_v15, 1 }
  0xcf   : > { %v1615_v47 = vshll.u32 %v2724_v36, 16  ;;  %v1802_v53 = vrot.slane %v2724_v36, 1 }
  0xd0   : > { %1723 = vmatmul.bf16.vlgmr.msra.gmra.mxu3 %v1602_v57  ;;  %1878 = vmatmul.bf16.vlgmr.msra.gmra.mxu0 %v1799_v24 }
  0xd1   : > { %v751_v59 = vpop.f32.mrf.mxu2 }
  0xd2   : > { %v791_v60 = vadd.f32 %v751_v59, %v612_v55  ;;  %v1239_v59 = vsel %vm668_vm1, %v1236_v4, %v1238_v49 }
  0xd3   : > { %v951_v8 = vpop.f32.mrf.mxu3  ;;  %v613_v61 = vpop.f32.mrf.mxu1 }
  0xd4   : > { %v991_v10 = vadd.f32 %v951_v8, %v791_v60  ;;  %v614_v63 = vadd.f32 %v613_v61, %v508_v25 }
  0xd5   : > { %v1162_v0 = vpop.f32.mrf.mxu0 }
  0xd6   : > { %v3332_v3 = vadd.f32 %v1160_v56, %v991_v10  ;;  %v1803_v10 = vsel %vm668_vm1, %v1800_v16, %v1802_v53  ;;  %v1240_v16 = vrot.slane %v3212_v23, 1 }
  0xd9   : > { %v753_v17 = vpop.f32.mrf.mxu2 }
  0xda   : > { %v792_v18 = vadd.f32 %v753_v17, %v614_v63  ;;  %v2725_v63 = vld [vmem:[%s3120_s11 + $0x20] sm:$0xff]  ;;  %v1619_v17 = vshrl.u32 %v2724_v36, 16 }
  0xdb   : > { %v953_v26 = vpop.f32.mrf.mxu3  ;;  %v616_v27 = vpop.f32.mrf.mxu1 }
  0xdc   : > { %v992_v28 = vadd.f32 %v953_v26, %v792_v18  ;;  %v617_v5 = vadd.f32 %v616_v27, %v511_v34  ;;  %v1611_v34 = vshrl.u32 %v2723_v30, 16  ;;  %v1623_v18 = vshll.u32 %v2725_v63, 16 }
  0xdd   : > { %v1165_v25 = vpop.f32.mrf.mxu0 }
  0xde   : > { %1319 = vmatmul.bf16.gmra.mxu1 %v1237_v7  ;;  %1519 = vmatmul.bf16.gmra.mxu2 %v2722_v54  ;;  %v3338_v58 = vadd.f32 %v1162_v0, %v992_v28  ;;  %v1613_v52 = vor.u32 %v1611_v34, %v1609_v13  ;;  %v1617_v54 = vrot.slane %v1615_v47, 1  ;;  %v1625_v27 = vrot.slane %v1623_v18, 1 }
  0xdf   : > { %v1804_v7 = vrot.slane %v2725_v63, 1 }
  0xe0   : > { %1728 = vmatmul.bf16.gmra.mxu3 %v1610_v33  ;;  %1883 = vmatmul.bf16.gmra.mxu0 %v1801_v35  ;;  %v1618_v61 = vsel %vm372_vm0, %v1613_v52, %v1617_v54  ;;  %v1241_v35 = vsel %vm668_vm1, %v1238_v49, %v1240_v16 }
  0xe1   : > { %v756_v37 = vpop.f32.mrf.mxu2 }
  0xe2   : > { %v793_v42 = vadd.f32 %v756_v37, %v617_v5 }
  0xe3   : > { %v956_v43 = vpop.f32.mrf.mxu3  ;;  %v618_v44 = vpop.f32.mrf.mxu1 }
  0xe4   : > { %v993_v45 = vadd.f32 %v956_v43, %v793_v42  ;;  %v619_v14 = vadd.f32 %v618_v44, %v513_v41  ;;  %v1805_v44 = vsel %vm668_vm1, %v1802_v53, %v1804_v7  ;;  %v1242_v53 = vrot.slane %v3234_v40, 1 }
  0xe5   : > { %v1167_v46 = vpop.f32.mrf.mxu0 }
  0xe6   : > { %v3341_v48 = vadd.f32 %v1165_v25, %v993_v45  ;;  %v2726_v45 = vld [vmem:[%s3120_s11 + $0x28] sm:$0xff] }
  0xe9   : > { %v758_v55 = vpop.f32.mrf.mxu2 }
  0xea   : > { %v794_v56 = vadd.f32 %v758_v55, %v619_v14  ;;  %v1631_v55 = vshll.u32 %v2726_v45, 16 }
  0xeb   : > { %v958_v57 = vpop.f32.mrf.mxu3  ;;  %v621_v24 = vpop.f32.mrf.mxu1 }
  0xec   : > { %v994_v60 = vadd.f32 %v958_v57, %v794_v56  ;;  %v622_v41 = vadd.f32 %v621_v24, %v3287_v12  ;;  %v1633_v57 = vrot.slane %v1631_v55, 1  ;;  %v1806_v24 = vrot.slane %v2726_v45, 1 }
  0xed   : > { %v1170_v8 = vpop.f32.mrf.mxu0 }
  0xee   : > { %1324 = vmatmul.bf16.gmra.mxu1 %v1239_v59  ;;  %1524 = vmatmul.bf16.gmra.mxu2 %v2723_v30  ;;  %v3348_v15 = vadd.f32 %v1167_v46, %v994_v60  ;;  %v1621_v30 = vor.u32 %v1619_v17, %v1617_v54  ;;  %v1627_v54 = vshrl.u32 %v2725_v63, 16 }
  0xf0   : > { %1733 = vmatmul.bf16.gmra.mxu3 %v1618_v61  ;;  %1888 = vmatmul.bf16.gmra.mxu0 %v1803_v10  ;;  %v1626_v43 = vsel %vm372_vm0, %v1621_v30, %v1625_v27  ;;  %v1243_v61 = vsel %vm668_vm1, %v1240_v16, %v1242_v53  ;;  %v1635_v30 = vshrl.u32 %v2726_v45, 16 }
  0xf1   : > { %v761_v0 = vpop.f32.mrf.mxu2 }
  0xf2   : > { %v795_v1 = vadd.f32 %v761_v0, %v622_v41 }
  0xf3   : > { %v961_v2 = vpop.f32.mrf.mxu3  ;;  %v623_v11 = vpop.f32.mrf.mxu1 }
  0xf4   : > { %v995_v4 = vadd.f32 %v961_v2, %v795_v1  ;;  %v624_v13 = vadd.f32 %v623_v11, %v3299_v22  ;;  %v1807_v1 = vsel %vm668_vm1, %v1804_v7, %v1806_v24  ;;  %v2727_v11 = vld [vmem:[%s3120_s11 + $0x30] sm:$0xff]  ;;  %v1244_v7 = vrot.slane %v3253_v50, 1 }
  0xf5   : > { %v1172_v12 = vpop.f32.mrf.mxu0 }
  0xf6   : > { %v3352_v26 = vadd.f32 %v1170_v8, %v995_v4 }
  0xf9   : > { %v763_v28 = vpop.f32.mrf.mxu2 }
  0xfa   : > { %v796_v5 = vadd.f32 %v763_v28, %v624_v13 }
  0xfb   : > { %v963_v25 = vpop.f32.mrf.mxu3  ;;  %v626_v33 = vpop.f32.mrf.mxu1 }
  0xfc   : > { %v996_v37 = vadd.f32 %v963_v25, %v796_v5  ;;  %v627_v22 = vadd.f32 %v626_v33, %v3308_v32  ;;  %v1637_v5 = vor.u32 %v1635_v30, %v1633_v57  ;;  %v1808_v33 = vrot.slane %v2727_v11, 1 }
  0xfd   : > { %v1175_v42 = vpop.f32.mrf.mxu0 }
  0xfe   : > { %1329 = vmatmul.bf16.gmra.mxu1 %v1241_v35  ;;  %1529 = vmatmul.bf16.gmra.mxu2 %v2724_v36  ;;  %v3359_v23 = vadd.f32 %v1172_v12, %v996_v37  ;;  %v1629_v36 = vor.u32 %v1627_v54, %v1625_v27  ;;  %v1639_v27 = vshll.u32 %v2727_v11, 16 }
 0x100   : > { %1738 = vmatmul.bf16.gmra.mxu3 %v1626_v43  ;;  %1893 = vmatmul.bf16.gmra.mxu0 %v1805_v44  ;;  %v1641_v25 = vrot.slane %v1639_v27, 1 }
 0x101   : > { %v766_v14 = vpop.f32.mrf.mxu2 }
 0x102   : > { %v797_v46 = vadd.f32 %v766_v14, %v627_v22  ;;  %v1642_v14 = vsel %vm372_vm0, %v1637_v5, %v1641_v25 }
 0x103   : > { %v966_v34 = vpop.f32.mrf.mxu3  ;;  %v628_v47 = vpop.f32.mrf.mxu1 }
 0x104   : > { %v997_v49 = vadd.f32 %v966_v34, %v797_v46  ;;  %v629_v52 = vadd.f32 %v628_v47, %v3320_v9  ;;  %v1634_v9 = vsel %vm372_vm0, %v1629_v36, %v1633_v57  ;;  %v1809_v46 = vsel %vm668_vm1, %v1806_v24, %v1808_v33  ;;  %v2728_v34 = vld [vmem:[%s3120_s11 + $0x38] sm:$0xff] }
 0x105   : > { %v1177_v32 = vpop.f32.mrf.mxu0  ;;  %v1647_v36 = vshll.u32 %v2728_v34, 16  ;;  %v1651_v5 = vshrl.u32 %v2728_v34, 16 }
 0x106   : > { %v3363_v56 = vadd.f32 %v1175_v42, %v997_v49  ;;  %v1245_v42 = vsel %vm668_vm1, %v1242_v53, %v1244_v7  ;;  %v1643_v53 = vshrl.u32 %v2727_v11, 16 }
 0x109   : > { %v768_v59 = vpop.f32.mrf.mxu2 }
 0x10a   : > { %v798_v60 = vadd.f32 %v768_v59, %v629_v52  ;;  %v1645_v59 = vor.u32 %v1643_v53, %v1641_v25 }
 0x10b   : > { %v968_v41 = vpop.f32.mrf.mxu3  ;;  %v631_v8 = vpop.f32.mrf.mxu1 }
 0x10c   : > { %v998_v10 = vadd.f32 %v968_v41, %v798_v60  ;;  %v632_v40 = vadd.f32 %v631_v8, %v3295_v20  ;;  %v1649_v60 = vrot.slane %v1647_v36, 1  ;;  %v1810_v41 = vrot.slane %v2728_v34, 1  ;;  %v1392_v8 = vld [vmem:[%s3120_s11 + $0x40] sm:$0xf]  ;;  %s2778_s11 = smul.u32 48, %s3500_s13 }
 0x10d   : > { %v1180_v0 = vpop.f32.mrf.mxu0 }
 0x10e   : > { %1334 = vmatmul.bf16.gmra.mxu1 %v1243_v61  ;;  %1534 = vmatmul.bf16.gmra.mxu2 %v2725_v63  ;;  %v3369_v2 = vadd.f32 %v1177_v32, %v998_v10  ;;  %s270_s21 = sadd.s32 %s2778_s11, %s3502_s27 }
 0x10f   : > { %s2138_s9 = sshll.u32 %s270_s21, 3 }
 0x110   : > { %1743 = vmatmul.bf16.gmra.mxu3 %v1634_v9  ;;  %1898 = vmatmul.bf16.gmra.mxu0 %v1807_v1  ;;  %s3423_s19 = scalar_lea.vmem %s3488_s3, %s2138_s9 }
 0x111   : > { %v771_v4 = vpop.f32.mrf.mxu2 }
 0x112   : > { %v799_v13 = vadd.f32 %v771_v4, %v632_v40  ;;  %v1650_v4 = vsel %vm372_vm0, %v1645_v59, %v1649_v60 }
 0x113   : > { %v971_v12 = vpop.f32.mrf.mxu3  ;;  %v633_v17 = vpop.f32.mrf.mxu1 }
 0x114   : > { %v999_v18 = vadd.f32 %v971_v12, %v799_v13  ;;  %v634_v63 = vadd.f32 %v633_v17, %v3304_v29  ;;  %v1811_v13 = vsel %vm668_vm1, %v1808_v33, %v1810_v41  ;;  %v1589_v12 = vunpack.c.l.b16 %v1392_v8 }
 0x115   : > { %v1182_v16 = vpop.f32.mrf.mxu0  ;;  %v1248_v33 = vrot.slane %v3293_v19, 1 }
 0x116   : > { %v3373_v28 = vadd.f32 %v1180_v0, %v999_v18  ;;  %v1590_v17 = vpack.c.b16 %v1589_v12, %v1589_v12 }
 0x118   : > { %v1655_v25 = vshll.u32 %v1590_v17, 16 }
 0x119   : > { %v773_v20 = vpop.f32.mrf.mxu2 }
 0x11a   : > { %v800_v35 = vadd.f32 %v773_v20, %v634_v63 }
 0x11b   : > { %v973_v37 = vpop.f32.mrf.mxu3  ;;  %v636_v22 = vpop.f32.mrf.mxu1 }
 0x11c   : > { %v1000_v43 = vadd.f32 %v973_v37, %v800_v35  ;;  %v637_v29 = vadd.f32 %v636_v22, %v3316_v38  ;;  %v1653_v35 = vor.u32 %v1651_v5, %v1649_v60  ;;  %v1657_v37 = vrot.slane %v1655_v25, 1 }
 0x11d   : > { %v1185_v44 = vpop.f32.mrf.mxu0  ;;  %v1812_v22 = vrot.slane %v1590_v17, 1 }
 0x11e   : > { %1339 = vmatmul.bf16.gmra.mxu1 %v1245_v42  ;;  %1539 = vmatmul.bf16.gmra.mxu2 %v2726_v45  ;;  %v3380_v50 = vadd.f32 %v1182_v16, %v1000_v43  ;;  %v1246_v45 = vrot.slane %v3275_v62, 1 }
 0x120   : > { %1748 = vmatmul.bf16.gmra.mxu3 %v1642_v14  ;;  %1903 = vmatmul.bf16.gmra.mxu0 %v1809_v46  ;;  %v1247_v9 = vsel %vm668_vm1, %v1244_v7, %v1246_v45  ;;  %v1249_v14 = vsel %vm668_vm1, %v1246_v45, %v1248_v33 }
 0x121   : > { %v776_v47 = vpop.f32.mrf.mxu2 }
 0x122   : > { %v801_v49 = vadd.f32 %v776_v47, %v637_v29  ;;  %v1658_v47 = vsel %vm372_vm0, %v1653_v35, %v1657_v37 }
 0x123   : > { %v976_v52 = vpop.f32.mrf.mxu3  ;;  %v638_v32 = vpop.f32.mrf.mxu1 }
 0x124   : > { %v1001_v54 = vadd.f32 %v976_v52, %v801_v49  ;;  %v639_v24 = vadd.f32 %v638_v32, %v3324_v6  ;;  %v1813_v49 = vsel %vm668_vm1, %v1810_v41, %v1812_v22 }
 0x125   : > { %v1187_v55 = vpop.f32.mrf.mxu0 }
 0x126   : > { %v3384_v57 = vadd.f32 %v1185_v44, %v1001_v54 }
 0x129   : > { %v778_v38 = vpop.f32.mrf.mxu2 }
 0x12a   : > { %v802_v61 = vadd.f32 %v778_v38, %v639_v24 }
 0x12b   : > { %v978_v10 = vpop.f32.mrf.mxu3  ;;  %v641_v0 = vpop.f32.mrf.mxu1 }
 0x12c   : > { %v1002_v1 = vadd.f32 %v978_v10, %v802_v61  ;;  %v642_v6 = vadd.f32 %v641_v0, %v3297_v21 }
 0x12d   : > { %v1190_v40 = vpop.f32.mrf.mxu0 }
 0x12e   : > { %1344 = vmatmul.bf16.gmra.mxu1 %v1247_v9  ;;  %1544 = vmatmul.bf16.gmra.mxu2 %v2727_v11  ;;  %v3392_v62 = vadd.f32 %v1187_v55, %v1002_v1 }
 0x130   : > { %1753 = vmatmul.bf16.gmra.mxu3 %v1650_v4  ;;  %1908 = vmatmul.bf16.gmra.mxu0 %v1811_v13 }
 0x131   : > { %v781_v18 = vpop.f32.mrf.mxu2 }
 0x132   : > { %v803_v16 = vadd.f32 %v781_v18, %v642_v6 }
 0x133   : > { %v981_v30 = vpop.f32.mrf.mxu3  ;;  %v643_v27 = vpop.f32.mrf.mxu1 }
 0x134   : > { %v1003_v7 = vadd.f32 %v981_v30, %v803_v16  ;;  %v644_v11 = vadd.f32 %v643_v27, %v3306_v31 }
 0x135   : > { %v1192_v63 = vpop.f32.mrf.mxu0 }
 0x136   : > { %v3395_v20 = vadd.f32 %v1190_v40, %v1003_v7  ;;  %v3416_v40 = vld [vmem:[%s3487_s2] ss:$0 sm:$0xff] }
 0x139   : > { %v783_v42 = vpop.f32.mrf.mxu2 }
 0x13a   : > { %v804_v21 = vadd.f32 %v783_v42, %v644_v11 }
 0x13b   : > { %v983_v43 = vpop.f32.mrf.mxu3  ;;  %v646_v44 = vpop.f32.mrf.mxu1 }
 0x13c   : > { %v1004_v46 = vadd.f32 %v983_v43, %v804_v21  ;;  %v647_v31 = vadd.f32 %v646_v44, %v3318_v39 }
 0x13d   : > { %v1195_v29 = vpop.f32.mrf.mxu0 }
 0x13e   : > { %1349 = vmatmul.bf16.gmra.mxu1 %v1249_v14  ;;  %1549 = vmatmul.bf16.gmra.mxu2 %v2728_v34  ;;  %v3402_v19 = vadd.f32 %v1192_v63, %v1004_v46 }
 0x140   : > { %1758 = vmatmul.bf16.gmra.mxu3 %v1658_v47  ;;  %1913 = vmatmul.bf16.gmra.mxu0 %v1813_v49 }
 0x141   : > { %v786_v52 = vpop.f32.mrf.mxu2 }
 0x142   : > { %v805_v32 = vadd.f32 %v786_v52, %v647_v31 }
 0x143   : > { %v986_v54 = vpop.f32.mrf.mxu3  ;;  %v648_v55 = vpop.f32.mrf.mxu1 }
 0x144   : > { %v1005_v53 = vadd.f32 %v986_v54, %v805_v32  ;;  %v649_v24 = vadd.f32 %v648_v55, %v3326_v51 }
 0x145   : > { %v1197_v36 = vpop.f32.mrf.mxu0 }
 0x146   : > { %v3405_v45 = vadd.f32 %v1195_v29, %v1005_v53 }
 0x149   : > { %v788_v59 = vpop.f32.mrf.mxu2 }
 0x14a   : > { %v806_v34 = vadd.f32 %v788_v59, %v649_v24 }
 0x14b   : > { %v988_v60 = vpop.f32.mrf.mxu3  ;;  %v1315_v41 = vpop.f32.mrf.mxu1 }
 0x14c   : > { %v1006_v38 = vadd.f32 %v988_v60, %v806_v34  ;;  %v1355_v61 = vadd.f32 %v1315_v41, %v3332_v3 }
 0x14d   : > { %v1879_v8 = vpop.f32.mrf.mxu0 }
 0x14e   : > { %v3410_v39 = vadd.f32 %v1197_v36, %v1006_v38 }
 0x151   : > { %v1515_v10 = vpop.f32.mrf.mxu2 }
 0x152   : > { %v1555_v0 = vadd.f32 %v1515_v10, %v1355_v61 }
 0x153   : > { %v1724_v9 = vpop.f32.mrf.mxu3  ;;  %v1317_v1 = vpop.f32.mrf.mxu1 }
 0x154   : > { %v1764_v51 = vadd.f32 %v1724_v9, %v1555_v0  ;;  %v1356_v6 = vadd.f32 %v1317_v1, %v3338_v58 }
 0x155   : > { %v1881_v4 = vpop.f32.mrf.mxu0 }
 0x156   : > { %v1919_v13 = vadd.f32 %v1879_v8, %v1764_v51 }
 0x158   : > { %v1939_v12 = vadd.f32 %v3416_v40, %v1919_v13 }
 0x159   : > { %v1517_v3 = vpop.f32.mrf.mxu2 }
 0x15a   : > { %v1955_v17 = vmax.f32 %v1939_v12, 0.0  ;;  %v1556_v18 = vadd.f32 %v1517_v3, %v1356_v6 }
 0x15b   : > { %v1726_v16 = vpop.f32.mrf.mxu3  ;;  %v1320_v30 = vpop.f32.mrf.mxu1 }
 0x15c   : > { %1971 = vst [vmem:[%s3423_s19] sm:$0xff] %v1955_v17  ;;  %v1765_v27 = vadd.f32 %v1726_v16, %v1556_v18  ;;  %v1357_v58 = vadd.f32 %v1320_v30, %v3341_v48 }
 0x15d   : > { %v1884_v7 = vpop.f32.mrf.mxu0 }
 0x15e   : > { %v1920_v63 = vadd.f32 %v1881_v4, %v1765_v27 }
 0x160   : > { %v1940_v5 = vadd.f32 %v3416_v40, %v1920_v63 }
 0x161   : > { %v1520_v25 = vpop.f32.mrf.mxu2 }
 0x162   : > { %v1956_v33 = vmax.f32 %v1940_v5, 0.0  ;;  %v1557_v11 = vadd.f32 %v1520_v25, %v1357_v58 }
 0x163   : > { %v1729_v35 = vpop.f32.mrf.mxu3  ;;  %v1322_v37 = vpop.f32.mrf.mxu1 }
 0x164   : > { %1972 = vst [vmem:[%s3423_s19 + $0x8] sm:$0xff] %v1956_v33  ;;  %v1766_v22 = vadd.f32 %v1729_v35, %v1557_v11  ;;  %v1358_v44 = vadd.f32 %v1322_v37, %v3348_v15 }
 0x165   : > { %v1886_v42 = vpop.f32.mrf.mxu0 }
 0x166   : > { %v1921_v21 = vadd.f32 %v1884_v7, %v1766_v22 }
 0x168   : > { %v1941_v43 = vadd.f32 %v3416_v40, %v1921_v21 }
 0x169   : > { %v1522_v14 = vpop.f32.mrf.mxu2 }
 0x16a   : > { %v1957_v46 = vmax.f32 %v1941_v43, 0.0  ;;  %v1558_v29 = vadd.f32 %v1522_v14, %v1358_v44 }
 0x16b   : > { %v1731_v47 = vpop.f32.mrf.mxu3  ;;  %v1325_v48 = vpop.f32.mrf.mxu1 }
 0x16c   : > { %1973 = vst [vmem:[%s3423_s19 + $0x10] sm:$0xff] %v1957_v46  ;;  %v1767_v49 = vadd.f32 %v1731_v47, %v1558_v29  ;;  %v1359_v54 = vadd.f32 %v1325_v48, %v3352_v26 }
 0x16d   : > { %v1889_v31 = vpop.f32.mrf.mxu0 }
 0x16e   : > { %v1922_v52 = vadd.f32 %v1886_v42, %v1767_v49 }
 0x170   : > { %v1942_v32 = vadd.f32 %v3416_v40, %v1922_v52 }
 0x171   : > { %v1525_v55 = vpop.f32.mrf.mxu2 }
 0x172   : > { %v1958_v53 = vmax.f32 %v1942_v32, 0.0  ;;  %v1559_v36 = vadd.f32 %v1525_v55, %v1359_v54 }
 0x173   : > { %v1734_v24 = vpop.f32.mrf.mxu3  ;;  %v1327_v15 = vpop.f32.mrf.mxu1 }
 0x174   : > { %1974 = vst [vmem:[%s3423_s19 + $0x18] sm:$0xff] %v1958_v53  ;;  %v1768_v59 = vadd.f32 %v1734_v24, %v1559_v36  ;;  %v1360_v38 = vadd.f32 %v1327_v15, %v3359_v23 }
 0x175   : > { %v1891_v34 = vpop.f32.mrf.mxu0 }
 0x176   : > { %v1923_v60 = vadd.f32 %v1889_v31, %v1768_v59 }
 0x178   : > { %v1943_v41 = vadd.f32 %v3416_v40, %v1923_v60 }
 0x179   : > { %v1527_v8 = vpop.f32.mrf.mxu2 }
 0x17a   : > { %v1959_v61 = vmax.f32 %v1943_v41, 0.0  ;;  %v1560_v10 = vadd.f32 %v1527_v8, %v1360_v38 }
 0x17b   : > { %v1736_v0 = vpop.f32.mrf.mxu3  ;;  %v1330_v26 = vpop.f32.mrf.mxu1 }
 0x17c   : > { %1975 = vst [vmem:[%s3423_s19 + $0x20] sm:$0xff] %v1959_v61  ;;  %v1769_v9 = vadd.f32 %v1736_v0, %v1560_v10  ;;  %v1361_v13 = vadd.f32 %v1330_v26, %v3363_v56 }
 0x17d   : > { %v1894_v1 = vpop.f32.mrf.mxu0 }
 0x17e   : > { %v1924_v51 = vadd.f32 %v1891_v34, %v1769_v9 }
 0x180   : > { %v1944_v4 = vadd.f32 %v3416_v40, %v1924_v51 }
 0x181   : > { %v1530_v12 = vpop.f32.mrf.mxu2 }
 0x182   : > { %v1960_v6 = vmax.f32 %v1944_v4, 0.0  ;;  %v1561_v3 = vadd.f32 %v1530_v12, %v1361_v13 }
 0x183   : > { %v1739_v17 = vpop.f32.mrf.mxu3  ;;  %v1332_v23 = vpop.f32.mrf.mxu1 }
 0x184   : > { %1976 = vst [vmem:[%s3423_s19 + $0x28] sm:$0xff] %v1960_v6  ;;  %v1770_v18 = vadd.f32 %v1739_v17, %v1561_v3  ;;  %v1362_v7 = vadd.f32 %v1332_v23, %v3369_v2 }
 0x185   : > { %v1896_v16 = vpop.f32.mrf.mxu0 }
 0x186   : > { %v1925_v30 = vadd.f32 %v1894_v1, %v1770_v18 }
 0x188   : > { %v1945_v27 = vadd.f32 %v3416_v40, %v1925_v30 }
 0x189   : > { %v1532_v63 = vpop.f32.mrf.mxu2 }
 0x18a   : > { %v1961_v5 = vmax.f32 %v1945_v27, 0.0  ;;  %v1562_v58 = vadd.f32 %v1532_v63, %v1362_v7 }
 0x18b   : > { %v1741_v25 = vpop.f32.mrf.mxu3  ;;  %v1335_v56 = vpop.f32.mrf.mxu1 }
 0x18c   : > { %1977 = vst [vmem:[%s3423_s19 + $0x30] sm:$0xff] %v1961_v5  ;;  %v1771_v33 = vadd.f32 %v1741_v25, %v1562_v58  ;;  %v1363_v22 = vadd.f32 %v1335_v56, %v3373_v28 }
 0x18d   : > { %v1899_v11 = vpop.f32.mrf.mxu0 }
 0x18e   : > { %v1926_v35 = vadd.f32 %v1896_v16, %v1771_v33 }
 0x190   : > { %v1946_v37 = vadd.f32 %v3416_v40, %v1926_v35 }
 0x191   : > { %v1535_v42 = vpop.f32.mrf.mxu2 }
 0x192   : > { %v1962_v21 = vmax.f32 %v1946_v37, 0.0  ;;  %v1563_v43 = vadd.f32 %v1535_v42, %v1363_v22 }
 0x193   : > { %v1744_v44 = vpop.f32.mrf.mxu3  ;;  %v1337_v2 = vpop.f32.mrf.mxu1 }
 0x194   : > { %1978 = vst [vmem:[%s3423_s19 + $0x38] sm:$0xff] %v1962_v21  ;;  %v1772_v14 = vadd.f32 %v1744_v44, %v1563_v43  ;;  %v1364_v48 = vadd.f32 %v1337_v2, %v3380_v50 }
 0x195   : > { %v1901_v46 = vpop.f32.mrf.mxu0 }
 0x196   : > { %v1927_v29 = vadd.f32 %v1899_v11, %v1772_v14 }
 0x198   : > { %v1947_v47 = vadd.f32 %v3416_v40, %v1927_v29 }
 0x199   : > { %v1537_v49 = vpop.f32.mrf.mxu2 }
 0x19a   : > { %v1963_v31 = vmax.f32 %v1947_v47, 0.0  ;;  %v1564_v52 = vadd.f32 %v1537_v49, %v1364_v48 }
 0x19b   : > { %v1746_v32 = vpop.f32.mrf.mxu3  ;;  %v1340_v28 = vpop.f32.mrf.mxu1 }
 0x19c   : > { %1979 = vst [vmem:[%s3423_s19 + $0x40] sm:$0xff] %v1963_v31  ;;  %v1773_v54 = vadd.f32 %v1746_v32, %v1564_v52  ;;  %v1365_v24 = vadd.f32 %v1340_v28, %v3384_v57 }
 0x19d   : > { %v1904_v55 = vpop.f32.mrf.mxu0 }
 0x19e   : > { %v1928_v53 = vadd.f32 %v1901_v46, %v1773_v54 }
 0x1a0   : > { %v1948_v36 = vadd.f32 %v3416_v40, %v1928_v53 }
 0x1a1   : > { %v1540_v15 = vpop.f32.mrf.mxu2 }
 0x1a2   : > { %v1964_v59 = vmax.f32 %v1948_v36, 0.0  ;;  %v1565_v34 = vadd.f32 %v1540_v15, %v1365_v24 }
 0x1a3   : > { %v1749_v60 = vpop.f32.mrf.mxu3  ;;  %v1342_v50 = vpop.f32.mrf.mxu1 }
 0x1a4   : > { %1980 = vst [vmem:[%s3423_s19 + $0x48] sm:$0xff] %v1964_v59  ;;  %v1774_v41 = vadd.f32 %v1749_v60, %v1565_v34  ;;  %v1366_v10 = vadd.f32 %v1342_v50, %v3392_v62 }
 0x1a5   : > { %v1906_v38 = vpop.f32.mrf.mxu0 }
 0x1a6   : > { %v1929_v8 = vadd.f32 %v1904_v55, %v1774_v41 }
 0x1a8   : > { %v1949_v61 = vadd.f32 %v3416_v40, %v1929_v8 }
 0x1a9   : > { %v1542_v0 = vpop.f32.mrf.mxu2 }
 0x1aa   : > { %v1965_v26 = vmax.f32 %v1949_v61, 0.0  ;;  %v1566_v9 = vadd.f32 %v1542_v0, %v1366_v10 }
 0x1ab   : > { %v1751_v1 = vpop.f32.mrf.mxu3  ;;  %v1345_v57 = vpop.f32.mrf.mxu1 }
 0x1ac   : > { %1981 = vst [vmem:[%s3423_s19 + $0x50] sm:$0xff] %v1965_v26  ;;  %v1775_v51 = vadd.f32 %v1751_v1, %v1566_v9  ;;  %v1367_v6 = vadd.f32 %v1345_v57, %v3395_v20 }
 0x1ad   : > { %v1909_v13 = vpop.f32.mrf.mxu0 }
 0x1ae   : > { %v1930_v4 = vadd.f32 %v1906_v38, %v1775_v51 }
 0x1b0   : > { %v1950_v12 = vadd.f32 %v3416_v40, %v1930_v4 }
 0x1b1   : > { %v1545_v3 = vpop.f32.mrf.mxu2 }
 0x1b2   : > { %v1966_v17 = vmax.f32 %v1950_v12, 0.0  ;;  %v1567_v23 = vadd.f32 %v1545_v3, %v1367_v6 }
 0x1b3   : > { %v1754_v18 = vpop.f32.mrf.mxu3  ;;  %v1347_v62 = vpop.f32.mrf.mxu1 }
 0x1b4   : > { %1982 = vst [vmem:[%s3423_s19 + $0x58] sm:$0xff] %v1966_v17  ;;  %v1776_v16 = vadd.f32 %v1754_v18, %v1567_v23  ;;  %v1368_v7 = vadd.f32 %v1347_v62, %v3402_v19 }
 0x1b5   : > { %v1911_v63 = vpop.f32.mrf.mxu0 }
 0x1b6   : > { %v1931_v30 = vadd.f32 %v1909_v13, %v1776_v16 }
 0x1b8   : > { %v1951_v27 = vadd.f32 %v3416_v40, %v1931_v30 }
 0x1b9   : > { %v1547_v5 = vpop.f32.mrf.mxu2 }
 0x1ba   : > { %v1967_v58 = vmax.f32 %v1951_v27, 0.0  ;;  %v1568_v25 = vadd.f32 %v1547_v5, %v1368_v7 }
 0x1bb   : > { %v1756_v56 = vpop.f32.mrf.mxu3  ;;  %v1350_v20 = vpop.f32.mrf.mxu1 }
 0x1bc   : > { %1983 = vst [vmem:[%s3423_s19 + $0x60] sm:$0xff] %v1967_v58  ;;  %v1777_v33 = vadd.f32 %v1756_v56, %v1568_v25  ;;  %v1369_v37 = vadd.f32 %v1350_v20, %v3405_v45 }
 0x1bd   : > { %v1914_v19 = vpop.f32.mrf.mxu0 }
 0x1be   : > { %v1932_v11 = vadd.f32 %v1911_v63, %v1777_v33 }
 0x1c0   : > { %v1952_v35 = vadd.f32 %v3416_v40, %v1932_v11 }
 0x1c1   : > { %v1550_v22 = vpop.f32.mrf.mxu2 }
 0x1c2   : > { %v1968_v42 = vmax.f32 %v1952_v35, 0.0  ;;  %v1569_v21 = vadd.f32 %v1550_v22, %v1369_v37 }
 0x1c3   : > { %v1759_v43 = vpop.f32.mrf.mxu3  ;;  %v1352_v2 = vpop.f32.mrf.mxu1 }
 0x1c4   : > { %1984 = vst [vmem:[%s3423_s19 + $0x68] sm:$0xff] %v1968_v42  ;;  %v1778_v44 = vadd.f32 %v1759_v43, %v1569_v21  ;;  %v1370_v29 = vadd.f32 %v1352_v2, %v3410_v39 }
 0x1c5   : > { %v1916_v52 = vpop.f32.mrf.mxu0 }
 0x1c6   : > { %v1933_v14 = vadd.f32 %v1914_v19, %v1778_v44 }
 0x1c8   : > { %v1953_v46 = vadd.f32 %v3416_v40, %v1933_v14 }
 0x1c9   : > { %v1552_v47 = vpop.f32.mrf.mxu2 }
 0x1ca   : > { %v1969_v48 = vmax.f32 %v1953_v46, 0.0  ;;  %v1570_v49 = vadd.f32 %v1552_v47, %v1370_v29 }
 0x1cb   : > { %v1761_v31 = vpop.f32.mrf.mxu3 }
 0x1cc   : > { %1985 = vst [vmem:[%s3423_s19 + $0x70] sm:$0xff] %v1969_v48  ;;  %v1779_v45 = vadd.f32 %v1761_v31, %v1570_v49 }
 0x1ce   : > { %v1934_v32 = vadd.f32 %v1916_v52, %v1779_v45 }
 0x1d0   : > { %v1954_v28 = vadd.f32 %v3416_v40, %v1934_v32 }
 0x1d2   : > { %v1970_v54 = vmax.f32 %v1954_v28, 0.0 }
 0x1d4   : > { %1986 = vst [vmem:[%s3423_s19 + $0x78] sm:$0xff] %v1970_v54 }
 0x1d5 PF: > { %s13_s16 = sadd.s32 1, %s2858_s16   ;;  %s3489_s12 = smov %s2850_s14 }
 0x1d6   : > { %p10_p7 = scmp.ge.s32.totalorder %s13_s16, 8   ;;  %s3490_s13 = smov %s2854_s15 }
 0x1d7   : > { %s3491_s14 = smov %s3494_s17  ;;  %s3492_s15 = smov %s3498_s18 }
 0x1d8   :  { %12 = sbr.rel (!%p10_p7) target bundleno = 3 (0x3), region = 79 }

// kernel: inception_forward.6
= control target key start
LH: loop header
LB: loop body
LE: loop exit
PB: predicated region body
PF: predicated region fallthrough
CT: control target
= control target key end

     0   :  { %s6642_s12 = smov 0   ;;  %s6644_s13 = smov 0   ;;  %s8373_s0 = inlined_call_operand.vmem [shape: bf16[2,488,128], index: 0, kind: input, shape index: {}]   ;;  %s8374_s1 = inlined_call_operand.vmem [shape: bf16[25,128,128], index: 1, kind: input, shape index: {}]   ;;  %s8375_s2 = inlined_call_operand.vmem [shape: f32[1,128], index: 2, kind: input, shape index: {}]   ;;  %s8376_s3 = inlined_call_operand.vmem [shape: f32[2,384,128], index: 3, kind: output, shape index: {}]  }
   0x1   :  { %s6646_s14 = smov 0   ;;  %s6648_s15 = smov 0  }
   0x2   :  { %s6650_s16 = smov 0  }
   0x3 LB: > { %s35_s17 = sadd.s32 1, %s6612_s14  ;;  %s39_s18 = sadd.s32 1, %s6616_s15  ;;  %s6620_s16 = sphi %s6650_s16, %s13_s16   ;;  %s6616_s15 = sphi %s6648_s15, %s8380_s15   ;;  %s6612_s14 = sphi %s6646_s14, %s8379_s14   ;;  %s6608_s13 = sphi %s6644_s13, %s8378_s13   ;;  %s6604_s12 = sphi %s6642_s12, %s8377_s12  }
   0x4   : > { %p37_p0 = scmp.ge.s32.totalorder %s35_s17, 3  ;;  %p4919_p1 = scmp.ge.s32.totalorder %s6620_s16, 1 }
   0x5   : > { %p196_p2 = scmp.lt.s32.totalorder %s6620_s16, 7 }
   0x6   : > { %s8382_s17 = smov (%p37_p0, %s35_s17), 0  ;;  %s8384_s18 = smov (!%p37_p0, %s39_s18), %s6616_s15 }
   0x7   : > { %p197_p3 = pnand %p4919_p1, %p196_p2  ;;  %p41_p4 = scmp.ge.s32.totalorder %s8384_s18, 2 }
   0x8   : > { %p241_p5 = scmp.lt.s32.totalorder (!%p197_p3), %s6608_s13, 1  ;;  %s6678_s21 = sshll.u32 (!%p197_p3), %s6604_s12, 7 }
   0x9   : > { %s8386_s18 = smov (%p41_p4, %s8384_s18), 0  ;;  %200 = sbr.rel (%p197_p3) target bundleno = 981 (0x3d5), region = 32 }
   0xa   : > { %s275_s25 = sshra.s32 (!%p197_p3), %s6678_s21, 3  ;;  %s1139_s26 = sadd.s32 (!%p197_p3), 24, %s6678_s21 }
   0xb   : > { %s4924_s4 = sshll.u32 (!%p197_p3), %s275_s25, 2  ;;  %s1140_s5 = sshra.s32 (!%p197_p3), %s1139_s26, 3 }
   0xc   : > { %s5181_s10 = sshll.u32 (!%p197_p3), %s1140_s5, 2  ;;  %s2927_s26 = sadd.s32 (!%p197_p3), 72, %s6678_s21 }
   0xd   : > { %s2928_s27 = sshra.s32 (!%p197_p3), %s2927_s26, 3  ;;  %s3821_s28 = sadd.s32 (!%p197_p3), 96, %s6678_s21 }
   0xe   : > { %v6298_v0 = vld [vmem:[%s8374_s1 + $0x78] sm:$0xff]  ;;  %v6297_v1 = vld [vmem:[%s8374_s1 + $0x70] sm:$0xff]  ;;  %s8388_s13 = smov (!%p241_p5, %s6608_s13), 1  ;;  %v6296_v2 = vld [vmem:[%s8374_s1 + $0x68] sm:$0xff]  ;;  %vm372_vm0 = vsmask.f32 7424 }
   0xf   : > { %6515 = vmatpush.bf16.msra.mxu1 %v6298_v0  ;;  %6516 = vmatpush.bf16.msra.mxu2 %v6298_v0  ;;  %s6539_s24 = smul.u32 244, %s8388_s13  ;;  %v6295_v3 = vld [vmem:[%s8374_s1 + $0x60] sm:$0xff]  ;;  %v6294_v4 = vld [vmem:[%s8374_s1 + $0x58] sm:$0xff]  ;;  %v6293_v11 = vld [vmem:[%s8374_s1 + $0x50] sm:$0xff]  ;;  %vm668_vm1 = vcmask 1046528   ;;  %vm1000_vm3 = vcmask 1045504  }
  0x10   : > { %6517 = vmatpush.bf16.msra.mxu3 %v6298_v0  ;;  %497 = vmatpush.bf16.msra.mxu0 %v6298_v0  ;;  %v6292_v22 = vld [vmem:[%s8374_s1 + $0x48] sm:$0xff]  ;;  %v6291_v31 = vld [vmem:[%s8374_s1 + $0x40] sm:$0xff]  ;;  %v6306_v40 = vld [vmem:[%s8374_s1 + $0xb8] sm:$0xff]  ;;  %vm824_vm2 = vsmask.f32 6400  ;;  %s5727_s6 = sshll.u32 %s2928_s27, 2 }
  0x11   : > { %s6693_s30 = scalar_lea.vmem %s8373_s0, %s6539_s24  ;;  %v6290_v41 = vld [vmem:[%s8374_s1 + $0x38] sm:$0xff]  ;;  %v6305_v50 = vld [vmem:[%s8374_s1 + $0xb0] sm:$0xff]  ;;  %v6304_v55 = vld [vmem:[%s8374_s1 + $0xa8] sm:$0xff] }
  0x12   : > { %s6699_s7 = scalar_lea.vmem %s6693_s30, %s4924_s4  ;;  %v6314_v46 = vld [vmem:[%s8374_s1 + $0xf8] sm:$0xff]  ;;  %v6289_v51 = vld [vmem:[%s8374_s1 + $0x30] sm:$0xff]  ;;  %v6288_v56 = vld [vmem:[%s8374_s1 + $0x28] sm:$0xff]  ;;  %s7106_s11 = scalar_lea.vmem %s6693_s30, %s5181_s10 }
  0x13   : > { %6518 = vmatpush.bf16.msra.mxu1 %v6297_v1  ;;  %6519 = vmatpush.bf16.msra.mxu2 %v6297_v1  ;;  %v6705_v5 = vld [vmem:[%s6699_s7 + $0x10] sm:$0xff]  ;;  %v6708_v6 = vld [vmem:[%s6699_s7 + $0x20] sm:$0xff]  ;;  %v6717_v9 = vld [vmem:[%s6699_s7 + $0x18] sm:$0xff]  ;;  %s6540_s4 = smul.u32 48, %s8388_s13 }
  0x14   : > { %6520 = vmatpush.bf16.msra.mxu3 %v6297_v1  ;;  %498 = vmatpush.bf16.msra.mxu0 %v6297_v1  ;;  %v6711_v7 = vld [vmem:[%s6699_s7 + $0x30] sm:$0xff]  ;;  %v6714_v8 = vld [vmem:[%s6699_s7] sm:$0xff]  ;;  %v6720_v10 = vld [vmem:[%s6699_s7 + $0x28] sm:$0xff]  ;;  %v389_v12 = vshll.u32 %v6705_v5, 16  ;;  %v405_v13 = vshll.u32 %v6708_v6, 16  ;;  %v393_v18 = vshrl.u32 %v6705_v5, 16 }
  0x15   : > { %v6728_v14 = vld [vmem:[%s6699_s7 + $0x38] sm:$0xff]  ;;  %v421_v15 = vshll.u32 %v6711_v7, 16  ;;  %v6732_v16 = vld [vmem:[%s6699_s7 + $0x8] sm:$0xff]  ;;  %v376_v17 = vshll.u32 %v6714_v8, 16  ;;  %v397_v19 = vshll.u32 %v6717_v9, 16  ;;  %v409_v20 = vshrl.u32 %v6708_v6, 16 }
  0x16   : > { %v413_v21 = vshll.u32 %v6720_v10, 16  ;;  %v6744_v23 = vrot.slane %v389_v12, 1  ;;  %v6748_v24 = vrot.slane %v405_v13, 1  ;;  %v425_v25 = vshrl.u32 %v6711_v7, 16  ;;  %v295_v42 = vld [vmem:[%s6699_s7 + $0x40] sm:$0xf]  ;;  %s7628_s7 = scalar_lea.vmem %s6693_s30, %s5727_s6 }
  0x17   : > { %6521 = vmatpush.bf16.msra.mxu1 %v6296_v2  ;;  %6522 = vmatpush.bf16.msra.mxu2 %v6296_v2  ;;  %v429_v26 = vshll.u32 %v6728_v14, 16  ;;  %v6754_v27 = vrot.slane %v421_v15, 1  ;;  %v374_v28 = vshrl.u32 %v6714_v8, 16  ;;  %v378_v29 = vrot.slane %v376_v17, 1  ;;  %v6322_v48 = vld [vmem:[%s8374_s1 + $0x138] sm:$0xff]  ;;  %v6313_v52 = vld [vmem:[%s8374_s1 + $0xf0] sm:$0xff] }
  0x18   : > { %6523 = vmatpush.bf16.msra.mxu3 %v6296_v2  ;;  %499 = vmatpush.bf16.msra.mxu0 %v6296_v2  ;;  %v381_v30 = vshll.u32 %v6732_v16, 16  ;;  %v395_v32 = vor.u32 %v393_v18, %v6744_v23  ;;  %v399_v33 = vrot.slane %v397_v19, 1  ;;  %v411_v34 = vor.u32 %v409_v20, %v6748_v24  ;;  %v6321_v53 = vld [vmem:[%s8374_s1 + $0x130] sm:$0xff]  ;;  %v6312_v59 = vld [vmem:[%s8374_s1 + $0xe8] sm:$0xff]  ;;  %v6303_v0 = vld [vmem:[%s8374_s1 + $0xa0] sm:$0xff] }
  0x19   : > { %v415_v35 = vrot.slane %v413_v21, 1  ;;  %v427_v36 = vor.u32 %v425_v25, %v6754_v27  ;;  %v431_v37 = vrot.slane %v429_v26, 1  ;;  %v379_v38 = vor.u32 %v378_v29, %v374_v28  ;;  %v6320_v60 = vld [vmem:[%s8374_s1 + $0x128] sm:$0xff]  ;;  %v6287_v1 = vld [vmem:[%s8374_s1 + $0x20] sm:$0xff] }
  0x1a   : > { %v383_v39 = vrot.slane %v381_v30, 1  ;;  %v400_v43 = vsel %vm372_vm0, %v395_v32, %v399_v33  ;;  %v362_v49 = vunpack.c.l.b16 %v295_v42  ;;  %v401_v57 = vshrl.u32 %v6717_v9, 16  ;;  %v6302_v32 = vld [vmem:[%s8374_s1 + $0x98] sm:$0xff]  ;;  %v6284_v42 = vld [vmem:[%s8374_s1 + $0x8] sm:$0xff] }
  0x1b   : > { %6524 = vmatpush.bf16.msra.mxu1 %v6295_v3  ;;  %6525 = vmatpush.bf16.msra.mxu2 %v6295_v3  ;;  %v416_v44 = vsel %vm372_vm0, %v411_v34, %v415_v35  ;;  %v432_v45 = vsel %vm372_vm0, %v427_v36, %v431_v37  ;;  %v417_v58 = vshrl.u32 %v6720_v10, 16  ;;  %v433_v61 = vshrl.u32 %v6728_v14, 16 }
  0x1c   : > { %6526 = vmatpush.bf16.msra.mxu3 %v6295_v3  ;;  %500 = vmatpush.bf16.msra.mxu0 %v6295_v3  ;;  %v384_v47 = vsel %vm372_vm0, %v379_v38, %v383_v39  ;;  %v6811_v54 = vpack.c.b16 %v362_v49, %v362_v49  ;;  %v385_v63 = vshrl.u32 %v6732_v16, 16  ;;  %v403_v2 = vor.u32 %v401_v57, %v399_v33  ;;  %v6286_v33 = vld [vmem:[%s8374_s1 + $0x18] sm:$0xff] }
  0x1d   : > { %v419_v3 = vor.u32 %v417_v58, %v415_v35  ;;  %v6346_v49 = vld [vmem:[%s8374_s1 + $0x1b8] sm:$0xff] }
  0x1e   : > { %v437_v62 = vshll.u32 %v6811_v54, 16  ;;  %v408_v34 = vsel %vm372_vm0, %v403_v2, %v6748_v24  ;;  %v6301_v24 = vld [vmem:[%s8374_s1 + $0x90] sm:$0xff] }
  0x1f   : > { %6527 = vmatpush.bf16.msra.mxu1 %v6294_v4  ;;  %6528 = vmatpush.bf16.msra.mxu2 %v6294_v4  ;;  %v424_v35 = vsel %vm372_vm0, %v419_v3, %v6754_v27  ;;  %v6285_v27 = vld [vmem:[%s8374_s1 + $0x10] sm:$0xff] }
  0x20   : > { %6529 = vmatpush.bf16.msra.mxu3 %v6294_v4  ;;  %501 = vmatpush.bf16.msra.mxu0 %v6294_v4  ;;  %v6311_v4 = vld [vmem:[%s8374_s1 + $0xe0] sm:$0xff]  ;;  %v439_v29 = vrot.slane %v437_v62, 1 }
  0x23   : > { %6530 = vmatpush.bf16.msra.mxu1 %v6293_v11  ;;  %6531 = vmatpush.bf16.msra.mxu2 %v6293_v11 }
  0x24   : > { %6532 = vmatpush.bf16.msra.mxu3 %v6293_v11  ;;  %502 = vmatpush.bf16.msra.mxu0 %v6293_v11  ;;  %v6319_v11 = vld [vmem:[%s8374_s1 + $0x120] sm:$0xff] }
  0x27   : > { %6533 = vmatpush.bf16.msra.mxu1 %v6292_v22  ;;  %6534 = vmatpush.bf16.msra.mxu2 %v6292_v22 }
  0x28   : > { %6535 = vmatpush.bf16.msra.mxu3 %v6292_v22  ;;  %503 = vmatpush.bf16.msra.mxu0 %v6292_v22  ;;  %v435_v22 = vor.u32 %v433_v61, %v431_v37  ;;  %v6310_v37 = vld [vmem:[%s8374_s1 + $0xd8] sm:$0xff] }
  0x2a   : > { %v440_v36 = vsel %vm372_vm0, %v435_v22, %v439_v29  ;;  %v6353_v22 = vld [vmem:[%s8374_s1 + $0x1f0] sm:$0xff] }
  0x2b   : > { %6536 = vmatpush.bf16.msra.mxu1 %v6291_v31  ;;  %6537 = vmatpush.bf16.msra.mxu2 %v6291_v31  ;;  %v6361_v29 = vld [vmem:[%s8374_s1 + $0x230] sm:$0xff] }
  0x2c   : > { %6538 = vmatpush.bf16.msra.mxu3 %v6291_v31  ;;  %504 = vmatpush.bf16.msra.mxu0 %v6291_v31  ;;  %v387_v31 = vor.u32 %v385_v63, %v383_v39  ;;  %v6318_v39 = vld [vmem:[%s8374_s1 + $0x118] sm:$0xff] }
  0x2e   : > { %515 = vmatmul.bf16.vlgmr.msra.gmra.mxu1 %v400_v43  ;;  %525 = vmatmul.bf16.vlgmr.msra.gmra.mxu2 %v416_v44  ;;  %v392_v38 = vsel %vm372_vm0, %v387_v31, %v6744_v23  ;;  %v6309_v23 = vld [vmem:[%s8374_s1 + $0xd0] sm:$0xff]  ;;  %v825_v43 = vrot.slane %v374_v28, 1  ;;  %v826_v44 = vrot.slane %v376_v17, 2  ;;  %v6299_v17 = vld [vmem:[%s8374_s1 + $0x80] sm:$0xff]  ;;  %v6344_v31 = vld [vmem:[%s8374_s1 + $0x1a8] sm:$0xff] }
  0x2f   : > { %742 = vmatpush.bf16.msrb.mxu2 %v6306_v40  ;;  %602 = vmatpush.bf16.msrb.mxu1 %v6290_v41  ;;  %v6317_v40 = vld [vmem:[%s8374_s1 + $0x110] sm:$0xff]  ;;  %v6300_v41 = vld [vmem:[%s8374_s1 + $0x88] sm:$0xff]  ;;  %v6283_v28 = vld [vmem:[%s8374_s1] sm:$0xff] }
  0x30   : > { %535 = vmatmul.bf16.vlgmr.msra.gmra.mxu3 %v432_v45  ;;  %505 = vmatmul.bf16.vlgmr.msra.gmra.mxu0 %v384_v47  ;;  %v6308_v45 = vld [vmem:[%s8374_s1 + $0xc8] sm:$0xff]  ;;  %v828_v47 = vrot.slane %v385_v63, 1  ;;  %v6354_v63 = vld [vmem:[%s8374_s1 + $0x1f8] sm:$0xff] }
  0x31   : > { %918 = vmatpush.bf16.msrb.mxu3 %v6314_v46  ;;  %1074 = vmatpush.bf16.msrb.mxu0 %v6322_v48  ;;  %v6316_v46 = vld [vmem:[%s8374_s1 + $0x108] sm:$0xff]  ;;  %v829_v48 = vrot.slane %v381_v30, 2  ;;  %v669_v30 = vrot.slane %v6714_v8, 1 }
  0x33   : > { %743 = vmatpush.bf16.msrb.mxu2 %v6305_v50  ;;  %603 = vmatpush.bf16.msrb.mxu1 %v6289_v51  ;;  %v6338_v50 = vld [vmem:[%s8374_s1 + $0x178] sm:$0xff]  ;;  %v670_v51 = vrot.slane %v6732_v16, 1 }
  0x35   : > { %919 = vmatpush.bf16.msrb.mxu3 %v6313_v52  ;;  %1075 = vmatpush.bf16.msrb.mxu0 %v6321_v53  ;;  %v827_v52 = vor.u32 %v826_v44, %v825_v43  ;;  %v6307_v53 = vld [vmem:[%s8374_s1 + $0xc0] sm:$0xff]  ;;  %v674_v43 = vrot.slane %v6717_v9, 1  ;;  %v1006_v44 = vrot.slane %v6717_v9, 2 }
  0x37   : > { %744 = vmatpush.bf16.msrb.mxu2 %v6304_v55  ;;  %604 = vmatpush.bf16.msrb.mxu1 %v6288_v56  ;;  %v6315_v55 = vld [vmem:[%s8374_s1 + $0x100] sm:$0xff]  ;;  %v830_v56 = vor.u32 %v829_v48, %v828_v47  ;;  %v6342_v48 = vld [vmem:[%s8374_s1 + $0x198] sm:$0xff] }
  0x39   : > { %920 = vmatpush.bf16.msrb.mxu3 %v6312_v59  ;;  %1076 = vmatpush.bf16.msrb.mxu0 %v6320_v60  ;;  %v1001_v59 = vrot.slane %v6714_v8, 2  ;;  %v1002_v60 = vrot.slane %v6732_v16, 2  ;;  %v831_v2 = vsel %vm824_vm2, %v827_v52, %v830_v56  ;;  %v6341_v52 = vld [vmem:[%s8374_s1 + $0x190] sm:$0xff] }
  0x3b   : > { %745 = vmatpush.bf16.msrb.mxu2 %v6303_v0  ;;  %605 = vmatpush.bf16.msrb.mxu1 %v6287_v1  ;;  %v6362_v0 = vld [vmem:[%s8374_s1 + $0x238] sm:$0xff]  ;;  %v671_v1 = vsel %vm668_vm1, %v669_v30, %v670_v51  ;;  %v1003_v3 = vsel %vm1000_vm3, %v1001_v59, %v1002_v60  ;;  %v845_v59 = vrot.slane %v413_v21, 2  ;;  %v6340_v21 = vld [vmem:[%s8374_s1 + $0x188] sm:$0xff] }
  0x3d   : > { %921 = vmatpush.bf16.msrb.mxu3 %v6311_v4  ;;  %1077 = vmatpush.bf16.msrb.mxu0 %v6319_v11  ;;  %v6345_v4 = vld [vmem:[%s8374_s1 + $0x1b0] sm:$0xff] }
  0x3e   : > { %520 = vmatmul.bf16.gmra.mxu1 %v408_v34  ;;  %530 = vmatmul.bf16.gmra.mxu2 %v424_v35  ;;  %v6337_v11 = vld [vmem:[%s8374_s1 + $0x170] sm:$0xff]  ;;  %v832_v34 = vrot.slane %v393_v18, 1  ;;  %v833_v35 = vrot.slane %v389_v12, 2  ;;  %v840_v18 = vrot.slane %v409_v20, 1  ;;  %v841_v12 = vrot.slane %v405_v13, 2  ;;  %v6351_v13 = vld [vmem:[%s8374_s1 + $0x1e0] sm:$0xff] }
  0x3f   : > { %746 = vmatpush.bf16.msrb.mxu2 %v6302_v32  ;;  %606 = vmatpush.bf16.msrb.mxu1 %v6286_v33  ;;  %v6336_v32 = vld [vmem:[%s8374_s1 + $0x168] sm:$0xff]  ;;  %v6335_v20 = vld [vmem:[%s8374_s1 + $0x160] sm:$0xff] }
  0x40   : > { %540 = vmatmul.bf16.gmra.mxu3 %v440_v36  ;;  %510 = vmatmul.bf16.gmra.mxu0 %v392_v38  ;;  %v6352_v33 = vld [vmem:[%s8374_s1 + $0x1e8] sm:$0xff]  ;;  %v672_v36 = vrot.slane %v6705_v5, 1  ;;  %v1004_v38 = vrot.slane %v6705_v5, 2 }
  0x41   : > { %922 = vmatpush.bf16.msrb.mxu3 %v6310_v37  ;;  %1078 = vmatpush.bf16.msrb.mxu0 %v6318_v39  ;;  %v834_v37 = vor.u32 %v833_v35, %v832_v34  ;;  %v836_v39 = vrot.slane %v401_v57, 1  ;;  %v6347_v34 = vld [vmem:[%s8374_s1 + $0x1c0] sm:$0xff] }
  0x42   : > { %v1007_v47 = vsel %vm1000_vm3, %v1004_v38, %v1006_v44  ;;  %v6331_v35 = vld [vmem:[%s8374_s1 + $0x140] sm:$0xff] }
  0x43   : > { %747 = vmatpush.bf16.msrb.mxu2 %v6301_v24  ;;  %607 = vmatpush.bf16.msrb.mxu1 %v6285_v27  ;;  %v837_v24 = vrot.slane %v397_v19, 2  ;;  %v673_v27 = vsel %vm668_vm1, %v670_v51, %v672_v36  ;;  %v6343_v19 = vld [vmem:[%s8374_s1 + $0x1a0] sm:$0xff] }
  0x45   : > { %923 = vmatpush.bf16.msrb.mxu3 %v6309_v23  ;;  %1079 = vmatpush.bf16.msrb.mxu0 %v6317_v40  ;;  %v835_v23 = vsel %vm824_vm2, %v830_v56, %v834_v37  ;;  %v1005_v40 = vsel %vm1000_vm3, %v1002_v60, %v1004_v38  ;;  %v6357_v56 = vld [vmem:[%s8374_s1 + $0x210] sm:$0xff]  ;;  %v678_v60 = vrot.slane %v6720_v10, 1  ;;  %v682_v38 = vrot.slane %v6728_v14, 1 }
  0x47   : > { %748 = vmatpush.bf16.msrb.mxu2 %v6300_v41  ;;  %608 = vmatpush.bf16.msrb.mxu1 %v6284_v42  ;;  %v838_v41 = vor.u32 %v837_v24, %v836_v39  ;;  %v842_v42 = vor.u32 %v841_v12, %v840_v18  ;;  %v1014_v24 = vrot.slane %v6728_v14, 2 }
  0x49   : > { %924 = vmatpush.bf16.msrb.mxu3 %v6308_v45  ;;  %1080 = vmatpush.bf16.msrb.mxu0 %v6316_v46  ;;  %v843_v57 = vsel %vm824_vm2, %v838_v41, %v842_v42  ;;  %v675_v45 = vsel %vm668_vm1, %v672_v36, %v674_v43  ;;  %v839_v46 = vsel %vm824_vm2, %v834_v37, %v838_v41  ;;  %v853_v36 = vrot.slane %v429_v26, 2  ;;  %v6355_v37 = vld [vmem:[%s8374_s1 + $0x200] sm:$0xff] }
  0x4a   : > { %v856_v41 = vshrl.u32 %v6811_v54, 16 }
  0x4b   : > { %749 = vmatpush.bf16.msrb.mxu2 %v6299_v17  ;;  %609 = vmatpush.bf16.msrb.mxu1 %v6283_v28  ;;  %v6350_v17 = vld [vmem:[%s8374_s1 + $0x1d8] sm:$0xff] }
  0x4c   : > { %v6334_v28 = vld [vmem:[%s8374_s1 + $0x158] sm:$0xff] }
  0x4d   : > { %925 = vmatpush.bf16.msrb.mxu3 %v6307_v53  ;;  %1081 = vmatpush.bf16.msrb.mxu0 %v6315_v55  ;;  %v6349_v53 = vld [vmem:[%s8374_s1 + $0x1d0] sm:$0xff] }
  0x4e   : > { %610 = vmatmul.bf16.vlgmr.msrb.gmra.mxu1 %v6714_v8  ;;  %750 = vmatmul.bf16.vlgmr.msrb.gmra.mxu2 %v671_v1  ;;  %v6360_v8 = vld [vmem:[%s8374_s1 + $0x228] sm:$0xff]  ;;  %v6333_v55 = vld [vmem:[%s8374_s1 + $0x150] sm:$0xff] }
  0x4f   : > { %1483 = vmatpush.bf16.msra.mxu2 %v6346_v49  ;;  %1274 = vmatpush.bf16.msra.mxu1 %v6338_v50  ;;  %v6358_v49 = vld [vmem:[%s8374_s1 + $0x218] sm:$0xff]  ;;  %v1008_v50 = vrot.slane %v6708_v6, 2 }
  0x50   : > { %926 = vmatmul.bf16.vlgmr.msrb.gmra.mxu3 %v831_v2  ;;  %1082 = vmatmul.bf16.vlgmr.msrb.gmra.mxu0 %v1003_v3 }
  0x51   : > { %1638 = vmatpush.bf16.msra.mxu3 %v6354_v63  ;;  %1813 = vmatpush.bf16.msra.mxu0 %v6362_v0  ;;  %v1009_v51 = vsel %vm1000_vm3, %v1006_v44, %v1008_v50  ;;  %v1010_v0 = vrot.slane %v6720_v10, 2  ;;  %v684_v44 = vrot.slane %v6811_v54, 1 }
  0x53   : > { %1484 = vmatpush.bf16.msra.mxu2 %v6345_v4  ;;  %1275 = vmatpush.bf16.msra.mxu1 %v6337_v11  ;;  %v1011_v3 = vsel %vm1000_vm3, %v1008_v50, %v1010_v0  ;;  %v6332_v4 = vld [vmem:[%s8374_s1 + $0x148] sm:$0xff]  ;;  %v849_v11 = vrot.slane %v421_v15, 2  ;;  %v6339_v15 = vld [vmem:[%s8374_s1 + $0x180] sm:$0xff] }
  0x54   : > { %v7123_v50 = vld [vmem:[%s7106_s11 + $0x8] sm:$0xff] }
  0x55   : > { %1639 = vmatpush.bf16.msra.mxu3 %v6353_v22  ;;  %1814 = vmatpush.bf16.msra.mxu0 %v6361_v29  ;;  %v6356_v22 = vld [vmem:[%s8374_s1 + $0x208] sm:$0xff]  ;;  %v680_v29 = vrot.slane %v6711_v7, 1 }
  0x57   : > { %1485 = vmatpush.bf16.msra.mxu2 %v6344_v31  ;;  %1276 = vmatpush.bf16.msra.mxu1 %v6336_v32  ;;  %v1012_v32 = vrot.slane %v6711_v7, 2  ;;  %v683_v12 = vsel %vm668_vm1, %v680_v29, %v682_v38 }
  0x59   : > { %1640 = vmatpush.bf16.msra.mxu3 %v6352_v33  ;;  %1815 = vmatpush.bf16.msra.mxu0 %v6360_v8  ;;  %v681_v33 = vsel %vm668_vm1, %v678_v60, %v680_v29 }
  0x5b   : > { %1486 = vmatpush.bf16.msra.mxu2 %v6343_v19  ;;  %1277 = vmatpush.bf16.msra.mxu1 %v6335_v20  ;;  %v859_v20 = vrot.slane %v437_v62, 2 }
  0x5d   : > { %1641 = vmatpush.bf16.msra.mxu3 %v6351_v13  ;;  %v858_v13 = vrot.slane %v856_v41, 1 }
  0x5e   : > { %615 = vmatmul.bf16.gmra.mxu1 %v6732_v16  ;;  %755 = vmatmul.bf16.gmra.mxu2 %v673_v27  ;;  %v6359_v16 = vld [vmem:[%s8374_s1 + $0x220] sm:$0xff]  ;;  %v1015_v27 = vsel %vm1000_vm3, %v1012_v32, %v1014_v24 }
  0x5f   : > { %1816 = vmatpush.bf16.msra.mxu0 %v6359_v16  ;;  %1487 = vmatpush.bf16.msra.mxu2 %v6342_v48  ;;  %v6370_v16 = vld [vmem:[%s8374_s1 + $0x278] sm:$0xff] }
  0x60   : > { %931 = vmatmul.bf16.gmra.mxu3 %v835_v23  ;;  %1087 = vmatmul.bf16.gmra.mxu0 %v1005_v40  ;;  %v6386_v23 = vld [vmem:[%s8374_s1 + $0x2b8] sm:$0xff] }
  0x61   : > { %1642 = vmatpush.bf16.msra.mxu3 %v6350_v17  ;;  %1278 = vmatpush.bf16.msra.mxu1 %v6334_v28  ;;  %v6394_v40 = vld [vmem:[%s8374_s1 + $0x2f8] sm:$0xff]  ;;  %v685_v17 = vsel %vm668_vm1, %v682_v38, %v684_v44  ;;  %v7116_v28 = vld [vmem:[%s7106_s11] sm:$0xff]  ;;  %v6392_v38 = vld [vmem:[%s8374_s1 + $0x2e8] sm:$0xff] }
  0x63   : > { %1817 = vmatpush.bf16.msra.mxu0 %v6358_v49  ;;  %1488 = vmatpush.bf16.msra.mxu2 %v6341_v52  ;;  %v6393_v52 = vld [vmem:[%s8374_s1 + $0x2f0] sm:$0xff] }
  0x65   : > { %1643 = vmatpush.bf16.msra.mxu3 %v6349_v53  ;;  %1279 = vmatpush.bf16.msra.mxu1 %v6333_v55  ;;  %v1360_v53 = vshrl.u32 %v7116_v28, 16  ;;  %v1367_v55 = vshll.u32 %v7123_v50, 16 }
  0x67   : > { %1818 = vmatpush.bf16.msra.mxu0 %v6357_v56  ;;  %1489 = vmatpush.bf16.msra.mxu2 %v6340_v21  ;;  %v1371_v56 = vshrl.u32 %v7123_v50, 16  ;;  %v6369_v21 = vld [vmem:[%s8374_s1 + $0x270] sm:$0xff] }
  0x69   : > { %1280 = vmatpush.bf16.msra.mxu1 %v6332_v4 }
  0x6b   : > { %1819 = vmatpush.bf16.msra.mxu0 %v6356_v22  ;;  %1490 = vmatpush.bf16.msra.mxu2 %v6339_v15  ;;  %v1566_v22 = vrot.slane %v7123_v50, 1 }
  0x6d   : > { %1281 = vmatpush.bf16.msra.mxu1 %v6331_v35 }
  0x6e   : > { %620 = vmatmul.bf16.gmra.mxu1 %v6705_v5  ;;  %760 = vmatmul.bf16.gmra.mxu2 %v675_v45  ;;  %v676_v5 = vrot.slane %v6708_v6, 1  ;;  %v860_v45 = vor.u32 %v859_v20, %v858_v13 }
  0x6f   : > { %1820 = vmatpush.bf16.msra.mxu0 %v6355_v37  ;;  %2168 = vmatpush.bf16.msrb.mxu2 %v6386_v23  ;;  %v6384_v37 = vld [vmem:[%s8374_s1 + $0x2a8] sm:$0xff] }
  0x70   : > { %936 = vmatmul.bf16.gmra.mxu3 %v839_v46  ;;  %1092 = vmatmul.bf16.gmra.mxu0 %v1007_v47  ;;  %v677_v30 = vsel %vm668_vm1, %v674_v43, %v676_v5  ;;  %v679_v1 = vsel %vm668_vm1, %v676_v5, %v678_v60  ;;  %v6402_v43 = vld [vmem:[%s8374_s1 + $0x338] sm:$0xff]  ;;  %v1016_v46 = vrot.slane %v6811_v54, 2 }
  0x71   : > { %1968 = vmatpush.bf16.msrb.mxu1 %v6370_v16  ;;  %v6368_v16 = vld [vmem:[%s8374_s1 + $0x268] sm:$0xff] }
  0x72   : > { %v1017_v54 = vsel %vm1000_vm3, %v1014_v24, %v1016_v46 }
  0x73   : > { %2532 = vmatpush.bf16.msrb.mxu0 %v6402_v43  ;;  %v6400_v43 = vld [vmem:[%s8374_s1 + $0x328] sm:$0xff] }
  0x75   : > { %1969 = vmatpush.bf16.msrb.mxu1 %v6369_v21 }
  0x79   : > { %1970 = vmatpush.bf16.msrb.mxu1 %v6368_v16 }
  0x7e   : > { %625 = vmatmul.bf16.gmra.mxu1 %v6717_v9  ;;  %765 = vmatmul.bf16.gmra.mxu2 %v677_v30  ;;  %v844_v9 = vrot.slane %v417_v58, 1  ;;  %v6348_v58 = vld [vmem:[%s8374_s1 + $0x1c8] sm:$0xff]  ;;  %v1362_v30 = vshll.u32 %v7116_v28, 16 }
  0x7f   : > { %1644 = vmatpush.bf16.msra.mxu3 %v6348_v58  ;;  %v6401_v58 = vld [vmem:[%s8374_s1 + $0x330] sm:$0xff] }
  0x80   : > { %941 = vmatmul.bf16.gmra.mxu3 %v843_v57  ;;  %1097 = vmatmul.bf16.gmra.mxu0 %v1009_v51  ;;  %v846_v63 = vor.u32 %v845_v59, %v844_v9  ;;  %v6385_v51 = vld [vmem:[%s8374_s1 + $0x2b0] sm:$0xff]  ;;  %v1364_v60 = vrot.slane %v1362_v30, 1 }
  0x81   : > { %2169 = vmatpush.bf16.msrb.mxu2 %v6385_v51  ;;  %2533 = vmatpush.bf16.msrb.mxu0 %v6401_v58 }
  0x82   : > { %v847_v2 = vsel %vm824_vm2, %v842_v42, %v846_v63  ;;  %v1365_v4 = vor.u32 %v1364_v60, %v1360_v53 }
  0x83   : > { %1645 = vmatpush.bf16.msra.mxu3 %v6347_v34 }
  0x85   : > { %2170 = vmatpush.bf16.msrb.mxu2 %v6384_v37  ;;  %2534 = vmatpush.bf16.msrb.mxu0 %v6400_v43  ;;  %v7215_v43 = vld [vmem:[%s7106_s11 + $0x20] sm:$0xff] }
  0x87   : > { %2377 = vmatpush.bf16.msrb.mxu3 %v6394_v40 }
  0x8b   : > { %2378 = vmatpush.bf16.msrb.mxu3 %v6393_v52 }
  0x8e   : > { %630 = vmatmul.bf16.gmra.mxu1 %v6708_v6  ;;  %770 = vmatmul.bf16.gmra.mxu2 %v679_v1  ;;  %v848_v6 = vrot.slane %v425_v25, 1  ;;  %v1013_v25 = vsel %vm1000_vm3, %v1010_v0, %v1012_v32  ;;  %v1720_v0 = vrot.slane %v1360_v53, 1  ;;  %v1721_v1 = vrot.slane %v1362_v30, 2 }
  0x8f   : > { %2379 = vmatpush.bf16.msrb.mxu3 %v6392_v38 }
  0x90   : > { %946 = vmatmul.bf16.gmra.mxu3 %v847_v2  ;;  %1102 = vmatmul.bf16.gmra.mxu0 %v1011_v3  ;;  %v850_v31 = vor.u32 %v849_v11, %v848_v6  ;;  %v1723_v2 = vrot.slane %v1371_v56, 1  ;;  %v1724_v3 = vrot.slane %v1367_v55, 2  ;;  %v1369_v6 = vrot.slane %v1367_v55, 1 }
  0x91   : > { %v1565_v11 = vrot.slane %v7116_v28, 1  ;;  %v1722_v29 = vor.u32 %v1721_v1, %v1720_v0 }
  0x92   : > { %v851_v8 = vsel %vm824_vm2, %v846_v63, %v850_v31 }
  0x93   : > { %v1567_v35 = vsel %vm668_vm1, %v1565_v11, %v1566_v22 }
  0x9e   : > { %635 = vmatmul.bf16.gmra.mxu1 %v6720_v10  ;;  %775 = vmatmul.bf16.gmra.mxu2 %v681_v33  ;;  %v852_v10 = vrot.slane %v433_v61, 1 }
  0xa0   : > { %951 = vmatmul.bf16.gmra.mxu3 %v851_v8  ;;  %1107 = vmatmul.bf16.gmra.mxu0 %v1013_v25  ;;  %v854_v39 = vor.u32 %v853_v36, %v852_v10  ;;  %v1370_v25 = vsel %vm372_vm0, %v1365_v4, %v1369_v6  ;;  %v7161_v36 = vld [vmem:[%s7106_s11 + $0x10] sm:$0xff] }
  0xa1   : > { %v1379_v24 = vshrl.u32 %v7161_v36, 16 }
  0xa2   : > { %v855_v26 = vsel %vm824_vm2, %v850_v31, %v854_v39  ;;  %v861_v5 = vsel %vm824_vm2, %v854_v39, %v860_v45  ;;  %v1725_v31 = vor.u32 %v1724_v3, %v1723_v2  ;;  %v1375_v39 = vshll.u32 %v7161_v36, 16  ;;  %v7187_v2 = vld [vmem:[%s7106_s11 + $0x18] sm:$0xff]  ;;  %v6383_v3 = vld [vmem:[%s8374_s1 + $0x2a0] sm:$0xff] }
  0xa3   : > { %v1727_v13 = vrot.slane %v1379_v24, 1  ;;  %v1373_v45 = vor.u32 %v1371_v56, %v1369_v6  ;;  %v1383_v21 = vshll.u32 %v7187_v2, 16  ;;  %v1387_v58 = vshrl.u32 %v7187_v2, 16  ;;  %2171 = vmatpush.bf16.msrb.mxu2 %v6383_v3 }
  0xa4   : > { %v1726_v10 = vsel %vm824_vm2, %v1722_v29, %v1725_v31  ;;  %v1728_v20 = vrot.slane %v1375_v39, 2  ;;  %v1377_v46 = vrot.slane %v1375_v39, 1 }
  0xa5   : > { %v1385_v38 = vrot.slane %v1383_v21, 1 }
  0xa6   : > { %v1378_v52 = vsel %vm372_vm0, %v1373_v45, %v1377_v46  ;;  %v1381_v37 = vor.u32 %v1379_v24, %v1377_v46  ;;  %v6382_v45 = vld [vmem:[%s8374_s1 + $0x298] sm:$0xff]  ;;  %v1391_v46 = vshll.u32 %v7215_v43, 16 }
  0xa7   : > { %2172 = vmatpush.bf16.msrb.mxu2 %v6382_v45  ;;  %v6397_v45 = vld [vmem:[%s8374_s1 + $0x310] sm:$0xff] }
  0xab   : > { %v7071_v18 = vpop.f32.mrf.mxu1 }
  0xad   : > { %v7074_v61 = vpop.f32.mrf.mxu0 }
  0xae   : > { %640 = vmatmul.bf16.gmra.mxu1 %v6711_v7  ;;  %780 = vmatmul.bf16.gmra.mxu2 %v683_v12 }
  0xb0   : > { %956 = vmatmul.bf16.gmra.mxu3 %v855_v26  ;;  %1112 = vmatmul.bf16.gmra.mxu0 %v1015_v27 }
  0xb1   : > { %v7087_v42 = vpop.f32.mrf.mxu2 }
  0xb3   : > { %v7089_v7 = vpop.f32.mrf.mxu3  ;;  %v7091_v57 = vpop.f32.mrf.mxu1 }
  0xb5   : > { %v7093_v19 = vpop.f32.mrf.mxu0 }
  0xb9   : > { %v7108_v62 = vpop.f32.mrf.mxu2 }
  0xbb   : > { %v7110_v47 = vpop.f32.mrf.mxu3  ;;  %v7112_v48 = vpop.f32.mrf.mxu1 }
  0xbd   : > { %v7118_v49 = vpop.f32.mrf.mxu0 }
  0xbe   : > { %645 = vmatmul.bf16.gmra.mxu1 %v6728_v14  ;;  %785 = vmatmul.bf16.gmra.mxu2 %v685_v17  ;;  %v1729_v17 = vor.u32 %v1728_v20, %v1727_v13 }
  0xc0   : > { %961 = vmatmul.bf16.gmra.mxu3 %v861_v5  ;;  %1117 = vmatmul.bf16.gmra.mxu0 %v1017_v54  ;;  %v1730_v1 = vsel %vm824_vm2, %v1725_v31, %v1729_v17 }
  0xc1   : > { %v7136_v14 = vpop.f32.mrf.mxu2 }
  0xc3   : > { %v7138_v9 = vpop.f32.mrf.mxu3  ;;  %v7140_v59 = vpop.f32.mrf.mxu1 }
  0xc5   : > { %v7142_v63 = vpop.f32.mrf.mxu0 }
  0xc9   : > { %v7152_v32 = vpop.f32.mrf.mxu2 }
  0xcb   : > { %v7154_v33 = vpop.f32.mrf.mxu3  ;;  %v611_v8 = vpop.f32.mrf.mxu1 }
  0xcc   : > { %v612_v15 = vadd.f32 %v611_v8, %v7074_v61 }
  0xcd   : > { %v1083_v34 = vpop.f32.mrf.mxu0 }
  0xce   : > { %1282 = vmatmul.bf16.vlgmr.msra.gmra.mxu1 %v7116_v28  ;;  %1491 = vmatmul.bf16.vlgmr.msra.gmra.mxu2 %v1370_v25  ;;  %v1731_v25 = vrot.slane %v1387_v58, 1 }
  0xd0   : > { %1646 = vmatmul.bf16.vlgmr.msra.gmra.mxu3 %v1567_v35  ;;  %1821 = vmatmul.bf16.vlgmr.msra.gmra.mxu0 %v1726_v10  ;;  %v6399_v35 = vld [vmem:[%s8374_s1 + $0x320] sm:$0xff] }
  0xd1   : > { %v751_v12 = vpop.f32.mrf.mxu2  ;;  %2535 = vmatpush.bf16.msrb.mxu0 %v6399_v35 }
  0xd2   : > { %v791_v61 = vadd.f32 %v751_v12, %v612_v15  ;;  %v1732_v15 = vrot.slane %v1383_v21, 2  ;;  %v1393_v21 = vrot.slane %v1391_v46, 1 }
  0xd3   : > { %v927_v26 = vpop.f32.mrf.mxu3  ;;  %v613_v27 = vpop.f32.mrf.mxu1 }
  0xd4   : > { %v967_v23 = vadd.f32 %v927_v26, %v791_v61  ;;  %v614_v40 = vadd.f32 %v613_v27, %v7093_v19  ;;  %v1568_v19 = vrot.slane %v7161_v36, 1  ;;  %v1733_v39 = vor.u32 %v1732_v15, %v1731_v25 }
  0xd5   : > { %v1085_v41 = vpop.f32.mrf.mxu0 }
  0xd6   : > { %v7179_v44 = vadd.f32 %v1083_v34, %v967_v23  ;;  %v1569_v0 = vsel %vm668_vm1, %v1566_v22, %v1568_v19  ;;  %v6367_v34 = vld [vmem:[%s8374_s1 + $0x260] sm:$0xff]  ;;  %v1386_v23 = vsel %vm372_vm0, %v1381_v37, %v1385_v38  ;;  %v1734_v16 = vsel %vm824_vm2, %v1729_v17, %v1733_v39  ;;  %v7243_v37 = vld [vmem:[%s7106_s11 + $0x28] sm:$0xff] }
  0xd7   : > { %1971 = vmatpush.bf16.msrb.mxu1 %v6367_v34 }
  0xd9   : > { %v753_v5 = vpop.f32.mrf.mxu2 }
  0xda   : > { %v792_v54 = vadd.f32 %v753_v5, %v614_v40 }
  0xdb   : > { %v929_v30 = vpop.f32.mrf.mxu3  ;;  %v616_v51 = vpop.f32.mrf.mxu1 }
  0xdc   : > { %v968_v53 = vadd.f32 %v929_v30, %v792_v54  ;;  %v617_v55 = vadd.f32 %v616_v51, %v7118_v49  ;;  %v6391_v49 = vld [vmem:[%s8374_s1 + $0x2e0] sm:$0xff] }
  0xdd   : > { %v1088_v60 = vpop.f32.mrf.mxu0  ;;  %2380 = vmatpush.bf16.msrb.mxu3 %v6391_v49  ;;  %v1389_v49 = vor.u32 %v1387_v58, %v1385_v38  ;;  %v6381_v38 = vld [vmem:[%s8374_s1 + $0x290] sm:$0xff] }
  0xde   : > { %1287 = vmatmul.bf16.gmra.mxu1 %v7123_v50  ;;  %1496 = vmatmul.bf16.gmra.mxu2 %v1378_v52  ;;  %v7190_v56 = vadd.f32 %v1085_v41, %v968_v53 }
  0xdf   : > { %2173 = vmatpush.bf16.msrb.mxu2 %v6381_v38  ;;  %v6364_v38 = vld [vmem:[%s8374_s1 + $0x248] sm:$0xff] }
  0xe0   : > { %1651 = vmatmul.bf16.gmra.mxu3 %v1569_v0  ;;  %1826 = vmatmul.bf16.gmra.mxu0 %v1730_v1  ;;  %v6366_v0 = vld [vmem:[%s8374_s1 + $0x258] sm:$0xff] }
  0xe1   : > { %v756_v4 = vpop.f32.mrf.mxu2  ;;  %v6398_v1 = vld [vmem:[%s8374_s1 + $0x318] sm:$0xff]  ;;  %1972 = vmatpush.bf16.msrb.mxu1 %v6366_v0 }
  0xe2   : > { %v793_v6 = vadd.f32 %v756_v4, %v617_v55  ;;  %2536 = vmatpush.bf16.msrb.mxu0 %v6398_v1 }
  0xe3   : > { %v932_v11 = vpop.f32.mrf.mxu3  ;;  %v618_v22 = vpop.f32.mrf.mxu1 }
  0xe4   : > { %v969_v29 = vadd.f32 %v932_v11, %v793_v6  ;;  %v619_v31 = vadd.f32 %v618_v22, %v7142_v63  ;;  %v1570_v63 = vrot.slane %v7187_v2, 1 }
  0xe5   : > { %v1090_v8 = vpop.f32.mrf.mxu0 }
  0xe6   : > { %v7207_v10 = vadd.f32 %v1088_v60, %v969_v29  ;;  %v1571_v20 = vsel %vm668_vm1, %v1568_v19, %v1570_v63  ;;  %v1395_v19 = vshrl.u32 %v7215_v43, 16  ;;  %v1736_v60 = vrot.slane %v1391_v46, 2  ;;  %2537 = vmatpush.bf16.msrb.mxu0 %v6397_v45 }
  0xe8   : > { %v1735_v55 = vrot.slane %v1395_v19, 1  ;;  %v1397_v46 = vor.u32 %v1395_v19, %v1393_v21 }
  0xe9   : > { %v758_v12 = vpop.f32.mrf.mxu2 }
  0xea   : > { %v794_v61 = vadd.f32 %v758_v12, %v619_v31  ;;  %v1737_v4 = vor.u32 %v1736_v60, %v1735_v55  ;;  %v1394_v31 = vsel %vm372_vm0, %v1389_v49, %v1393_v21  ;;  %v7270_v49 = vld [vmem:[%s7106_s11 + $0x30] sm:$0xff]  ;;  %v6380_v21 = vld [vmem:[%s8374_s1 + $0x288] sm:$0xff] }
  0xeb   : > { %v934_v26 = vpop.f32.mrf.mxu3  ;;  %v621_v27 = vpop.f32.mrf.mxu1  ;;  %2174 = vmatpush.bf16.msrb.mxu2 %v6380_v21 }
  0xec   : > { %v970_v40 = vadd.f32 %v934_v26, %v794_v61  ;;  %v622_v41 = vadd.f32 %v621_v27, %v7071_v18  ;;  %v6390_v18 = vld [vmem:[%s8374_s1 + $0x2d8] sm:$0xff]  ;;  %v1738_v35 = vsel %vm824_vm2, %v1733_v39, %v1737_v4  ;;  %v1403_v39 = vshrl.u32 %v7243_v37, 16 }
  0xed   : > { %v1093_v13 = vpop.f32.mrf.mxu0  ;;  %2381 = vmatpush.bf16.msrb.mxu3 %v6390_v18 }
  0xee   : > { %1292 = vmatmul.bf16.gmra.mxu1 %v7161_v36  ;;  %1501 = vmatmul.bf16.gmra.mxu2 %v1386_v23  ;;  %v7218_v24 = vadd.f32 %v1090_v8, %v970_v40 }
  0xf0   : > { %1656 = vmatmul.bf16.gmra.mxu3 %v1571_v20  ;;  %1831 = vmatmul.bf16.gmra.mxu0 %v1734_v16  ;;  %v6365_v16 = vld [vmem:[%s8374_s1 + $0x250] sm:$0xff] }
  0xf1   : > { %v761_v17 = vpop.f32.mrf.mxu2  ;;  %1973 = vmatpush.bf16.msrb.mxu1 %v6365_v16 }
  0xf2   : > { %v795_v5 = vadd.f32 %v761_v17, %v622_v41 }
  0xf3   : > { %v937_v54 = vpop.f32.mrf.mxu3  ;;  %v623_v30 = vpop.f32.mrf.mxu1 }
  0xf4   : > { %v971_v51 = vadd.f32 %v937_v54, %v795_v5  ;;  %v624_v52 = vadd.f32 %v623_v30, %v7091_v57  ;;  %v1572_v57 = vrot.slane %v7215_v43, 1 }
  0xf5   : > { %v1095_v53 = vpop.f32.mrf.mxu0  ;;  %1974 = vmatpush.bf16.msrb.mxu1 %v6364_v38 }
  0xf6   : > { %v7235_v3 = vadd.f32 %v1093_v13, %v971_v51  ;;  %v1573_v34 = vsel %vm668_vm1, %v1570_v63, %v1572_v57  ;;  %v1399_v63 = vshll.u32 %v7243_v37, 16  ;;  %v1739_v13 = vrot.slane %v1403_v39, 1 }
  0xf8   : > { %v1740_v20 = vrot.slane %v1399_v63, 2  ;;  %v1401_v17 = vrot.slane %v1399_v63, 1 }
  0xf9   : > { %v763_v6 = vpop.f32.mrf.mxu2 }
  0xfa   : > { %v796_v11 = vadd.f32 %v763_v6, %v624_v52  ;;  %v1741_v5 = vor.u32 %v1740_v20, %v1739_v13  ;;  %v6388_v6 = vld [vmem:[%s8374_s1 + $0x2c8] sm:$0xff]  ;;  %v1405_v63 = vor.u32 %v1403_v39, %v1401_v17  ;;  %v6379_v39 = vld [vmem:[%s8374_s1 + $0x280] sm:$0xff] }
  0xfb   : > { %v939_v22 = vpop.f32.mrf.mxu3  ;;  %v626_v29 = vpop.f32.mrf.mxu1  ;;  %2175 = vmatpush.bf16.msrb.mxu2 %v6379_v39 }
  0xfc   : > { %v972_v8 = vadd.f32 %v939_v22, %v796_v11  ;;  %v627_v25 = vadd.f32 %v626_v29, %v7112_v48  ;;  %v6389_v48 = vld [vmem:[%s8374_s1 + $0x2d0] sm:$0xff]  ;;  %v1742_v1 = vsel %vm824_vm2, %v1737_v4, %v1741_v5  ;;  %v1407_v4 = vshll.u32 %v7270_v49, 16 }
  0xfd   : > { %v1098_v15 = vpop.f32.mrf.mxu0  ;;  %2382 = vmatpush.bf16.msrb.mxu3 %v6389_v48  ;;  %v1411_v11 = vshrl.u32 %v7270_v49, 16 }
  0xfe   : > { %1297 = vmatmul.bf16.gmra.mxu1 %v7187_v2  ;;  %1506 = vmatmul.bf16.gmra.mxu2 %v1394_v31  ;;  %v7246_v58 = vadd.f32 %v1095_v53, %v972_v8  ;;  %v1402_v53 = vsel %vm372_vm0, %v1397_v46, %v1401_v17  ;;  %v6387_v17 = vld [vmem:[%s8374_s1 + $0x2c0] sm:$0xff] }
 0x100   : > { %1661 = vmatmul.bf16.gmra.mxu3 %v1573_v34  ;;  %1836 = vmatmul.bf16.gmra.mxu0 %v1738_v35  ;;  %v1743_v34 = vrot.slane %v1411_v11, 1  ;;  %v1744_v35 = vrot.slane %v1407_v4, 2 }
 0x101   : > { %v766_v12 = vpop.f32.mrf.mxu2  ;;  %2383 = vmatpush.bf16.msrb.mxu3 %v6388_v6 }
 0x102   : > { %v797_v61 = vadd.f32 %v766_v12, %v627_v25  ;;  %v1409_v12 = vrot.slane %v1407_v4, 1  ;;  %v1160_v4 = vld [vmem:[%s7106_s11 + $0x40] sm:$0xf] }
 0x103   : > { %v942_v26 = vpop.f32.mrf.mxu3  ;;  %v628_v27 = vpop.f32.mrf.mxu1 }
 0x104   : > { %v973_v23 = vadd.f32 %v942_v26, %v797_v61  ;;  %v629_v40 = vadd.f32 %v628_v27, %v7140_v59  ;;  %v1574_v59 = vrot.slane %v7243_v37, 1  ;;  %v1576_v26 = vrot.slane %v7270_v49, 1 }
 0x105   : > { %v1100_v41 = vpop.f32.mrf.mxu0  ;;  %v1745_v27 = vor.u32 %v1744_v35, %v1743_v34  ;;  %v1410_v20 = vsel %vm372_vm0, %v1405_v63, %v1409_v12  ;;  %2384 = vmatpush.bf16.msrb.mxu3 %v6387_v17  ;;  %v1357_v34 = vunpack.c.l.b16 %v1160_v4 }
 0x106   : > { %v7263_v18 = vadd.f32 %v1098_v15, %v973_v23  ;;  %v1575_v0 = vsel %vm668_vm1, %v1572_v57, %v1574_v59  ;;  %v1577_v46 = vsel %vm668_vm1, %v1574_v59, %v1576_v26 }
 0x109   : > { %v768_v54 = vpop.f32.mrf.mxu2 }
 0x10a   : > { %v798_v30 = vadd.f32 %v768_v54, %v629_v40  ;;  %v1746_v54 = vsel %vm824_vm2, %v1741_v5, %v1745_v27 }
 0x10b   : > { %v944_v51 = vpop.f32.mrf.mxu3  ;;  %v631_v52 = vpop.f32.mrf.mxu1 }
 0x10c   : > { %v974_v55 = vadd.f32 %v944_v51, %v798_v30  ;;  %v632_v57 = vadd.f32 %v631_v52, %v7087_v42  ;;  %v6396_v42 = vld [vmem:[%s8374_s1 + $0x308] sm:$0xff]  ;;  %v7298_v30 = vld [vmem:[%s7106_s11 + $0x38] sm:$0xff]  ;;  %s2033_s11 = sadd.s32 48, %s6678_s21 }
 0x10d   : > { %v1103_v60 = vpop.f32.mrf.mxu0  ;;  %2538 = vmatpush.bf16.msrb.mxu0 %v6396_v42  ;;  %v1415_v5 = vshll.u32 %v7298_v30, 16  ;;  %v1419_v51 = vshrl.u32 %v7298_v30, 16  ;;  %s2034_s29 = sshra.s32 %s2033_s11, 3 }
 0x10e   : > { %1302 = vmatmul.bf16.gmra.mxu1 %v7215_v43  ;;  %1511 = vmatmul.bf16.gmra.mxu2 %v1402_v53  ;;  %v7273_v19 = vadd.f32 %v1100_v41, %v974_v55  ;;  %s5454_s8 = sshll.u32 %s2034_s29, 2 }
 0x10f   : > { %v1747_v21 = vrot.slane %v1419_v51, 1  ;;  %v1748_v6 = vrot.slane %v1415_v5, 2  ;;  %s7352_s9 = scalar_lea.vmem %s6693_s30, %s5454_s8  ;;  %s3822_s8 = sshra.s32 %s3821_s28, 3 }
 0x110   : > { %1666 = vmatmul.bf16.gmra.mxu3 %v1575_v0  ;;  %1841 = vmatmul.bf16.gmra.mxu0 %v1742_v1  ;;  %s6000_s22 = sshll.u32 %s3822_s8, 2 }
 0x111   : > { %v771_v22 = vpop.f32.mrf.mxu2 }
 0x112   : > { %v799_v29 = vadd.f32 %v771_v22, %v632_v57  ;;  %v6363_v57 = vld [vmem:[%s8374_s1 + $0x240] sm:$0xff] }
 0x113   : > { %v947_v31 = vpop.f32.mrf.mxu3  ;;  %v633_v8 = vpop.f32.mrf.mxu1  ;;  %1975 = vmatpush.bf16.msrb.mxu1 %v6363_v57 }
 0x114   : > { %v975_v25 = vadd.f32 %v947_v31, %v799_v29  ;;  %v634_v61 = vadd.f32 %v633_v8, %v7108_v62  ;;  %v1413_v29 = vor.u32 %v1411_v11, %v1409_v12  ;;  %v1417_v31 = vrot.slane %v1415_v5, 1 }
 0x115   : > { %v1105_v15 = vpop.f32.mrf.mxu0  ;;  %v7326_v12 = vpack.c.b16 %v1357_v34, %v1357_v34  ;;  %v7356_v34 = vld [vmem:[%s7352_s9] sm:$0xff] }
 0x116   : > { %v7290_v48 = vadd.f32 %v1103_v60, %v975_v25  ;;  %v1578_v25 = vrot.slane %v7298_v30, 1 }
 0x119   : > { %v773_v23 = vpop.f32.mrf.mxu2 }
 0x11a   : > { %v800_v40 = vadd.f32 %v773_v23, %v634_v61  ;;  %v1418_v61 = vsel %vm372_vm0, %v1413_v29, %v1417_v31 }
 0x11b   : > { %v949_v41 = vpop.f32.mrf.mxu3  ;;  %v636_v13 = vpop.f32.mrf.mxu1 }
 0x11c   : > { %v976_v16 = vadd.f32 %v949_v41, %v800_v40  ;;  %v637_v59 = vadd.f32 %v636_v13, %v7136_v14  ;;  %v6395_v14 = vld [vmem:[%s8374_s1 + $0x300] sm:$0xff]  ;;  %v1579_v41 = vsel %vm668_vm1, %v1576_v26, %v1578_v25  ;;  %v6418_v13 = vld [vmem:[%s8374_s1 + $0x3b8] sm:$0xff] }
 0x11d   : > { %v1108_v45 = vpop.f32.mrf.mxu0  ;;  %2539 = vmatpush.bf16.msrb.mxu0 %v6395_v14  ;;  %v6434_v26 = vld [vmem:[%s8374_s1 + $0x3f8] sm:$0xff]  ;;  %2862 = vmatpush.bf16.msra.mxu2 %v6418_v13  ;;  %v2254_v13 = vshrl.u32 %v7356_v34, 16 }
 0x11e   : > { %1307 = vmatmul.bf16.gmra.mxu1 %v7243_v37  ;;  %1516 = vmatmul.bf16.gmra.mxu2 %v1410_v20  ;;  %v7301_v62 = vadd.f32 %v1105_v15, %v976_v16  ;;  %v1749_v15 = vor.u32 %v1748_v6, %v1747_v21  ;;  %v1423_v20 = vshll.u32 %v7326_v12, 16  ;;  %v1751_v16 = vshrl.u32 %v7326_v12, 16 }
 0x11f   : > { %3062 = vmatpush.bf16.msra.mxu3 %v6434_v26  ;;  %v1580_v21 = vrot.slane %v7326_v12, 1 }
 0x120   : > { %1671 = vmatmul.bf16.gmra.mxu3 %v1577_v46  ;;  %1846 = vmatmul.bf16.gmra.mxu0 %v1746_v54  ;;  %v1750_v11 = vsel %vm824_vm2, %v1745_v27, %v1749_v15  ;;  %v1753_v5 = vrot.slane %v1751_v16, 1 }
 0x121   : > { %v776_v52 = vpop.f32.mrf.mxu2 }
 0x122   : > { %v801_v53 = vadd.f32 %v776_v52, %v637_v59  ;;  %v1754_v52 = vrot.slane %v1423_v20, 2 }
 0x123   : > { %v952_v55 = vpop.f32.mrf.mxu3  ;;  %v638_v60 = vpop.f32.mrf.mxu1 }
 0x124   : > { %v977_v0 = vadd.f32 %v952_v55, %v801_v53  ;;  %v639_v8 = vadd.f32 %v638_v60, %v7152_v32  ;;  %v6442_v53 = vld [vmem:[%s8374_s1 + $0x438] sm:$0xff]  ;;  %v1421_v60 = vor.u32 %v1419_v51, %v1417_v31  ;;  %v1755_v6 = vor.u32 %v1754_v52, %v1753_v5 }
 0x125   : > { %v1110_v1 = vpop.f32.mrf.mxu0  ;;  %3271 = vmatpush.bf16.msra.mxu0 %v6442_v53  ;;  %v1581_v31 = vsel %vm668_vm1, %v1578_v25, %v1580_v21  ;;  %v2459_v52 = vrot.slane %v7356_v34, 1 }
 0x126   : > { %v7319_v22 = vadd.f32 %v1108_v45, %v977_v0  ;;  %v1425_v0 = vrot.slane %v1423_v20, 1 }
 0x129   : > { %v778_v35 = vpop.f32.mrf.mxu2 }
 0x12a   : > { %v802_v38 = vadd.f32 %v778_v35, %v639_v8  ;;  %v1426_v8 = vsel %vm372_vm0, %v1421_v60, %v1425_v0 }
 0x12b   : > { %v954_v42 = vpop.f32.mrf.mxu3  ;;  %v641_v63 = vpop.f32.mrf.mxu1 }
 0x12c   : > { %v978_v23 = vadd.f32 %v954_v42, %v802_v38  ;;  %v642_v27 = vadd.f32 %v641_v63, %v7089_v7  ;;  %v6410_v7 = vld [vmem:[%s8374_s1 + $0x378] sm:$0xff]  ;;  %v2256_v42 = vshll.u32 %v7356_v34, 16  ;;  %v6417_v63 = vld [vmem:[%s8374_s1 + $0x3b0] sm:$0xff] }
 0x12d   : > { %v1113_v40 = vpop.f32.mrf.mxu0  ;;  %2707 = vmatpush.bf16.msra.mxu1 %v6410_v7  ;;  %2863 = vmatpush.bf16.msra.mxu2 %v6417_v63 }
 0x12e   : > { %1312 = vmatmul.bf16.gmra.mxu1 %v7270_v49  ;;  %1521 = vmatmul.bf16.gmra.mxu2 %v1418_v61  ;;  %v7329_v32 = vadd.f32 %v1110_v1, %v978_v23  ;;  %v6433_v61 = vld [vmem:[%s8374_s1 + $0x3f0] sm:$0xff]  ;;  %v2258_v26 = vrot.slane %v2256_v42, 1 }
 0x12f   : > { %3063 = vmatpush.bf16.msra.mxu3 %v6433_v61 }
 0x130   : > { %1676 = vmatmul.bf16.gmra.mxu3 %v1579_v41  ;;  %1851 = vmatmul.bf16.gmra.mxu0 %v1750_v11 }
 0x131   : > { %v781_v45 = vpop.f32.mrf.mxu2 }
 0x132   : > { %v803_v46 = vadd.f32 %v781_v45, %v642_v27  ;;  %v6441_v45 = vld [vmem:[%s8374_s1 + $0x430] sm:$0xff] }
 0x133   : > { %v957_v54 = vpop.f32.mrf.mxu3  ;;  %v643_v39 = vpop.f32.mrf.mxu1  ;;  %3272 = vmatpush.bf16.msra.mxu0 %v6441_v45 }
 0x134   : > { %v979_v17 = vadd.f32 %v957_v54, %v803_v46  ;;  %v644_v1 = vadd.f32 %v643_v39, %v7110_v47  ;;  %v1756_v47 = vsel %vm824_vm2, %v1749_v15, %v1755_v6  ;;  %v7372_v15 = vld [vmem:[%s7352_s9 + $0x8] sm:$0xff]  ;;  %v1895_v54 = vrot.slane %v7116_v28, 2 }
 0x135   : > { %v1115_v59 = vpop.f32.mrf.mxu0  ;;  %v2261_v16 = vshll.u32 %v7372_v15, 16  ;;  %v1896_v39 = vrot.slane %v7123_v50, 2  ;;  %v2460_v7 = vrot.slane %v7372_v15, 1 }
 0x136   : > { %v7347_v55 = vadd.f32 %v1113_v40, %v979_v17  ;;  %v2259_v17 = vor.u32 %v2258_v26, %v2254_v13  ;;  %v1898_v26 = vrot.slane %v7161_v36, 2 }
 0x137   : > { %v2263_v5 = vrot.slane %v2261_v16, 1  ;;  %v1897_v28 = vsel %vm1000_vm3, %v1895_v54, %v1896_v39 }
 0x139   : > { %v783_v57 = vpop.f32.mrf.mxu2 }
 0x13a   : > { %v804_v14 = vadd.f32 %v783_v57, %v644_v1  ;;  %v2461_v57 = vsel %vm668_vm1, %v2459_v52, %v2460_v7 }
 0x13b   : > { %v959_v4 = vpop.f32.mrf.mxu3  ;;  %v646_v29 = vpop.f32.mrf.mxu1 }
 0x13c   : > { %v980_v35 = vadd.f32 %v959_v4, %v804_v14  ;;  %v647_v25 = vadd.f32 %v646_v29, %v7138_v9  ;;  %v6409_v9 = vld [vmem:[%s8374_s1 + $0x370] sm:$0xff]  ;;  %v6416_v4 = vld [vmem:[%s8374_s1 + $0x3a8] sm:$0xff] }
 0x13d   : > { %v1118_v51 = vpop.f32.mrf.mxu0  ;;  %2708 = vmatpush.bf16.msra.mxu1 %v6409_v9  ;;  %v7409_v29 = vld [vmem:[%s7352_s9 + $0x10] sm:$0xff]  ;;  %2864 = vmatpush.bf16.msra.mxu2 %v6416_v4 }
 0x13e   : > { %1317 = vmatmul.bf16.gmra.mxu1 %v7298_v30  ;;  %1526 = vmatmul.bf16.gmra.mxu2 %v1426_v8  ;;  %v7361_v38 = vadd.f32 %v1115_v59, %v980_v35  ;;  %v2273_v4 = vshrl.u32 %v7409_v29, 16 }
 0x140   : > { %1681 = vmatmul.bf16.gmra.mxu3 %v1581_v31  ;;  %1856 = vmatmul.bf16.gmra.mxu0 %v1756_v47 }
 0x141   : > { %v786_v23 = vpop.f32.mrf.mxu2 }
 0x142   : > { %v805_v40 = vadd.f32 %v786_v23, %v647_v25  ;;  %v2265_v25 = vshrl.u32 %v7372_v15, 16  ;;  %v2269_v23 = vshll.u32 %v7409_v29, 16 }
 0x143   : > { %v962_v41 = vpop.f32.mrf.mxu3  ;;  %v648_v11 = vpop.f32.mrf.mxu1 }
 0x144   : > { %v981_v27 = vadd.f32 %v962_v41, %v805_v40  ;;  %v649_v59 = vadd.f32 %v648_v11, %v7154_v33  ;;  %v2264_v33 = vsel %vm372_vm0, %v2259_v17, %v2263_v5  ;;  %v6408_v40 = vld [vmem:[%s8374_s1 + $0x368] sm:$0xff] }
 0x145   : > { %v1120_v20 = vpop.f32.mrf.mxu0  ;;  %v6440_v41 = vld [vmem:[%s8374_s1 + $0x428] sm:$0xff]  ;;  %2709 = vmatpush.bf16.msra.mxu1 %v6408_v40 }
 0x146   : > { %v7384_v46 = vadd.f32 %v1118_v51, %v981_v27  ;;  %3273 = vmatpush.bf16.msra.mxu0 %v6440_v41  ;;  %v2271_v27 = vrot.slane %v2269_v23, 1 }
 0x149   : > { %v788_v53 = vpop.f32.mrf.mxu2 }
 0x14a   : > { %v806_v60 = vadd.f32 %v788_v53, %v649_v59  ;;  %v1899_v59 = vsel %vm1000_vm3, %v1896_v39, %v1898_v26  ;;  %v7442_v39 = vld [vmem:[%s7352_s9 + $0x18] sm:$0xff] }
 0x14b   : > { %v964_v0 = vpop.f32.mrf.mxu3  ;;  %v1283_v1 = vpop.f32.mrf.mxu1 }
 0x14c   : > { %v982_v50 = vadd.f32 %v964_v0, %v806_v60  ;;  %v1323_v21 = vadd.f32 %v1283_v1, %v7179_v44  ;;  %v6432_v44 = vld [vmem:[%s8374_s1 + $0x3e8] sm:$0xff]  ;;  %v6415_v1 = vld [vmem:[%s8374_s1 + $0x3a0] sm:$0xff] }
 0x14d   : > { %v1822_v6 = vpop.f32.mrf.mxu0  ;;  %3064 = vmatpush.bf16.msra.mxu3 %v6432_v44  ;;  %2865 = vmatpush.bf16.msra.mxu2 %v6415_v1  ;;  %v2277_v44 = vshll.u32 %v7442_v39, 16 }
 0x14e   : > { %1976 = vmatmul.bf16.vlgmr.msrb.gmra.mxu1 %v1897_v28  ;;  %2176 = vmatmul.bf16.vlgmr.msrb.gmra.mxu2 %v7356_v34  ;;  %v7400_v14 = vadd.f32 %v1120_v20, %v982_v50  ;;  %v2462_v20 = vrot.slane %v7409_v29, 1 }
 0x150   : > { %2385 = vmatmul.bf16.vlgmr.msrb.gmra.mxu3 %v2264_v33  ;;  %2540 = vmatmul.bf16.vlgmr.msrb.gmra.mxu0 %v2461_v57 }
 0x151   : > { %v1492_v8 = vpop.f32.mrf.mxu2 }
 0x152   : > { %v1532_v35 = vadd.f32 %v1492_v8, %v1323_v21  ;;  %v6407_v8 = vld [vmem:[%s8374_s1 + $0x360] sm:$0xff] }
 0x153   : > { %v1647_v51 = vpop.f32.mrf.mxu3  ;;  %v1285_v31 = vpop.f32.mrf.mxu1  ;;  %2710 = vmatpush.bf16.msra.mxu1 %v6407_v8 }
 0x154   : > { %v1687_v47 = vadd.f32 %v1647_v51, %v1532_v35  ;;  %v1324_v63 = vadd.f32 %v1285_v31, %v7190_v56  ;;  %v2267_v56 = vor.u32 %v2265_v25, %v2263_v5  ;;  %v2463_v5 = vsel %vm668_vm1, %v2460_v7, %v2462_v20  ;;  %v6439_v35 = vld [vmem:[%s8374_s1 + $0x420] sm:$0xff] }
 0x155   : > { %v1824_v61 = vpop.f32.mrf.mxu0  ;;  %3274 = vmatpush.bf16.msra.mxu0 %v6439_v35  ;;  %v1900_v31 = vrot.slane %v7187_v2, 2 }
 0x156   : > { %v7420_v11 = vadd.f32 %v1822_v6, %v1687_v47  ;;  %v2272_v36 = vsel %vm372_vm0, %v2267_v56, %v2271_v27  ;;  %v2279_v47 = vrot.slane %v2277_v44, 1 }
 0x159   : > { %v1494_v9 = vpop.f32.mrf.mxu2 }
 0x15a   : > { %v1533_v45 = vadd.f32 %v1494_v9, %v1324_v63  ;;  %v2464_v63 = vrot.slane %v7442_v39, 1  ;;  %v1901_v9 = vsel %vm1000_vm3, %v1898_v26, %v1900_v31  ;;  %v7475_v26 = vld [vmem:[%s7352_s9 + $0x20] sm:$0xff] }
 0x15b   : > { %v1649_v54 = vpop.f32.mrf.mxu3  ;;  %v1288_v17 = vpop.f32.mrf.mxu1  ;;  %v2466_v8 = vrot.slane %v7475_v26, 1 }
 0x15c   : > { %v1688_v52 = vadd.f32 %v1649_v54, %v1533_v45  ;;  %v1325_v53 = vadd.f32 %v1288_v17, %v7207_v10  ;;  %v6431_v10 = vld [vmem:[%s8374_s1 + $0x3e0] sm:$0xff] }
 0x15d   : > { %v1827_v60 = vpop.f32.mrf.mxu0  ;;  %3065 = vmatpush.bf16.msra.mxu3 %v6431_v10 }
 0x15e   : > { %1981 = vmatmul.bf16.gmra.mxu1 %v1899_v59  ;;  %2181 = vmatmul.bf16.gmra.mxu2 %v7372_v15  ;;  %v7433_v0 = vadd.f32 %v1824_v61, %v1688_v52  ;;  %v6414_v52 = vld [vmem:[%s8374_s1 + $0x398] sm:$0xff] }
 0x15f   : > { %2866 = vmatpush.bf16.msra.mxu2 %v6414_v52 }
 0x160   : > { %2390 = vmatmul.bf16.gmra.mxu3 %v2272_v36  ;;  %2545 = vmatmul.bf16.gmra.mxu0 %v2463_v5 }
 0x161   : > { %v1497_v28 = vpop.f32.mrf.mxu2 }
 0x162   : > { %v1534_v7 = vadd.f32 %v1497_v28, %v1325_v53  ;;  %v2281_v28 = vshrl.u32 %v7442_v39, 16 }
 0x163   : > { %v1652_v50 = vpop.f32.mrf.mxu3  ;;  %v1290_v21 = vpop.f32.mrf.mxu1 }
 0x164   : > { %v1689_v6 = vadd.f32 %v1652_v50, %v1534_v7  ;;  %v1326_v33 = vadd.f32 %v1290_v21, %v7218_v24  ;;  %v2275_v24 = vor.u32 %v2273_v4, %v2271_v27  ;;  %v2465_v27 = vsel %vm668_vm1, %v2462_v20, %v2464_v63  ;;  %v6406_v50 = vld [vmem:[%s8374_s1 + $0x358] sm:$0xff] }
 0x165   : > { %v1829_v57 = vpop.f32.mrf.mxu0  ;;  %v2285_v7 = vshll.u32 %v7475_v26, 16  ;;  %v6438_v21 = vld [vmem:[%s8374_s1 + $0x418] sm:$0xff]  ;;  %2711 = vmatpush.bf16.msra.mxu1 %v6406_v50  ;;  %v1904_v50 = vrot.slane %v7243_v37, 2 }
 0x166   : > { %v7453_v51 = vadd.f32 %v1827_v60, %v1689_v6  ;;  %v2280_v2 = vsel %vm372_vm0, %v2275_v24, %v2279_v47  ;;  %3275 = vmatpush.bf16.msra.mxu0 %v6438_v21 }
 0x169   : > { %v1499_v61 = vpop.f32.mrf.mxu2 }
 0x16a   : > { %v1535_v40 = vadd.f32 %v1499_v61, %v1326_v33  ;;  %v1902_v33 = vrot.slane %v7215_v43, 2 }
 0x16b   : > { %v1654_v41 = vpop.f32.mrf.mxu3  ;;  %v1293_v56 = vpop.f32.mrf.mxu1 }
 0x16c   : > { %v1690_v45 = vadd.f32 %v1654_v41, %v1535_v40  ;;  %v1327_v54 = vadd.f32 %v1293_v56, %v7235_v3  ;;  %v6430_v3 = vld [vmem:[%s8374_s1 + $0x3d8] sm:$0xff]  ;;  %v1903_v41 = vsel %vm1000_vm3, %v1900_v31, %v1902_v33  ;;  %v7508_v31 = vld [vmem:[%s7352_s9 + $0x28] sm:$0xff] }
 0x16d   : > { %v1832_v17 = vpop.f32.mrf.mxu0  ;;  %3066 = vmatpush.bf16.msra.mxu3 %v6430_v3 }
 0x16e   : > { %1986 = vmatmul.bf16.gmra.mxu1 %v1901_v9  ;;  %2186 = vmatmul.bf16.gmra.mxu2 %v7409_v29  ;;  %v7466_v59 = vadd.f32 %v1829_v57, %v1690_v45  ;;  %v2287_v57 = vrot.slane %v2285_v7, 1 }
 0x170   : > { %2395 = vmatmul.bf16.gmra.mxu3 %v2280_v2  ;;  %2550 = vmatmul.bf16.gmra.mxu0 %v2465_v27 }
 0x171   : > { %v1502_v53 = vpop.f32.mrf.mxu2 }
 0x172   : > { %v1536_v20 = vadd.f32 %v1502_v53, %v1327_v54 }
 0x173   : > { %v1657_v60 = vpop.f32.mrf.mxu3  ;;  %v1295_v36 = vpop.f32.mrf.mxu1 }
 0x174   : > { %v1691_v5 = vadd.f32 %v1657_v60, %v1536_v20  ;;  %v1328_v1 = vadd.f32 %v1295_v36, %v7246_v58  ;;  %v2283_v58 = vor.u32 %v2281_v28, %v2279_v47  ;;  %v2467_v47 = vsel %vm668_vm1, %v2464_v63, %v2466_v8 }
 0x175   : > { %v1834_v10 = vpop.f32.mrf.mxu0  ;;  %v2289_v60 = vshrl.u32 %v7475_v26, 16  ;;  %v2293_v36 = vshll.u32 %v7508_v31, 16 }
 0x176   : > { %v7486_v6 = vadd.f32 %v1832_v17, %v1691_v5  ;;  %v2288_v43 = vsel %vm372_vm0, %v2283_v58, %v2287_v57  ;;  %v6413_v17 = vld [vmem:[%s8374_s1 + $0x390] sm:$0xff]  ;;  %v2468_v58 = vrot.slane %v7508_v31, 1 }
 0x177   : > { %2867 = vmatpush.bf16.msra.mxu2 %v6413_v17  ;;  %v6405_v5 = vld [vmem:[%s8374_s1 + $0x350] sm:$0xff]  ;;  %v2295_v21 = vrot.slane %v2293_v36, 1 }
 0x178   : > { %2712 = vmatpush.bf16.msra.mxu1 %v6405_v5  ;;  %v6436_v5 = vld [vmem:[%s8374_s1 + $0x408] sm:$0xff] }
 0x179   : > { %v1504_v35 = vpop.f32.mrf.mxu2 }
 0x17a   : > { %v1537_v24 = vadd.f32 %v1504_v35, %v1328_v1  ;;  %v6437_v1 = vld [vmem:[%s8374_s1 + $0x410] sm:$0xff] }
 0x17b   : > { %v1659_v61 = vpop.f32.mrf.mxu3  ;;  %v1298_v40 = vpop.f32.mrf.mxu1  ;;  %3276 = vmatpush.bf16.msra.mxu0 %v6437_v1 }
 0x17c   : > { %v1692_v56 = vadd.f32 %v1659_v61, %v1537_v24  ;;  %v1329_v9 = vadd.f32 %v1298_v40, %v7263_v18  ;;  %v6429_v18 = vld [vmem:[%s8374_s1 + $0x3d0] sm:$0xff] }
 0x17d   : > { %v1837_v45 = vpop.f32.mrf.mxu0  ;;  %3067 = vmatpush.bf16.msra.mxu3 %v6429_v18 }
 0x17e   : > { %1991 = vmatmul.bf16.gmra.mxu1 %v1903_v41  ;;  %2191 = vmatmul.bf16.gmra.mxu2 %v7442_v39  ;;  %v7499_v54 = vadd.f32 %v1834_v10, %v1692_v56  ;;  %v1905_v41 = vsel %vm1000_vm3, %v1902_v33, %v1904_v50  ;;  %v7541_v33 = vld [vmem:[%s7352_s9 + $0x30] sm:$0xff] }
 0x17f   : > { %3277 = vmatpush.bf16.msra.mxu0 %v6436_v5  ;;  %v6403_v5 = vld [vmem:[%s8374_s1 + $0x340] sm:$0xff] }
 0x180   : > { %2400 = vmatmul.bf16.gmra.mxu3 %v2288_v43  ;;  %2555 = vmatmul.bf16.gmra.mxu0 %v2467_v47  ;;  %v6412_v47 = vld [vmem:[%s8374_s1 + $0x388] sm:$0xff] }
 0x181   : > { %v1507_v2 = vpop.f32.mrf.mxu2  ;;  %2868 = vmatpush.bf16.msra.mxu2 %v6412_v47 }
 0x182   : > { %v1538_v63 = vadd.f32 %v1507_v2, %v1329_v9 }
 0x183   : > { %v1662_v27 = vpop.f32.mrf.mxu3  ;;  %v1300_v52 = vpop.f32.mrf.mxu1 }
 0x184   : > { %v1693_v3 = vadd.f32 %v1662_v27, %v1538_v63  ;;  %v1330_v53 = vadd.f32 %v1300_v52, %v7273_v19  ;;  %v2291_v19 = vor.u32 %v2289_v60, %v2287_v57  ;;  %v2469_v57 = vsel %vm668_vm1, %v2466_v8, %v2468_v58 }
 0x185   : > { %v1839_v20 = vpop.f32.mrf.mxu0 }
 0x186   : > { %v7519_v10 = vadd.f32 %v1837_v45, %v1693_v3  ;;  %v2296_v37 = vsel %vm372_vm0, %v2291_v19, %v2295_v21  ;;  %v2297_v3 = vshrl.u32 %v7508_v31, 16  ;;  %v1906_v19 = vrot.slane %v7270_v49, 2 }
 0x189   : > { %v1509_v35 = vpop.f32.mrf.mxu2 }
 0x18a   : > { %v1539_v24 = vadd.f32 %v1509_v35, %v1330_v53  ;;  %v2301_v53 = vshll.u32 %v7541_v33, 16 }
 0x18b   : > { %v1664_v61 = vpop.f32.mrf.mxu3  ;;  %v1303_v40 = vpop.f32.mrf.mxu1 }
 0x18c   : > { %v1694_v56 = vadd.f32 %v1664_v61, %v1539_v24  ;;  %v1331_v9 = vadd.f32 %v1303_v40, %v7290_v48  ;;  %v6428_v48 = vld [vmem:[%s8374_s1 + $0x3c8] sm:$0xff]  ;;  %v2303_v35 = vrot.slane %v2301_v53, 1  ;;  %v2470_v24 = vrot.slane %v7541_v33, 1 }
 0x18d   : > { %v1842_v45 = vpop.f32.mrf.mxu0  ;;  %3068 = vmatpush.bf16.msra.mxu3 %v6428_v48  ;;  %v7568_v48 = vld [vmem:[%s7352_s9 + $0x38] sm:$0xff] }
 0x18e   : > { %1996 = vmatmul.bf16.gmra.mxu1 %v1905_v41  ;;  %2196 = vmatmul.bf16.gmra.mxu2 %v7475_v26  ;;  %v7532_v43 = vadd.f32 %v1839_v20, %v1694_v56  ;;  %v6404_v20 = vld [vmem:[%s8374_s1 + $0x348] sm:$0xff] }
 0x18f   : > { %2713 = vmatpush.bf16.msra.mxu1 %v6404_v20 }
 0x190   : > { %2405 = vmatmul.bf16.gmra.mxu3 %v2296_v37  ;;  %2560 = vmatmul.bf16.gmra.mxu0 %v2469_v57 }
 0x191   : > { %v1512_v17 = vpop.f32.mrf.mxu2 }
 0x192   : > { %v1540_v8 = vadd.f32 %v1512_v17, %v1331_v9  ;;  %v1907_v9 = vsel %vm1000_vm3, %v1904_v50, %v1906_v19  ;;  %v6411_v50 = vld [vmem:[%s8374_s1 + $0x380] sm:$0xff] }
 0x193   : > { %v1667_v18 = vpop.f32.mrf.mxu3  ;;  %v1305_v2 = vpop.f32.mrf.mxu1  ;;  %2869 = vmatpush.bf16.msra.mxu2 %v6411_v50  ;;  %2714 = vmatpush.bf16.msra.mxu1 %v6403_v5 }
 0x194   : > { %v1695_v63 = vadd.f32 %v1667_v18, %v1540_v8  ;;  %v1332_v27 = vadd.f32 %v1305_v2, %v7301_v62  ;;  %v2299_v62 = vor.u32 %v2297_v3, %v2295_v21  ;;  %v2471_v21 = vsel %vm668_vm1, %v2468_v58, %v2470_v24 }
 0x195   : > { %v1844_v52 = vpop.f32.mrf.mxu0  ;;  %v2305_v2 = vshrl.u32 %v7541_v33, 16 }
 0x196   : > { %v7552_v1 = vadd.f32 %v1842_v45, %v1695_v63  ;;  %v2304_v49 = vsel %vm372_vm0, %v2299_v62, %v2303_v35  ;;  %v2309_v63 = vshll.u32 %v7568_v48, 16  ;;  %v6435_v62 = vld [vmem:[%s8374_s1 + $0x400] sm:$0xff] }
 0x197   : > { %3278 = vmatpush.bf16.msra.mxu0 %v6435_v62 }
 0x199   : > { %v1514_v61 = vpop.f32.mrf.mxu2 }
 0x19a   : > { %v1541_v40 = vadd.f32 %v1514_v61, %v1332_v27 }
 0x19b   : > { %v1669_v41 = vpop.f32.mrf.mxu3  ;;  %v1308_v56 = vpop.f32.mrf.mxu1 }
 0x19c   : > { %v1696_v37 = vadd.f32 %v1669_v41, %v1541_v40  ;;  %v1333_v45 = vadd.f32 %v1308_v56, %v7319_v22  ;;  %v6427_v22 = vld [vmem:[%s8374_s1 + $0x3c0] sm:$0xff]  ;;  %v1908_v40 = vrot.slane %v7298_v30, 2  ;;  %v2307_v41 = vor.u32 %v2305_v2, %v2303_v35 }
 0x19d   : > { %v1847_v57 = vpop.f32.mrf.mxu0  ;;  %3069 = vmatpush.bf16.msra.mxu3 %v6427_v22  ;;  %v2472_v56 = vrot.slane %v7568_v48, 1 }
 0x19e   : > { %2001 = vmatmul.bf16.gmra.mxu1 %v1907_v9  ;;  %2201 = vmatmul.bf16.gmra.mxu2 %v7508_v31  ;;  %v7565_v47 = vadd.f32 %v1844_v52, %v1696_v37  ;;  %v2054_v37 = vld [vmem:[%s7352_s9 + $0x40] sm:$0xf]  ;;  %v1909_v50 = vsel %vm1000_vm3, %v1906_v19, %v1908_v40  ;;  %v6458_v19 = vld [vmem:[%s8374_s1 + $0x4b8] sm:$0xff] }
 0x19f   : > { %v2473_v35 = vsel %vm668_vm1, %v2470_v24, %v2472_v56  ;;  %3601 = vmatpush.bf16.msrb.mxu2 %v6458_v19 }
 0x1a0   : > { %2410 = vmatmul.bf16.gmra.mxu3 %v2304_v49  ;;  %2565 = vmatmul.bf16.gmra.mxu0 %v2471_v21 }
 0x1a1   : > { %v1517_v17 = vpop.f32.mrf.mxu2 }
 0x1a2   : > { %v1542_v58 = vadd.f32 %v1517_v17, %v1333_v45 }
 0x1a3   : > { %v1672_v8 = vpop.f32.mrf.mxu3  ;;  %v1310_v18 = vpop.f32.mrf.mxu1 }
 0x1a4   : > { %v1697_v27 = vadd.f32 %v1672_v8, %v1542_v58  ;;  %v1334_v52 = vadd.f32 %v1310_v18, %v7329_v32  ;;  %v2311_v32 = vrot.slane %v2309_v63, 1  ;;  %v2251_v58 = vunpack.c.l.b16 %v2054_v37  ;;  %v6466_v18 = vld [vmem:[%s8374_s1 + $0x4f8] sm:$0xff] }
 0x1a5   : > { %v1849_v20 = vpop.f32.mrf.mxu0  ;;  %3756 = vmatpush.bf16.msrb.mxu3 %v6466_v18 }
 0x1a6   : > { %v7585_v61 = vadd.f32 %v1847_v57, %v1697_v27  ;;  %v2312_v57 = vsel %vm372_vm0, %v2307_v41, %v2311_v32 }
 0x1a9   : > { %v1519_v9 = vpop.f32.mrf.mxu2 }
 0x1aa   : > { %v1543_v45 = vadd.f32 %v1519_v9, %v1334_v52  ;;  %v2313_v9 = vshrl.u32 %v7568_v48, 16 }
 0x1ab   : > { %v1674_v49 = vpop.f32.mrf.mxu3  ;;  %v1313_v21 = vpop.f32.mrf.mxu1 }
 0x1ac   : > { %v1698_v22 = vadd.f32 %v1674_v49, %v1543_v45  ;;  %v1335_v30 = vadd.f32 %v1313_v21, %v7347_v55  ;;  %v7607_v55 = vpack.c.b16 %v2251_v58, %v2251_v58  ;;  %v6450_v45 = vld [vmem:[%s8374_s1 + $0x478] sm:$0xff] }
 0x1ad   : > { %v1852_v17 = vpop.f32.mrf.mxu0  ;;  %v6482_v49 = vld [vmem:[%s8374_s1 + $0x538] sm:$0xff]  ;;  %3426 = vmatpush.bf16.msrb.mxu1 %v6450_v45 }
 0x1ae   : > { %2006 = vmatmul.bf16.gmra.mxu1 %v1909_v50  ;;  %2206 = vmatmul.bf16.gmra.mxu2 %v7541_v33  ;;  %v7599_v8 = vadd.f32 %v1849_v20, %v1698_v22  ;;  %v2317_v37 = vshll.u32 %v7607_v55, 16  ;;  %v2315_v50 = vor.u32 %v2313_v9, %v2311_v32  ;;  %v2474_v22 = vrot.slane %v7607_v55, 1 }
 0x1af   : > { %3956 = vmatpush.bf16.msrb.mxu0 %v6482_v49 }
 0x1b0   : > { %2415 = vmatmul.bf16.gmra.mxu3 %v2312_v57  ;;  %2570 = vmatmul.bf16.gmra.mxu0 %v2473_v35  ;;  %v2319_v57 = vrot.slane %v2317_v37, 1 }
 0x1b1   : > { %v1522_v24 = vpop.f32.mrf.mxu2 }
 0x1b2   : > { %v1544_v27 = vadd.f32 %v1522_v24, %v1335_v30  ;;  %v2320_v32 = vsel %vm372_vm0, %v2315_v50, %v2319_v57  ;;  %v2614_v50 = vrot.slane %v2254_v13, 1  ;;  %v2615_v57 = vrot.slane %v2256_v42, 2  ;;  %v6449_v13 = vld [vmem:[%s8374_s1 + $0x470] sm:$0xff] }
 0x1b3   : > { %v1677_v52 = vpop.f32.mrf.mxu3  ;;  %v1315_v20 = vpop.f32.mrf.mxu1  ;;  %v6481_v42 = vld [vmem:[%s8374_s1 + $0x530] sm:$0xff]  ;;  %3427 = vmatpush.bf16.msrb.mxu1 %v6449_v13 }
 0x1b4   : > { %v1699_v5 = vadd.f32 %v1677_v52, %v1544_v27  ;;  %v1336_v62 = vadd.f32 %v1315_v20, %v7361_v38  ;;  %v1910_v38 = vrot.slane %v7326_v12, 2  ;;  %v2475_v27 = vsel %vm668_vm1, %v2472_v56, %v2474_v22  ;;  %v7635_v52 = vld [vmem:[%s7628_s7] sm:$0xff]  ;;  %3957 = vmatpush.bf16.msrb.mxu0 %v6481_v42 }
 0x1b5   : > { %v1854_v41 = vpop.f32.mrf.mxu0  ;;  %v3150_v56 = vshll.u32 %v7635_v52, 16  ;;  %v2618_v22 = vrot.slane %v2261_v16, 2  ;;  %v2621_v42 = vrot.slane %v2273_v4, 1 }
 0x1b6   : > { %v7619_v21 = vadd.f32 %v1852_v17, %v1699_v5  ;;  %v1911_v17 = vsel %vm1000_vm3, %v1908_v40, %v1910_v38  ;;  %v6457_v40 = vld [vmem:[%s8374_s1 + $0x4b0] sm:$0xff]  ;;  %v7647_v5 = vld [vmem:[%s7628_s7 + $0x8] sm:$0xff] }
 0x1b7   : > { %3602 = vmatpush.bf16.msrb.mxu2 %v6457_v40 }
 0x1b9   : > { %v1524_v30 = vpop.f32.mrf.mxu2 }
 0x1ba   : > { %v1545_v35 = vadd.f32 %v1524_v30, %v1336_v62  ;;  %v3148_v30 = vshrl.u32 %v7635_v52, 16 }
 0x1bb   : > { %v1679_v58 = vpop.f32.mrf.mxu3  ;;  %v1318_v19 = vpop.f32.mrf.mxu1 }
 0x1bc   : > { %v1700_v18 = vadd.f32 %v1679_v58, %v1545_v35  ;;  %v1337_v12 = vadd.f32 %v1318_v19, %v7384_v46  ;;  %v6465_v46 = vld [vmem:[%s8374_s1 + $0x4f0] sm:$0xff] }
 0x1bd   : > { %v1857_v24 = vpop.f32.mrf.mxu0  ;;  %3757 = vmatpush.bf16.msrb.mxu3 %v6465_v46 }
 0x1be   : > { %2011 = vmatmul.bf16.gmra.mxu1 %v1911_v17  ;;  %2211 = vmatmul.bf16.gmra.mxu2 %v7568_v48  ;;  %v7638_v20 = vadd.f32 %v1854_v41, %v1700_v18  ;;  %v2617_v41 = vrot.slane %v2265_v25, 1  ;;  %v3152_v25 = vrot.slane %v3150_v56, 1  ;;  %v3155_v17 = vshll.u32 %v7647_v5, 16 }
 0x1bf   : > { %v2616_v18 = vor.u32 %v2615_v57, %v2614_v50 }
 0x1c0   : > { %2420 = vmatmul.bf16.gmra.mxu3 %v2320_v32  ;;  %2575 = vmatmul.bf16.gmra.mxu0 %v2475_v27  ;;  %v2790_v32 = vrot.slane %v7372_v15, 2  ;;  %v3153_v27 = vor.u32 %v3152_v25, %v3148_v30  ;;  %v3157_v40 = vrot.slane %v3155_v17, 1 }
 0x1c1   : > { %v1527_v62 = vpop.f32.mrf.mxu2 }
 0x1c2   : > { %v1546_v45 = vadd.f32 %v1527_v62, %v1337_v12  ;;  %v2789_v12 = vrot.slane %v7356_v34, 2  ;;  %v3158_v15 = vsel %vm372_vm0, %v3153_v27, %v3157_v40 }
 0x1c3   : > { %v1682_v49 = vpop.f32.mrf.mxu3  ;;  %v1320_v38 = vpop.f32.mrf.mxu1 }
 0x1c4   : > { %v1701_v35 = vadd.f32 %v1682_v49, %v1546_v45  ;;  %v1338_v58 = vadd.f32 %v1320_v38, %v7400_v14  ;;  %v2619_v14 = vor.u32 %v2618_v22, %v2617_v41  ;;  %v2791_v38 = vsel %vm1000_vm3, %v2789_v12, %v2790_v32  ;;  %v6456_v22 = vld [vmem:[%s8374_s1 + $0x4a8] sm:$0xff] }
 0x1c5   : > { %v1859_v19 = vpop.f32.mrf.mxu0  ;;  %3603 = vmatpush.bf16.msrb.mxu2 %v6456_v22 }
 0x1c6   : > { %v7669_v16 = vadd.f32 %v1857_v24, %v1701_v35  ;;  %v2620_v24 = vsel %vm824_vm2, %v2616_v18, %v2619_v14  ;;  %v6464_v35 = vld [vmem:[%s8374_s1 + $0x4e8] sm:$0xff]  ;;  %v2622_v18 = vrot.slane %v2269_v23, 2 }
 0x1c7   : > { %3758 = vmatpush.bf16.msrb.mxu3 %v6464_v35 }
 0x1c8   : > { %v2623_v23 = vor.u32 %v2622_v18, %v2621_v42  ;;  %v6455_v42 = vld [vmem:[%s8374_s1 + $0x4a0] sm:$0xff] }
 0x1c9   : > { %v1529_v46 = vpop.f32.mrf.mxu2  ;;  %3604 = vmatpush.bf16.msrb.mxu2 %v6455_v42 }
 0x1ca   : > { %v1547_v62 = vadd.f32 %v1529_v46, %v1338_v58  ;;  %v7691_v58 = vld [vmem:[%s7628_s7 + $0x10] sm:$0xff] }
 0x1cb   : > { %v1684_v45 = vpop.f32.mrf.mxu3  ;;  %v1977_v49 = vpop.f32.mrf.mxu1 }
 0x1cc   : > { %v1702_v41 = vadd.f32 %v1684_v45, %v1547_v62  ;;  %v2017_v34 = vadd.f32 %v1977_v49, %v7420_v11  ;;  %v3159_v62 = vshrl.u32 %v7647_v5, 16  ;;  %v3163_v45 = vshll.u32 %v7691_v58, 16  ;;  %v6448_v49 = vld [vmem:[%s8374_s1 + $0x468] sm:$0xff] }
 0x1cd   : > { %v2541_v50 = vpop.f32.mrf.mxu0  ;;  %3428 = vmatpush.bf16.msrb.mxu1 %v6448_v49  ;;  %v2626_v49 = vrot.slane %v2277_v44, 2 }
 0x1ce   : > { %2715 = vmatmul.bf16.vlgmr.msra.gmra.mxu1 %v2620_v24  ;;  %2870 = vmatmul.bf16.vlgmr.msra.gmra.mxu2 %v2791_v38  ;;  %v7681_v57 = vadd.f32 %v1859_v19, %v1702_v41  ;;  %v6480_v24 = vld [vmem:[%s8374_s1 + $0x528] sm:$0xff]  ;;  %v3161_v38 = vor.u32 %v3159_v62, %v3157_v40  ;;  %v3165_v41 = vrot.slane %v3163_v45, 1 }
 0x1cf   : > { %3958 = vmatpush.bf16.msrb.mxu0 %v6480_v24 }
 0x1d0   : > { %3070 = vmatmul.bf16.vlgmr.msra.gmra.mxu3 %v7635_v52  ;;  %3279 = vmatmul.bf16.vlgmr.msra.gmra.mxu0 %v3158_v15 }
 0x1d1   : > { %v2177_v11 = vpop.f32.mrf.mxu2 }
 0x1d2   : > { %v2217_v25 = vadd.f32 %v2177_v11, %v2017_v34  ;;  %v2624_v11 = vsel %vm824_vm2, %v2619_v14, %v2623_v23  ;;  %v6463_v14 = vld [vmem:[%s8374_s1 + $0x4e0] sm:$0xff] }
 0x1d3   : > { %v2386_v13 = vpop.f32.mrf.mxu3  ;;  %v1979_v19 = vpop.f32.mrf.mxu1  ;;  %3759 = vmatpush.bf16.msrb.mxu3 %v6463_v14 }
 0x1d4   : > { %v2426_v12 = vadd.f32 %v2386_v13, %v2217_v25  ;;  %v2018_v27 = vadd.f32 %v1979_v19, %v7433_v0  ;;  %v2792_v0 = vrot.slane %v7409_v29, 2  ;;  %v3166_v29 = vsel %vm372_vm0, %v3161_v38, %v3165_v41 }
 0x1d5   : > { %v2543_v46 = vpop.f32.mrf.mxu0 }
 0x1d6   : > { %v7706_v4 = vadd.f32 %v2541_v50, %v2426_v12  ;;  %v2793_v25 = vsel %vm1000_vm3, %v2790_v32, %v2792_v0  ;;  %v7727_v32 = vld [vmem:[%s7628_s7 + $0x18] sm:$0xff] }
 0x1d9   : > { %v2179_v34 = vpop.f32.mrf.mxu2 }
 0x1da   : > { %v2218_v15 = vadd.f32 %v2179_v34, %v2018_v27 }
 0x1db   : > { %v2388_v22 = vpop.f32.mrf.mxu3  ;;  %v1982_v35 = vpop.f32.mrf.mxu1 }
 0x1dc   : > { %v2427_v50 = vadd.f32 %v2388_v22, %v2218_v15  ;;  %v2019_v13 = vadd.f32 %v1982_v35, %v7453_v51  ;;  %v3167_v15 = vshrl.u32 %v7691_v58, 16  ;;  %v3171_v22 = vshll.u32 %v7727_v32, 16  ;;  %v6447_v35 = vld [vmem:[%s8374_s1 + $0x460] sm:$0xff] }
 0x1dd   : > { %v2546_v19 = vpop.f32.mrf.mxu0  ;;  %3429 = vmatpush.bf16.msrb.mxu1 %v6447_v35  ;;  %v2630_v35 = vrot.slane %v2285_v7, 2 }
 0x1de   : > { %2720 = vmatmul.bf16.gmra.mxu1 %v2624_v11  ;;  %2875 = vmatmul.bf16.gmra.mxu2 %v2793_v25  ;;  %v7717_v40 = vadd.f32 %v2543_v46, %v2427_v50  ;;  %v2625_v46 = vrot.slane %v2281_v28, 1  ;;  %v6479_v11 = vld [vmem:[%s8374_s1 + $0x520] sm:$0xff]  ;;  %v3169_v25 = vor.u32 %v3167_v15, %v3165_v41  ;;  %v3173_v50 = vrot.slane %v3171_v22, 1 }
 0x1df   : > { %3959 = vmatpush.bf16.msrb.mxu0 %v6479_v11 }
 0x1e0   : > { %3075 = vmatmul.bf16.gmra.mxu3 %v7647_v5  ;;  %3284 = vmatmul.bf16.gmra.mxu0 %v3166_v29  ;;  %v2627_v44 = vor.u32 %v2626_v49, %v2625_v46  ;;  %v6454_v46 = vld [vmem:[%s8374_s1 + $0x498] sm:$0xff] }
 0x1e1   : > { %v2182_v51 = vpop.f32.mrf.mxu2  ;;  %3605 = vmatpush.bf16.msrb.mxu2 %v6454_v46 }
 0x1e2   : > { %v2219_v18 = vadd.f32 %v2182_v51, %v2019_v13  ;;  %v2628_v51 = vsel %vm824_vm2, %v2623_v23, %v2627_v44  ;;  %v6462_v23 = vld [vmem:[%s8374_s1 + $0x4d8] sm:$0xff] }
 0x1e3   : > { %v2391_v12 = vpop.f32.mrf.mxu3  ;;  %v1984_v27 = vpop.f32.mrf.mxu1  ;;  %3760 = vmatpush.bf16.msrb.mxu3 %v6462_v23 }
 0x1e4   : > { %v2428_v24 = vadd.f32 %v2391_v12, %v2219_v18  ;;  %v2020_v38 = vadd.f32 %v1984_v27, %v7466_v59  ;;  %v2794_v59 = vrot.slane %v7442_v39, 2  ;;  %v3174_v39 = vsel %vm372_vm0, %v3169_v25, %v3173_v50 }
 0x1e5   : > { %v2548_v34 = vpop.f32.mrf.mxu0 }
 0x1e6   : > { %v7742_v28 = vadd.f32 %v2546_v19, %v2428_v24  ;;  %v2795_v18 = vsel %vm1000_vm3, %v2792_v0, %v2794_v59  ;;  %v7763_v0 = vld [vmem:[%s7628_s7 + $0x20] sm:$0xff] }
 0x1e9   : > { %v2184_v13 = vpop.f32.mrf.mxu2 }
 0x1ea   : > { %v2220_v29 = vadd.f32 %v2184_v13, %v2020_v38 }
 0x1eb   : > { %v2393_v42 = vpop.f32.mrf.mxu3  ;;  %v1987_v14 = vpop.f32.mrf.mxu1 }
 0x1ec   : > { %v2429_v19 = vadd.f32 %v2393_v42, %v2220_v29  ;;  %v2021_v12 = vadd.f32 %v1987_v14, %v7486_v6  ;;  %v3175_v29 = vshrl.u32 %v7727_v32, 16  ;;  %v3179_v42 = vshll.u32 %v7763_v0, 16  ;;  %v6446_v14 = vld [vmem:[%s8374_s1 + $0x458] sm:$0xff] }
 0x1ed   : > { %v2551_v27 = vpop.f32.mrf.mxu0  ;;  %3430 = vmatpush.bf16.msrb.mxu1 %v6446_v14  ;;  %v2634_v14 = vrot.slane %v2293_v36, 2 }
 0x1ee   : > { %2725 = vmatmul.bf16.gmra.mxu1 %v2628_v51  ;;  %2880 = vmatmul.bf16.gmra.mxu2 %v2795_v18  ;;  %v7753_v41 = vadd.f32 %v2548_v34, %v2429_v19  ;;  %v2629_v34 = vrot.slane %v2289_v60, 1  ;;  %v6478_v51 = vld [vmem:[%s8374_s1 + $0x518] sm:$0xff]  ;;  %v3177_v18 = vor.u32 %v3175_v29, %v3173_v50  ;;  %v3181_v19 = vrot.slane %v3179_v42, 1 }
 0x1ef   : > { %3960 = vmatpush.bf16.msrb.mxu0 %v6478_v51 }
 0x1f0   : > { %3080 = vmatmul.bf16.gmra.mxu3 %v7691_v58  ;;  %3289 = vmatmul.bf16.gmra.mxu0 %v3174_v39  ;;  %v2631_v7 = vor.u32 %v2630_v35, %v2629_v34  ;;  %v6453_v34 = vld [vmem:[%s8374_s1 + $0x490] sm:$0xff] }
 0x1f1   : > { %v2187_v6 = vpop.f32.mrf.mxu2  ;;  %3606 = vmatpush.bf16.msrb.mxu2 %v6453_v34 }
 0x1f2   : > { %v2221_v49 = vadd.f32 %v2187_v6, %v2021_v12  ;;  %v2632_v6 = vsel %vm824_vm2, %v2627_v44, %v2631_v7  ;;  %v6461_v44 = vld [vmem:[%s8374_s1 + $0x4d0] sm:$0xff] }
 0x1f3   : > { %v2396_v24 = vpop.f32.mrf.mxu3  ;;  %v1989_v38 = vpop.f32.mrf.mxu1  ;;  %3761 = vmatpush.bf16.msrb.mxu3 %v6461_v44 }
 0x1f4   : > { %v2430_v11 = vadd.f32 %v2396_v24, %v2221_v49  ;;  %v2022_v25 = vadd.f32 %v1989_v38, %v7499_v54  ;;  %v2796_v54 = vrot.slane %v7475_v26, 2  ;;  %v3182_v26 = vsel %vm372_vm0, %v3177_v18, %v3181_v19 }
 0x1f5   : > { %v2553_v13 = vpop.f32.mrf.mxu0 }
 0x1f6   : > { %v7778_v60 = vadd.f32 %v2551_v27, %v2430_v11  ;;  %v2797_v49 = vsel %vm1000_vm3, %v2794_v59, %v2796_v54  ;;  %v7799_v59 = vld [vmem:[%s7628_s7 + $0x28] sm:$0xff] }
 0x1f9   : > { %v2189_v12 = vpop.f32.mrf.mxu2 }
 0x1fa   : > { %v2222_v39 = vadd.f32 %v2189_v12, %v2022_v25 }
 0x1fb   : > { %v2398_v46 = vpop.f32.mrf.mxu3  ;;  %v1992_v23 = vpop.f32.mrf.mxu1 }
 0x1fc   : > { %v2431_v27 = vadd.f32 %v2398_v46, %v2222_v39  ;;  %v2023_v24 = vadd.f32 %v1992_v23, %v7519_v10  ;;  %v3183_v39 = vshrl.u32 %v7763_v0, 16  ;;  %v3187_v46 = vshll.u32 %v7799_v59, 16  ;;  %v6445_v23 = vld [vmem:[%s8374_s1 + $0x450] sm:$0xff] }
 0x1fd   : > { %v2556_v38 = vpop.f32.mrf.mxu0  ;;  %3431 = vmatpush.bf16.msrb.mxu1 %v6445_v23  ;;  %v2638_v23 = vrot.slane %v2301_v53, 2 }
 0x1fe   : > { %2730 = vmatmul.bf16.gmra.mxu1 %v2632_v6  ;;  %2885 = vmatmul.bf16.gmra.mxu2 %v2797_v49  ;;  %v7789_v50 = vadd.f32 %v2553_v13, %v2431_v27  ;;  %v2633_v13 = vrot.slane %v2297_v3, 1  ;;  %v6477_v6 = vld [vmem:[%s8374_s1 + $0x510] sm:$0xff]  ;;  %v3185_v49 = vor.u32 %v3183_v39, %v3181_v19  ;;  %v3189_v27 = vrot.slane %v3187_v46, 1 }
 0x1ff   : > { %3961 = vmatpush.bf16.msrb.mxu0 %v6477_v6 }
 0x200   : > { %3085 = vmatmul.bf16.gmra.mxu3 %v7727_v32  ;;  %3294 = vmatmul.bf16.gmra.mxu0 %v3182_v26  ;;  %v2635_v36 = vor.u32 %v2634_v14, %v2633_v13  ;;  %v6452_v13 = vld [vmem:[%s8374_s1 + $0x488] sm:$0xff] }
 0x201   : > { %v2192_v10 = vpop.f32.mrf.mxu2  ;;  %3607 = vmatpush.bf16.msrb.mxu2 %v6452_v13 }
 0x202   : > { %v2223_v35 = vadd.f32 %v2192_v10, %v2023_v24  ;;  %v2636_v10 = vsel %vm824_vm2, %v2631_v7, %v2635_v36  ;;  %v6460_v7 = vld [vmem:[%s8374_s1 + $0x4c8] sm:$0xff] }
 0x203   : > { %v2401_v11 = vpop.f32.mrf.mxu3  ;;  %v1994_v25 = vpop.f32.mrf.mxu1  ;;  %3762 = vmatpush.bf16.msrb.mxu3 %v6460_v7 }
 0x204   : > { %v2432_v51 = vadd.f32 %v2401_v11, %v2223_v35  ;;  %v2024_v18 = vadd.f32 %v1994_v25, %v7532_v43  ;;  %v2798_v43 = vrot.slane %v7508_v31, 2  ;;  %v3190_v31 = vsel %vm372_vm0, %v3185_v49, %v3189_v27 }
 0x205   : > { %v2558_v12 = vpop.f32.mrf.mxu0 }
 0x206   : > { %v7814_v3 = vadd.f32 %v2556_v38, %v2432_v51  ;;  %v2799_v35 = vsel %vm1000_vm3, %v2796_v54, %v2798_v43  ;;  %v7835_v54 = vld [vmem:[%s7628_s7 + $0x30] sm:$0xff] }
 0x209   : > { %v2194_v24 = vpop.f32.mrf.mxu2 }
 0x20a   : > { %v2224_v26 = vadd.f32 %v2194_v24, %v2024_v18 }
 0x20b   : > { %v2403_v34 = vpop.f32.mrf.mxu3  ;;  %v1997_v44 = vpop.f32.mrf.mxu1 }
 0x20c   : > { %v2433_v38 = vadd.f32 %v2403_v34, %v2224_v26  ;;  %v2025_v11 = vadd.f32 %v1997_v44, %v7552_v1  ;;  %v3191_v26 = vshrl.u32 %v7799_v59, 16  ;;  %v3195_v34 = vshll.u32 %v7835_v54, 16  ;;  %v6444_v44 = vld [vmem:[%s8374_s1 + $0x448] sm:$0xff] }
 0x20d   : > { %v2561_v25 = vpop.f32.mrf.mxu0  ;;  %3432 = vmatpush.bf16.msrb.mxu1 %v6444_v44  ;;  %v2642_v44 = vrot.slane %v2309_v63, 2 }
 0x20e   : > { %2735 = vmatmul.bf16.gmra.mxu1 %v2636_v10  ;;  %2890 = vmatmul.bf16.gmra.mxu2 %v2799_v35  ;;  %v7825_v19 = vadd.f32 %v2558_v12, %v2433_v38  ;;  %v2637_v12 = vrot.slane %v2305_v2, 1  ;;  %v6476_v10 = vld [vmem:[%s8374_s1 + $0x508] sm:$0xff]  ;;  %v3193_v35 = vor.u32 %v3191_v26, %v3189_v27  ;;  %v3197_v38 = vrot.slane %v3195_v34, 1 }
 0x20f   : > { %3962 = vmatpush.bf16.msrb.mxu0 %v6476_v10 }
 0x210   : > { %3090 = vmatmul.bf16.gmra.mxu3 %v7763_v0  ;;  %3299 = vmatmul.bf16.gmra.mxu0 %v3190_v31  ;;  %v2639_v53 = vor.u32 %v2638_v23, %v2637_v12  ;;  %v6451_v12 = vld [vmem:[%s8374_s1 + $0x480] sm:$0xff] }
 0x211   : > { %v2197_v1 = vpop.f32.mrf.mxu2  ;;  %3608 = vmatpush.bf16.msrb.mxu2 %v6451_v12 }
 0x212   : > { %v2225_v14 = vadd.f32 %v2197_v1, %v2025_v11  ;;  %v2640_v1 = vsel %vm824_vm2, %v2635_v36, %v2639_v53  ;;  %v6459_v36 = vld [vmem:[%s8374_s1 + $0x4c0] sm:$0xff] }
 0x213   : > { %v2406_v51 = vpop.f32.mrf.mxu3  ;;  %v1999_v18 = vpop.f32.mrf.mxu1  ;;  %3763 = vmatpush.bf16.msrb.mxu3 %v6459_v36 }
 0x214   : > { %v2434_v6 = vadd.f32 %v2406_v51, %v2225_v14  ;;  %v2026_v49 = vadd.f32 %v1999_v18, %v7565_v47  ;;  %v2800_v47 = vrot.slane %v7541_v33, 2  ;;  %v3198_v33 = vsel %vm372_vm0, %v3193_v35, %v3197_v38 }
 0x215   : > { %v2563_v24 = vpop.f32.mrf.mxu0 }
 0x216   : > { %v7850_v2 = vadd.f32 %v2561_v25, %v2434_v6  ;;  %v2801_v14 = vsel %vm1000_vm3, %v2798_v43, %v2800_v47  ;;  %v7871_v43 = vld [vmem:[%s7628_s7 + $0x38] sm:$0xff] }
 0x219   : > { %v2199_v11 = vpop.f32.mrf.mxu2 }
 0x21a   : > { %v2226_v31 = vadd.f32 %v2199_v11, %v2026_v49 }
 0x21b   : > { %v2408_v13 = vpop.f32.mrf.mxu3  ;;  %v2002_v7 = vpop.f32.mrf.mxu1 }
 0x21c   : > { %v2435_v25 = vadd.f32 %v2408_v13, %v2226_v31  ;;  %v2027_v51 = vadd.f32 %v2002_v7, %v7585_v61  ;;  %v3199_v31 = vshrl.u32 %v7835_v54, 16  ;;  %v3203_v13 = vshll.u32 %v7871_v43, 16  ;;  %v6443_v7 = vld [vmem:[%s8374_s1 + $0x440] sm:$0xff] }
 0x21d   : > { %v2566_v18 = vpop.f32.mrf.mxu0  ;;  %3433 = vmatpush.bf16.msrb.mxu1 %v6443_v7 }
 0x21e   : > { %2740 = vmatmul.bf16.gmra.mxu1 %v2640_v1  ;;  %2895 = vmatmul.bf16.gmra.mxu2 %v2801_v14  ;;  %v7861_v27 = vadd.f32 %v2563_v24, %v2435_v25  ;;  %v2641_v24 = vrot.slane %v2313_v9, 1  ;;  %v6475_v9 = vld [vmem:[%s8374_s1 + $0x500] sm:$0xff]  ;;  %v3201_v14 = vor.u32 %v3199_v31, %v3197_v38  ;;  %v3205_v25 = vrot.slane %v3203_v13, 1 }
 0x21f   : > { %3963 = vmatpush.bf16.msrb.mxu0 %v6475_v9 }
 0x220   : > { %3095 = vmatmul.bf16.gmra.mxu3 %v7799_v59  ;;  %3304 = vmatmul.bf16.gmra.mxu0 %v3198_v33  ;;  %v2643_v1 = vor.u32 %v2642_v44, %v2641_v24  ;;  %v2948_v33 = vld [vmem:[%s7628_s7 + $0x40] sm:$0xf]  ;;  %s7964_s7 = scalar_lea.vmem %s6693_s30, %s6000_s22 }
 0x221   : > { %v2202_v61 = vpop.f32.mrf.mxu2  ;;  %v3145_v44 = vunpack.c.l.b16 %v2948_v33 }
 0x222   : > { %v2227_v23 = vadd.f32 %v2202_v61, %v2027_v51 }
 0x223   : > { %v2411_v6 = vpop.f32.mrf.mxu3  ;;  %v2004_v49 = vpop.f32.mrf.mxu1 }
 0x224   : > { %v2436_v10 = vadd.f32 %v2411_v6, %v2227_v23  ;;  %v2028_v35 = vadd.f32 %v2004_v49, %v7599_v8  ;;  %v2802_v8 = vrot.slane %v7568_v48, 2  ;;  %v2644_v23 = vsel %vm824_vm2, %v2639_v53, %v2643_v1  ;;  %v6498_v53 = vld [vmem:[%s8374_s1 + $0x5b8] sm:$0xff] }
 0x225   : > { %v2568_v11 = vpop.f32.mrf.mxu0  ;;  %v3206_v48 = vsel %vm372_vm0, %v3201_v14, %v3205_v25  ;;  %4320 = vmatpush.bf16.msra.mxu2 %v6498_v53 }
 0x226   : > { %v7886_v63 = vadd.f32 %v2566_v18, %v2436_v10  ;;  %v2803_v6 = vsel %vm1000_vm3, %v2800_v47, %v2802_v8  ;;  %v2645_v10 = vshrl.u32 %v7607_v55, 16  ;;  %v7908_v47 = vpack.c.b16 %v3145_v44, %v3145_v44 }
 0x228   : > { %v2647_v14 = vrot.slane %v2645_v10, 1 }
 0x229   : > { %v2204_v51 = vpop.f32.mrf.mxu2 }
 0x22a   : > { %v2228_v12 = vadd.f32 %v2204_v51, %v2028_v35  ;;  %v2648_v51 = vrot.slane %v2317_v37, 2 }
 0x22b   : > { %v2413_v36 = vpop.f32.mrf.mxu3  ;;  %v2007_v61 = vpop.f32.mrf.mxu1 }
 0x22c   : > { %v2437_v18 = vadd.f32 %v2413_v36, %v2228_v12  ;;  %v2029_v49 = vadd.f32 %v2007_v61, %v7619_v21  ;;  %v6506_v21 = vld [vmem:[%s8374_s1 + $0x5f8] sm:$0xff]  ;;  %v3207_v61 = vshrl.u32 %v7871_v43, 16  ;;  %v2649_v37 = vor.u32 %v2648_v51, %v2647_v14 }
 0x22d   : > { %v2571_v24 = vpop.f32.mrf.mxu0  ;;  %4495 = vmatpush.bf16.msra.mxu3 %v6506_v21 }
 0x22e   : > { %2745 = vmatmul.bf16.gmra.mxu1 %v2644_v23  ;;  %2900 = vmatmul.bf16.gmra.mxu2 %v2803_v6  ;;  %v7898_v38 = vadd.f32 %v2568_v11, %v2437_v18  ;;  %v3211_v23 = vshll.u32 %v7908_v47, 16  ;;  %v6490_v6 = vld [vmem:[%s8374_s1 + $0x578] sm:$0xff] }
 0x22f   : > { %v6514_v18 = vld [vmem:[%s8374_s1 + $0x638] sm:$0xff]  ;;  %4165 = vmatpush.bf16.msra.mxu1 %v6490_v6  ;;  %v3508_v6 = vrot.slane %v3148_v30, 1  ;;  %v3353_v30 = vrot.slane %v7635_v52, 1 }
 0x230   : > { %3100 = vmatmul.bf16.gmra.mxu3 %v7835_v54  ;;  %3309 = vmatmul.bf16.gmra.mxu0 %v3206_v48  ;;  %v3209_v48 = vor.u32 %v3207_v61, %v3205_v25  ;;  %v3213_v44 = vrot.slane %v3211_v23, 1 }
 0x231   : > { %v2207_v35 = vpop.f32.mrf.mxu2  ;;  %4650 = vmatpush.bf16.msra.mxu0 %v6514_v18  ;;  %v3509_v18 = vrot.slane %v3150_v56, 2 }
 0x232   : > { %v2229_v11 = vadd.f32 %v2207_v35, %v2029_v49 }
 0x233   : > { %v2416_v7 = vpop.f32.mrf.mxu3  ;;  %v2009_v9 = vpop.f32.mrf.mxu1 }
 0x234   : > { %v2438_v33 = vadd.f32 %v2416_v7, %v2229_v11  ;;  %v2030_v12 = vadd.f32 %v2009_v9, %v7638_v20  ;;  %v2804_v20 = vrot.slane %v7607_v55, 2  ;;  %v2650_v11 = vsel %vm824_vm2, %v2643_v1, %v2649_v37  ;;  %v6497_v1 = vld [vmem:[%s8374_s1 + $0x5b0] sm:$0xff] }
 0x235   : > { %v2573_v36 = vpop.f32.mrf.mxu0  ;;  %v3214_v55 = vsel %vm372_vm0, %v3209_v48, %v3213_v44  ;;  %4321 = vmatpush.bf16.msra.mxu2 %v6497_v1  ;;  %v3512_v37 = vrot.slane %v3155_v17, 2  ;;  %v3354_v17 = vrot.slane %v7647_v5, 1  ;;  %v7969_v1 = vld [vmem:[%s7964_s7] sm:$0xff] }
 0x236   : > { %v7921_v49 = vadd.f32 %v2571_v24, %v2438_v33  ;;  %v2805_v7 = vsel %vm1000_vm3, %v2802_v8, %v2804_v20  ;;  %v6505_v8 = vld [vmem:[%s8374_s1 + $0x5f0] sm:$0xff] }
 0x237   : > { %4496 = vmatpush.bf16.msra.mxu3 %v6505_v8 }
 0x239   : > { %v2209_v10 = vpop.f32.mrf.mxu2 }
 0x23a   : > { %v2230_v53 = vadd.f32 %v2209_v10, %v2030_v12  ;;  %v3511_v12 = vrot.slane %v3159_v62, 1  ;;  %v6489_v10 = vld [vmem:[%s8374_s1 + $0x570] sm:$0xff] }
 0x23b   : > { %v2418_v21 = vpop.f32.mrf.mxu3  ;;  %v2012_v35 = vpop.f32.mrf.mxu1  ;;  %v6513_v62 = vld [vmem:[%s8374_s1 + $0x630] sm:$0xff]  ;;  %4166 = vmatpush.bf16.msra.mxu1 %v6489_v10 }
 0x23c   : > { %v2439_v24 = vadd.f32 %v2418_v21, %v2230_v53  ;;  %v2031_v9 = vadd.f32 %v2012_v35, %v7669_v16  ;;  %4651 = vmatpush.bf16.msra.mxu0 %v6513_v62  ;;  %v3510_v53 = vor.u32 %v3509_v18, %v3508_v6  ;;  %v3683_v21 = vrot.slane %v7635_v52, 2  ;;  %v6488_v62 = vld [vmem:[%s8374_s1 + $0x568] sm:$0xff] }
 0x23d   : > { %v2576_v14 = vpop.f32.mrf.mxu0  ;;  %v3684_v35 = vrot.slane %v7647_v5, 2 }
 0x23e   : > { %2750 = vmatmul.bf16.gmra.mxu1 %v2650_v11  ;;  %2905 = vmatmul.bf16.gmra.mxu2 %v2805_v7  ;;  %v7932_v25 = vadd.f32 %v2573_v36, %v2439_v24 }
 0x23f   : > { %v3685_v52 = vsel %vm1000_vm3, %v3683_v21, %v3684_v35  ;;  %4167 = vmatpush.bf16.msra.mxu1 %v6488_v62  ;;  %v3686_v21 = vrot.slane %v7691_v58, 2 }
 0x240   : > { %3105 = vmatmul.bf16.gmra.mxu3 %v7871_v43  ;;  %3314 = vmatmul.bf16.gmra.mxu0 %v3214_v55 }
 0x241   : > { %v2212_v16 = vpop.f32.mrf.mxu2 }
 0x242   : > { %v2231_v51 = vadd.f32 %v2212_v16, %v2031_v9 }
 0x243   : > { %v2421_v33 = vpop.f32.mrf.mxu3  ;;  %v2014_v36 = vpop.f32.mrf.mxu1 }
 0x244   : > { %v2440_v20 = vadd.f32 %v2421_v33, %v2231_v51  ;;  %v2032_v48 = vadd.f32 %v2014_v36, %v7681_v57  ;;  %v3513_v57 = vor.u32 %v3512_v37, %v3511_v12  ;;  %v6496_v33 = vld [vmem:[%s8374_s1 + $0x5a8] sm:$0xff]  ;;  %v3515_v37 = vrot.slane %v3167_v15, 1 }
 0x245   : > { %v2578_v44 = vpop.f32.mrf.mxu0  ;;  %v6504_v12 = vld [vmem:[%s8374_s1 + $0x5e8] sm:$0xff]  ;;  %4322 = vmatpush.bf16.msra.mxu2 %v6496_v33  ;;  %v3356_v15 = vrot.slane %v7691_v58, 1  ;;  %v6495_v58 = vld [vmem:[%s8374_s1 + $0x5a0] sm:$0xff] }
 0x246   : > { %v7957_v56 = vadd.f32 %v2576_v14, %v2440_v20  ;;  %v3355_v14 = vsel %vm668_vm1, %v3353_v30, %v3354_v17  ;;  %v3514_v55 = vsel %vm824_vm2, %v3510_v53, %v3513_v57  ;;  %4497 = vmatpush.bf16.msra.mxu3 %v6504_v12  ;;  %v3516_v20 = vrot.slane %v3163_v45, 2  ;;  %v6512_v30 = vld [vmem:[%s8374_s1 + $0x628] sm:$0xff] }
 0x247   : > { %4652 = vmatpush.bf16.msra.mxu0 %v6512_v30 }
 0x248   : > { %v3517_v45 = vor.u32 %v3516_v20, %v3515_v37  ;;  %v6487_v20 = vld [vmem:[%s8374_s1 + $0x560] sm:$0xff] }
 0x249   : > { %v2214_v11 = vpop.f32.mrf.mxu2  ;;  %4323 = vmatpush.bf16.msra.mxu2 %v6495_v58  ;;  %4168 = vmatpush.bf16.msra.mxu1 %v6487_v20  ;;  %v3523_v58 = vrot.slane %v3183_v39, 1  ;;  %v3360_v39 = vrot.slane %v7763_v0, 1 }
 0x24a   : > { %v2232_v7 = vadd.f32 %v2214_v11, %v2032_v48 }
 0x24b   : > { %v2423_v24 = vpop.f32.mrf.mxu3  ;;  %v2716_v9 = vpop.f32.mrf.mxu1 }
 0x24c   : > { %v2441_v8 = vadd.f32 %v2423_v24, %v2232_v7  ;;  %v2756_v16 = vadd.f32 %v2716_v9, %v7706_v4  ;;  %v3357_v9 = vsel %vm668_vm1, %v3354_v17, %v3356_v15  ;;  %v6503_v17 = vld [vmem:[%s8374_s1 + $0x5e0] sm:$0xff] }
 0x24d   : > { %v3280_v51 = vpop.f32.mrf.mxu0  ;;  %4498 = vmatpush.bf16.msra.mxu3 %v6503_v17  ;;  %v3524_v17 = vrot.slane %v3179_v42, 2 }
 0x24e   : > { %3434 = vmatmul.bf16.vlgmr.msrb.gmra.mxu1 %v3355_v14  ;;  %3609 = vmatmul.bf16.vlgmr.msrb.gmra.mxu2 %v3514_v55  ;;  %v7973_v5 = vadd.f32 %v2578_v44, %v2441_v8  ;;  %v3518_v14 = vsel %vm824_vm2, %v3513_v57, %v3517_v45  ;;  %v8000_v55 = vld [vmem:[%s7964_s7 + $0x8] sm:$0xff] }
 0x24f   : > { %v3525_v42 = vor.u32 %v3524_v17, %v3523_v58  ;;  %v3692_v58 = vrot.slane %v7799_v59, 2 }
 0x250   : > { %3764 = vmatmul.bf16.vlgmr.msrb.gmra.mxu3 %v3685_v52  ;;  %3964 = vmatmul.bf16.vlgmr.msrb.gmra.mxu0 %v7969_v1  ;;  %v3687_v52 = vsel %vm1000_vm3, %v3684_v35, %v3686_v21 }
 0x251   : > { %v2871_v36 = vpop.f32.mrf.mxu2 }
 0x252   : > { %v2911_v4 = vadd.f32 %v2871_v36, %v2756_v16  ;;  %v3519_v36 = vrot.slane %v3175_v29, 1  ;;  %v3358_v29 = vrot.slane %v7727_v32, 1 }
 0x253   : > { %v3071_v6 = vpop.f32.mrf.mxu3  ;;  %v2718_v18 = vpop.f32.mrf.mxu1 }
 0x254   : > { %v3111_v48 = vadd.f32 %v3071_v6, %v2911_v4  ;;  %v2757_v44 = vadd.f32 %v2718_v18, %v7717_v40  ;;  %v3520_v4 = vrot.slane %v3171_v22, 2 }
 0x255   : > { %v3282_v10 = vpop.f32.mrf.mxu0 }
 0x256   : > { %v7993_v53 = vadd.f32 %v3280_v51, %v3111_v48  ;;  %v6511_v48 = vld [vmem:[%s8374_s1 + $0x620] sm:$0xff]  ;;  %v3521_v22 = vor.u32 %v3520_v4, %v3519_v36  ;;  %v6510_v36 = vld [vmem:[%s8374_s1 + $0x618] sm:$0xff] }
 0x257   : > { %4653 = vmatpush.bf16.msra.mxu0 %v6511_v48  ;;  %v3361_v48 = vsel %vm668_vm1, %v3358_v29, %v3360_v39 }
 0x259   : > { %v2873_v40 = vpop.f32.mrf.mxu2 }
 0x25a   : > { %v2912_v11 = vadd.f32 %v2873_v40, %v2757_v44 }
 0x25b   : > { %v3073_v7 = vpop.f32.mrf.mxu3  ;;  %v2721_v24 = vpop.f32.mrf.mxu1  ;;  %4654 = vmatpush.bf16.msra.mxu0 %v6510_v36  ;;  %v8093_v36 = vld [vmem:[%s7964_s7 + $0x20] sm:$0xff] }
 0x25c   : > { %v3112_v8 = vadd.f32 %v3073_v7, %v2912_v11  ;;  %v2758_v16 = vadd.f32 %v2721_v24, %v7742_v28  ;;  %v3359_v11 = vsel %vm668_vm1, %v3356_v15, %v3358_v29  ;;  %v3522_v7 = vsel %vm824_vm2, %v3517_v45, %v3521_v22  ;;  %v8031_v24 = vld [vmem:[%s7964_s7 + $0x10] sm:$0xff]  ;;  %v6502_v15 = vld [vmem:[%s8374_s1 + $0x5d8] sm:$0xff] }
 0x25d   : > { %v3285_v51 = vpop.f32.mrf.mxu0  ;;  %4499 = vmatpush.bf16.msra.mxu3 %v6502_v15  ;;  %v6501_v29 = vld [vmem:[%s8374_s1 + $0x5d0] sm:$0xff] }
 0x25e   : > { %3439 = vmatmul.bf16.gmra.mxu1 %v3357_v9  ;;  %3614 = vmatmul.bf16.gmra.mxu2 %v3518_v14  ;;  %v8004_v33 = vadd.f32 %v3282_v10, %v3112_v8  ;;  %v3688_v10 = vrot.slane %v7727_v32, 2  ;;  %v6494_v32 = vld [vmem:[%s8374_s1 + $0x598] sm:$0xff] }
 0x25f   : > { %4324 = vmatpush.bf16.msra.mxu2 %v6494_v32 }
 0x260   : > { %3769 = vmatmul.bf16.gmra.mxu3 %v3687_v52  ;;  %3969 = vmatmul.bf16.gmra.mxu0 %v8000_v55 }
 0x261   : > { %v2876_v57 = vpop.f32.mrf.mxu2  ;;  %4500 = vmatpush.bf16.msra.mxu3 %v6501_v29  ;;  %v6484_v29 = vld [vmem:[%s8374_s1 + $0x548] sm:$0xff] }
 0x262   : > { %v2913_v28 = vadd.f32 %v2876_v57, %v2758_v16  ;;  %v3689_v16 = vsel %vm1000_vm3, %v3686_v21, %v3688_v10 }
 0x263   : > { %v3076_v35 = vpop.f32.mrf.mxu3  ;;  %v2723_v12 = vpop.f32.mrf.mxu1 }
 0x264   : > { %v3113_v6 = vadd.f32 %v3076_v35, %v2913_v28  ;;  %v2759_v18 = vadd.f32 %v2723_v12, %v7753_v41  ;;  %v6486_v12 = vld [vmem:[%s8374_s1 + $0x558] sm:$0xff] }
 0x265   : > { %v3287_v37 = vpop.f32.mrf.mxu0  ;;  %4169 = vmatpush.bf16.msra.mxu1 %v6486_v12 }
 0x266   : > { %v8024_v44 = vadd.f32 %v3285_v51, %v3113_v6  ;;  %v3690_v6 = vrot.slane %v7763_v0, 2  ;;  %v6493_v0 = vld [vmem:[%s8374_s1 + $0x590] sm:$0xff] }
 0x267   : > { %4325 = vmatpush.bf16.msra.mxu2 %v6493_v0 }
 0x269   : > { %v2878_v41 = vpop.f32.mrf.mxu2 }
 0x26a   : > { %v2914_v62 = vadd.f32 %v2878_v41, %v2759_v18  ;;  %v3526_v41 = vsel %vm824_vm2, %v3521_v22, %v3525_v42 }
 0x26b   : > { %v3078_v30 = vpop.f32.mrf.mxu3  ;;  %v2726_v40 = vpop.f32.mrf.mxu1 }
 0x26c   : > { %v3114_v9 = vadd.f32 %v3078_v30, %v2914_v62  ;;  %v2760_v14 = vadd.f32 %v2726_v40, %v7778_v60  ;;  %v8062_v62 = vld [vmem:[%s7964_s7 + $0x18] sm:$0xff] }
 0x26d   : > { %v3290_v8 = vpop.f32.mrf.mxu0 }
 0x26e   : > { %3444 = vmatmul.bf16.gmra.mxu1 %v3359_v11  ;;  %3619 = vmatmul.bf16.gmra.mxu2 %v3522_v7  ;;  %v8035_v51 = vadd.f32 %v3287_v37, %v3114_v9  ;;  %v3691_v7 = vsel %vm1000_vm3, %v3688_v10, %v3690_v6 }
 0x270   : > { %3774 = vmatmul.bf16.gmra.mxu3 %v3689_v16  ;;  %3974 = vmatmul.bf16.gmra.mxu0 %v8031_v24  ;;  %v3528_v16 = vrot.slane %v3187_v46, 2 }
 0x271   : > { %v2881_v45 = vpop.f32.mrf.mxu2 }
 0x272   : > { %v2915_v60 = vadd.f32 %v2881_v45, %v2760_v14 }
 0x273   : > { %v3081_v21 = vpop.f32.mrf.mxu3  ;;  %v2728_v52 = vpop.f32.mrf.mxu1 }
 0x274   : > { %v3115_v57 = vadd.f32 %v3081_v21, %v2915_v60  ;;  %v2761_v28 = vadd.f32 %v2728_v52, %v7789_v50  ;;  %v6485_v60 = vld [vmem:[%s8374_s1 + $0x550] sm:$0xff] }
 0x275   : > { %v3292_v35 = vpop.f32.mrf.mxu0  ;;  %v6509_v21 = vld [vmem:[%s8374_s1 + $0x610] sm:$0xff]  ;;  %4170 = vmatpush.bf16.msra.mxu1 %v6485_v60 }
 0x276   : > { %v8055_v4 = vadd.f32 %v3290_v8, %v3115_v57  ;;  %v3527_v8 = vrot.slane %v3191_v26, 1  ;;  %4655 = vmatpush.bf16.msra.mxu0 %v6509_v21  ;;  %v3362_v26 = vrot.slane %v7799_v59, 1  ;;  %v6492_v59 = vld [vmem:[%s8374_s1 + $0x588] sm:$0xff] }
 0x277   : > { %4326 = vmatpush.bf16.msra.mxu2 %v6492_v59  ;;  %v6507_v59 = vld [vmem:[%s8374_s1 + $0x600] sm:$0xff] }
 0x278   : > { %v3529_v46 = vor.u32 %v3528_v16, %v3527_v8 }
 0x279   : > { %v2883_v50 = vpop.f32.mrf.mxu2  ;;  %4171 = vmatpush.bf16.msra.mxu1 %v6484_v29 }
 0x27a   : > { %v2916_v18 = vadd.f32 %v2883_v50, %v2761_v28  ;;  %v3530_v12 = vsel %vm824_vm2, %v3525_v42, %v3529_v46 }
 0x27b   : > { %v3083_v37 = vpop.f32.mrf.mxu3  ;;  %v2731_v20 = vpop.f32.mrf.mxu1 }
 0x27c   : > { %v3116_v30 = vadd.f32 %v3083_v37, %v2916_v18  ;;  %v2762_v40 = vadd.f32 %v2731_v20, %v7814_v3  ;;  %v3693_v20 = vsel %vm1000_vm3, %v3690_v6, %v3692_v58 }
 0x27d   : > { %v3295_v11 = vpop.f32.mrf.mxu0 }
 0x27e   : > { %3449 = vmatmul.bf16.gmra.mxu1 %v3361_v48  ;;  %3624 = vmatmul.bf16.gmra.mxu2 %v3526_v41  ;;  %v8066_v9 = vadd.f32 %v3292_v35, %v3116_v30  ;;  %v3363_v35 = vsel %vm668_vm1, %v3360_v39, %v3362_v26  ;;  %v6500_v39 = vld [vmem:[%s8374_s1 + $0x5c8] sm:$0xff]  ;;  %v3531_v30 = vrot.slane %v3199_v31, 1  ;;  %v3364_v31 = vrot.slane %v7835_v54, 1 }
 0x27f   : > { %4501 = vmatpush.bf16.msra.mxu3 %v6500_v39 }
 0x280   : > { %3779 = vmatmul.bf16.gmra.mxu3 %v3691_v7  ;;  %3979 = vmatmul.bf16.gmra.mxu0 %v8062_v62 }
 0x281   : > { %v2886_v22 = vpop.f32.mrf.mxu2 }
 0x282   : > { %v2917_v3 = vadd.f32 %v2886_v22, %v2762_v40  ;;  %v3532_v40 = vrot.slane %v3195_v34, 2  ;;  %v6508_v22 = vld [vmem:[%s8374_s1 + $0x608] sm:$0xff] }
 0x283   : > { %v3086_v10 = vpop.f32.mrf.mxu3  ;;  %v2733_v14 = vpop.f32.mrf.mxu1  ;;  %4656 = vmatpush.bf16.msra.mxu0 %v6508_v22 }
 0x284   : > { %v3117_v32 = vadd.f32 %v3086_v10, %v2917_v3  ;;  %v2763_v15 = vadd.f32 %v2733_v14, %v7825_v19  ;;  %v3533_v34 = vor.u32 %v3532_v40, %v3531_v30  ;;  %v3694_v10 = vrot.slane %v7835_v54, 2  ;;  %v6491_v54 = vld [vmem:[%s8374_s1 + $0x580] sm:$0xff] }
 0x285   : > { %v3297_v45 = vpop.f32.mrf.mxu0  ;;  %4327 = vmatpush.bf16.msra.mxu2 %v6491_v54 }
 0x286   : > { %v8086_v52 = vadd.f32 %v3295_v11, %v3117_v32  ;;  %v3365_v32 = vsel %vm668_vm1, %v3362_v26, %v3364_v31  ;;  %v6499_v26 = vld [vmem:[%s8374_s1 + $0x5c0] sm:$0xff] }
 0x287   : > { %4502 = vmatpush.bf16.msra.mxu3 %v6499_v26  ;;  %4657 = vmatpush.bf16.msra.mxu0 %v6507_v59  ;;  %v4053_v59 = vshrl.u32 %v8000_v55, 16 }
 0x289   : > { %v2888_v19 = vpop.f32.mrf.mxu2 }
 0x28a   : > { %v2918_v17 = vadd.f32 %v2888_v19, %v2763_v15  ;;  %v3534_v15 = vsel %vm824_vm2, %v3529_v46, %v3533_v34 }
 0x28b   : > { %v3088_v57 = vpop.f32.mrf.mxu3  ;;  %v2736_v28 = vpop.f32.mrf.mxu1 }
 0x28c   : > { %v3118_v50 = vadd.f32 %v3088_v57, %v2918_v17  ;;  %v2764_v18 = vadd.f32 %v2736_v28, %v7850_v2  ;;  %v3695_v17 = vsel %vm1000_vm3, %v3692_v58, %v3694_v10 }
 0x28d   : > { %v3300_v37 = vpop.f32.mrf.mxu0 }
 0x28e   : > { %3454 = vmatmul.bf16.gmra.mxu1 %v3363_v35  ;;  %3629 = vmatmul.bf16.gmra.mxu2 %v3530_v12  ;;  %v8097_v48 = vadd.f32 %v3297_v45, %v3118_v50  ;;  %v8124_v45 = vld [vmem:[%s7964_s7 + $0x28] sm:$0xff]  ;;  %v3535_v35 = vrot.slane %v3207_v61, 1  ;;  %v3536_v12 = vrot.slane %v3203_v13, 2  ;;  %v3366_v61 = vrot.slane %v7871_v43, 1 }
 0x290   : > { %3784 = vmatmul.bf16.gmra.mxu3 %v3693_v20  ;;  %3984 = vmatmul.bf16.gmra.mxu0 %v8093_v36  ;;  %v6483_v20 = vld [vmem:[%s8374_s1 + $0x540] sm:$0xff]  ;;  %v3537_v13 = vor.u32 %v3536_v12, %v3535_v35  ;;  %v3367_v30 = vsel %vm668_vm1, %v3364_v31, %v3366_v61 }
 0x291   : > { %v2891_v42 = vpop.f32.mrf.mxu2  ;;  %4172 = vmatpush.bf16.msra.mxu1 %v6483_v20  ;;  %v4049_v20 = vshll.u32 %v8000_v55, 16 }
 0x292   : > { %v2919_v2 = vadd.f32 %v2891_v42, %v2764_v18  ;;  %v3696_v42 = vrot.slane %v7871_v43, 2  ;;  %v3538_v40 = vsel %vm824_vm2, %v3533_v34, %v3537_v13  ;;  %v3539_v43 = vshrl.u32 %v7908_v47, 16 }
 0x293   : > { %v3091_v6 = vpop.f32.mrf.mxu3  ;;  %v2738_v41 = vpop.f32.mrf.mxu1 }
 0x294   : > { %v3119_v11 = vadd.f32 %v3091_v6, %v2919_v2  ;;  %v2765_v7 = vadd.f32 %v2738_v41, %v7861_v27  ;;  %v3697_v22 = vsel %vm1000_vm3, %v3694_v10, %v3696_v42 }
 0x295   : > { %v3302_v0 = vpop.f32.mrf.mxu0 }
 0x296   : > { %v8117_v3 = vadd.f32 %v3300_v37, %v3119_v11  ;;  %v8155_v11 = vld [vmem:[%s7964_s7 + $0x30] sm:$0xff] }
 0x299   : > { %v2893_v27 = vpop.f32.mrf.mxu2 }
 0x29a   : > { %v2920_v14 = vadd.f32 %v2893_v27, %v2765_v7 }
 0x29b   : > { %v3093_v8 = vpop.f32.mrf.mxu3  ;;  %v2741_v16 = vpop.f32.mrf.mxu1 }
 0x29c   : > { %v3120_v60 = vadd.f32 %v3093_v8, %v2920_v14  ;;  %v2766_v21 = vadd.f32 %v2741_v16, %v7886_v63  ;;  %v3541_v16 = vrot.slane %v3539_v43, 1  ;;  %v4051_v43 = vrot.slane %v4049_v20, 1 }
 0x29d   : > { %v3305_v19 = vpop.f32.mrf.mxu0 }
 0x29e   : > { %3459 = vmatmul.bf16.gmra.mxu1 %v3365_v32  ;;  %3634 = vmatmul.bf16.gmra.mxu2 %v3534_v15  ;;  %v8128_v57 = vadd.f32 %v3302_v0, %v3120_v60 }
 0x2a0   : > { %3789 = vmatmul.bf16.gmra.mxu3 %v3695_v17  ;;  %3989 = vmatmul.bf16.gmra.mxu0 %v8124_v45  ;;  %v3698_v17 = vrot.slane %v7908_v47, 2 }
 0x2a1   : > { %v2896_v46 = vpop.f32.mrf.mxu2 }
 0x2a2   : > { %v2921_v63 = vadd.f32 %v2896_v46, %v2766_v21  ;;  %v3368_v21 = vrot.slane %v7908_v47, 1  ;;  %v4042_v47 = vshrl.u32 %v7969_v1, 16 }
 0x2a3   : > { %v3096_v58 = vpop.f32.mrf.mxu3  ;;  %v2743_v28 = vpop.f32.mrf.mxu1 }
 0x2a4   : > { %v3121_v50 = vadd.f32 %v3096_v58, %v2921_v63  ;;  %v2767_v18 = vadd.f32 %v2743_v28, %v7898_v38  ;;  %v3369_v58 = vsel %vm668_vm1, %v3366_v61, %v3368_v21 }
 0x2a5   : > { %v3307_v37 = vpop.f32.mrf.mxu0 }
 0x2a6   : > { %v8148_v39 = vadd.f32 %v3305_v19, %v3121_v50  ;;  %v3699_v50 = vsel %vm1000_vm3, %v3696_v42, %v3698_v17 }
 0x2a9   : > { %v2898_v38 = vpop.f32.mrf.mxu2 }
 0x2aa   : > { %v2922_v2 = vadd.f32 %v2898_v38, %v2767_v18 }
 0x2ab   : > { %v3098_v6 = vpop.f32.mrf.mxu3  ;;  %v2746_v41 = vpop.f32.mrf.mxu1 }
 0x2ac   : > { %v3122_v7 = vadd.f32 %v3098_v6, %v2922_v2  ;;  %v2768_v0 = vadd.f32 %v2746_v41, %v7921_v49  ;;  %v3542_v49 = vrot.slane %v3211_v23, 2  ;;  %v8173_v23 = vld [vmem:[%s7964_s7 + $0x38] sm:$0xff]  ;;  %v4402_v2 = vrot.slane %v4042_v47, 1 }
 0x2ad   : > { %v3310_v29 = vpop.f32.mrf.mxu0 }
 0x2ae   : > { %3464 = vmatmul.bf16.gmra.mxu1 %v3367_v30  ;;  %3639 = vmatmul.bf16.gmra.mxu2 %v3538_v40  ;;  %v8159_v27 = vadd.f32 %v3307_v37, %v3122_v7  ;;  %v3543_v19 = vor.u32 %v3542_v49, %v3541_v16  ;;  %v4044_v37 = vshll.u32 %v7969_v1, 16  ;;  %v4405_v7 = vrot.slane %v4053_v59, 1 }
 0x2af   : > { %v4577_v16 = vrot.slane %v7969_v1, 2  ;;  %v4578_v49 = vrot.slane %v8000_v55, 2 }
 0x2b0   : > { %3794 = vmatmul.bf16.gmra.mxu3 %v3697_v22  ;;  %3994 = vmatmul.bf16.gmra.mxu0 %v8155_v11  ;;  %v3544_v28 = vsel %vm824_vm2, %v3537_v13, %v3543_v19  ;;  %v4046_v42 = vrot.slane %v4044_v37, 1  ;;  %v4403_v6 = vrot.slane %v4044_v37, 2 }
 0x2b1   : > { %v2901_v31 = vpop.f32.mrf.mxu2 }
 0x2b2   : > { %v2923_v14 = vadd.f32 %v2901_v31, %v2768_v0  ;;  %v4406_v0 = vrot.slane %v4049_v20, 2  ;;  %v4047_v22 = vor.u32 %v4046_v42, %v4042_v47  ;;  %v4247_v31 = vrot.slane %v7969_v1, 1 }
 0x2b3   : > { %v3101_v34 = vpop.f32.mrf.mxu3  ;;  %v2748_v8 = vpop.f32.mrf.mxu1 }
 0x2b4   : > { %v3123_v32 = vadd.f32 %v3101_v34, %v2923_v14  ;;  %v2769_v10 = vadd.f32 %v2748_v8, %v7932_v25  ;;  %v4248_v14 = vrot.slane %v8000_v55, 1  ;;  %v4404_v34 = vor.u32 %v4403_v6, %v4402_v2 }
 0x2b5   : > { %v3312_v15 = vpop.f32.mrf.mxu0  ;;  %v4407_v8 = vor.u32 %v4406_v0, %v4405_v7  ;;  %v4052_v21 = vsel %vm372_vm0, %v4047_v22, %v4051_v43  ;;  %v4057_v55 = vshll.u32 %v8031_v24, 16  ;;  %v4580_v2 = vrot.slane %v8031_v24, 2 }
 0x2b6   : > { %v8166_v60 = vadd.f32 %v3310_v29, %v3123_v32  ;;  %v4249_v19 = vsel %vm668_vm1, %v4247_v31, %v4248_v14 }
 0x2b7   : > { %v4410_v20 = vrot.slane %v4057_v55, 2 }
 0x2b9   : > { %v2903_v54 = vpop.f32.mrf.mxu2 }
 0x2ba   : > { %v2924_v26 = vadd.f32 %v2903_v54, %v2769_v10 }
 0x2bb   : > { %v3103_v46 = vpop.f32.mrf.mxu3  ;;  %v2751_v63 = vpop.f32.mrf.mxu1 }
 0x2bc   : > { %v3124_v35 = vadd.f32 %v3103_v46, %v2924_v26  ;;  %v2770_v25 = vadd.f32 %v2751_v63, %v7957_v56  ;;  %v4408_v46 = vsel %vm824_vm2, %v4404_v34, %v4407_v8  ;;  %v4579_v63 = vsel %vm1000_vm3, %v4577_v16, %v4578_v49 }
 0x2bd   : > { %v3315_v12 = vpop.f32.mrf.mxu0  ;;  %v4069_v16 = vshrl.u32 %v8062_v62, 16 }
 0x2be   : > { %3469 = vmatmul.bf16.gmra.mxu1 %v3369_v58  ;;  %3644 = vmatmul.bf16.gmra.mxu2 %v3544_v28  ;;  %v8177_v18 = vadd.f32 %v3312_v15, %v3124_v35  ;;  %v4061_v58 = vshrl.u32 %v8031_v24, 16 }
 0x2c0   : > { %3799 = vmatmul.bf16.gmra.mxu3 %v3699_v50  ;;  %3999 = vmatmul.bf16.gmra.mxu0 %v8173_v23  ;;  %v4409_v37 = vrot.slane %v4061_v58, 1 }
 0x2c1   : > { %v2906_v61 = vpop.f32.mrf.mxu2 }
 0x2c2   : > { %v2925_v56 = vadd.f32 %v2906_v61, %v2770_v25  ;;  %v4411_v42 = vor.u32 %v4410_v20, %v4409_v37 }
 0x2c3   : > { %v3106_v13 = vpop.f32.mrf.mxu3  ;;  %v2753_v38 = vpop.f32.mrf.mxu1 }
 0x2c4   : > { %v3125_v41 = vadd.f32 %v3106_v13, %v2925_v56  ;;  %v2771_v30 = vadd.f32 %v2753_v38, %v7973_v5  ;;  %v4055_v56 = vor.u32 %v4053_v59, %v4051_v43  ;;  %v4059_v13 = vrot.slane %v4057_v55, 1 }
 0x2c5   : > { %v3317_v40 = vpop.f32.mrf.mxu0  ;;  %v4250_v38 = vrot.slane %v8031_v24, 1  ;;  %v4412_v59 = vsel %vm824_vm2, %v4407_v8, %v4411_v42  ;;  %v4581_v43 = vsel %vm1000_vm3, %v4578_v49, %v4580_v2  ;;  %v4065_v24 = vshll.u32 %v8062_v62, 16 }
 0x2c6   : > { %v8185_v29 = vadd.f32 %v3315_v12, %v3125_v41  ;;  %v4060_v7 = vsel %vm372_vm0, %v4055_v56, %v4059_v13  ;;  %v4077_v56 = vshrl.u32 %v8093_v36, 16 }
 0x2c7   : > { %v4414_v49 = vrot.slane %v4065_v24, 2 }
 0x2c9   : > { %v2908_v32 = vpop.f32.mrf.mxu2 }
 0x2ca   : > { %v2926_v10 = vadd.f32 %v2908_v32, %v2771_v30 }
 0x2cb   : > { %v3108_v5 = vpop.f32.mrf.mxu3  ;;  %v3435_v15 = vpop.f32.mrf.mxu1 }
 0x2cc   : > { %v3126_v17 = vadd.f32 %v3108_v5, %v2926_v10  ;;  %v3475_v54 = vadd.f32 %v3435_v15, %v7993_v53 }
 0x2cd   : > { %v3965_v26 = vpop.f32.mrf.mxu0 }
 0x2ce   : > { %4173 = vmatmul.bf16.vlgmr.msra.gmra.mxu1 %v4052_v21  ;;  %4328 = vmatmul.bf16.vlgmr.msra.gmra.mxu2 %v4249_v19  ;;  %v8196_v1 = vadd.f32 %v3317_v40, %v3126_v17  ;;  %v4413_v21 = vrot.slane %v4069_v16, 1  ;;  %v4063_v17 = vor.u32 %v4061_v58, %v4059_v13 }
 0x2d0   : > { %4503 = vmatmul.bf16.vlgmr.msra.gmra.mxu3 %v4408_v46  ;;  %4658 = vmatmul.bf16.vlgmr.msra.gmra.mxu0 %v4579_v63  ;;  %v4415_v46 = vor.u32 %v4414_v49, %v4413_v21  ;;  %v4582_v63 = vrot.slane %v8062_v62, 2  ;;  %v4085_v49 = vshrl.u32 %v8124_v45, 16 }
 0x2d1   : > { %v3610_v28 = vpop.f32.mrf.mxu2 }
 0x2d2   : > { %v3650_v35 = vadd.f32 %v3610_v28, %v3475_v54  ;;  %v4067_v54 = vrot.slane %v4065_v24, 1  ;;  %v4416_v58 = vsel %vm824_vm2, %v4411_v42, %v4415_v46  ;;  %v4583_v37 = vsel %vm1000_vm3, %v4580_v2, %v4582_v63 }
 0x2d3   : > { %v3765_v25 = vpop.f32.mrf.mxu3  ;;  %v3437_v12 = vpop.f32.mrf.mxu1 }
 0x2d4   : > { %v3805_v53 = vadd.f32 %v3765_v25, %v3650_v35  ;;  %v3476_v50 = vadd.f32 %v3437_v12, %v8004_v33  ;;  %v4251_v33 = vsel %vm668_vm1, %v4248_v14, %v4250_v38  ;;  %v4068_v12 = vsel %vm372_vm0, %v4063_v17, %v4067_v54 }
 0x2d5   : > { %v3967_v47 = vpop.f32.mrf.mxu0 }
 0x2d6   : > { %v8201_v61 = vadd.f32 %v3965_v26, %v3805_v53  ;;  %v4252_v26 = vrot.slane %v8062_v62, 1  ;;  %v4073_v62 = vshll.u32 %v8093_v36, 16 }
 0x2d8   : > { %v4418_v2 = vrot.slane %v4073_v62, 2 }
 0x2d9   : > { %v3612_v6 = vpop.f32.mrf.mxu2 }
 0x2da   : > { %v3651_v41 = vadd.f32 %v3612_v6, %v3476_v50 }
 0x2db   : > { %v3767_v30 = vpop.f32.mrf.mxu3  ;;  %v3440_v40 = vpop.f32.mrf.mxu1 }
 0x2dc   : > { %v3806_v0 = vadd.f32 %v3767_v30, %v3651_v41  ;;  %v3477_v22 = vadd.f32 %v3440_v40, %v8024_v44  ;;  %v4417_v40 = vrot.slane %v4077_v56, 1 }
 0x2dd   : > { %v3970_v31 = vpop.f32.mrf.mxu0 }
 0x2de   : > { %4178 = vmatmul.bf16.gmra.mxu1 %v4060_v7  ;;  %4333 = vmatmul.bf16.gmra.mxu2 %v4251_v33  ;;  %v8210_v34 = vadd.f32 %v3967_v47, %v3806_v0  ;;  %v4071_v33 = vor.u32 %v4069_v16, %v4067_v54  ;;  %v4075_v0 = vrot.slane %v4073_v62, 1 }
 0x2e0   : > { %4508 = vmatmul.bf16.gmra.mxu3 %v4412_v59  ;;  %4663 = vmatmul.bf16.gmra.mxu0 %v4581_v43  ;;  %v4584_v59 = vrot.slane %v8093_v36, 2 }
 0x2e1   : > { %v3615_v32 = vpop.f32.mrf.mxu2 }
 0x2e2   : > { %v3652_v14 = vadd.f32 %v3615_v32, %v3477_v22  ;;  %v4254_v22 = vrot.slane %v8093_v36, 1  ;;  %v4081_v36 = vshll.u32 %v8124_v45, 16 }
 0x2e3   : > { %v3770_v10 = vpop.f32.mrf.mxu3  ;;  %v3442_v5 = vpop.f32.mrf.mxu1 }
 0x2e4   : > { %v3807_v44 = vadd.f32 %v3770_v10, %v3652_v14  ;;  %v3478_v15 = vadd.f32 %v3442_v5, %v8035_v51  ;;  %v4253_v51 = vsel %vm668_vm1, %v4250_v38, %v4252_v26  ;;  %v4076_v10 = vsel %vm372_vm0, %v4071_v33, %v4075_v0 }
 0x2e5   : > { %v3972_v8 = vpop.f32.mrf.mxu0 }
 0x2e6   : > { %v8215_v19 = vadd.f32 %v3970_v31, %v3807_v44  ;;  %v4419_v31 = vor.u32 %v4418_v2, %v4417_v40  ;;  %v4093_v40 = vshrl.u32 %v8155_v11, 16 }
 0x2e8   : > { %v4420_v16 = vsel %vm824_vm2, %v4415_v46, %v4419_v31 }
 0x2e9   : > { %v3617_v55 = vpop.f32.mrf.mxu2 }
 0x2ea   : > { %v3653_v28 = vadd.f32 %v3617_v55, %v3478_v15 }
 0x2eb   : > { %v3772_v35 = vpop.f32.mrf.mxu3  ;;  %v3445_v25 = vpop.f32.mrf.mxu1 }
 0x2ec   : > { %v3808_v53 = vadd.f32 %v3772_v35, %v3653_v28  ;;  %v3479_v50 = vadd.f32 %v3445_v25, %v8055_v4  ;;  %v4421_v35 = vrot.slane %v4085_v49, 1 }
 0x2ed   : > { %v3975_v47 = vpop.f32.mrf.mxu0 }
 0x2ee   : > { %4183 = vmatmul.bf16.gmra.mxu1 %v4068_v12  ;;  %4338 = vmatmul.bf16.gmra.mxu2 %v4253_v51  ;;  %v8224_v20 = vadd.f32 %v3972_v8, %v3808_v53  ;;  %v4585_v8 = vsel %vm1000_vm3, %v4582_v63, %v4584_v59  ;;  %v4422_v63 = vrot.slane %v4081_v36, 2  ;;  %v4079_v12 = vor.u32 %v4077_v56, %v4075_v0 }
 0x2ef   : > { %v4083_v51 = vrot.slane %v4081_v36, 1  ;;  %v4256_v53 = vrot.slane %v8124_v45, 1 }
 0x2f0   : > { %4513 = vmatmul.bf16.gmra.mxu3 %v4416_v58  ;;  %4668 = vmatmul.bf16.gmra.mxu0 %v4583_v37 }
 0x2f1   : > { %v3620_v13 = vpop.f32.mrf.mxu2 }
 0x2f2   : > { %v3654_v38 = vadd.f32 %v3620_v13, %v3479_v50  ;;  %v4423_v50 = vor.u32 %v4422_v63, %v4421_v35 }
 0x2f3   : > { %v3775_v6 = vpop.f32.mrf.mxu3  ;;  %v3447_v41 = vpop.f32.mrf.mxu1 }
 0x2f4   : > { %v3809_v4 = vadd.f32 %v3775_v6, %v3654_v38  ;;  %v3480_v30 = vadd.f32 %v3447_v41, %v8066_v9  ;;  %v4255_v9 = vsel %vm668_vm1, %v4252_v26, %v4254_v22  ;;  %v4084_v38 = vsel %vm372_vm0, %v4079_v12, %v4083_v51 }
 0x2f5   : > { %v3977_v42 = vpop.f32.mrf.mxu0  ;;  %v4424_v56 = vsel %vm824_vm2, %v4419_v31, %v4423_v50 }
 0x2f6   : > { %v8229_v7 = vadd.f32 %v3975_v47, %v3809_v4  ;;  %v4586_v47 = vrot.slane %v8124_v45, 2  ;;  %v4089_v45 = vshll.u32 %v8155_v11, 16 }
 0x2f9   : > { %v3622_v43 = vpop.f32.mrf.mxu2 }
 0x2fa   : > { %v3655_v24 = vadd.f32 %v3622_v43, %v3480_v30  ;;  %v4587_v30 = vsel %vm1000_vm3, %v4584_v59, %v4586_v47  ;;  %v4426_v59 = vrot.slane %v4089_v45, 2 }
 0x2fb   : > { %v3777_v32 = vpop.f32.mrf.mxu3  ;;  %v3450_v14 = vpop.f32.mrf.mxu1 }
 0x2fc   : > { %v3810_v5 = vadd.f32 %v3777_v32, %v3655_v24  ;;  %v3481_v44 = vadd.f32 %v3450_v14, %v8086_v52  ;;  %v4425_v24 = vrot.slane %v4093_v40, 1  ;;  %v4087_v14 = vor.u32 %v4085_v49, %v4083_v51 }
 0x2fd   : > { %v3980_v15 = vpop.f32.mrf.mxu0 }
 0x2fe   : > { %4188 = vmatmul.bf16.gmra.mxu1 %v4076_v10  ;;  %4343 = vmatmul.bf16.gmra.mxu2 %v4255_v9  ;;  %v8238_v21 = vadd.f32 %v3977_v42, %v3810_v5  ;;  %v4091_v10 = vrot.slane %v4089_v45, 1  ;;  %v4258_v9 = vrot.slane %v8155_v11, 1  ;;  %v4427_v5 = vor.u32 %v4426_v59, %v4425_v24 }
 0x300   : > { %4518 = vmatmul.bf16.gmra.mxu3 %v4420_v16  ;;  %4673 = vmatmul.bf16.gmra.mxu0 %v4585_v8  ;;  %v4428_v49 = vsel %vm824_vm2, %v4423_v50, %v4427_v5 }
 0x301   : > { %v3625_v17 = vpop.f32.mrf.mxu2 }
 0x302   : > { %v3656_v54 = vadd.f32 %v3625_v17, %v3481_v44  ;;  %v4588_v44 = vrot.slane %v8155_v11, 2  ;;  %v4092_v17 = vsel %vm372_vm0, %v4087_v14, %v4091_v10 }
 0x303   : > { %v3780_v26 = vpop.f32.mrf.mxu3  ;;  %v3452_v55 = vpop.f32.mrf.mxu1 }
 0x304   : > { %v3811_v52 = vadd.f32 %v3780_v26, %v3656_v54  ;;  %v3482_v28 = vadd.f32 %v3452_v55, %v8097_v48  ;;  %v4257_v48 = vsel %vm668_vm1, %v4254_v22, %v4256_v53 }
 0x305   : > { %v3982_v46 = vpop.f32.mrf.mxu0 }
 0x306   : > { %v8243_v25 = vadd.f32 %v3980_v15, %v3811_v52  ;;  %v4589_v52 = vsel %vm1000_vm3, %v4586_v47, %v4588_v44 }
 0x309   : > { %v3627_v58 = vpop.f32.mrf.mxu2 }
 0x30a   : > { %v3657_v37 = vadd.f32 %v3627_v58, %v3482_v28  ;;  %v4097_v28 = vshll.u32 %v8173_v23, 16 }
 0x30b   : > { %v3782_v62 = vpop.f32.mrf.mxu3  ;;  %v3455_v13 = vpop.f32.mrf.mxu1 }
 0x30c   : > { %v3812_v6 = vadd.f32 %v3782_v62, %v3657_v37  ;;  %v3483_v41 = vadd.f32 %v3455_v13, %v8117_v3  ;;  %v3842_v37 = vld [vmem:[%s7964_s7 + $0x40] sm:$0xf]  ;;  %v4095_v13 = vor.u32 %v4093_v40, %v4091_v10  ;;  %s4921_s7 = sshll.u32 %s6604_s12, 4 }
 0x30d   : > { %v3985_v4 = vpop.f32.mrf.mxu0  ;;  %p264_p6 = scmp.lt.s32.totalorder %s4921_s7, 47 }
 0x30e   : > { %4193 = vmatmul.bf16.gmra.mxu1 %v4084_v38  ;;  %4348 = vmatmul.bf16.gmra.mxu2 %v4257_v48  ;;  %v8252_v42 = vadd.f32 %v3982_v46, %v3812_v6  ;;  %v4101_v46 = vshrl.u32 %v8173_v23, 16  ;;  %v4099_v38 = vrot.slane %v4097_v28, 1  ;;  %v4260_v48 = vrot.slane %v8173_v23, 1 }
 0x30f   : > { %s8390_s7 = smov (!%p264_p6, %s4921_s7), 47 }
 0x310   : > { %4523 = vmatmul.bf16.gmra.mxu3 %v4424_v56  ;;  %4678 = vmatmul.bf16.gmra.mxu0 %v4587_v30  ;;  %v4429_v51 = vrot.slane %v4101_v46, 1  ;;  %s270_s5 = sadd.s32 %s6540_s4, %s8390_s7 }
 0x311   : > { %v3630_v2 = vpop.f32.mrf.mxu2  ;;  %s4922_s8 = sshll.u32 %s270_s5, 3 }
 0x312   : > { %v3658_v33 = vadd.f32 %v3630_v2, %v3483_v41  ;;  %v4590_v41 = vrot.slane %v8173_v23, 2  ;;  %s8311_s10 = scalar_lea.vmem %s8376_s3, %s4922_s8 }
 0x313   : > { %v3785_v0 = vpop.f32.mrf.mxu3  ;;  %v3457_v22 = vpop.f32.mrf.mxu1 }
 0x314   : > { %v3813_v3 = vadd.f32 %v3785_v0, %v3658_v33  ;;  %v3484_v43 = vadd.f32 %v3457_v22, %v8128_v57  ;;  %v4259_v57 = vsel %vm668_vm1, %v4256_v53, %v4258_v9  ;;  %v4430_v53 = vrot.slane %v4097_v28, 2 }
 0x315   : > { %v3987_v31 = vpop.f32.mrf.mxu0  ;;  %v4100_v33 = vsel %vm372_vm0, %v4095_v13, %v4099_v38 }
 0x316   : > { %v8257_v32 = vadd.f32 %v3985_v4, %v3813_v3  ;;  %v4431_v6 = vor.u32 %v4430_v53, %v4429_v51  ;;  %v4039_v4 = vunpack.c.l.b16 %v3842_v37 }
 0x318   : > { %v4432_v0 = vsel %vm824_vm2, %v4427_v5, %v4431_v6 }
 0x319   : > { %v3632_v15 = vpop.f32.mrf.mxu2 }
 0x31a   : > { %v3659_v16 = vadd.f32 %v3632_v15, %v3484_v43  ;;  %v4591_v43 = vsel %vm1000_vm3, %v4588_v44, %v4590_v41 }
 0x31b   : > { %v3787_v8 = vpop.f32.mrf.mxu3  ;;  %v3460_v36 = vpop.f32.mrf.mxu1 }
 0x31c   : > { %v3814_v54 = vadd.f32 %v3787_v8, %v3659_v16  ;;  %v3485_v26 = vadd.f32 %v3460_v36, %v8148_v39 }
 0x31d   : > { %v3990_v55 = vpop.f32.mrf.mxu0 }
 0x31e   : > { %4198 = vmatmul.bf16.gmra.mxu1 %v4092_v17  ;;  %4353 = vmatmul.bf16.gmra.mxu2 %v4259_v57  ;;  %v8266_v11 = vadd.f32 %v3987_v31, %v3814_v54  ;;  %v4040_v31 = vpack.c.b16 %v4039_v4, %v4039_v4  ;;  %v4103_v17 = vor.u32 %v4101_v46, %v4099_v38 }
 0x320   : > { %4528 = vmatmul.bf16.gmra.mxu3 %v4428_v49  ;;  %4683 = vmatmul.bf16.gmra.mxu0 %v4589_v52  ;;  %v4105_v24 = vshll.u32 %v4040_v31, 16  ;;  %v4433_v59 = vshrl.u32 %v4040_v31, 16  ;;  %v4262_v54 = vrot.slane %v4040_v31, 1 }
 0x321   : > { %v3635_v35 = vpop.f32.mrf.mxu2 }
 0x322   : > { %v3660_v63 = vadd.f32 %v3635_v35, %v3485_v26  ;;  %v4435_v8 = vrot.slane %v4433_v59, 1  ;;  %v4436_v36 = vrot.slane %v4105_v24, 2  ;;  %v4107_v57 = vrot.slane %v4105_v24, 1 }
 0x323   : > { %v3790_v12 = vpop.f32.mrf.mxu3  ;;  %v3462_v39 = vpop.f32.mrf.mxu1 }
 0x324   : > { %v3815_v50 = vadd.f32 %v3790_v12, %v3660_v63  ;;  %v3486_v47 = vadd.f32 %v3462_v39, %v8159_v27  ;;  %v4261_v27 = vsel %vm668_vm1, %v4258_v9, %v4260_v48  ;;  %v4437_v26 = vor.u32 %v4436_v36, %v4435_v8 }
 0x325   : > { %v3992_v58 = vpop.f32.mrf.mxu0  ;;  %v4108_v63 = vsel %vm372_vm0, %v4103_v17, %v4107_v57  ;;  %v4263_v12 = vsel %vm668_vm1, %v4260_v48, %v4262_v54 }
 0x326   : > { %v8272_v62 = vadd.f32 %v3990_v55, %v3815_v50  ;;  %v4592_v55 = vrot.slane %v4040_v31, 2  ;;  %v4438_v53 = vsel %vm824_vm2, %v4431_v6, %v4437_v26 }
 0x328   : > { %v4593_v46 = vsel %vm1000_vm3, %v4590_v41, %v4592_v55 }
 0x329   : > { %v3637_v56 = vpop.f32.mrf.mxu2 }
 0x32a   : > { %v3661_v30 = vadd.f32 %v3637_v56, %v3486_v47 }
 0x32b   : > { %v3792_v45 = vpop.f32.mrf.mxu3  ;;  %v3465_v2 = vpop.f32.mrf.mxu1 }
 0x32c   : > { %v3816_v22 = vadd.f32 %v3792_v45, %v3661_v30  ;;  %v3487_v40 = vadd.f32 %v3465_v2, %v8166_v60 }
 0x32d   : > { %v3995_v3 = vpop.f32.mrf.mxu0 }
 0x32e   : > { %4203 = vmatmul.bf16.gmra.mxu1 %v4100_v33  ;;  %4358 = vmatmul.bf16.gmra.mxu2 %v4261_v27  ;;  %v8281_v23 = vadd.f32 %v3992_v58, %v3816_v22 }
 0x330   : > { %4533 = vmatmul.bf16.gmra.mxu3 %v4432_v0  ;;  %4688 = vmatmul.bf16.gmra.mxu0 %v4591_v43  ;;  %v8304_v43 = vld [vmem:[%s8375_s2] ss:$0 sm:$0xff] }
 0x331   : > { %v3640_v14 = vpop.f32.mrf.mxu2 }
 0x332   : > { %v3662_v10 = vadd.f32 %v3640_v14, %v3487_v40 }
 0x333   : > { %v3795_v9 = vpop.f32.mrf.mxu3  ;;  %v3467_v15 = vpop.f32.mrf.mxu1 }
 0x334   : > { %v3817_v5 = vadd.f32 %v3795_v9, %v3662_v10  ;;  %v3488_v16 = vadd.f32 %v3467_v15, %v8177_v18 }
 0x335   : > { %v3997_v60 = vpop.f32.mrf.mxu0 }
 0x336   : > { %v8284_v44 = vadd.f32 %v3995_v3, %v3817_v5 }
 0x339   : > { %v3642_v49 = vpop.f32.mrf.mxu2 }
 0x33a   : > { %v3663_v52 = vadd.f32 %v3642_v49, %v3488_v16 }
 0x33b   : > { %v3797_v28 = vpop.f32.mrf.mxu3  ;;  %v3470_v35 = vpop.f32.mrf.mxu1 }
 0x33c   : > { %v3818_v39 = vadd.f32 %v3797_v28, %v3663_v52  ;;  %v3489_v18 = vadd.f32 %v3470_v35, %v8185_v29 }
 0x33d   : > { %v4000_v51 = vpop.f32.mrf.mxu0 }
 0x33e   : > { %4208 = vmatmul.bf16.gmra.mxu1 %v4108_v63  ;;  %4363 = vmatmul.bf16.gmra.mxu2 %v4263_v12  ;;  %v8291_v50 = vadd.f32 %v3997_v60, %v3818_v39 }
 0x340   : > { %4538 = vmatmul.bf16.gmra.mxu3 %v4438_v53  ;;  %4693 = vmatmul.bf16.gmra.mxu0 %v4593_v46 }
 0x341   : > { %v3645_v47 = vpop.f32.mrf.mxu2 }
 0x342   : > { %v3664_v58 = vadd.f32 %v3645_v47, %v3489_v18 }
 0x343   : > { %v3800_v37 = vpop.f32.mrf.mxu3  ;;  %v3472_v13 = vpop.f32.mrf.mxu1 }
 0x344   : > { %v3819_v38 = vadd.f32 %v3800_v37, %v3664_v58  ;;  %v3490_v29 = vadd.f32 %v3472_v13, %v8196_v1 }
 0x345   : > { %v4002_v48 = vpop.f32.mrf.mxu0 }
 0x346   : > { %v8294_v4 = vadd.f32 %v4000_v51, %v3819_v38 }
 0x349   : > { %v3647_v6 = vpop.f32.mrf.mxu2 }
 0x34a   : > { %v3665_v41 = vadd.f32 %v3647_v6, %v3490_v29 }
 0x34b   : > { %v3802_v56 = vpop.f32.mrf.mxu3  ;;  %v4174_v30 = vpop.f32.mrf.mxu1 }
 0x34c   : > { %v3820_v45 = vadd.f32 %v3802_v56, %v3665_v41  ;;  %v4214_v27 = vadd.f32 %v4174_v30, %v8201_v61 }
 0x34d   : > { %v4659_v2 = vpop.f32.mrf.mxu0 }
 0x34e   : > { %v8298_v33 = vadd.f32 %v4002_v48, %v3820_v45 }
 0x351   : > { %v4329_v0 = vpop.f32.mrf.mxu2 }
 0x352   : > { %v4369_v22 = vadd.f32 %v4329_v0, %v4214_v27 }
 0x353   : > { %v4504_v1 = vpop.f32.mrf.mxu3  ;;  %v4176_v40 = vpop.f32.mrf.mxu1 }
 0x354   : > { %v4544_v3 = vadd.f32 %v4504_v1, %v4369_v22  ;;  %v4215_v14 = vadd.f32 %v4176_v40, %v8210_v34 }
 0x355   : > { %v4661_v31 = vpop.f32.mrf.mxu0 }
 0x356   : > { %v4699_v24 = vadd.f32 %v4659_v2, %v4544_v3 }
 0x358   : > { %v4719_v59 = vadd.f32 %v8304_v43, %v4699_v24 }
 0x359   : > { %v4331_v61 = vpop.f32.mrf.mxu2 }
 0x35a   : > { %v4735_v10 = vmax.f32 %v4719_v59, 0.0  ;;  %v4370_v9 = vadd.f32 %v4331_v61, %v4215_v14 }
 0x35b   : > { %v4506_v15 = vpop.f32.mrf.mxu3  ;;  %v4179_v5 = vpop.f32.mrf.mxu1 }
 0x35c   : > { %4751 = vst [vmem:[%s8311_s10] sm:$0xff] %v4735_v10  ;;  %v4545_v16 = vadd.f32 %v4506_v15, %v4370_v9  ;;  %v4216_v34 = vadd.f32 %v4179_v5, %v8215_v19 }
 0x35d   : > { %v4664_v60 = vpop.f32.mrf.mxu0 }
 0x35e   : > { %v4700_v8 = vadd.f32 %v4661_v31, %v4545_v16 }
 0x360   : > { %v4720_v36 = vadd.f32 %v8304_v43, %v4700_v8 }
 0x361   : > { %v4334_v17 = vpop.f32.mrf.mxu2 }
 0x362   : > { %v4736_v57 = vmax.f32 %v4720_v36, 0.0  ;;  %v4371_v54 = vadd.f32 %v4334_v17, %v4216_v34 }
 0x363   : > { %v4509_v26 = vpop.f32.mrf.mxu3  ;;  %v4181_v55 = vpop.f32.mrf.mxu1 }
 0x364   : > { %4752 = vst [vmem:[%s8311_s10 + $0x8] sm:$0xff] %v4736_v57  ;;  %v4546_v49 = vadd.f32 %v4509_v26, %v4371_v54  ;;  %v4217_v63 = vadd.f32 %v4181_v55, %v8224_v20 }
 0x365   : > { %v4666_v52 = vpop.f32.mrf.mxu0 }
 0x366   : > { %v4701_v28 = vadd.f32 %v4664_v60, %v4546_v49 }
 0x368   : > { %v4721_v35 = vadd.f32 %v8304_v43, %v4701_v28 }
 0x369   : > { %v4336_v12 = vpop.f32.mrf.mxu2 }
 0x36a   : > { %v4737_v39 = vmax.f32 %v4721_v35, 0.0  ;;  %v4372_v18 = vadd.f32 %v4336_v12, %v4217_v63 }
 0x36b   : > { %v4511_v51 = vpop.f32.mrf.mxu3  ;;  %v4184_v19 = vpop.f32.mrf.mxu1 }
 0x36c   : > { %4753 = vst [vmem:[%s8311_s10 + $0x10] sm:$0xff] %v4737_v39  ;;  %v4547_v53 = vadd.f32 %v4511_v51, %v4372_v18  ;;  %v4218_v37 = vadd.f32 %v4184_v19, %v8229_v7 }
 0x36d   : > { %v4669_v46 = vpop.f32.mrf.mxu0 }
 0x36e   : > { %v4702_v47 = vadd.f32 %v4666_v52, %v4547_v53 }
 0x370   : > { %v4722_v58 = vadd.f32 %v8304_v43, %v4702_v47 }
 0x371   : > { %v4339_v13 = vpop.f32.mrf.mxu2 }
 0x372   : > { %v4738_v38 = vmax.f32 %v4722_v58, 0.0  ;;  %v4373_v29 = vadd.f32 %v4339_v13, %v4218_v37 }
 0x373   : > { %v4514_v48 = vpop.f32.mrf.mxu3  ;;  %v4186_v20 = vpop.f32.mrf.mxu1 }
 0x374   : > { %4754 = vst [vmem:[%s8311_s10 + $0x18] sm:$0xff] %v4738_v38  ;;  %v4548_v6 = vadd.f32 %v4514_v48, %v4373_v29  ;;  %v4219_v45 = vadd.f32 %v4186_v20, %v8238_v21 }
 0x375   : > { %v4671_v41 = vpop.f32.mrf.mxu0 }
 0x376   : > { %v4703_v56 = vadd.f32 %v4669_v46, %v4548_v6 }
 0x378   : > { %v4723_v30 = vadd.f32 %v8304_v43, %v4703_v56 }
 0x379   : > { %v4341_v2 = vpop.f32.mrf.mxu2 }
 0x37a   : > { %v4739_v27 = vmax.f32 %v4723_v30, 0.0  ;;  %v4374_v0 = vadd.f32 %v4341_v2, %v4219_v45 }
 0x37b   : > { %v4516_v22 = vpop.f32.mrf.mxu3  ;;  %v4189_v7 = vpop.f32.mrf.mxu1 }
 0x37c   : > { %4755 = vst [vmem:[%s8311_s10 + $0x20] sm:$0xff] %v4739_v27  ;;  %v4549_v1 = vadd.f32 %v4516_v22, %v4374_v0  ;;  %v4220_v24 = vadd.f32 %v4189_v7, %v8243_v25 }
 0x37d   : > { %v4674_v40 = vpop.f32.mrf.mxu0 }
 0x37e   : > { %v4704_v3 = vadd.f32 %v4671_v41, %v4549_v1 }
 0x380   : > { %v4724_v31 = vadd.f32 %v8304_v43, %v4704_v3 }
 0x381   : > { %v4344_v59 = vpop.f32.mrf.mxu2 }
 0x382   : > { %v4740_v14 = vmax.f32 %v4724_v31, 0.0  ;;  %v4375_v61 = vadd.f32 %v4344_v59, %v4220_v24 }
 0x383   : > { %v4519_v10 = vpop.f32.mrf.mxu3  ;;  %v4191_v21 = vpop.f32.mrf.mxu1 }
 0x384   : > { %4756 = vst [vmem:[%s8311_s10 + $0x28] sm:$0xff] %v4740_v14  ;;  %v4550_v9 = vadd.f32 %v4519_v10, %v4375_v61  ;;  %v4221_v60 = vadd.f32 %v4191_v21, %v8252_v42 }
 0x385   : > { %v4676_v15 = vpop.f32.mrf.mxu0 }
 0x386   : > { %v4705_v5 = vadd.f32 %v4674_v40, %v4550_v9 }
 0x388   : > { %v4725_v16 = vadd.f32 %v8304_v43, %v4705_v5 }
 0x389   : > { %v4346_v8 = vpop.f32.mrf.mxu2 }
 0x38a   : > { %v4741_v36 = vmax.f32 %v4725_v16, 0.0  ;;  %v4376_v34 = vadd.f32 %v4346_v8, %v4221_v60 }
 0x38b   : > { %v4521_v17 = vpop.f32.mrf.mxu3  ;;  %v4194_v25 = vpop.f32.mrf.mxu1 }
 0x38c   : > { %4757 = vst [vmem:[%s8311_s10 + $0x30] sm:$0xff] %v4741_v36  ;;  %v4551_v57 = vadd.f32 %v4521_v17, %v4376_v34  ;;  %v4222_v49 = vadd.f32 %v4194_v25, %v8257_v32 }
 0x38d   : > { %v4679_v54 = vpop.f32.mrf.mxu0 }
 0x38e   : > { %v4706_v26 = vadd.f32 %v4676_v15, %v4551_v57 }
 0x390   : > { %v4726_v55 = vadd.f32 %v8304_v43, %v4706_v26 }
 0x391   : > { %v4349_v52 = vpop.f32.mrf.mxu2 }
 0x392   : > { %v4742_v28 = vmax.f32 %v4726_v55, 0.0  ;;  %v4377_v35 = vadd.f32 %v4349_v52, %v4222_v49 }
 0x393   : > { %v4524_v63 = vpop.f32.mrf.mxu3  ;;  %v4196_v42 = vpop.f32.mrf.mxu1 }
 0x394   : > { %4758 = vst [vmem:[%s8311_s10 + $0x38] sm:$0xff] %v4742_v28  ;;  %v4552_v12 = vadd.f32 %v4524_v63, %v4377_v35  ;;  %v4223_v19 = vadd.f32 %v4196_v42, %v8266_v11 }
 0x395   : > { %v4681_v39 = vpop.f32.mrf.mxu0 }
 0x396   : > { %v4707_v18 = vadd.f32 %v4679_v54, %v4552_v12 }
 0x398   : > { %v4727_v51 = vadd.f32 %v8304_v43, %v4707_v18 }
 0x399   : > { %v4351_v53 = vpop.f32.mrf.mxu2 }
 0x39a   : > { %v4743_v46 = vmax.f32 %v4727_v51, 0.0  ;;  %v4378_v47 = vadd.f32 %v4351_v53, %v4223_v19 }
 0x39b   : > { %v4526_v58 = vpop.f32.mrf.mxu3  ;;  %v4199_v32 = vpop.f32.mrf.mxu1 }
 0x39c   : > { %4759 = vst [vmem:[%s8311_s10 + $0x40] sm:$0xff] %v4743_v46  ;;  %v4553_v37 = vadd.f32 %v4526_v58, %v4378_v47  ;;  %v4224_v48 = vadd.f32 %v4199_v32, %v8272_v62 }
 0x39d   : > { %v4684_v13 = vpop.f32.mrf.mxu0 }
 0x39e   : > { %v4708_v38 = vadd.f32 %v4681_v39, %v4553_v37 }
 0x3a0   : > { %v4728_v29 = vadd.f32 %v8304_v43, %v4708_v38 }
 0x3a1   : > { %v4354_v20 = vpop.f32.mrf.mxu2 }
 0x3a2   : > { %v4744_v6 = vmax.f32 %v4728_v29, 0.0  ;;  %v4379_v41 = vadd.f32 %v4354_v20, %v4224_v48 }
 0x3a3   : > { %v4529_v56 = vpop.f32.mrf.mxu3  ;;  %v4201_v11 = vpop.f32.mrf.mxu1 }
 0x3a4   : > { %4760 = vst [vmem:[%s8311_s10 + $0x48] sm:$0xff] %v4744_v6  ;;  %v4554_v30 = vadd.f32 %v4529_v56, %v4379_v41  ;;  %v4225_v0 = vadd.f32 %v4201_v11, %v8281_v23 }
 0x3a5   : > { %v4686_v45 = vpop.f32.mrf.mxu0 }
 0x3a6   : > { %v4709_v2 = vadd.f32 %v4684_v13, %v4554_v30 }
 0x3a8   : > { %v4729_v27 = vadd.f32 %v8304_v43, %v4709_v2 }
 0x3a9   : > { %v4356_v22 = vpop.f32.mrf.mxu2 }
 0x3aa   : > { %v4745_v7 = vmax.f32 %v4729_v27, 0.0  ;;  %v4380_v1 = vadd.f32 %v4356_v22, %v4225_v0 }
 0x3ab   : > { %v4531_v40 = vpop.f32.mrf.mxu3  ;;  %v4204_v62 = vpop.f32.mrf.mxu1 }
 0x3ac   : > { %4761 = vst [vmem:[%s8311_s10 + $0x50] sm:$0xff] %v4745_v7  ;;  %v4555_v3 = vadd.f32 %v4531_v40, %v4380_v1  ;;  %v4226_v14 = vadd.f32 %v4204_v62, %v8284_v44 }
 0x3ad   : > { %v4689_v24 = vpop.f32.mrf.mxu0 }
 0x3ae   : > { %v4710_v31 = vadd.f32 %v4686_v45, %v4555_v3 }
 0x3b0   : > { %v4730_v59 = vadd.f32 %v8304_v43, %v4710_v31 }
 0x3b1   : > { %v4359_v61 = vpop.f32.mrf.mxu2 }
 0x3b2   : > { %v4746_v10 = vmax.f32 %v4730_v59, 0.0  ;;  %v4381_v21 = vadd.f32 %v4359_v61, %v4226_v14 }
 0x3b3   : > { %v4534_v9 = vpop.f32.mrf.mxu3  ;;  %v4206_v23 = vpop.f32.mrf.mxu1 }
 0x3b4   : > { %4762 = vst [vmem:[%s8311_s10 + $0x58] sm:$0xff] %v4746_v10  ;;  %v4556_v15 = vadd.f32 %v4534_v9, %v4381_v21  ;;  %v4227_v60 = vadd.f32 %v4206_v23, %v8291_v50 }
 0x3b5   : > { %v4691_v8 = vpop.f32.mrf.mxu0 }
 0x3b6   : > { %v4711_v5 = vadd.f32 %v4689_v24, %v4556_v15 }
 0x3b8   : > { %v4731_v16 = vadd.f32 %v8304_v43, %v4711_v5 }
 0x3b9   : > { %v4361_v36 = vpop.f32.mrf.mxu2 }
 0x3ba   : > { %v4747_v34 = vmax.f32 %v4731_v16, 0.0  ;;  %v4382_v17 = vadd.f32 %v4361_v36, %v4227_v60 }
 0x3bb   : > { %v4536_v25 = vpop.f32.mrf.mxu3  ;;  %v4209_v44 = vpop.f32.mrf.mxu1 }
 0x3bc   : > { %4763 = vst [vmem:[%s8311_s10 + $0x60] sm:$0xff] %v4747_v34  ;;  %v4557_v57 = vadd.f32 %v4536_v25, %v4382_v17  ;;  %v4228_v55 = vadd.f32 %v4209_v44, %v8294_v4 }
 0x3bd   : > { %v4694_v50 = vpop.f32.mrf.mxu0 }
 0x3be   : > { %v4712_v54 = vadd.f32 %v4691_v8, %v4557_v57 }
 0x3c0   : > { %v4732_v26 = vadd.f32 %v8304_v43, %v4712_v54 }
 0x3c1   : > { %v4364_v49 = vpop.f32.mrf.mxu2 }
 0x3c2   : > { %v4748_v52 = vmax.f32 %v4732_v26, 0.0  ;;  %v4383_v28 = vadd.f32 %v4364_v49, %v4228_v55 }
 0x3c3   : > { %v4539_v35 = vpop.f32.mrf.mxu3  ;;  %v4211_v42 = vpop.f32.mrf.mxu1 }
 0x3c4   : > { %4764 = vst [vmem:[%s8311_s10 + $0x68] sm:$0xff] %v4748_v52  ;;  %v4558_v63 = vadd.f32 %v4539_v35, %v4383_v28  ;;  %v4229_v18 = vadd.f32 %v4211_v42, %v8298_v33 }
 0x3c5   : > { %v4696_v47 = vpop.f32.mrf.mxu0 }
 0x3c6   : > { %v4713_v12 = vadd.f32 %v4694_v50, %v4558_v63 }
 0x3c8   : > { %v4733_v39 = vadd.f32 %v8304_v43, %v4713_v12 }
 0x3c9   : > { %v4366_v51 = vpop.f32.mrf.mxu2 }
 0x3ca   : > { %v4749_v19 = vmax.f32 %v4733_v39, 0.0  ;;  %v4384_v53 = vadd.f32 %v4366_v51, %v4229_v18 }
 0x3cb   : > { %v4541_v46 = vpop.f32.mrf.mxu3 }
 0x3cc   : > { %4765 = vst [vmem:[%s8311_s10 + $0x70] sm:$0xff] %v4749_v19  ;;  %v4559_v4 = vadd.f32 %v4541_v46, %v4384_v53 }
 0x3ce   : > { %v4714_v58 = vadd.f32 %v4696_v47, %v4559_v4 }
 0x3d0   : > { %v4734_v32 = vadd.f32 %v8304_v43, %v4714_v58 }
 0x3d2   : > { %v4750_v37 = vmax.f32 %v4734_v32, 0.0 }
 0x3d4   : > { %4766 = vst [vmem:[%s8311_s10 + $0x78] sm:$0xff] %v4750_v37 }
 0x3d5 PF: > { %s13_s16 = sadd.s32 1, %s6620_s16   ;;  %s8377_s12 = smov %s6612_s14 }
 0x3d6   : > { %p10_p7 = scmp.ge.s32.totalorder %s13_s16, 8   ;;  %s8378_s13 = smov %s6616_s15 }
 0x3d7   : > { %s8379_s14 = smov %s8382_s17  ;;  %s8380_s15 = smov %s8386_s18 }
 0x3d8   :  { %12 = sbr.rel (!%p10_p7) target bundleno = 3 (0x3), region = 97 }

</bundles_post_ra>
